<compile_context>
chip_gen: v7x
topology: tpu7x:2x2x1
jax: 0.10.0
libtpu: 0.0.40
codegen_flags: <defaults>
</compile_context>

<pallas_src>
import functools

import numpy as np
import jax
import jax.numpy as jnp
from jax import lax
from jax.experimental import pallas as pl
from jax.experimental.pallas import tpu as pltpu

_BN_EPS = 1e-5


def _compiler_params(est_block_bytes):
    """'parallel' batch axis (v7x megacore) + a VMEM limit derived from the actual per-step
    footprint, capped at 3/4 of physical per-core VMEM (~48 MiB on v7x, plenty of headroom
    on v5e/v6e's 128 MiB)."""
    try:
        cap = int(pltpu.get_tpu_info().vmem_capacity_bytes)
    except Exception:
        cap = 64 * 1024 * 1024  # conservative default = v7x per-core VMEM
    limit = int(min((cap * 3) // 4, max(32 * 1024 * 1024, 4 * est_block_bytes)))
    return pltpu.CompilerParams(dimension_semantics=("parallel",),
                                vmem_limit_bytes=limit)


# -----------------------------------------------------------------------------
# Conv pass: (optional fused BN-apply + ReLU of the previous layer) + 3x3 conv +
# per-image BN partial statistics of THIS layer's raw output.
# -----------------------------------------------------------------------------
def _conv_body(a_ref, w_ref, scale_ref, shift_ref, z_ref, ps_ref, pad_ref, *,
               apply_input_bn):
    _, H, W, Cin = a_ref.shape
    Cout = w_ref.shape[-1]
    P = H * W
    prec = lax.Precision.HIGHEST  # f32 parity with the reference (see TODO in header)

    # Zero only the 1-pixel border of the padded scratch; the interior is fully
    # overwritten below before every read.  Re-done every step because with a
    # 'parallel' grid each core owns its own scratch instance.
    pad_ref[:, 0:1, :, :] = jnp.zeros((1, 1, W + 2, Cin), jnp.float32)
    pad_ref[:, H + 1:H + 2, :, :] = jnp.zeros((1, 1, W + 2, Cin), jnp.float32)
    pad_ref[:, :, 0:1, :] = jnp.zeros((1, H + 2, 1, Cin), jnp.float32)
    pad_ref[:, :, W + 1:W + 2, :] = jnp.zeros((1, H + 2, 1, Cin), jnp.float32)

    a = a_ref[...]                                            # (1, H, W, Cin)
    if apply_input_bn:
        # Fused BN-apply + ReLU of the previous layer (scale/shift from its stats pass).
        a = jnp.maximum(a * scale_ref[...] + shift_ref[...], 0.0)
    pad_ref[:, 1:H + 1, 1:W + 1, :] = a

    # 3x3 conv as 9 accumulated MXU matmuls over shifted views of the padded scratch:
    # no 9x im2col materialization and no lane-misaligned concat.  (Conv bias omitted on
    # purpose: it cancels exactly against the training-mode BN batch-mean subtraction.)
    wfull = w_ref[...]                                        # (3, 3, Cin, Cout)
    acc = jnp.zeros((P, Cout), jnp.float32)
    for ky in range(3):
        for kx in range(3):
            patch = pad_ref[:, ky:ky + H, kx:kx + W, :].reshape(P, Cin)
            acc = acc + jnp.dot(patch, wfull[ky, kx], precision=prec,
                                preferred_element_type=jnp.float32)

    z_ref[...] = acc.reshape(1, H, W, Cout)

    # Per-image BN partial sums via MXU row-reductions (keeps the cross-sublane reduce off
    # the VPU/XLU).  The tiny cross-batch reduction happens in the wrapper, so the batch
    # grid axis can stay 'parallel'.
    ones = jnp.ones((1, P), jnp.float32)
    s1 = jnp.dot(ones, acc, precision=prec, preferred_element_type=jnp.float32)
    s2 = jnp.dot(ones, acc * acc, precision=prec, preferred_element_type=jnp.float32)
    ps_ref[...] = jnp.concatenate([s1, s2], axis=0)[None]     # (1, 2, Cout)


def _conv_pass(a_nhwc, w_hwio, scale, shift, *, apply_input_bn):
    N, H, W, Cin = a_nhwc.shape
    Cout = w_hwio.shape[-1]
    kernel = functools.partial(_conv_body, apply_input_bn=apply_input_bn)
    est = 4 * (H * W * Cin + (H + 2) * (W + 2) * Cin + 2 * H * W * Cout
               + 9 * Cin * Cout + 4 * Cout)
    z, ps = pl.pallas_call(
        kernel,
        grid=(N,),
        in_specs=[
            pl.BlockSpec((1, H, W, Cin), lambda n: (n, 0, 0, 0)),
            pl.BlockSpec((3, 3, Cin, Cout), lambda n: (0, 0, 0, 0)),
            pl.BlockSpec((1, Cin), lambda n: (0, 0)),
            pl.BlockSpec((1, Cin), lambda n: (0, 0)),
        ],
        out_specs=(
            pl.BlockSpec((1, H, W, Cout), lambda n: (n, 0, 0, 0)),
            pl.BlockSpec((1, 2, Cout), lambda n: (n, 0, 0)),
        ),
        out_shape=(jax.ShapeDtypeStruct((N, H, W, Cout), jnp.float32),
                   jax.ShapeDtypeStruct((N, 2, Cout), jnp.float32)),
        scratch_shapes=[pltpu.VMEM((1, H + 2, W + 2, Cin), jnp.float32)],
        compiler_params=_compiler_params(est),
    )(a_nhwc, w_hwio, scale, shift)
    return z, ps


# -----------------------------------------------------------------------------
# Pool pass: BN3-apply + ReLU + MaxPool2d(2, 2, return_indices=True).
# -----------------------------------------------------------------------------
def _pool_body(z_ref, scale_ref, shift_ref, pooled_ref, idx_ref):
    _, H, W, C = z_ref.shape
    Hh, Wh = H // 2, W // 2

    # BN3-apply + ReLU (scale/shift precomputed from the conv3 stats pass).
    y = jnp.maximum(z_ref[...] * scale_ref[...] + shift_ref[...], 0.0).reshape(H, W, C)

    # Exact 2x2 argmax decided with elementwise compares in PyTorch window order BEFORE
    # any matmul, so the pooling indices stay bit-exact; only the compaction of the winning
    # value / candidate id goes through the MXU.
    y_sh = jnp.concatenate([y[:, 1:, :], y[:, :1, :]], axis=1)   # value at column w + 1
    t = y.reshape(Hh, 2, W, C)            # H split over a major dim: layout-free
    t_sh = y_sh.reshape(Hh, 2, W, C)
    # window order: (2i,2j), (2i,2j+1), (2i+1,2j), (2i+1,2j+1)  [valid at even w]
    cands = (t[:, 0], t_sh[:, 0], t[:, 1], t_sh[:, 1])

    best = cands[0]
    kbest = jnp.zeros_like(best)          # winning candidate id 0..3, as f32
    for k, c in enumerate(cands[1:], start=1):
        better = c > best                 # strict '>': first max in window order wins ties
        kbest = jnp.where(better, jnp.float32(k), kbest)
        best = jnp.where(better, c, best)

    # Even-W compaction via a 0/1 selection matmul contracting W on the LHS so C stays on
    # the lane axis (no minor-dim transpose; lane-dense vregs for production C >= 128).
    # Precision.HIGH suffices: the selection matrix and candidate ids are bf16-exact and
    # the pooled values only need ~f32 accuracy (argmax was already decided above).
    w_ids = lax.broadcasted_iota(jnp.int32, (Wh, W), 1)
    v2 = 2 * lax.broadcasted_iota(jnp.int32, (Wh, W), 0)
    s_even = jnp.broadcast_to(((w_ids == v2).astype(jnp.float32))[None], (Hh, Wh, W))

    def compact(arr):
        return jnp.einsum("hvw,hwc->hvc", s_even, arr,
                          precision=lax.Precision.HIGH,
                          preferred_element_type=jnp.float32)

    pooled = compact(best)                                # (Hh, Wh, C)
    ksel = (compact(kbest) + 0.5).astype(jnp.int32)       # small ints -> exact

    i_ids = lax.broadcasted_iota(jnp.int32, (Hh, Wh, C), 0)
    j_ids = lax.broadcasted_iota(jnp.int32, (Hh, Wh, C), 1)
    off = (ksel & 1) + (ksel >> 1) * W                    # 0, 1, W, W+1 in window order
    idx = 2 * i_ids * W + 2 * j_ids + off                 # PyTorch flat h*W + w per (n, c)

    pooled_ref[...] = pooled.reshape(1, Hh, Wh, C)
    idx_ref[...] = idx.reshape(1, Hh, Wh, C)


def _pool_pass(z_nhwc, scale, shift):
    N, H, W, C = z_nhwc.shape
    Hh, Wh = H // 2, W // 2
    est = 4 * (6 * H * W * C + 4 * Hh * Wh * C)
    pooled, idx = pl.pallas_call(
        _pool_body,
        grid=(N,),
        in_specs=[
            pl.BlockSpec((1, H, W, C), lambda n: (n, 0, 0, 0)),
            pl.BlockSpec((1, C), lambda n: (0, 0)),
            pl.BlockSpec((1, C), lambda n: (0, 0)),
        ],
        out_specs=(
            pl.BlockSpec((1, Hh, Wh, C), lambda n: (n, 0, 0, 0)),
            pl.BlockSpec((1, Hh, Wh, C), lambda n: (n, 0, 0, 0)),
        ),
        out_shape=(jax.ShapeDtypeStruct((N, Hh, Wh, C), jnp.float32),
                   jax.ShapeDtypeStruct((N, Hh, Wh, C), jnp.int32)),
        compiler_params=_compiler_params(est),
    )(z_nhwc, scale, shift)
    return pooled, idx


def _bn_scale_shift(ps, gamma, beta, count):
    # Training-mode BatchNorm folded to one scale/shift per channel (biased variance, like
    # PyTorch's normalization path).  Single-pass E[x^2] - E[x]^2 in f32 with clamping.
    # TODO(synk): switch to Welford / two-pass merging if activation means grow large.
    s1 = jnp.sum(ps[:, 0, :], axis=0)
    s2 = jnp.sum(ps[:, 1, :], axis=0)
    mean = s1 / count
    var = jnp.maximum(s2 / count - mean * mean, 0.0)
    scale = gamma.astype(jnp.float32) * lax.rsqrt(var + _BN_EPS)
    shift = beta.astype(jnp.float32) - mean * scale
    return scale.reshape(1, -1), shift.reshape(1, -1)


def segnet_down3(x_nchw, params):
    (w1, b1, g1, be1), (w2, b2, g2, be2), (w3, b3, g3, be3) = params
    del b1, b2, b3  # conv bias cancels against training-mode BN mean subtraction
    N, C_in, H, W = x_nchw.shape
    assert H % 2 == 0 and W % 2 == 0
    C_out = w1.shape[0]
    count = float(N * H * W)

    def prep_w(w):  # OIHW (O, I, 3, 3) -> HWIO (3, 3, I, O)
        return jnp.transpose(w, (2, 3, 1, 0)).astype(jnp.float32)

    x_nhwc = jnp.transpose(x_nchw, (0, 2, 3, 1)).astype(jnp.float32)
    one_in = jnp.ones((1, C_in), jnp.float32)
    zero_in = jnp.zeros((1, C_in), jnp.float32)

    # Layer 1: conv + stats (no BN/ReLU on the raw network input).
    z1, ps1 = _conv_pass(x_nhwc, prep_w(w1), one_in, zero_in, apply_input_bn=False)
    sc1, sh1 = _bn_scale_shift(ps1, g1, be1, count)
    # Layer 2: BN1-apply + ReLU fused with conv2 + stats.
    z2, ps2 = _conv_pass(z1, prep_w(w2), sc1, sh1, apply_input_bn=True)
    sc2, sh2 = _bn_scale_shift(ps2, g2, be2, count)
    # Layer 3: BN2-apply + ReLU fused with conv3 + stats.
    z3, ps3 = _conv_pass(z2, prep_w(w3), sc2, sh2, apply_input_bn=True)
    sc3, sh3 = _bn_scale_shift(ps3, g3, be3, count)
    # BN3-apply + ReLU + 2x2 max-pool with indices (lane-dense NHWC outputs).
    pooled_nhwc, idx_nhwc = _pool_pass(z3, sc3, sh3)

    pooled = jnp.transpose(pooled_nhwc, (0, 3, 1, 2))  # (N, Hh, Wh, C) -> NCHW
    idx = jnp.transpose(idx_nhwc, (0, 3, 1, 2))
    unpooled_shape = (N, C_out, H, W)                  # outputs.size() before pooling
    return pooled, idx, unpooled_shape


def init_params(key, in_channels, out_channels):
    def layer(k, cin):
        k1, k2, k3, k4 = jax.random.split(k, 4)
        w = 0.2 * jax.random.normal(k1, (out_channels, cin, 3, 3), jnp.float32)  # OIHW
        b = 0.1 * jax.random.normal(k2, (out_channels,), jnp.float32)            # conv bias
        g = 1.0 + 0.1 * jax.random.normal(k3, (out_channels,), jnp.float32)      # BN gamma
        be = 0.1 * jax.random.normal(k4, (out_channels,), jnp.float32)           # BN beta
        return (w, b, g, be)
    k1, k2, k3 = jax.random.split(key, 3)
    return (layer(k1, in_channels), layer(k2, out_channels), layer(k3, out_channels))


def reference_forward(x, params):
    """Pure-JAX (XLA) reference matching the PyTorch forward (incl. conv bias)."""
    def cbr(x, p):
        w, b, g, be = p
        y = lax.conv_general_dilated(x, w, window_strides=(1, 1),
                                     padding=((1, 1), (1, 1)),
                                     dimension_numbers=('NCHW', 'OIHW', 'NCHW'),
                                     precision=lax.Precision.HIGHEST)
        y = y + b[None, :, None, None]
        mean = jnp.mean(y, axis=(0, 2, 3), keepdims=True)
        var = jnp.mean(jnp.square(y - mean), axis=(0, 2, 3), keepdims=True)
        y = (y - mean) / jnp.sqrt(var + _BN_EPS)
        y = y * g[None, :, None, None] + be[None, :, None, None]
        return jnp.maximum(y, 0.0)

    y = x
    for p in params:
        y = cbr(y, p)
    N, C, H, W = y.shape
    yr = y.reshape(N, C, H // 2, 2, W // 2, 2)
    cands = [yr[:, :, :, 0, :, 0], yr[:, :, :, 0, :, 1],
             yr[:, :, :, 1, :, 0], yr[:, :, :, 1, :, 1]]
    ii = jnp.arange(H // 2, dtype=jnp.int32)[None, None, :, None]
    jj = jnp.arange(W // 2, dtype=jnp.int32)[None, None, None, :]
    base = 2 * ii * W + 2 * jj
    offsets = (0, 1, W, W + 1)
    best = cands[0]
    best_idx = jnp.broadcast_to(base, best.shape) + offsets[0]
    for c, off in zip(cands[1:], offsets[1:]):
        better = c > best
        best_idx = jnp.where(better, base + off, best_idx)
        best = jnp.where(better, c, best)
    return best, best_idx, (N, C, H, W)


if __name__ == "__main__":
    N, C_in, C_out, H, W = 2, 4, 8, 16, 16
    key = jax.random.PRNGKey(0)
    kx, kp = jax.random.split(key)
    x = jax.random.normal(kx, (N, C_in, H, W), jnp.float32)
    params = init_params(kp, C_in, C_out)

    pooled, idx, unpooled_shape = segnet_down3(x, params)
    pooled, idx = jax.block_until_ready((pooled, idx))

    ref_pooled, ref_idx, ref_shape = reference_forward(x, params)
    assert tuple(unpooled_shape) == tuple(ref_shape) == (N, C_out, H, W)
    np.testing.assert_allclose(np.asarray(pooled), np.asarray(ref_pooled),
                               atol=2e-3, rtol=2e-3)
    assert np.array_equal(np.asarray(idx), np.asarray(ref_idx)), "argmax indices mismatch"
    print("KERNEL_OK")
</pallas_src>

<mosaic_0001>
module attributes {stable_mosaic.version = 11 : i64} {
  func.func @_conv_body(%arg0: i32, %arg1: memref<1x16x16x4xf32, #tpu.memory_space<vmem>>, %arg2: memref<3x3x4x8xf32, #tpu.memory_space<vmem>>, %arg3: memref<1x4xf32, #tpu.memory_space<vmem>>, %arg4: memref<1x4xf32, #tpu.memory_space<vmem>>, %arg5: memref<1x16x16x8xf32, #tpu.memory_space<vmem>>, %arg6: memref<1x2x8xf32, #tpu.memory_space<vmem>>, %arg7: memref<1x18x18x4xf32, #tpu.memory_space<vmem>>) attributes {dimension_semantics = [#tpu.dimension_semantics<parallel>], iteration_bounds = array<i64: 2>, scalar_prefetch = 0 : i64, scratch_operands = 1 : i64, tpu.core_type = #tpu.core_type<tc>, window_params = [{transform_indices = @transform_0, window_bounds = array<i64: 1, 16, 16, 4>}, {pipeline_mode = #tpu.pipeline_mode<synchronous>, transform_indices = @transform_1, window_bounds = array<i64: 3, 3, 4, 8>}, {pipeline_mode = #tpu.pipeline_mode<synchronous>, transform_indices = @transform_2, window_bounds = array<i64: 1, 4>}, {pipeline_mode = #tpu.pipeline_mode<synchronous>, transform_indices = @transform_3, window_bounds = array<i64: 1, 4>}, {transform_indices = @transform_4, window_bounds = array<i64: 1, 16, 16, 8>}, {transform_indices = @transform_5, window_bounds = array<i64: 1, 2, 8>}]} {
    %cst = arith.constant 0.000000e+00 : f32
    %0 = vector.broadcast %cst : f32 to vector<1x1x18x4xf32>
    %c0 = arith.constant 0 : index
    %c0_0 = arith.constant 0 : index
    %c0_1 = arith.constant 0 : index
    %c0_2 = arith.constant 0 : index
    %1 = vector.load %arg7[%c0, %c0_0, %c0_1, %c0_2] : memref<1x18x18x4xf32, #tpu.memory_space<vmem>>, vector<1x1x18x4xf32>
    tpu.vector_store %arg7[%c0, %c0_0, %c0_1, %c0_2], %0 {strides = array<i32>} : memref<1x18x18x4xf32, #tpu.memory_space<vmem>>, vector<1x1x18x4xf32>,
    %cst_3 = arith.constant 0.000000e+00 : f32
    %2 = vector.broadcast %cst_3 : f32 to vector<1x1x18x4xf32>
    %c0_4 = arith.constant 0 : index
    %c17 = arith.constant 17 : index
    %c0_5 = arith.constant 0 : index
    %c0_6 = arith.constant 0 : index
    %3 = vector.load %arg7[%c0_4, %c17, %c0_5, %c0_6] : memref<1x18x18x4xf32, #tpu.memory_space<vmem>>, vector<1x1x18x4xf32>
    tpu.vector_store %arg7[%c0_4, %c17, %c0_5, %c0_6], %2 {strides = array<i32>} : memref<1x18x18x4xf32, #tpu.memory_space<vmem>>, vector<1x1x18x4xf32>,
    %cst_7 = arith.constant 0.000000e+00 : f32
    %4 = vector.broadcast %cst_7 : f32 to vector<1x18x1x4xf32>
    %c0_8 = arith.constant 0 : index
    %c0_9 = arith.constant 0 : index
    %c0_10 = arith.constant 0 : index
    %c0_11 = arith.constant 0 : index
    %5 = vector.load %arg7[%c0_8, %c0_9, %c0_10, %c0_11] : memref<1x18x18x4xf32, #tpu.memory_space<vmem>>, vector<1x18x1x4xf32>
    tpu.vector_store %arg7[%c0_8, %c0_9, %c0_10, %c0_11], %4 {strides = array<i32>} : memref<1x18x18x4xf32, #tpu.memory_space<vmem>>, vector<1x18x1x4xf32>,
    %cst_12 = arith.constant 0.000000e+00 : f32
    %6 = vector.broadcast %cst_12 : f32 to vector<1x18x1x4xf32>
    %c0_13 = arith.constant 0 : index
    %c0_14 = arith.constant 0 : index
    %c17_15 = arith.constant 17 : index
    %c0_16 = arith.constant 0 : index
    %7 = vector.load %arg7[%c0_13, %c0_14, %c17_15, %c0_16] : memref<1x18x18x4xf32, #tpu.memory_space<vmem>>, vector<1x18x1x4xf32>
    tpu.vector_store %arg7[%c0_13, %c0_14, %c17_15, %c0_16], %6 {strides = array<i32>} : memref<1x18x18x4xf32, #tpu.memory_space<vmem>>, vector<1x18x1x4xf32>,
    %c0_17 = arith.constant 0 : index
    %c0_18 = arith.constant 0 : index
    %c0_19 = arith.constant 0 : index
    %c0_20 = arith.constant 0 : index
    %8 = vector.load %arg1[%c0_17, %c0_18, %c0_19, %c0_20] : memref<1x16x16x4xf32, #tpu.memory_space<vmem>>, vector<1x16x16x4xf32>
    %c0_21 = arith.constant 0 : index
    %c1 = arith.constant 1 : index
    %c1_22 = arith.constant 1 : index
    %c0_23 = arith.constant 0 : index
    %9 = vector.load %arg7[%c0_21, %c1, %c1_22, %c0_23] : memref<1x18x18x4xf32, #tpu.memory_space<vmem>>, vector<1x16x16x4xf32>
    tpu.vector_store %arg7[%c0_21, %c1, %c1_22, %c0_23], %8 {strides = array<i32>} : memref<1x18x18x4xf32, #tpu.memory_space<vmem>>, vector<1x16x16x4xf32>,
    %c0_24 = arith.constant 0 : index
    %c0_25 = arith.constant 0 : index
    %c0_26 = arith.constant 0 : index
    %c0_27 = arith.constant 0 : index
    %10 = vector.load %arg2[%c0_24, %c0_25, %c0_26, %c0_27] : memref<3x3x4x8xf32, #tpu.memory_space<vmem>>, vector<3x3x4x8xf32>
    %cst_28 = arith.constant 0.000000e+00 : f32
    %11 = vector.broadcast %cst_28 : f32 to vector<256x8xf32>
    %c0_29 = arith.constant 0 : index
    %c0_30 = arith.constant 0 : index
    %c0_31 = arith.constant 0 : index
    %c0_32 = arith.constant 0 : index
    %12 = vector.load %arg7[%c0_29, %c0_30, %c0_31, %c0_32] : memref<1x18x18x4xf32, #tpu.memory_space<vmem>>, vector<1x16x16x4xf32>
    %13 = vector.shape_cast %12 : vector<1x16x16x4xf32> to vector<256x4xf32>
    %14 = vector.extract_strided_slice %10 {offsets = [0, 0, 0, 0], sizes = [1, 1, 4, 8], strides = [1, 1, 1, 1]} : vector<3x3x4x8xf32> to vector<1x1x4x8xf32>
    %15 = vector.shape_cast %14 : vector<1x1x4x8xf32> to vector<4x8xf32>
    %cst_33 = arith.constant dense<0.000000e+00> : vector<256x8xf32>
    %16 = tpu.matmul %13, %15, %cst_33 {dimension_numbers = #tpu.dot_dimension_numbers<[1], [0], [0], [1], [0, 0, 1, 1], [], []>, precision = #tpu.contract_precision<fp32>} : vector<256x4xf32>, vector<4x8xf32>, vector<256x8xf32> -> vector<256x8xf32>
    %17 = arith.addf %11, %16 : vector<256x8xf32>
    %c0_34 = arith.constant 0 : index
    %c0_35 = arith.constant 0 : index
    %c1_36 = arith.constant 1 : index
    %c0_37 = arith.constant 0 : index
    %18 = vector.load %arg7[%c0_34, %c0_35, %c1_36, %c0_37] : memref<1x18x18x4xf32, #tpu.memory_space<vmem>>, vector<1x16x16x4xf32>
    %19 = vector.shape_cast %18 : vector<1x16x16x4xf32> to vector<256x4xf32>
    %20 = vector.extract_strided_slice %10 {offsets = [0, 1, 0, 0], sizes = [1, 1, 4, 8], strides = [1, 1, 1, 1]} : vector<3x3x4x8xf32> to vector<1x1x4x8xf32>
    %21 = vector.shape_cast %20 : vector<1x1x4x8xf32> to vector<4x8xf32>
    %cst_38 = arith.constant dense<0.000000e+00> : vector<256x8xf32>
    %22 = tpu.matmul %19, %21, %cst_38 {dimension_numbers = #tpu.dot_dimension_numbers<[1], [0], [0], [1], [0, 0, 1, 1], [], []>, precision = #tpu.contract_precision<fp32>} : vector<256x4xf32>, vector<4x8xf32>, vector<256x8xf32> -> vector<256x8xf32>
    %23 = arith.addf %17, %22 : vector<256x8xf32>
    %c0_39 = arith.constant 0 : index
    %c0_40 = arith.constant 0 : index
    %c2 = arith.constant 2 : index
    %c0_41 = arith.constant 0 : index
    %24 = vector.load %arg7[%c0_39, %c0_40, %c2, %c0_41] : memref<1x18x18x4xf32, #tpu.memory_space<vmem>>, vector<1x16x16x4xf32>
    %25 = vector.shape_cast %24 : vector<1x16x16x4xf32> to vector<256x4xf32>
    %26 = vector.extract_strided_slice %10 {offsets = [0, 2, 0, 0], sizes = [1, 1, 4, 8], strides = [1, 1, 1, 1]} : vector<3x3x4x8xf32> to vector<1x1x4x8xf32>
    %27 = vector.shape_cast %26 : vector<1x1x4x8xf32> to vector<4x8xf32>
    %cst_42 = arith.constant dense<0.000000e+00> : vector<256x8xf32>
    %28 = tpu.matmul %25, %27, %cst_42 {dimension_numbers = #tpu.dot_dimension_numbers<[1], [0], [0], [1], [0, 0, 1, 1], [], []>, precision = #tpu.contract_precision<fp32>} : vector<256x4xf32>, vector<4x8xf32>, vector<256x8xf32> -> vector<256x8xf32>
    %29 = arith.addf %23, %28 : vector<256x8xf32>
    %c0_43 = arith.constant 0 : index
    %c1_44 = arith.constant 1 : index
    %c0_45 = arith.constant 0 : index
    %c0_46 = arith.constant 0 : index
    %30 = vector.load %arg7[%c0_43, %c1_44, %c0_45, %c0_46] : memref<1x18x18x4xf32, #tpu.memory_space<vmem>>, vector<1x16x16x4xf32>
    %31 = vector.shape_cast %30 : vector<1x16x16x4xf32> to vector<256x4xf32>
    %32 = vector.extract_strided_slice %10 {offsets = [1, 0, 0, 0], sizes = [1, 1, 4, 8], strides = [1, 1, 1, 1]} : vector<3x3x4x8xf32> to vector<1x1x4x8xf32>
    %33 = vector.shape_cast %32 : vector<1x1x4x8xf32> to vector<4x8xf32>
    %cst_47 = arith.constant dense<0.000000e+00> : vector<256x8xf32>
    %34 = tpu.matmul %31, %33, %cst_47 {dimension_numbers = #tpu.dot_dimension_numbers<[1], [0], [0], [1], [0, 0, 1, 1], [], []>, precision = #tpu.contract_precision<fp32>} : vector<256x4xf32>, vector<4x8xf32>, vector<256x8xf32> -> vector<256x8xf32>
    %35 = arith.addf %29, %34 : vector<256x8xf32>
    %c0_48 = arith.constant 0 : index
    %c1_49 = arith.constant 1 : index
    %c1_50 = arith.constant 1 : index
    %c0_51 = arith.constant 0 : index
    %36 = vector.load %arg7[%c0_48, %c1_49, %c1_50, %c0_51] : memref<1x18x18x4xf32, #tpu.memory_space<vmem>>, vector<1x16x16x4xf32>
    %37 = vector.shape_cast %36 : vector<1x16x16x4xf32> to vector<256x4xf32>
    %38 = vector.extract_strided_slice %10 {offsets = [1, 1, 0, 0], sizes = [1, 1, 4, 8], strides = [1, 1, 1, 1]} : vector<3x3x4x8xf32> to vector<1x1x4x8xf32>
    %39 = vector.shape_cast %38 : vector<1x1x4x8xf32> to vector<4x8xf32>
    %cst_52 = arith.constant dense<0.000000e+00> : vector<256x8xf32>
    %40 = tpu.matmul %37, %39, %cst_52 {dimension_numbers = #tpu.dot_dimension_numbers<[1], [0], [0], [1], [0, 0, 1, 1], [], []>, precision = #tpu.contract_precision<fp32>} : vector<256x4xf32>, vector<4x8xf32>, vector<256x8xf32> -> vector<256x8xf32>
    %41 = arith.addf %35, %40 : vector<256x8xf32>
    %c0_53 = arith.constant 0 : index
    %c1_54 = arith.constant 1 : index
    %c2_55 = arith.constant 2 : index
    %c0_56 = arith.constant 0 : index
    %42 = vector.load %arg7[%c0_53, %c1_54, %c2_55, %c0_56] : memref<1x18x18x4xf32, #tpu.memory_space<vmem>>, vector<1x16x16x4xf32>
    %43 = vector.shape_cast %42 : vector<1x16x16x4xf32> to vector<256x4xf32>
    %44 = vector.extract_strided_slice %10 {offsets = [1, 2, 0, 0], sizes = [1, 1, 4, 8], strides = [1, 1, 1, 1]} : vector<3x3x4x8xf32> to vector<1x1x4x8xf32>
    %45 = vector.shape_cast %44 : vector<1x1x4x8xf32> to vector<4x8xf32>
    %cst_57 = arith.constant dense<0.000000e+00> : vector<256x8xf32>
    %46 = tpu.matmul %43, %45, %cst_57 {dimension_numbers = #tpu.dot_dimension_numbers<[1], [0], [0], [1], [0, 0, 1, 1], [], []>, precision = #tpu.contract_precision<fp32>} : vector<256x4xf32>, vector<4x8xf32>, vector<256x8xf32> -> vector<256x8xf32>
    %47 = arith.addf %41, %46 : vector<256x8xf32>
    %c0_58 = arith.constant 0 : index
    %c2_59 = arith.constant 2 : index
    %c0_60 = arith.constant 0 : index
    %c0_61 = arith.constant 0 : index
    %48 = vector.load %arg7[%c0_58, %c2_59, %c0_60, %c0_61] : memref<1x18x18x4xf32, #tpu.memory_space<vmem>>, vector<1x16x16x4xf32>
    %49 = vector.shape_cast %48 : vector<1x16x16x4xf32> to vector<256x4xf32>
    %50 = vector.extract_strided_slice %10 {offsets = [2, 0, 0, 0], sizes = [1, 1, 4, 8], strides = [1, 1, 1, 1]} : vector<3x3x4x8xf32> to vector<1x1x4x8xf32>
    %51 = vector.shape_cast %50 : vector<1x1x4x8xf32> to vector<4x8xf32>
    %cst_62 = arith.constant dense<0.000000e+00> : vector<256x8xf32>
    %52 = tpu.matmul %49, %51, %cst_62 {dimension_numbers = #tpu.dot_dimension_numbers<[1], [0], [0], [1], [0, 0, 1, 1], [], []>, precision = #tpu.contract_precision<fp32>} : vector<256x4xf32>, vector<4x8xf32>, vector<256x8xf32> -> vector<256x8xf32>
    %53 = arith.addf %47, %52 : vector<256x8xf32>
    %c0_63 = arith.constant 0 : index
    %c2_64 = arith.constant 2 : index
    %c1_65 = arith.constant 1 : index
    %c0_66 = arith.constant 0 : index
    %54 = vector.load %arg7[%c0_63, %c2_64, %c1_65, %c0_66] : memref<1x18x18x4xf32, #tpu.memory_space<vmem>>, vector<1x16x16x4xf32>
    %55 = vector.shape_cast %54 : vector<1x16x16x4xf32> to vector<256x4xf32>
    %56 = vector.extract_strided_slice %10 {offsets = [2, 1, 0, 0], sizes = [1, 1, 4, 8], strides = [1, 1, 1, 1]} : vector<3x3x4x8xf32> to vector<1x1x4x8xf32>
    %57 = vector.shape_cast %56 : vector<1x1x4x8xf32> to vector<4x8xf32>
    %cst_67 = arith.constant dense<0.000000e+00> : vector<256x8xf32>
    %58 = tpu.matmul %55, %57, %cst_67 {dimension_numbers = #tpu.dot_dimension_numbers<[1], [0], [0], [1], [0, 0, 1, 1], [], []>, precision = #tpu.contract_precision<fp32>} : vector<256x4xf32>, vector<4x8xf32>, vector<256x8xf32> -> vector<256x8xf32>
    %59 = arith.addf %53, %58 : vector<256x8xf32>
    %c0_68 = arith.constant 0 : index
    %c2_69 = arith.constant 2 : index
    %c2_70 = arith.constant 2 : index
    %c0_71 = arith.constant 0 : index
    %60 = vector.load %arg7[%c0_68, %c2_69, %c2_70, %c0_71] : memref<1x18x18x4xf32, #tpu.memory_space<vmem>>, vector<1x16x16x4xf32>
    %61 = vector.shape_cast %60 : vector<1x16x16x4xf32> to vector<256x4xf32>
    %62 = vector.extract_strided_slice %10 {offsets = [2, 2, 0, 0], sizes = [1, 1, 4, 8], strides = [1, 1, 1, 1]} : vector<3x3x4x8xf32> to vector<1x1x4x8xf32>
    %63 = vector.shape_cast %62 : vector<1x1x4x8xf32> to vector<4x8xf32>
    %cst_72 = arith.constant dense<0.000000e+00> : vector<256x8xf32>
    %64 = tpu.matmul %61, %63, %cst_72 {dimension_numbers = #tpu.dot_dimension_numbers<[1], [0], [0], [1], [0, 0, 1, 1], [], []>, precision = #tpu.contract_precision<fp32>} : vector<256x4xf32>, vector<4x8xf32>, vector<256x8xf32> -> vector<256x8xf32>
    %65 = arith.addf %59, %64 : vector<256x8xf32>
    %66 = vector.shape_cast %65 : vector<256x8xf32> to vector<1x16x16x8xf32>
    %c0_73 = arith.constant 0 : index
    %c0_74 = arith.constant 0 : index
    %c0_75 = arith.constant 0 : index
    %c0_76 = arith.constant 0 : index
    %67 = vector.load %arg5[%c0_73, %c0_74, %c0_75, %c0_76] : memref<1x16x16x8xf32, #tpu.memory_space<vmem>>, vector<1x16x16x8xf32>
    tpu.vector_store %arg5[%c0_73, %c0_74, %c0_75, %c0_76], %66 {strides = array<i32>} : memref<1x16x16x8xf32, #tpu.memory_space<vmem>>, vector<1x16x16x8xf32>,
    %cst_77 = arith.constant 1.000000e+00 : f32
    %68 = vector.broadcast %cst_77 : f32 to vector<1x256xf32>
    %cst_78 = arith.constant dense<0.000000e+00> : vector<1x8xf32>
    %69 = tpu.matmul %68, %65, %cst_78 {dimension_numbers = #tpu.dot_dimension_numbers<[1], [0], [0], [1], [0, 0, 1, 1], [], []>, precision = #tpu.contract_precision<fp32>} : vector<1x256xf32>, vector<256x8xf32>, vector<1x8xf32> -> vector<1x8xf32>
    %70 = arith.mulf %65, %65 : vector<256x8xf32>
    %cst_79 = arith.constant dense<0.000000e+00> : vector<1x8xf32>
    %71 = tpu.matmul %68, %70, %cst_79 {dimension_numbers = #tpu.dot_dimension_numbers<[1], [0], [0], [1], [0, 0, 1, 1], [], []>, precision = #tpu.contract_precision<fp32>} : vector<1x256xf32>, vector<256x8xf32>, vector<1x8xf32> -> vector<1x8xf32>
    %72 = tpu.concatenate %69, %71 in 0 : vector<1x8xf32>, vector<1x8xf32> -> vector<2x8xf32>
    %73 = vector.shape_cast %72 : vector<2x8xf32> to vector<1x2x8xf32>
    %c0_80 = arith.constant 0 : index
    %c0_81 = arith.constant 0 : index
    %c0_82 = arith.constant 0 : index
    %74 = vector.load %arg6[%c0_80, %c0_81, %c0_82] : memref<1x2x8xf32, #tpu.memory_space<vmem>>, vector<1x2x8xf32>
    tpu.vector_store %arg6[%c0_80, %c0_81, %c0_82], %73 {strides = array<i32>} : memref<1x2x8xf32, #tpu.memory_space<vmem>>, vector<1x2x8xf32>,
    return
  }
  func.func @transform_0(%arg0: i32) -> (i32, i32, i32, i32) {
    %c0_i32 = arith.constant 0 : i32
    %c0_i32_0 = arith.constant 0 : i32
    %c0_i32_1 = arith.constant 0 : i32
    %c0_i32_2 = arith.constant 0 : i32
    return %arg0, %c0_i32, %c0_i32_0, %c0_i32_1 : i32, i32, i32, i32
  }
  func.func @transform_1(%arg0: i32) -> (i32, i32, i32, i32) {
    %c0_i32 = arith.constant 0 : i32
    %c0_i32_0 = arith.constant 0 : i32
    %c0_i32_1 = arith.constant 0 : i32
    %c0_i32_2 = arith.constant 0 : i32
    %c0_i32_3 = arith.constant 0 : i32
    return %c0_i32, %c0_i32_0, %c0_i32_1, %c0_i32_2 : i32, i32, i32, i32
  }
  func.func @transform_2(%arg0: i32) -> (i32, i32) {
    %c0_i32 = arith.constant 0 : i32
    %c0_i32_0 = arith.constant 0 : i32
    %c0_i32_1 = arith.constant 0 : i32
    return %c0_i32, %c0_i32_0 : i32, i32
  }
  func.func @transform_3(%arg0: i32) -> (i32, i32) {
    %c0_i32 = arith.constant 0 : i32
    %c0_i32_0 = arith.constant 0 : i32
    %c0_i32_1 = arith.constant 0 : i32
    return %c0_i32, %c0_i32_0 : i32, i32
  }
  func.func @transform_4(%arg0: i32) -> (i32, i32, i32, i32) {
    %c0_i32 = arith.constant 0 : i32
    %c0_i32_0 = arith.constant 0 : i32
    %c0_i32_1 = arith.constant 0 : i32
    %c0_i32_2 = arith.constant 0 : i32
    return %arg0, %c0_i32, %c0_i32_0, %c0_i32_1 : i32, i32, i32, i32
  }
  func.func @transform_5(%arg0: i32) -> (i32, i32, i32) {
    %c0_i32 = arith.constant 0 : i32
    %c0_i32_0 = arith.constant 0 : i32
    %c0_i32_1 = arith.constant 0 : i32
    return %arg0, %c0_i32, %c0_i32_0 : i32, i32, i32
  }
}

</mosaic_0001>

<bundles_post_ra>
// kernel: tpu_custom_call.1
= control target key start
LH: loop header
LB: loop body
LE: loop exit
PB: predicated region body
PF: predicated region fallthrough
CT: control target
= control target key end

     0   :  { %11 = vsyncpa [#allocation4], 0  ;;  %s33591_s0 = inlined_call_operand.vmem [shape: f32[2,16,16,4], index: 0, kind: input, shape index: {}]   ;;  %s33592_s1 = inlined_call_operand.vmem [shape: f32[3,3,4,8], index: 1, kind: input, shape index: {}]   ;;  %s33593_s2 = inlined_call_operand.vmem [shape: f32[1,4], index: 2, kind: input, shape index: {}]   ;;  %s33594_s3 = inlined_call_operand.vmem [shape: f32[1,4], index: 3, kind: input, shape index: {}]   ;;  %s33595_s4 = inlined_call_operand.vmem [shape: f32[2,16,16,8], index: 4, kind: output, shape index: {0}]   ;;  %s33596_s5 = inlined_call_operand.hbm [shape: f32[2,2,8], index: 5, kind: output, shape index: {1}]  }
   0x1   :  { %13 = vsyncpa [#allocation4 + $0x1], 0  ;;  %s26757_s18 = smov 0   ;;  %s26759_s19 = smov 0  }
   0x2   :  { %s26761_s20 = smov 0   ;;  %s26763_s21 = smov 0  }
   0x3 LB: > { %s26778_s2 = sadd.s32 4294967295, %s26722_s21   ;;  %s19622_s3 = sadd.s32 4294967294, %s26722_s21   ;;  %s26722_s21 = sphi %s26763_s21, %s36648_s21   ;;  %s26718_s20 = sphi %s26761_s20, %s36647_s20   ;;  %s26714_s19 = sphi %s26759_s19, %s36646_s19   ;;  %s26710_s18 = sphi %s26757_s18, %s36645_s18  }
   0x4   : > { %s26782_s22 = sadd.s32 1, %s26722_s21   ;;  %s141_s23 = sadd.s32 1, %s26718_s20 }
   0x5   : > { %s138_s24 = ssub.s32 %s26722_s21, %s26782_s22  ;;  %p151_p0 = scmp.ne.s32.totalorder %s26718_s20, %s26714_s19 }
   0x6   : > { %p139_p1 = scmp.eq.s32.totalorder %s138_s24, 0  ;;  %p152_p2 = scmp.eq.s32.totalorder %s26778_s2, 1 }
   0x7   : > { %p157_p3 = scmp.ne.s32.totalorder %s26714_s19, %s26710_s18  ;;  %p158_p4 = scmp.eq.s32.totalorder %s19622_s3, 1 }
   0x8   : > { %s26793_s25 = scalar_select %p139_p1, %s26718_s20, %s141_s23  }
   0x9   : > { %p26795_p5 = por %p152_p2, %p151_p0  ;;  %p26799_p6 = por %p158_p4, %p157_p3 }
   0xa   : > { %p19625_p7 = scmp.ge.s32.totalorder %s26722_s21, 1  ;;  %p193_p8 = scmp.lt.s32.totalorder %s26722_s21, 3 }
   0xc   : > { %p194_p9 = pnand %p19625_p7, %p193_p8 }
   0xe   : > { %197 = sbr.rel (%p194_p9) target bundleno = 2820 (0xb04), region = 36 }
  0x15   : > { %v348_v0 = vld [vmem:[%s33592_s1 + $0x4] sm:$0xf]  ;;  %vm516_vm0 = vcmask 1043456   ;;  %vm236_vm1 = vcmask 31744   ;;  %vm239_vm2 = vcmask 25600   ;;  %v33597_v2 = vmov 0.0  }
  0x16   : > { %v518_v1 = vsel %vm516_vm0, %v348_v0, 0  ;;  %237 = vst.msk [vmem:[#allocation2] sm:$0xff] %vm236_vm1, %v33597_v2  ;;  %238 = vst.msk [vmem:[#allocation2 + $0x8] sm:$0xff] %vm236_vm1, %v33597_v2  ;;  %vm245_vm3 = vcmask 24576   ;;  %v351_v3 = vld [vmem:[%s33592_s1 + $0x10] sm:$0xf] }
  0x17   : > { %242 = vst.msk [vmem:[#allocation2 + $0x198] sm:$0xff] %vm236_vm1, %v33597_v2  ;;  %243 = vst.msk [vmem:[#allocation2 + $0x1a0] sm:$0xff] %vm236_vm1, %v33597_v2  ;;  %p226_p10 = scmp.lt.s32.totalorder %s26778_s2, 1  ;;  %v26823_v4 = vand.u32 4294901760, %v518_v1  ;;  %v8190_v5 = vsel %vm516_vm0, %v351_v3, 0  ;;  %vm17772_vm4 = vcmask 64512  }
  0x18   : > { %240 = vst.msk [vmem:[#allocation2 + $0x10] sm:$0x3] %vm239_vm2, %v33597_v2  ;;  %244 = vst.msk [vmem:[#allocation2 + $0x1a8] sm:$0x3] %vm239_vm2, %v33597_v2  ;;  %v26898_v6 = vand.u32 4294901760, %v8190_v5  ;;  %s19632_s13 = sshll.u32 %s26778_s2, 5 }
  0x19   : > { %264 = vst.msk [vmem:[#allocation2 + $0x11] sm:$0x1] %vm245_vm3, %v33597_v2  ;;  %246 = vst.msk [vmem:[#allocation2] sm:$0x1] %vm245_vm3, %v33597_v2  ;;  %s26903_s7 = scalar_select %p226_p10, %s26778_s2, 1  ;;  %21839 = vmatprep.subr.mxu1 %v26823_v4  ;;  %v26907_v7 = vsub.f32 %v518_v1, %v26823_v4  ;;  %vm19512_vm5 = vcmask 1040384  }
  0x1a   : > { %247 = vst.msk [vmem:[#allocation2 + $0x18] sm:$0x1] %vm245_vm3, %v33597_v2  ;;  %248 = vst.msk [vmem:[#allocation2 + $0x30] sm:$0x1] %vm245_vm3, %v33597_v2  ;;  %21840 = vmatpush3.msra.mxu1 %v26823_v4  ;;  %23039 = vmatprep.subr.mxu0 %v26898_v6  ;;  %v26913_v8 = vsub.f32 %v8190_v5, %v26898_v6  ;;  %vm19514_vm6 = vcmask 58368   ;;  %s33549_s3 = scalar_lea.hbm %s33596_s5, %s19632_s13  ;;  %s26726_s2 = smov [#allocation3]  }
  0x1b   : > { %249 = vst.msk [vmem:[#allocation2 + $0x48] sm:$0x1] %vm245_vm3, %v33597_v2  ;;  %250 = vst.msk [vmem:[#allocation2 + $0x60] sm:$0x1] %vm245_vm3, %v33597_v2  ;;  %s19635_s8 = sshll.u32 %s26903_s7, 8  ;;  %23040 = vmatpush3.msra.mxu0 %v26898_v6  ;;  %v26924_v9 = vand.u32 4294901760, %v26907_v7 }
  0x1c   : > { %251 = vst.msk [vmem:[#allocation2 + $0x78] sm:$0x1] %vm245_vm3, %v33597_v2  ;;  %252 = vst.msk [vmem:[#allocation2 + $0x90] sm:$0x1] %vm245_vm3, %v33597_v2  ;;  %s26920_s11 = scalar_lea.vmem %s33591_s0, %s19635_s8  ;;  %v26930_v13 = vand.u32 4294901760, %v26913_v8  ;;  %s32267_s12 = scalar_lea.vmem %s33595_s4, %s19635_s8 }
  0x1d   : > { %253 = vst.msk [vmem:[#allocation2 + $0xa8] sm:$0x1] %vm245_vm3, %v33597_v2  ;;  %254 = vst.msk [vmem:[#allocation2 + $0xc0] sm:$0x1] %vm245_vm3, %v33597_v2  ;;  %v282_v10 = vld [vmem:[%s26920_s11] sm:$0xff]  ;;  %v283_v11 = vld [vmem:[%s26920_s11 + $0x8] sm:$0xff]  ;;  %v910_v17 = vsub.f32 %v26907_v7, %v26924_v9 }
  0x1e   : > { %255 = vst.msk [vmem:[#allocation2 + $0xd8] sm:$0x1] %vm245_vm3, %v33597_v2  ;;  %256 = vst.msk [vmem:[#allocation2 + $0xf0] sm:$0x1] %vm245_vm3, %v33597_v2  ;;  %v284_v12 = vld [vmem:[%s26920_s11 + $0x10] sm:$0xff]  ;;  %v388_v14 = vld [vmem:[#allocation2 + $0x1] sm:$0xff]  ;;  %v8582_v23 = vsub.f32 %v26913_v8, %v26930_v13 }
  0x1f   : > { %257 = vst.msk [vmem:[#allocation2 + $0x108] sm:$0x1] %vm245_vm3, %v33597_v2  ;;  %258 = vst.msk [vmem:[#allocation2 + $0x120] sm:$0x1] %vm245_vm3, %v33597_v2  ;;  %v389_v15 = vld [vmem:[#allocation2 + $0x9] sm:$0xff]  ;;  %v285_v16 = vld [vmem:[%s26920_s11 + $0x18] sm:$0xff] }
  0x20   : > { %259 = vst.msk [vmem:[#allocation2 + $0x138] sm:$0x1] %vm245_vm3, %v33597_v2  ;;  %260 = vst.msk [vmem:[#allocation2 + $0x150] sm:$0x1] %vm245_vm3, %v33597_v2  ;;  %v421_v18 = vsel %vm236_vm1, %v388_v14, 0  ;;  %v424_v19 = vsel %vm236_vm1, %v389_v15, 0 }
  0x21   : > { %261 = vst.msk [vmem:[#allocation2 + $0x168] sm:$0x1] %vm245_vm3, %v33597_v2  ;;  %262 = vst.msk [vmem:[#allocation2 + $0x180] sm:$0x1] %vm245_vm3, %v33597_v2  ;;  %v286_v20 = vld [vmem:[%s26920_s11 + $0x20] sm:$0xff]  ;;  %v287_v21 = vld [vmem:[%s26920_s11 + $0x28] sm:$0xff] }
  0x22   : > { %263 = vst.msk [vmem:[#allocation2 + $0x198] sm:$0x1] %vm245_vm3, %v33597_v2  ;;  %265 = vst.msk [vmem:[#allocation2 + $0x29] sm:$0x1] %vm245_vm3, %v33597_v2  ;;  %v288_v22 = vld [vmem:[%s26920_s11 + $0x30] sm:$0xff]  ;;  %v26946_v24 = vand.u32 4294901760, %v421_v18 }
  0x23   : > { %266 = vst.msk [vmem:[#allocation2 + $0x41] sm:$0x1] %vm245_vm3, %v33597_v2  ;;  %267 = vst.msk [vmem:[#allocation2 + $0x59] sm:$0x1] %vm245_vm3, %v33597_v2  ;;  %v26948_v25 = vand.u32 4294901760, %v424_v19  ;;  %v289_v26 = vld [vmem:[%s26920_s11 + $0x38] sm:$0xff] }
  0x24   : > { %268 = vst.msk [vmem:[#allocation2 + $0x71] sm:$0x1] %vm245_vm3, %v33597_v2  ;;  %269 = vst.msk [vmem:[#allocation2 + $0x89] sm:$0x1] %vm245_vm3, %v33597_v2  ;;  %v290_v27 = vld [vmem:[%s26920_s11 + $0x40] sm:$0xff]  ;;  %v291_v28 = vld [vmem:[%s26920_s11 + $0x48] sm:$0xff]  ;;  %v26967_v34 = vsub.f32 %v421_v18, %v26946_v24 }
  0x25   : > { %270 = vst.msk [vmem:[#allocation2 + $0xa1] sm:$0x1] %vm245_vm3, %v33597_v2  ;;  %271 = vst.msk [vmem:[#allocation2 + $0xb9] sm:$0x1] %vm245_vm3, %v33597_v2  ;;  %v26956_v29 = vand.u32 4294901760, %v910_v17  ;;  %v292_v30 = vld [vmem:[%s26920_s11 + $0x50] sm:$0xff]  ;;  %v26970_v35 = vsub.f32 %v424_v19, %v26948_v25 }
  0x26   : > { %272 = vst.msk [vmem:[#allocation2 + $0xd1] sm:$0x1] %vm245_vm3, %v33597_v2  ;;  %273 = vst.msk [vmem:[#allocation2 + $0xe9] sm:$0x1] %vm245_vm3, %v33597_v2  ;;  %v293_v31 = vld [vmem:[%s26920_s11 + $0x58] sm:$0xff]  ;;  %v294_v32 = vld [vmem:[%s26920_s11 + $0x60] sm:$0xff] }
  0x27   : > { %274 = vst.msk [vmem:[#allocation2 + $0x101] sm:$0x1] %vm245_vm3, %v33597_v2  ;;  %275 = vst.msk [vmem:[#allocation2 + $0x119] sm:$0x1] %vm245_vm3, %v33597_v2  ;;  %v26964_v33 = vand.u32 4294901760, %v8582_v23  ;;  %v295_v36 = vld [vmem:[%s26920_s11 + $0x68] sm:$0xff]  ;;  %21889 = vmatprep.subr.mxu1 %v26956_v29 }
  0x28   : > { %276 = vst.msk [vmem:[#allocation2 + $0x131] sm:$0x1] %vm245_vm3, %v33597_v2  ;;  %277 = vst.msk [vmem:[#allocation2 + $0x149] sm:$0x1] %vm245_vm3, %v33597_v2  ;;  %v296_v37 = vld [vmem:[%s26920_s11 + $0x70] sm:$0xff]  ;;  %v297_v38 = vld [vmem:[%s26920_s11 + $0x78] sm:$0xff] }
  0x29   : > { %278 = vst.msk [vmem:[#allocation2 + $0x161] sm:$0x1] %vm245_vm3, %v33597_v2  ;;  %279 = vst.msk [vmem:[#allocation2 + $0x179] sm:$0x1] %vm245_vm3, %v33597_v2  ;;  %v298_v39 = vld [vmem:[%s26920_s11 + $0x80] sm:$0xff]  ;;  %23089 = vmatprep.subr.mxu0 %v26964_v33  ;;  %v299_v40 = vld [vmem:[%s26920_s11 + $0x88] sm:$0xff] }
  0x2a   : > { %280 = vst.msk [vmem:[#allocation2 + $0x191] sm:$0x1] %vm245_vm3, %v33597_v2  ;;  %281 = vst.msk [vmem:[#allocation2 + $0x1a9] sm:$0x1] %vm245_vm3, %v33597_v2  ;;  %v300_v41 = vld [vmem:[%s26920_s11 + $0x90] sm:$0xff]  ;;  %v33600_v42 = vand.u32 4294901760, %v26967_v34 }
  0x2b   : > { %34692 = vst [vmem:[#allocation6_spill] sm:$0xff] %v26930_v13  ;;  %315 = vst.msk [vmem:[#allocation2 + $0x19] sm:$0xff] %vm236_vm1, %v282_v10  ;;  %v33599_v43 = vand.u32 4294901760, %v26970_v35  ;;  %v301_v44 = vld [vmem:[%s26920_s11 + $0x98] sm:$0xff]  ;;  %v302_v45 = vld [vmem:[%s26920_s11 + $0xa0] sm:$0xff]  ;;  %s223_s7 = sand.u32 1, %s26714_s19  }
  0x2c   : > { %316 = vst.msk [vmem:[#allocation2 + $0x21] sm:$0xff] %vm236_vm1, %v283_v11  ;;  %317 = vst.msk [vmem:[#allocation2 + $0x31] sm:$0xff] %vm236_vm1, %v284_v12  ;;  %v303_v46 = vld [vmem:[%s26920_s11 + $0xa8] sm:$0xff]  ;;  %v589_v50 = vsub.f32 %v26967_v34, %v33600_v42  ;;  %v304_v55 = vld [vmem:[%s26920_s11 + $0xb0] sm:$0xff]  ;;  %s19626_s8 = sshll.u32 %s223_s7, 1  ;;  %s19522_s23 = scalar_lea.sflag [#allocation4], %s223_s7 }
  0x2d   : > { %318 = vst.msk [vmem:[#allocation2 + $0x39] sm:$0xff] %vm236_vm1, %v285_v16  ;;  %319 = vst.msk [vmem:[#allocation2 + $0x49] sm:$0xff] %vm236_vm1, %v286_v20  ;;  %v599_v51 = vsub.f32 %v26970_v35, %v33599_v43  ;;  %v305_v56 = vld [vmem:[%s26920_s11 + $0xb8] sm:$0xff]  ;;  %s225_s14 = scalar_lea.vmem [#allocation3], %s19626_s8  ;;  %s26664_s28 = sshll.u32 %s26726_s2, 4  ;;  %s26665_s28 = int_to_ptr.vmem [resolvable:$false] %s26664_s28 }
  0x2e   : > { %320 = vst.msk [vmem:[#allocation2 + $0x51] sm:$0xff] %vm236_vm1, %v287_v21  ;;  %321 = vst.msk [vmem:[#allocation2 + $0x61] sm:$0xff] %vm236_vm1, %v288_v22  ;;  %v590_v63 = vand.u32 4294901760, %v589_v50  ;;  %s19538_s15 = sshll.u32 %s225_s14, 4  ;;  %s26666_s29 = scalar_lea.vmem %s26665_s28, 64  ;;  %s33551_s15 = int_to_ptr.vmem [resolvable:$true] %s19538_s15 }
  0x2f   : > { %322 = vst.msk [vmem:[#allocation2 + $0x69] sm:$0xff] %vm236_vm1, %v289_v26  ;;  %323 = vst.msk [vmem:[#allocation2 + $0x79] sm:$0xff] %vm236_vm1, %v290_v27  ;;  %v600_v0 = vand.u32 4294901760, %v599_v51  ;;  %s26660_s24 = scalar_lea.vmem %s33551_s15, 32  ;;  %p26667_p0 = scmp.lt.s32.totalorder %s33551_s15, %s26665_s28 }
  0x30   : > { %324 = vst.msk [vmem:[#allocation2 + $0x81] sm:$0xff] %vm236_vm1, %v291_v28  ;;  %325 = vst.msk [vmem:[#allocation2 + $0x91] sm:$0xff] %vm236_vm1, %v292_v30  ;;  %21841 = vmatprep.mubr.f32.mxu1 %v590_v63  ;;  %p26661_p11 = scmp.ne.s32.totalorder %s33551_s15, %s26660_s24  ;;  %p26668_p1 = scmp.lt.s32.totalorder %s26666_s29, %s26660_s24 }
  0x31   : > { %326 = vst.msk [vmem:[#allocation2 + $0x99] sm:$0xff] %vm236_vm1, %v293_v31  ;;  %327 = vst.msk [vmem:[#allocation2 + $0xa9] sm:$0xff] %vm236_vm1, %v294_v32  ;;  %21842 = vmatmul.mubr.f32.vlgmr.msra.gmra.mrb[0].mxu1 %v600_v0 }
  0x32   : > { %328 = vst.msk [vmem:[#allocation2 + $0xb1] sm:$0xff] %vm236_vm1, %v295_v36  ;;  %329 = vst.msk [vmem:[#allocation2 + $0xc1] sm:$0xff] %vm236_vm1, %v296_v37  ;;  %v390_v47 = vld [vmem:[#allocation2 + $0x19] sm:$0xff]  ;;  %21890 = vmatpush3.msra.mxu1 %v26956_v29  ;;  %p26662_p12 = pnand %p26661_p11, %p26795_p5  ;;  %p26669_p2 = por %p26668_p1, %p26667_p0 }
  0x33   : > { %330 = vst.msk [vmem:[#allocation2 + $0xc9] sm:$0xff] %vm236_vm1, %v297_v38  ;;  %331 = vst.msk [vmem:[#allocation2 + $0xd9] sm:$0xff] %vm236_vm1, %v298_v39  ;;  %v391_v48 = vld [vmem:[#allocation2 + $0x21] sm:$0xff]  ;;  %v392_v49 = vld [vmem:[#allocation2 + $0x31] sm:$0xff]  ;;  %v427_v52 = vsel %vm236_vm1, %v390_v47, 0  ;;  %21939 = vmatprep.subr.mxu1 %v26907_v7 }
  0x34   : > { %332 = vst.msk [vmem:[#allocation2 + $0xe1] sm:$0xff] %vm236_vm1, %v299_v40  ;;  %333 = vst.msk [vmem:[#allocation2 + $0xf1] sm:$0xff] %vm236_vm1, %v300_v41  ;;  %v430_v53 = vsel %vm236_vm1, %v391_v48, 0  ;;  %v393_v54 = vld [vmem:[#allocation2 + $0x39] sm:$0xff]  ;;  %v27007_v57 = vand.u32 4294901760, %v427_v52  ;;  %v433_v59 = vsel %vm236_vm1, %v392_v49, 0  ;;  %p26663_p13 = pneg %p26662_p12 }
  0x35   : > { %334 = vst.msk [vmem:[#allocation2 + $0xf9] sm:$0xff] %vm236_vm1, %v301_v44  ;;  %335 = vst.msk [vmem:[#allocation2 + $0x109] sm:$0xff] %vm236_vm1, %v302_v45  ;;  %v27009_v58 = vand.u32 4294901760, %v430_v53  ;;  %v436_v60 = vsel %vm236_vm1, %v393_v54, 0  ;;  %v394_v61 = vld [vmem:[#allocation2 + $0x49] sm:$0xff]  ;;  %v395_v62 = vld [vmem:[#allocation2 + $0x51] sm:$0xff] }
  0x36   : > { %336 = vst.msk [vmem:[#allocation2 + $0x111] sm:$0xff] %vm236_vm1, %v303_v46  ;;  %337 = vst.msk [vmem:[#allocation2 + $0x121] sm:$0xff] %vm236_vm1, %v304_v55  ;;  %v27015_v1 = vand.u32 4294901760, %v433_v59  ;;  %v27017_v3 = vand.u32 4294901760, %v436_v60  ;;  %v396_v5 = vld [vmem:[#allocation2 + $0x61] sm:$0xff]  ;;  %v397_v10 = vld [vmem:[#allocation2 + $0x69] sm:$0xff]  ;;  %v27020_v11 = vsub.f32 %v427_v52, %v27007_v57  ;;  %p26670_p3 = pnand %p26669_p2, %p26663_p13 }
  0x37   : > { %338 = vst.msk [vmem:[#allocation2 + $0x129] sm:$0xff] %vm236_vm1, %v305_v56  ;;  %v27023_v12 = vsub.f32 %v430_v53, %v27009_v58  ;;  %v439_v14 = vsel %vm236_vm1, %v394_v61, 0  ;;  %v442_v15 = vsel %vm236_vm1, %v395_v62, 0  ;;  %v445_v22 = vsel %vm236_vm1, %v396_v5, 0  ;;  %v398_v38 = vld [vmem:[#allocation2 + $0x79] sm:$0xff]  ;;  %v399_v39 = vld [vmem:[#allocation2 + $0x81] sm:$0xff] }
  0x38   : > { %v27028_v16 = vsub.f32 %v433_v59, %v27015_v1  ;;  %v27031_v17 = vsub.f32 %v436_v60, %v27017_v3  ;;  %v27033_v18 = vand.u32 4294901760, %v439_v14  ;;  %v27035_v19 = vand.u32 4294901760, %v442_v15  ;;  %v400_v45 = vld [vmem:[#allocation2 + $0x91] sm:$0xff]  ;;  %v401_v46 = vld [vmem:[#allocation2 + $0x99] sm:$0xff]  ;;  %v307_v52 = vld [vmem:[%s26920_s11 + $0xc8] sm:$0xff] }
  0x39   : > { %v27038_v20 = vand.u32 4294901760, %v27020_v11  ;;  %v27041_v21 = vand.u32 4294901760, %v27023_v12  ;;  %v448_v23 = vsel %vm236_vm1, %v397_v10, 0  ;;  %v27062_v36 = vand.u32 4294901760, %v445_v22  ;;  %v306_v47 = vld [vmem:[%s26920_s11 + $0xc0] sm:$0xff]  ;;  %v308_v53 = vld [vmem:[%s26920_s11 + $0xd0] sm:$0xff] }
  0x3a   : > { %34693 = vst [vmem:[#allocation7_spill] sm:$0xff] %v27031_v17  ;;  %v27046_v26 = vand.u32 4294901760, %v27028_v16  ;;  %v27049_v27 = vand.u32 4294901760, %v27031_v17  ;;  %v27052_v28 = vsub.f32 %v439_v14, %v27033_v18  ;;  %v27055_v30 = vsub.f32 %v442_v15, %v27035_v19  ;;  %339 = vst.msk [vmem:[#allocation2 + $0x139] sm:$0xff] %vm236_vm1, %v306_v47  ;;  %v309_v54 = vld [vmem:[%s26920_s11 + $0xd8] sm:$0xff]  ;;  %v310_v60 = vld [vmem:[%s26920_s11 + $0xe0] sm:$0xff] }
  0x3b   : > { %34694 = vst [vmem:[#allocation8_spill] sm:$0xff] %v27038_v20  ;;  %34695 = vst [vmem:[#allocation9_spill] sm:$0xff] %v27041_v21  ;;  %v609_v31 = vsub.f32 %v27020_v11, %v27038_v20  ;;  %v619_v32 = vsub.f32 %v27023_v12, %v27041_v21  ;;  %v27064_v37 = vand.u32 4294901760, %v448_v23  ;;  %v27079_v50 = vsub.f32 %v445_v22, %v27062_v36  ;;  %v311_v61 = vld [vmem:[%s26920_s11 + $0xe8] sm:$0xff]  ;;  %v312_v62 = vld [vmem:[%s26920_s11 + $0xf0] sm:$0xff] }
  0x3c   : > { %34696 = vst [vmem:[#allocation10_spill] sm:$0xff] %v27046_v26  ;;  %34697 = vst [vmem:[#allocation11_spill] sm:$0xff] %v27049_v27  ;;  %v629_v29 = vsub.f32 %v27028_v16, %v27046_v26  ;;  %v639_v40 = vsub.f32 %v27031_v17, %v27049_v27  ;;  %v27072_v41 = vand.u32 4294901760, %v27052_v28  ;;  %v27075_v44 = vand.u32 4294901760, %v27055_v30  ;;  %v313_v14 = vld [vmem:[%s26920_s11 + $0xf8] sm:$0xff]  ;;  %v407_v43 = vld [vmem:[#allocation2 + $0xe1] sm:$0xff] }
  0x3d   : > { %34698 = vst [vmem:[#allocation12_spill] sm:$0xff] %v27052_v28  ;;  %34699 = vst [vmem:[#allocation13_spill] sm:$0xff] %v27055_v30  ;;  %v610_v48 = vand.u32 4294901760, %v609_v31  ;;  %v620_v49 = vand.u32 4294901760, %v619_v32  ;;  %v27082_v51 = vsub.f32 %v448_v23, %v27064_v37  ;;  %v27099_v63 = vand.u32 4294901760, %v27079_v50  ;;  %v402_v32 = vld [vmem:[#allocation2 + $0xa9] sm:$0xff] }
  0x3e   : > { %34700 = vst [vmem:[#allocation14_spill] sm:$0xff] %v27072_v41  ;;  %34701 = vst [vmem:[#allocation15_spill] sm:$0xff] %v27075_v44  ;;  %v630_v55 = vand.u32 4294901760, %v629_v29  ;;  %v649_v56 = vsub.f32 %v27052_v28, %v27072_v41  ;;  %v659_v59 = vsub.f32 %v27055_v30, %v27075_v44  ;;  %v451_v5 = vsel %vm236_vm1, %v398_v38, 0  ;;  %v403_v29 = vld [vmem:[#allocation2 + $0xb1] sm:$0xff]  ;;  %v406_v2 = vld [vmem:[#allocation2 + $0xd9] sm:$0xff] }
  0x3f   : > { %34702 = vst [vmem:[#allocation16_spill] sm:$0xff] %v27079_v50  ;;  %34703 = vst [vmem:[#allocation17_spill] sm:$0xff] %v27082_v51  ;;  %21844 = vmatprep.mubr.f32.mxu1 %v610_v48  ;;  %23041 = vmatprep.mubr.f32.mxu0 %v610_v48  ;;  %v27102_v0 = vand.u32 4294901760, %v27082_v51  ;;  %v454_v10 = vsel %vm236_vm1, %v399_v39, 0  ;;  %v640_v15 = vand.u32 4294901760, %v639_v40  ;;  %v27110_v23 = vand.u32 4294901760, %v451_v5 }
  0x40   : > { %340 = vst.msk [vmem:[#allocation2 + $0x141] sm:$0xff] %vm236_vm1, %v307_v52  ;;  %341 = vst.msk [vmem:[#allocation2 + $0x151] sm:$0xff] %vm236_vm1, %v308_v53  ;;  %21845 = vmatmul.mubr.f32.gmra.mrb[2].mxu1 %v620_v49  ;;  %23042 = vmatmul.mubr.f32.vlgmr.msra.gmra.mrb[0].mxu0 %v620_v49  ;;  %v650_v22 = vand.u32 4294901760, %v649_v56  ;;  %v27112_v31 = vand.u32 4294901760, %v454_v10  ;;  %v660_v38 = vand.u32 4294901760, %v659_v59  ;;  %v669_v39 = vsub.f32 %v27079_v50, %v27099_v63  ;;  %v411_v26 = vld [vmem:[#allocation2 + $0x111] sm:$0xff] }
  0x41   : > { %342 = vst.msk [vmem:[#allocation2 + $0x159] sm:$0xff] %vm236_vm1, %v309_v54  ;;  %34704 = vst [vmem:[#allocation18_spill] sm:$0xff] %v27099_v63  ;;  %21847 = vmatprep.mubr.f32.mxu1 %v630_v55  ;;  %23044 = vmatprep.mubr.f32.mxu0 %v630_v55  ;;  %v457_v47 = vsel %vm236_vm1, %v400_v45, 0  ;;  %v460_v48 = vsel %vm236_vm1, %v401_v46, 0  ;;  %v27120_v40 = vsub.f32 %v451_v5, %v27110_v23  ;;  %v404_v54 = vld [vmem:[#allocation2 + $0xc1] sm:$0xff]  ;;  %v405_v55 = vld [vmem:[#allocation2 + $0xc9] sm:$0xff] }
  0x42   : > { %34705 = vst [vmem:[#allocation19_spill] sm:$0xff] %v27102_v0  ;;  %343 = vst.msk [vmem:[#allocation2 + $0x169] sm:$0xff] %vm236_vm1, %v310_v60  ;;  %v27123_v49 = vsub.f32 %v454_v10, %v27112_v31  ;;  %v27125_v52 = vand.u32 4294901760, %v457_v47  ;;  %v27127_v53 = vand.u32 4294901760, %v460_v48  ;;  %23090 = vmatpush3.msra.mxu0 %v26964_v33  ;;  %v670_v56 = vand.u32 4294901760, %v669_v39  ;;  %v412_v20 = vld [vmem:[#allocation2 + $0x121] sm:$0xff] }
  0x43   : > { %344 = vst.msk [vmem:[#allocation2 + $0x171] sm:$0xff] %vm236_vm1, %v311_v61  ;;  %345 = vst.msk [vmem:[#allocation2 + $0x181] sm:$0xff] %vm236_vm1, %v312_v62  ;;  %v679_v45 = vsub.f32 %v27082_v51, %v27102_v0  ;;  %v463_v46 = vsel %vm236_vm1, %v402_v32, 0  ;;  %v466_v59 = vsel %vm236_vm1, %v403_v29, 0  ;;  %23139 = vmatprep.subr.mxu0 %v26913_v8  ;;  %v27136_v60 = vand.u32 4294901760, %v27120_v40  ;;  %v408_v0 = vld [vmem:[#allocation2 + $0xf1] sm:$0xff] }
  0x44   : > { %346 = vst.msk [vmem:[#allocation2 + $0x189] sm:$0xff] %vm236_vm1, %v313_v14  ;;  %34706 = vst [vmem:[#allocation20_spill] sm:$0xff] %v27120_v40  ;;  %21848 = vmatmul.mubr.f32.gmra.mrb[4].mxu1 %v640_v15  ;;  %23045 = vmatmul.mubr.f32.gmra.mrb[2].mxu0 %v640_v15  ;;  %v27139_v61 = vand.u32 4294901760, %v27123_v49  ;;  %v27142_v33 = vsub.f32 %v457_v47, %v27125_v52  ;;  %v27145_v62 = vsub.f32 %v460_v48, %v27127_v53 }
  0x45   : > { %34707 = vst [vmem:[#allocation21_spill] sm:$0xff] %v27123_v49  ;;  %34708 = vst [vmem:[#allocation22_spill] sm:$0xff] %v27136_v60  ;;  %21850 = vmatprep.mubr.f32.mxu1 %v650_v22  ;;  %23047 = vmatprep.mubr.f32.mxu0 %v650_v22  ;;  %v27147_v5 = vand.u32 4294901760, %v463_v46  ;;  %v27149_v10 = vand.u32 4294901760, %v466_v59  ;;  %v469_v14 = vsel %vm236_vm1, %v404_v54, 0  ;;  %v472_v15 = vsel %vm236_vm1, %v405_v55, 0 }
  0x46   : > { %34709 = vst [vmem:[#allocation23_spill] sm:$0xff] %v27139_v61  ;;  %34710 = vst [vmem:[#allocation24_spill] sm:$0xff] %v27142_v33  ;;  %v689_v32 = vsub.f32 %v27120_v40, %v27136_v60  ;;  %v699_v29 = vsub.f32 %v27123_v49, %v27139_v61  ;;  %v27158_v39 = vand.u32 4294901760, %v27142_v33  ;;  %v27161_v47 = vand.u32 4294901760, %v27145_v62 }
  0x47   : > { %34711 = vst [vmem:[#allocation25_spill] sm:$0xff] %v27145_v62  ;;  %v27164_v22 = vsub.f32 %v463_v46, %v27147_v5  ;;  %v27167_v48 = vsub.f32 %v466_v59, %v27149_v10  ;;  %v27169_v54 = vand.u32 4294901760, %v469_v14  ;;  %v27171_v55 = vand.u32 4294901760, %v472_v15  ;;  %v415_v40 = vld [vmem:[#allocation2 + $0x141] sm:$0xff] }
  0x48   : > { %34712 = vst [vmem:[#allocation26_spill] sm:$0xff] %v27158_v39  ;;  %34713 = vst [vmem:[#allocation27_spill] sm:$0xff] %v27161_v47  ;;  %21851 = vmatmul.mubr.f32.gmra.mrb[6].mxu1 %v660_v38  ;;  %23048 = vmatmul.mubr.f32.gmra.mrb[4].mxu0 %v660_v38  ;;  %v680_v42 = vand.u32 4294901760, %v679_v45  ;;  %v690_v61 = vand.u32 4294901760, %v689_v32  ;;  %v709_v60 = vsub.f32 %v27142_v33, %v27158_v39  ;;  %v475_v44 = vsel %vm236_vm1, %v406_v2, 0  ;;  %v409_v45 = vld [vmem:[#allocation2 + $0xf9] sm:$0xff] }
  0x49   : > { %34714 = vst [vmem:[#allocation28_spill] sm:$0xff] %v27164_v22  ;;  %34715 = vst [vmem:[#allocation29_spill] sm:$0xff] %v27167_v48  ;;  %21853 = vmatprep.mubr.f32.mxu1 %v670_v56  ;;  %23050 = vmatprep.mubr.f32.mxu0 %v670_v56  ;;  %v27176_v46 = vand.u32 4294901760, %v27164_v22  ;;  %v27179_v59 = vsub.f32 %v469_v14, %v27169_v54  ;;  %v719_v63 = vsub.f32 %v27145_v62, %v27161_v47  ;;  %v417_v50 = vld [vmem:[#allocation2 + $0x159] sm:$0xff] }
  0x4a   : > { %v478_v38 = vsel %vm236_vm1, %v407_v43, 0  ;;  %v700_v56 = vand.u32 4294901760, %v699_v29  ;;  %v27188_v39 = vand.u32 4294901760, %v27167_v48  ;;  %v27191_v41 = vsub.f32 %v472_v15, %v27171_v55  ;;  %v410_v29 = vld [vmem:[#allocation2 + $0x109] sm:$0xff] }
  0x4b   : > { %34716 = vst [vmem:[#allocation30_spill] sm:$0xff] %v27176_v46  ;;  %34717 = vst [vmem:[#allocation31_spill] sm:$0xff] %v27179_v59  ;;  %v729_v32 = vsub.f32 %v27164_v22, %v27176_v46  ;;  %v27194_v14 = vand.u32 4294901760, %v27179_v59  ;;  %v27196_v47 = vand.u32 4294901760, %v475_v44  ;;  %v27198_v2 = vand.u32 4294901760, %v478_v38 }
  0x4c   : > { %34718 = vst [vmem:[#allocation32_spill] sm:$0xff] %v27188_v39  ;;  %34719 = vst [vmem:[#allocation33_spill] sm:$0xff] %v27191_v41  ;;  %21854 = vmatmul.mubr.f32.gmra.mrb[8].mxu1 %v680_v42  ;;  %23051 = vmatmul.mubr.f32.gmra.mrb[6].mxu0 %v680_v42  ;;  %v481_v43 = vsel %vm236_vm1, %v408_v0, 0  ;;  %v710_v46 = vand.u32 4294901760, %v709_v60  ;;  %v484_v27 = vsel %vm236_vm1, %v409_v45, 0  ;;  %v720_v15 = vand.u32 4294901760, %v719_v63 }
  0x4d   : > { %34720 = vst [vmem:[#allocation34_spill] sm:$0xff] %v27194_v14  ;;  %21856 = vmatprep.mubr.f32.mxu1 %v690_v61  ;;  %23053 = vmatprep.mubr.f32.mxu0 %v690_v61  ;;  %v27203_v21 = vsub.f32 %v475_v44, %v27196_v47  ;;  %v27205_v42 = vand.u32 4294901760, %v481_v43  ;;  %v730_v22 = vand.u32 4294901760, %v729_v32  ;;  %v739_v62 = vsub.f32 %v27167_v48, %v27188_v39 }
  0x4e   : > { %v27210_v0 = vand.u32 4294901760, %v27191_v41  ;;  %v487_v61 = vsel %vm236_vm1, %v410_v29, 0  ;;  %v749_v63 = vsub.f32 %v27179_v59, %v27194_v14  ;;  %v27216_v44 = vsub.f32 %v478_v38, %v27198_v2  ;;  %v413_v14 = vld [vmem:[#allocation2 + $0x129] sm:$0xff] }
  0x4f   : > { %34721 = vst [vmem:[#allocation35_spill] sm:$0xff] %v27203_v21  ;;  %v27218_v60 = vand.u32 4294901760, %v484_v27  ;;  %v490_v45 = vsel %vm236_vm1, %v411_v26, 0  ;;  %v27222_v32 = vand.u32 4294901760, %v27203_v21  ;;  %v27225_v39 = vsub.f32 %v481_v43, %v27205_v42 }
  0x50   : > { %34722 = vst [vmem:[#allocation36_spill] sm:$0xff] %v27210_v0  ;;  %21857 = vmatmul.mubr.f32.gmra.mrb[10].mxu1 %v700_v56  ;;  %23054 = vmatmul.mubr.f32.gmra.mrb[8].mxu0 %v700_v56  ;;  %34723 = vst [vmem:[#allocation37_spill] sm:$0xff] %v27216_v44  ;;  %v27227_v29 = vand.u32 4294901760, %v487_v61  ;;  %v493_v56 = vsel %vm236_vm1, %v412_v20, 0  ;;  %v740_v59 = vand.u32 4294901760, %v739_v62  ;;  %v759_v38 = vsub.f32 %v27191_v41, %v27210_v0 }
  0x51   : > { %21859 = vmatprep.mubr.f32.mxu1 %v710_v46  ;;  %23056 = vmatprep.mubr.f32.mxu0 %v710_v46  ;;  %34724 = vst [vmem:[#allocation38_spill] sm:$0xff] %v27222_v32  ;;  %34725 = vst [vmem:[#allocation39_spill] sm:$0xff] %v27225_v39  ;;  %v27232_v48 = vand.u32 4294901760, %v490_v45  ;;  %v27234_v26 = vand.u32 4294901760, %v493_v56  ;;  %v414_v46 = vld [vmem:[#allocation2 + $0x139] sm:$0xff]  ;;  %v27237_v33 = vand.u32 4294901760, %v27216_v44  ;;  %v27240_v43 = vsub.f32 %v484_v27, %v27218_v60 }
  0x52   : > { %v27243_v20 = vsub.f32 %v487_v61, %v27227_v29  ;;  %v496_v62 = vsel %vm236_vm1, %v413_v14, 0  ;;  %v750_v0 = vand.u32 4294901760, %v749_v63  ;;  %v769_v41 = vsub.f32 %v27203_v21, %v27222_v32  ;;  %v416_v14 = vld [vmem:[#allocation2 + $0x151] sm:$0xff] }
  0x53   : > { %34726 = vst [vmem:[#allocation40_spill] sm:$0xff] %v27237_v33  ;;  %34727 = vst [vmem:[#allocation41_spill] sm:$0xff] %v27240_v43  ;;  %v27249_v49 = vand.u32 4294901760, %v27225_v39  ;;  %v27253_v27 = vsub.f32 %v490_v45, %v27232_v48  ;;  %v27256_v61 = vsub.f32 %v493_v56, %v27234_v26  ;;  %v27258_v51 = vand.u32 4294901760, %v496_v62 }
  0x54   : > { %21860 = vmatmul.mubr.f32.gmra.mrb[12].mxu1 %v720_v15  ;;  %23057 = vmatmul.mubr.f32.gmra.mrb[10].mxu0 %v720_v15  ;;  %34728 = vst [vmem:[#allocation42_spill] sm:$0xff] %v27243_v20  ;;  %v499_v15 = vsel %vm236_vm1, %v414_v46, 0  ;;  %v779_v63 = vsub.f32 %v27216_v44, %v27237_v33  ;;  %v27263_v32 = vand.u32 4294901760, %v27240_v43  ;;  %v27266_v46 = vand.u32 4294901760, %v27243_v20 }
  0x55   : > { %21862 = vmatprep.mubr.f32.mxu1 %v730_v22  ;;  %23059 = vmatprep.mubr.f32.mxu0 %v730_v22  ;;  %34729 = vst [vmem:[#allocation43_spill] sm:$0xff] %v27249_v49  ;;  %34730 = vst [vmem:[#allocation44_spill] sm:$0xff] %v27253_v27  ;;  %v760_v22 = vand.u32 4294901760, %v759_v38  ;;  %v770_v45 = vand.u32 4294901760, %v769_v41  ;;  %v789_v56 = vsub.f32 %v27225_v39, %v27249_v49  ;;  %v27270_v21 = vand.u32 4294901760, %v499_v15  ;;  %v418_v41 = vld [vmem:[#allocation2 + $0x169] sm:$0xff] }
  0x56   : > { %34731 = vst [vmem:[#allocation45_spill] sm:$0xff] %v27256_v61  ;;  %34732 = vst [vmem:[#allocation46_spill] sm:$0xff] %v27263_v32  ;;  %v505_v38 = vsel %vm236_vm1, %v416_v14, 0  ;;  %v27275_v33 = vand.u32 4294901760, %v27253_v27  ;;  %v27278_v44 = vand.u32 4294901760, %v27256_v61  ;;  %v27281_v30 = vsub.f32 %v496_v62, %v27258_v51 }
  0x57   : > { %34733 = vst [vmem:[#allocation47_spill] sm:$0xff] %v27266_v46  ;;  %v799_v49 = vsub.f32 %v27240_v43, %v27263_v32  ;;  %v790_v39 = vand.u32 4294901760, %v789_v56  ;;  %v27290_v28 = vsub.f32 %v499_v15, %v27270_v21  ;;  %v27292_v62 = vand.u32 4294901760, %v505_v38 }
  0x58   : > { %21863 = vmatmul.mubr.f32.gmra.mrb[14].mxu1 %v740_v59  ;;  %23060 = vmatmul.mubr.f32.gmra.mrb[12].mxu0 %v740_v59  ;;  %v502_v59 = vsel %vm236_vm1, %v415_v40, 0  ;;  %34734 = vst [vmem:[#allocation48_spill] sm:$0xff] %v27275_v33  ;;  %34735 = vst [vmem:[#allocation49_spill] sm:$0xff] %v27278_v44  ;;  %v809_v40 = vsub.f32 %v27243_v20, %v27266_v46  ;;  %v508_v17 = vsel %vm236_vm1, %v417_v50, 0  ;;  %v27301_v20 = vand.u32 4294901760, %v27281_v30 }
  0x59   : > { %21865 = vmatprep.mubr.f32.mxu1 %v750_v0  ;;  %23062 = vmatprep.mubr.f32.mxu0 %v750_v0  ;;  %v780_v0 = vand.u32 4294901760, %v779_v63  ;;  %v27287_v14 = vand.u32 4294901760, %v502_v59  ;;  %34736 = vst [vmem:[#allocation50_spill] sm:$0xff] %v27290_v28  ;;  %v419_v63 = vld [vmem:[#allocation2 + $0x171] sm:$0xff]  ;;  %v819_v32 = vsub.f32 %v27253_v27, %v27275_v33  ;;  %v829_v46 = vsub.f32 %v27256_v61, %v27278_v44 }
  0x5a   : > { %34737 = vst [vmem:[#allocation51_spill] sm:$0xff] %v27301_v20  ;;  %v800_v15 = vand.u32 4294901760, %v799_v49  ;;  %v810_v56 = vand.u32 4294901760, %v809_v40  ;;  %v27306_v50 = vand.u32 4294901760, %v508_v17  ;;  %v27312_v44 = vsub.f32 %v505_v38, %v27292_v62 }
  0x5b   : > { %v27304_v43 = vsub.f32 %v502_v59, %v27287_v14  ;;  %v514_v61 = vsel %vm236_vm1, %v419_v63, 0  ;;  %v820_v40 = vand.u32 4294901760, %v819_v32  ;;  %v830_v59 = vand.u32 4294901760, %v829_v46 }
  0x5c   : > { %21866 = vmatmul.mubr.f32.gmra.mrb[16].mxu1 %v760_v22  ;;  %23063 = vmatmul.mubr.f32.gmra.mrb[14].mxu0 %v760_v22  ;;  %v511_v22 = vsel %vm236_vm1, %v418_v41, 0  ;;  %v27309_v41 = vand.u32 4294901760, %v27290_v28  ;;  %v839_v27 = vsub.f32 %v27281_v30, %v27301_v20  ;;  %v27324_v38 = vsub.f32 %v508_v17, %v27306_v50 }
  0x5d   : > { %21868 = vmatprep.mubr.f32.mxu1 %v770_v45  ;;  %23065 = vmatprep.mubr.f32.mxu0 %v770_v45  ;;  %v8091_v45 = vld [vmem:[#allocation2 + $0x181] sm:$0xff]  ;;  %34738 = vst [vmem:[#allocation52_spill] sm:$0xff] %v27304_v43  ;;  %v27314_v33 = vand.u32 4294901760, %v511_v22  ;;  %v27326_v13 = vand.u32 4294901760, %v514_v61  ;;  %v27332_v46 = vand.u32 4294901760, %v27312_v44 }
  0x5e   : > { %34739 = vst [vmem:[#allocation53_spill] sm:$0xff] %v27309_v41  ;;  %v8184_v49 = vsel %vm236_vm1, %v8091_v45, 0  ;;  %v849_v32 = vsub.f32 %v27290_v28, %v27309_v41  ;;  %v840_v20 = vand.u32 4294901760, %v839_v27 }
  0x5f   : > { %34741 = vst [vmem:[#allocation55_spill] sm:$0xff] %v27332_v46  ;;  %v27335_v45 = vsub.f32 %v511_v22, %v27314_v33  ;;  %v869_v28 = vsub.f32 %v27312_v44, %v27332_v46 }
  0x60   : > { %21869 = vmatmul.mubr.f32.gmra.mrb[18].mxu1 %v780_v0  ;;  %23066 = vmatmul.mubr.f32.gmra.mrb[16].mxu0 %v780_v0  ;;  %v8092_v0 = vld [vmem:[#allocation2 + $0x189] sm:$0xff]  ;;  %v850_v22 = vand.u32 4294901760, %v849_v32 }
  0x61   : > { %21871 = vmatprep.mubr.f32.mxu1 %v790_v39  ;;  %23068 = vmatprep.mubr.f32.mxu0 %v790_v39  ;;  %v27321_v39 = vand.u32 4294901760, %v27304_v43  ;;  %v8187_v63 = vsel %vm236_vm1, %v8092_v0, 0  ;;  %v27342_v0 = vand.u32 4294901760, %v27324_v38  ;;  %v27352_v27 = vand.u32 4294901760, %v27335_v45 }
  0x62   : > { %v27347_v41 = vand.u32 4294901760, %v8187_v63  ;;  %v870_v32 = vand.u32 4294901760, %v869_v28 }
  0x63   : > { %34740 = vst [vmem:[#allocation54_spill] sm:$0xff] %v27321_v39  ;;  %v859_v17 = vsub.f32 %v27304_v43, %v27321_v39  ;;  %34742 = vst [vmem:[#allocation56_spill] sm:$0xff] %v27342_v0  ;;  %v889_v46 = vsub.f32 %v27335_v45, %v27352_v27 }
  0x64   : > { %21872 = vmatmul.mubr.f32.gmra.mrb[20].mxu1 %v800_v15  ;;  %23069 = vmatmul.mubr.f32.gmra.mrb[18].mxu0 %v800_v15  ;;  %v27337_v15 = vand.u32 4294901760, %v8184_v49 }
  0x65   : > { %21874 = vmatprep.mubr.f32.mxu1 %v810_v56  ;;  %23071 = vmatprep.mubr.f32.mxu0 %v810_v56  ;;  %v27345_v56 = vsub.f32 %v514_v61, %v27326_v13  ;;  %v860_v39 = vand.u32 4294901760, %v859_v17  ;;  %v879_v61 = vsub.f32 %v27324_v38, %v27342_v0 }
  0x67   : > { %v27360_v43 = vand.u32 4294901760, %v27345_v56 }
  0x68   : > { %21875 = vmatmul.mubr.f32.gmra.mrb[22].mxu1 %v820_v40  ;;  %23072 = vmatmul.mubr.f32.gmra.mrb[20].mxu0 %v820_v40  ;;  %v27355_v40 = vsub.f32 %v8184_v49, %v27337_v15 }
  0x69   : > { %21877 = vmatprep.mubr.f32.mxu1 %v830_v59  ;;  %23074 = vmatprep.mubr.f32.mxu0 %v830_v59  ;;  %34743 = vst [vmem:[#allocation57_spill] sm:$0xff] %v27360_v43  ;;  %v27363_v59 = vsub.f32 %v8187_v63, %v27347_v41  ;;  %v899_v17 = vsub.f32 %v27345_v56, %v27360_v43  ;;  %v890_v63 = vand.u32 4294901760, %v889_v46  ;;  %v34750_v46 = vld [vmem:[#allocation20_spill] sm:$0xff] }
  0x6a   : > { %v8560_v49 = vand.u32 4294901760, %v27355_v40 }
  0x6b   : > { %v8570_v0 = vand.u32 4294901760, %v27363_v59 }
  0x6c   : > { %21878 = vmatmul.mubr.f32.gmra.mrb[24].mxu1 %v840_v20  ;;  %23075 = vmatmul.mubr.f32.gmra.mrb[22].mxu0 %v840_v20  ;;  %v880_v20 = vand.u32 4294901760, %v879_v61  ;;  %v8561_v28 = vsub.f32 %v27355_v40, %v8560_v49 }
  0x6d   : > { %21880 = vmatprep.mubr.f32.mxu1 %v850_v22  ;;  %23077 = vmatprep.mubr.f32.mxu0 %v850_v22  ;;  %v900_v22 = vand.u32 4294901760, %v899_v17  ;;  %v34753_v17 = vld [vmem:[#allocation25_spill] sm:$0xff] }
  0x6e   : > { %v8562_v61 = vand.u32 4294901760, %v8561_v28  ;;  %v34755_v28 = vld [vmem:[#allocation29_spill] sm:$0xff] }
  0x70   : > { %21881 = vmatmul.mubr.f32.gmra.mrb[26].mxu1 %v860_v39  ;;  %23078 = vmatmul.mubr.f32.gmra.mrb[24].mxu0 %v860_v39  ;;  %v8571_v39 = vsub.f32 %v27363_v59, %v8570_v0 }
  0x71   : > { %21883 = vmatprep.mubr.f32.mxu1 %v870_v32  ;;  %23080 = vmatprep.mubr.f32.mxu0 %v870_v32  ;;  %v34751_v32 = vld [vmem:[#allocation21_spill] sm:$0xff] }
  0x72   : > { %v8572_v43 = vand.u32 4294901760, %v8571_v39  ;;  %v34757_v39 = vld [vmem:[#allocation33_spill] sm:$0xff] }
  0x74   : > { %21884 = vmatmul.mubr.f32.gmra.mrb[28].mxu1 %v880_v20  ;;  %23081 = vmatmul.mubr.f32.gmra.mrb[26].mxu0 %v880_v20  ;;  %v34752_v20 = vld [vmem:[#allocation24_spill] sm:$0xff] }
  0x75   : > { %21886 = vmatprep.mubr.f32.mxu1 %v890_v63  ;;  %23083 = vmatprep.mubr.f32.mxu0 %v890_v63  ;;  %v34754_v63 = vld [vmem:[#allocation28_spill] sm:$0xff] }
  0x78   : > { %21887 = vmatmul.mubr.f32.gmra.mrb[30].mxu1 %v900_v22  ;;  %23084 = vmatmul.mubr.f32.gmra.mrb[28].mxu0 %v900_v22  ;;  %v34756_v22 = vld [vmem:[#allocation31_spill] sm:$0xff] }
  0x79   : > { %21891 = vmatprep.mubr.f32.mxu1 %v26946_v24  ;;  %23086 = vmatprep.mubr.f32.mxu0 %v8562_v61  ;;  %v34758_v61 = vld [vmem:[#allocation35_spill] sm:$0xff] }
  0x7c   : > { %21892 = vmatmul.mubr.f32.vlgmr.msra.gmra.mrb[0].mxu1 %v26948_v25  ;;  %23087 = vmatmul.mubr.f32.gmra.mrb[30].mxu0 %v8572_v43  ;;  %v34747_v43 = vld [vmem:[#allocation13_spill] sm:$0xff] }
  0x7d   : > { %21894 = vmatprep.mubr.f32.mxu1 %v27007_v57  ;;  %23091 = vmatprep.mubr.f32.mxu0 %v27007_v57 }
  0x7e   : > { %21940 = vmatpush3.msra.mxu1 %v26907_v7  ;;  %v34744_v7 = vld [vmem:[#allocation6_spill] sm:$0xff] }
  0x7f   : > { %21989 = vmatprep.subr.mxu1 %v26823_v4 }
  0x80   : > { %21895 = vmatmul.mubr.f32.gmra.mrb[2].mxu1 %v27009_v58  ;;  %23092 = vmatmul.mubr.f32.vlgmr.msra.gmra.mrb[0].mxu0 %v27009_v58 }
  0x81   : > { %21897 = vmatprep.mubr.f32.mxu1 %v27015_v1  ;;  %23094 = vmatprep.mubr.f32.mxu0 %v27015_v1 }
  0x82   : > { %23140 = vmatpush3.msra.mxu0 %v26913_v8  ;;  %v34745_v8 = vld [vmem:[#allocation7_spill] sm:$0xff] }
  0x83   : > { %23189 = vmatprep.subr.mxu0 %v26898_v6 }
  0x84   : > { %21898 = vmatmul.mubr.f32.gmra.mrb[4].mxu1 %v27017_v3  ;;  %23095 = vmatmul.mubr.f32.gmra.mrb[2].mxu0 %v27017_v3 }
  0x85   : > { %21900 = vmatprep.mubr.f32.mxu1 %v27033_v18  ;;  %23097 = vmatprep.mubr.f32.mxu0 %v27033_v18 }
  0x88   : > { %21901 = vmatmul.mubr.f32.gmra.mrb[6].mxu1 %v27035_v19  ;;  %23098 = vmatmul.mubr.f32.gmra.mrb[4].mxu0 %v27035_v19 }
  0x89   : > { %21903 = vmatprep.mubr.f32.mxu1 %v27062_v36  ;;  %23100 = vmatprep.mubr.f32.mxu0 %v27062_v36 }
  0x8c   : > { %21904 = vmatmul.mubr.f32.gmra.mrb[8].mxu1 %v27064_v37  ;;  %23101 = vmatmul.mubr.f32.gmra.mrb[6].mxu0 %v27064_v37 }
  0x8d   : > { %21906 = vmatprep.mubr.f32.mxu1 %v27110_v23  ;;  %23103 = vmatprep.mubr.f32.mxu0 %v27110_v23 }
  0x90   : > { %21907 = vmatmul.mubr.f32.gmra.mrb[10].mxu1 %v27112_v31  ;;  %23104 = vmatmul.mubr.f32.gmra.mrb[8].mxu0 %v27112_v31 }
  0x91   : > { %21909 = vmatprep.mubr.f32.mxu1 %v27125_v52  ;;  %23106 = vmatprep.mubr.f32.mxu0 %v27125_v52 }
  0x94   : > { %21910 = vmatmul.mubr.f32.gmra.mrb[12].mxu1 %v27127_v53  ;;  %23107 = vmatmul.mubr.f32.gmra.mrb[10].mxu0 %v27127_v53 }
  0x95   : > { %21912 = vmatprep.mubr.f32.mxu1 %v27147_v5  ;;  %23109 = vmatprep.mubr.f32.mxu0 %v27147_v5 }
  0x98   : > { %21913 = vmatmul.mubr.f32.gmra.mrb[14].mxu1 %v27149_v10  ;;  %23110 = vmatmul.mubr.f32.gmra.mrb[12].mxu0 %v27149_v10 }
  0x99   : > { %21915 = vmatprep.mubr.f32.mxu1 %v27169_v54  ;;  %23112 = vmatprep.mubr.f32.mxu0 %v27169_v54 }
  0x9c   : > { %21916 = vmatmul.mubr.f32.gmra.mrb[16].mxu1 %v27171_v55  ;;  %23113 = vmatmul.mubr.f32.gmra.mrb[14].mxu0 %v27171_v55 }
  0x9d   : > { %21918 = vmatprep.mubr.f32.mxu1 %v27196_v47  ;;  %23115 = vmatprep.mubr.f32.mxu0 %v27196_v47 }
  0xa0   : > { %21919 = vmatmul.mubr.f32.gmra.mrb[18].mxu1 %v27198_v2  ;;  %23116 = vmatmul.mubr.f32.gmra.mrb[16].mxu0 %v27198_v2 }
  0xa1   : > { %21921 = vmatprep.mubr.f32.mxu1 %v27205_v42  ;;  %23118 = vmatprep.mubr.f32.mxu0 %v27205_v42 }
  0xa4   : > { %21922 = vmatmul.mubr.f32.gmra.mrb[20].mxu1 %v27218_v60  ;;  %23119 = vmatmul.mubr.f32.gmra.mrb[18].mxu0 %v27218_v60 }
  0xa5   : > { %21924 = vmatprep.mubr.f32.mxu1 %v27227_v29  ;;  %23121 = vmatprep.mubr.f32.mxu0 %v27227_v29 }
  0xa8   : > { %21925 = vmatmul.mubr.f32.gmra.mrb[22].mxu1 %v27232_v48  ;;  %23122 = vmatmul.mubr.f32.gmra.mrb[20].mxu0 %v27232_v48 }
  0xa9   : > { %21927 = vmatprep.mubr.f32.mxu1 %v27234_v26  ;;  %23124 = vmatprep.mubr.f32.mxu0 %v27234_v26 }
  0xac   : > { %21928 = vmatmul.mubr.f32.gmra.mrb[24].mxu1 %v27258_v51  ;;  %23125 = vmatmul.mubr.f32.gmra.mrb[22].mxu0 %v27258_v51 }
  0xad   : > { %21930 = vmatprep.mubr.f32.mxu1 %v27270_v21  ;;  %23127 = vmatprep.mubr.f32.mxu0 %v27270_v21 }
  0xb0   : > { %21931 = vmatmul.mubr.f32.gmra.mrb[26].mxu1 %v27287_v14  ;;  %23128 = vmatmul.mubr.f32.gmra.mrb[24].mxu0 %v27287_v14 }
  0xb1   : > { %21933 = vmatprep.mubr.f32.mxu1 %v27292_v62  ;;  %23130 = vmatprep.mubr.f32.mxu0 %v27292_v62 }
  0xb4   : > { %21934 = vmatmul.mubr.f32.gmra.mrb[28].mxu1 %v27306_v50  ;;  %23131 = vmatmul.mubr.f32.gmra.mrb[26].mxu0 %v27306_v50 }
  0xb5   : > { %21936 = vmatprep.mubr.f32.mxu1 %v27314_v33  ;;  %23133 = vmatprep.mubr.f32.mxu0 %v27314_v33 }
  0xb8   : > { %21937 = vmatmul.mubr.f32.gmra.mrb[30].mxu1 %v27326_v13  ;;  %23134 = vmatmul.mubr.f32.gmra.mrb[28].mxu0 %v27326_v13 }
  0xb9   : > { %21941 = vmatprep.mubr.f32.mxu1 %v26967_v34  ;;  %23136 = vmatprep.mubr.f32.mxu0 %v27337_v15 }
  0xbc   : > { %21942 = vmatmul.mubr.f32.vlgmr.msra.gmra.mrb[0].mxu1 %v26970_v35  ;;  %23137 = vmatmul.mubr.f32.gmra.mrb[30].mxu0 %v27347_v41 }
  0xbd   : > { %21944 = vmatprep.mubr.f32.mxu1 %v27020_v11  ;;  %23141 = vmatprep.mubr.f32.mxu0 %v27020_v11  ;;  %v34746_v11 = vld [vmem:[#allocation12_spill] sm:$0xff] }
  0xbe   : > { %21990 = vmatpush3.msra.mxu1 %v26823_v4 }
  0xbf   : > { %22039 = vmatprep.subr.mxu1 %v26924_v9 }
  0xc0   : > { %21945 = vmatmul.mubr.f32.gmra.mrb[2].mxu1 %v27023_v12  ;;  %23142 = vmatmul.mubr.f32.vlgmr.msra.gmra.mrb[0].mxu0 %v27023_v12  ;;  %v34748_v12 = vld [vmem:[#allocation16_spill] sm:$0xff] }
  0xc1   : > { %21947 = vmatprep.mubr.f32.mxu1 %v27028_v16  ;;  %23144 = vmatprep.mubr.f32.mxu0 %v27028_v16  ;;  %v34749_v16 = vld [vmem:[#allocation17_spill] sm:$0xff] }
  0xc2   : > { %23190 = vmatpush3.msra.mxu0 %v26898_v6 }
  0xc3   : > { %23239 = vmatprep.subr.mxu0 %v34744_v7 }
  0xc4   : > { %21948 = vmatmul.mubr.f32.gmra.mrb[4].mxu1 %v34745_v8  ;;  %23145 = vmatmul.mubr.f32.gmra.mrb[2].mxu0 %v34745_v8  ;;  %v34759_v8 = vld [vmem:[#allocation37_spill] sm:$0xff] }
  0xc5   : > { %21950 = vmatprep.mubr.f32.mxu1 %v34746_v11  ;;  %23147 = vmatprep.mubr.f32.mxu0 %v34746_v11  ;;  %v34760_v11 = vld [vmem:[#allocation39_spill] sm:$0xff] }
  0xc8   : > { %21951 = vmatmul.mubr.f32.gmra.mrb[6].mxu1 %v34747_v43  ;;  %23148 = vmatmul.mubr.f32.gmra.mrb[4].mxu0 %v34747_v43  ;;  %v34761_v43 = vld [vmem:[#allocation41_spill] sm:$0xff] }
  0xc9   : > { %21953 = vmatprep.mubr.f32.mxu1 %v34748_v12  ;;  %23150 = vmatprep.mubr.f32.mxu0 %v34748_v12  ;;  %v34762_v12 = vld [vmem:[#allocation42_spill] sm:$0xff] }
  0xcc   : > { %21954 = vmatmul.mubr.f32.gmra.mrb[8].mxu1 %v34749_v16  ;;  %23151 = vmatmul.mubr.f32.gmra.mrb[6].mxu0 %v34749_v16  ;;  %v34763_v16 = vld [vmem:[#allocation44_spill] sm:$0xff] }
  0xcd   : > { %21956 = vmatprep.mubr.f32.mxu1 %v34750_v46  ;;  %23153 = vmatprep.mubr.f32.mxu0 %v34750_v46  ;;  %v34764_v46 = vld [vmem:[#allocation45_spill] sm:$0xff] }
  0xd0   : > { %21957 = vmatmul.mubr.f32.gmra.mrb[10].mxu1 %v34751_v32  ;;  %23154 = vmatmul.mubr.f32.gmra.mrb[8].mxu0 %v34751_v32  ;;  %v34765_v32 = vld [vmem:[#allocation50_spill] sm:$0xff] }
  0xd1   : > { %21959 = vmatprep.mubr.f32.mxu1 %v34752_v20  ;;  %23156 = vmatprep.mubr.f32.mxu0 %v34752_v20  ;;  %v34766_v20 = vld [vmem:[#allocation52_spill] sm:$0xff] }
  0xd4   : > { %21960 = vmatmul.mubr.f32.gmra.mrb[12].mxu1 %v34753_v17  ;;  %23157 = vmatmul.mubr.f32.gmra.mrb[10].mxu0 %v34753_v17  ;;  %v34768_v17 = vand.u32 4294901760, %v26970_v35  ;;  %v34772_v35 = vld [vmem:[#allocation11_spill] sm:$0xff] }
  0xd5   : > { %21962 = vmatprep.mubr.f32.mxu1 %v34754_v63  ;;  %23159 = vmatprep.mubr.f32.mxu0 %v34754_v63  ;;  %v34776_v63 = vld [vmem:[#allocation19_spill] sm:$0xff] }
  0xd8   : > { %21963 = vmatmul.mubr.f32.gmra.mrb[14].mxu1 %v34755_v28  ;;  %23160 = vmatmul.mubr.f32.gmra.mrb[12].mxu0 %v34755_v28  ;;  %v34778_v28 = vld [vmem:[#allocation23_spill] sm:$0xff] }
  0xd9   : > { %21965 = vmatprep.mubr.f32.mxu1 %v34756_v22  ;;  %23162 = vmatprep.mubr.f32.mxu0 %v34756_v22  ;;  %v34779_v22 = vld [vmem:[#allocation26_spill] sm:$0xff] }
  0xdc   : > { %21966 = vmatmul.mubr.f32.gmra.mrb[16].mxu1 %v34757_v39  ;;  %23163 = vmatmul.mubr.f32.gmra.mrb[14].mxu0 %v34757_v39  ;;  %v34780_v39 = vld [vmem:[#allocation27_spill] sm:$0xff] }
  0xdd   : > { %21968 = vmatprep.mubr.f32.mxu1 %v34758_v61  ;;  %23165 = vmatprep.mubr.f32.mxu0 %v34758_v61  ;;  %v34781_v61 = vld [vmem:[#allocation30_spill] sm:$0xff] }
  0xe0   : > { %21969 = vmatmul.mubr.f32.gmra.mrb[18].mxu1 %v34759_v8  ;;  %23166 = vmatmul.mubr.f32.gmra.mrb[16].mxu0 %v34759_v8  ;;  %v34782_v8 = vld [vmem:[#allocation32_spill] sm:$0xff] }
  0xe1   : > { %21971 = vmatprep.mubr.f32.mxu1 %v34760_v11  ;;  %23168 = vmatprep.mubr.f32.mxu0 %v34760_v11  ;;  %v34783_v11 = vld [vmem:[#allocation34_spill] sm:$0xff] }
  0xe4   : > { %21972 = vmatmul.mubr.f32.gmra.mrb[20].mxu1 %v34761_v43  ;;  %23169 = vmatmul.mubr.f32.gmra.mrb[18].mxu0 %v34761_v43  ;;  %v34784_v43 = vld [vmem:[#allocation36_spill] sm:$0xff] }
  0xe5   : > { %21974 = vmatprep.mubr.f32.mxu1 %v34762_v12  ;;  %23171 = vmatprep.mubr.f32.mxu0 %v34762_v12  ;;  %v34785_v12 = vld [vmem:[#allocation38_spill] sm:$0xff] }
  0xe8   : > { %21975 = vmatmul.mubr.f32.gmra.mrb[22].mxu1 %v34763_v16  ;;  %23172 = vmatmul.mubr.f32.gmra.mrb[20].mxu0 %v34763_v16  ;;  %v34786_v16 = vld [vmem:[#allocation40_spill] sm:$0xff] }
  0xe9   : > { %21977 = vmatprep.mubr.f32.mxu1 %v34764_v46  ;;  %23174 = vmatprep.mubr.f32.mxu0 %v34764_v46  ;;  %v34787_v46 = vld [vmem:[#allocation43_spill] sm:$0xff] }
  0xec   : > { %21978 = vmatmul.mubr.f32.gmra.mrb[24].mxu1 %v27281_v30  ;;  %23175 = vmatmul.mubr.f32.gmra.mrb[22].mxu0 %v27281_v30  ;;  %v34767_v30 = vand.u32 4294901760, %v26967_v34  ;;  %v34771_v34 = vld [vmem:[#allocation10_spill] sm:$0xff] }
  0xed   : > { %21980 = vmatprep.mubr.f32.mxu1 %v34765_v32  ;;  %23177 = vmatprep.mubr.f32.mxu0 %v34765_v32  ;;  %v34788_v32 = vld [vmem:[#allocation46_spill] sm:$0xff] }
  0xf0   : > { %21981 = vmatmul.mubr.f32.gmra.mrb[26].mxu1 %v34766_v20  ;;  %23178 = vmatmul.mubr.f32.gmra.mrb[24].mxu0 %v34766_v20  ;;  %v34789_v20 = vld [vmem:[#allocation47_spill] sm:$0xff] }
  0xf1   : > { %21983 = vmatprep.mubr.f32.mxu1 %v27312_v44  ;;  %23180 = vmatprep.mubr.f32.mxu0 %v27312_v44  ;;  %v34769_v44 = vld [vmem:[#allocation8_spill] sm:$0xff] }
  0xf4   : > { %21984 = vmatmul.mubr.f32.gmra.mrb[28].mxu1 %v27324_v38  ;;  %23181 = vmatmul.mubr.f32.gmra.mrb[26].mxu0 %v27324_v38  ;;  %v34770_v38 = vld [vmem:[#allocation9_spill] sm:$0xff] }
  0xf5   : > { %21986 = vmatprep.mubr.f32.mxu1 %v27335_v45  ;;  %23183 = vmatprep.mubr.f32.mxu0 %v27335_v45  ;;  %v34773_v45 = vld [vmem:[#allocation14_spill] sm:$0xff] }
  0xf8   : > { %21987 = vmatmul.mubr.f32.gmra.mrb[30].mxu1 %v27345_v56  ;;  %23184 = vmatmul.mubr.f32.gmra.mrb[28].mxu0 %v27345_v56  ;;  %v34775_v56 = vld [vmem:[#allocation18_spill] sm:$0xff] }
  0xf9   : > { %21991 = vmatprep.mubr.f32.mxu1 %v34767_v30  ;;  %23186 = vmatprep.mubr.f32.mxu0 %v27355_v40  ;;  %v34790_v30 = vld [vmem:[#allocation48_spill] sm:$0xff] }
  0xfc   : > { %21992 = vmatmul.mubr.f32.vlgmr.msra.gmra.mrb[0].mxu1 %v34768_v17  ;;  %23187 = vmatmul.mubr.f32.gmra.mrb[30].mxu0 %v27363_v59  ;;  %v34791_v17 = vld [vmem:[#allocation49_spill] sm:$0xff] }
  0xfd   : > { %21994 = vmatprep.mubr.f32.mxu1 %v34769_v44  ;;  %23191 = vmatprep.mubr.f32.mxu0 %v34769_v44  ;;  %v34792_v44 = vld [vmem:[#allocation51_spill] sm:$0xff] }
  0xfe   : > { %22040 = vmatpush3.msra.mxu1 %v26924_v9  ;;  %v34774_v9 = vld [vmem:[#allocation15_spill] sm:$0xff] }
  0xff   : > { %22089 = vmatprep.subr.mxu1 %v26823_v4 }
 0x100   : > { %21995 = vmatmul.mubr.f32.gmra.mrb[2].mxu1 %v34770_v38  ;;  %23192 = vmatmul.mubr.f32.vlgmr.msra.gmra.mrb[0].mxu0 %v34770_v38  ;;  %v34793_v38 = vld [vmem:[#allocation53_spill] sm:$0xff] }
 0x101   : > { %21997 = vmatprep.mubr.f32.mxu1 %v34771_v34  ;;  %23194 = vmatprep.mubr.f32.mxu0 %v34771_v34  ;;  %v34794_v34 = vld [vmem:[#allocation54_spill] sm:$0xff] }
 0x102   : > { %23240 = vmatpush3.msra.mxu0 %v34744_v7  ;;  %v34777_v7 = vld [vmem:[#allocation22_spill] sm:$0xff] }
 0x103   : > { %23289 = vmatprep.subr.mxu0 %v26898_v6 }
 0x104   : > { %21998 = vmatmul.mubr.f32.gmra.mrb[4].mxu1 %v34772_v35  ;;  %23195 = vmatmul.mubr.f32.gmra.mrb[2].mxu0 %v34772_v35  ;;  %v34795_v35 = vld [vmem:[#allocation55_spill] sm:$0xff] }
 0x105   : > { %22000 = vmatprep.mubr.f32.mxu1 %v34773_v45  ;;  %23197 = vmatprep.mubr.f32.mxu0 %v34773_v45  ;;  %v34796_v45 = vld [vmem:[#allocation56_spill] sm:$0xff] }
 0x108   : > { %22001 = vmatmul.mubr.f32.gmra.mrb[6].mxu1 %v34774_v9  ;;  %23198 = vmatmul.mubr.f32.gmra.mrb[4].mxu0 %v34774_v9  ;;  %v347_v9 = vld [vmem:[%s33592_s1] sm:$0xf] }
 0x109   : > { %22003 = vmatprep.mubr.f32.mxu1 %v34775_v56  ;;  %23200 = vmatprep.mubr.f32.mxu0 %v34775_v56  ;;  %v34797_v56 = vld [vmem:[#allocation57_spill] sm:$0xff] }
 0x10c   : > { %22004 = vmatmul.mubr.f32.gmra.mrb[8].mxu1 %v34776_v63  ;;  %23201 = vmatmul.mubr.f32.gmra.mrb[6].mxu0 %v34776_v63  ;;  %v27585_v63 = vsel %vm516_vm0, %v347_v9, 0 }
 0x10d   : > { %22006 = vmatprep.mubr.f32.mxu1 %v34777_v7  ;;  %23203 = vmatprep.mubr.f32.mxu0 %v34777_v7  ;;  %v27594_v7 = vand.u32 4294901760, %v27585_v63 }
 0x110   : > { %22007 = vmatmul.mubr.f32.gmra.mrb[10].mxu1 %v34778_v28  ;;  %23204 = vmatmul.mubr.f32.gmra.mrb[8].mxu0 %v34778_v28 }
 0x111   : > { %22009 = vmatprep.mubr.f32.mxu1 %v34779_v22  ;;  %23206 = vmatprep.mubr.f32.mxu0 %v34779_v22 }
 0x114   : > { %22010 = vmatmul.mubr.f32.gmra.mrb[12].mxu1 %v34780_v39  ;;  %23207 = vmatmul.mubr.f32.gmra.mrb[10].mxu0 %v34780_v39  ;;  %v359_v39 = vld [vmem:[#allocation2 + $0x20] sm:$0xff] }
 0x115   : > { %22012 = vmatprep.mubr.f32.mxu1 %v34781_v61  ;;  %23209 = vmatprep.mubr.f32.mxu0 %v34781_v61  ;;  %v10004_v61 = vld [vmem:[#allocation2 + $0x22] sm:$0xff] }
 0x118   : > { %22013 = vmatmul.mubr.f32.gmra.mrb[14].mxu1 %v34782_v8  ;;  %23210 = vmatmul.mubr.f32.gmra.mrb[12].mxu0 %v34782_v8  ;;  %v27714_v8 = vsub.f32 %v27585_v63, %v27594_v7 }
 0x119   : > { %22015 = vmatprep.mubr.f32.mxu1 %v34783_v11  ;;  %23212 = vmatprep.mubr.f32.mxu0 %v34783_v11 }
 0x11c   : > { %22016 = vmatmul.mubr.f32.gmra.mrb[16].mxu1 %v34784_v43  ;;  %23213 = vmatmul.mubr.f32.gmra.mrb[14].mxu0 %v34784_v43  ;;  %v360_v43 = vld [vmem:[#allocation2 + $0x30] sm:$0xff] }
 0x11d   : > { %22018 = vmatprep.mubr.f32.mxu1 %v34785_v12  ;;  %23215 = vmatprep.mubr.f32.mxu0 %v34785_v12  ;;  %v10005_v12 = vld [vmem:[#allocation2 + $0x32] sm:$0xff] }
 0x120   : > { %22019 = vmatmul.mubr.f32.gmra.mrb[18].mxu1 %v34786_v16  ;;  %23216 = vmatmul.mubr.f32.gmra.mrb[16].mxu0 %v34786_v16  ;;  %v27720_v16 = vand.u32 4294901760, %v27714_v8 }
 0x121   : > { %22021 = vmatprep.mubr.f32.mxu1 %v34787_v46  ;;  %23218 = vmatprep.mubr.f32.mxu0 %v34787_v46 }
 0x122   : > { %34804 = vst [vmem:[#allocation20_spill] sm:$0xff] %v27720_v16 }
 0x124   : > { %22022 = vmatmul.mubr.f32.gmra.mrb[20].mxu1 %v34788_v32  ;;  %23219 = vmatmul.mubr.f32.gmra.mrb[18].mxu0 %v34788_v32  ;;  %v10039_v32 = vsel %vm236_vm1, %v10004_v61, 0  ;;  %v364_v61 = vld [vmem:[#allocation2 + $0x60] sm:$0xff] }
 0x125   : > { %22024 = vmatprep.mubr.f32.mxu1 %v34789_v20  ;;  %23221 = vmatprep.mubr.f32.mxu0 %v34789_v20  ;;  %v361_v20 = vld [vmem:[#allocation2 + $0x38] sm:$0xff]  ;;  %v27742_v9 = vand.u32 4294901760, %v10039_v32 }
 0x127   : > { %34809 = vst [vmem:[#allocation29_spill] sm:$0xff] %v27742_v9 }
 0x128   : > { %22025 = vmatmul.mubr.f32.gmra.mrb[22].mxu1 %v34790_v30  ;;  %23222 = vmatmul.mubr.f32.gmra.mrb[20].mxu0 %v34790_v30  ;;  %v10006_v30 = vld [vmem:[#allocation2 + $0x3a] sm:$0xff] }
 0x129   : > { %22027 = vmatprep.mubr.f32.mxu1 %v34791_v17  ;;  %23224 = vmatprep.mubr.f32.mxu0 %v34791_v17 }
 0x12c   : > { %22028 = vmatmul.mubr.f32.gmra.mrb[24].mxu1 %v34792_v44  ;;  %23225 = vmatmul.mubr.f32.gmra.mrb[22].mxu0 %v34792_v44  ;;  %v2788_v44 = vsub.f32 %v27714_v8, %v27720_v16 }
 0x12d   : > { %22030 = vmatprep.mubr.f32.mxu1 %v34793_v38  ;;  %23227 = vmatprep.mubr.f32.mxu0 %v34793_v38 }
 0x12e   : > { %v27746_v63 = vand.u32 4294901760, %v2788_v44 }
 0x130   : > { %22031 = vmatmul.mubr.f32.gmra.mrb[26].mxu1 %v34794_v34  ;;  %23228 = vmatmul.mubr.f32.gmra.mrb[24].mxu0 %v34794_v34  ;;  %v2312_v34 = vsel %vm236_vm1, %v360_v43, 0 }
 0x131   : > { %22033 = vmatprep.mubr.f32.mxu1 %v34795_v35  ;;  %23230 = vmatprep.mubr.f32.mxu0 %v34795_v35  ;;  %v10042_v35 = vsel %vm236_vm1, %v10005_v12, 0 }
 0x134   : > { %22034 = vmatmul.mubr.f32.gmra.mrb[28].mxu1 %v34796_v45  ;;  %23231 = vmatmul.mubr.f32.gmra.mrb[26].mxu0 %v34796_v45  ;;  %v362_v45 = vld [vmem:[#allocation2 + $0x48] sm:$0xff] }
 0x135   : > { %22036 = vmatprep.mubr.f32.mxu1 %v27352_v27  ;;  %23233 = vmatprep.mubr.f32.mxu0 %v27352_v27  ;;  %v352_v27 = vld [vmem:[%s33592_s1 + $0x14] sm:$0xf] }
 0x136   : > { %v10132_v28 = vsel %vm516_vm0, %v352_v27, 0 }
 0x137   : > { %v27603_v40 = vand.u32 4294901760, %v10132_v28 }
 0x138   : > { %22037 = vmatmul.mubr.f32.gmra.mrb[30].mxu1 %v34797_v56  ;;  %23234 = vmatmul.mubr.f32.gmra.mrb[28].mxu0 %v34797_v56  ;;  %v2315_v56 = vsel %vm236_vm1, %v361_v20, 0 }
 0x139   : > { %22041 = vmatprep.mubr.f32.mxu1 %v26946_v24  ;;  %23236 = vmatprep.mubr.f32.mxu0 %v8560_v49  ;;  %34798 = vst [vmem:[#allocation6_spill] sm:$0xff] %v27603_v40  ;;  %v10003_v49 = vld [vmem:[#allocation2 + $0x1a] sm:$0xff] }
 0x13c   : > { %22042 = vmatmul.mubr.f32.vlgmr.msra.gmra.mrb[0].mxu1 %v26948_v25  ;;  %23237 = vmatmul.mubr.f32.gmra.mrb[30].mxu0 %v8570_v0 }
 0x13d   : > { %22044 = vmatprep.mubr.f32.mxu1 %v27007_v57  ;;  %23241 = vmatprep.mubr.f32.mxu0 %v27007_v57 }
 0x13e   : > { %22090 = vmatpush3.msra.mxu1 %v26823_v4  ;;  %v27661_v4 = vsub.f32 %v10132_v28, %v27603_v40 }
 0x13f   : > { %22139 = vmatprep.subr.mxu1 %v27594_v7 }
 0x140   : > { %22045 = vmatmul.mubr.f32.gmra.mrb[2].mxu1 %v27009_v58  ;;  %23242 = vmatmul.mubr.f32.vlgmr.msra.gmra.mrb[0].mxu0 %v27009_v58 }
 0x141   : > { %22047 = vmatprep.mubr.f32.mxu1 %v27015_v1  ;;  %23244 = vmatprep.mubr.f32.mxu0 %v27015_v1 }
 0x142   : > { %23290 = vmatpush3.msra.mxu0 %v26898_v6  ;;  %v27668_v6 = vand.u32 4294901760, %v27661_v4 }
 0x143   : > { %23339 = vmatprep.subr.mxu0 %v27603_v40 }
 0x144   : > { %22048 = vmatmul.mubr.f32.gmra.mrb[4].mxu1 %v27017_v3  ;;  %23245 = vmatmul.mubr.f32.gmra.mrb[2].mxu0 %v27017_v3  ;;  %34799 = vst [vmem:[#allocation7_spill] sm:$0xff] %v27668_v6  ;;  %v10524_v0 = vsub.f32 %v27661_v4, %v27668_v6 }
 0x145   : > { %22050 = vmatprep.mubr.f32.mxu1 %v27033_v18  ;;  %23247 = vmatprep.mubr.f32.mxu0 %v27033_v18 }
 0x146   : > { %v27681_v59 = vand.u32 4294901760, %v10524_v0  ;;  %v27756_v0 = vand.u32 4294901760, %v2312_v34 }
 0x148   : > { %22051 = vmatmul.mubr.f32.gmra.mrb[6].mxu1 %v27035_v19  ;;  %23248 = vmatmul.mubr.f32.gmra.mrb[4].mxu0 %v27035_v19  ;;  %34811 = vst [vmem:[#allocation33_spill] sm:$0xff] %v27756_v0 }
 0x149   : > { %22053 = vmatprep.mubr.f32.mxu1 %v27062_v36  ;;  %23250 = vmatprep.mubr.f32.mxu0 %v27062_v36 }
 0x14c   : > { %22054 = vmatmul.mubr.f32.gmra.mrb[8].mxu1 %v27064_v37  ;;  %23251 = vmatmul.mubr.f32.gmra.mrb[6].mxu0 %v27064_v37 }
 0x14d   : > { %22056 = vmatprep.mubr.f32.mxu1 %v27110_v23  ;;  %23253 = vmatprep.mubr.f32.mxu0 %v27110_v23 }
 0x150   : > { %22057 = vmatmul.mubr.f32.gmra.mrb[10].mxu1 %v27112_v31  ;;  %23254 = vmatmul.mubr.f32.gmra.mrb[8].mxu0 %v27112_v31 }
 0x151   : > { %22059 = vmatprep.mubr.f32.mxu1 %v27125_v52  ;;  %23256 = vmatprep.mubr.f32.mxu0 %v27125_v52 }
 0x154   : > { %22060 = vmatmul.mubr.f32.gmra.mrb[12].mxu1 %v27127_v53  ;;  %23257 = vmatmul.mubr.f32.gmra.mrb[10].mxu0 %v27127_v53 }
 0x155   : > { %22062 = vmatprep.mubr.f32.mxu1 %v27147_v5  ;;  %23259 = vmatprep.mubr.f32.mxu0 %v27147_v5 }
 0x158   : > { %22063 = vmatmul.mubr.f32.gmra.mrb[14].mxu1 %v27149_v10  ;;  %23260 = vmatmul.mubr.f32.gmra.mrb[12].mxu0 %v27149_v10 }
 0x159   : > { %22065 = vmatprep.mubr.f32.mxu1 %v27169_v54  ;;  %23262 = vmatprep.mubr.f32.mxu0 %v27169_v54 }
 0x15c   : > { %22066 = vmatmul.mubr.f32.gmra.mrb[16].mxu1 %v27171_v55  ;;  %23263 = vmatmul.mubr.f32.gmra.mrb[14].mxu0 %v27171_v55 }
 0x15d   : > { %22068 = vmatprep.mubr.f32.mxu1 %v27196_v47  ;;  %23265 = vmatprep.mubr.f32.mxu0 %v27196_v47 }
 0x160   : > { %22069 = vmatmul.mubr.f32.gmra.mrb[18].mxu1 %v27198_v2  ;;  %23266 = vmatmul.mubr.f32.gmra.mrb[16].mxu0 %v27198_v2 }
 0x161   : > { %22071 = vmatprep.mubr.f32.mxu1 %v27205_v42  ;;  %23268 = vmatprep.mubr.f32.mxu0 %v27205_v42 }
 0x164   : > { %22072 = vmatmul.mubr.f32.gmra.mrb[20].mxu1 %v27218_v60  ;;  %23269 = vmatmul.mubr.f32.gmra.mrb[18].mxu0 %v27218_v60 }
 0x165   : > { %22074 = vmatprep.mubr.f32.mxu1 %v27227_v29  ;;  %23271 = vmatprep.mubr.f32.mxu0 %v27227_v29 }
 0x168   : > { %22075 = vmatmul.mubr.f32.gmra.mrb[22].mxu1 %v27232_v48  ;;  %23272 = vmatmul.mubr.f32.gmra.mrb[20].mxu0 %v27232_v48 }
 0x169   : > { %22077 = vmatprep.mubr.f32.mxu1 %v27234_v26  ;;  %23274 = vmatprep.mubr.f32.mxu0 %v27234_v26 }
 0x16c   : > { %22078 = vmatmul.mubr.f32.gmra.mrb[24].mxu1 %v27258_v51  ;;  %23275 = vmatmul.mubr.f32.gmra.mrb[22].mxu0 %v27258_v51 }
 0x16d   : > { %22080 = vmatprep.mubr.f32.mxu1 %v27270_v21  ;;  %23277 = vmatprep.mubr.f32.mxu0 %v27270_v21 }
 0x170   : > { %22081 = vmatmul.mubr.f32.gmra.mrb[26].mxu1 %v27287_v14  ;;  %23278 = vmatmul.mubr.f32.gmra.mrb[24].mxu0 %v27287_v14 }
 0x171   : > { %22083 = vmatprep.mubr.f32.mxu1 %v27292_v62  ;;  %23280 = vmatprep.mubr.f32.mxu0 %v27292_v62 }
 0x174   : > { %22084 = vmatmul.mubr.f32.gmra.mrb[28].mxu1 %v27306_v50  ;;  %23281 = vmatmul.mubr.f32.gmra.mrb[26].mxu0 %v27306_v50 }
 0x175   : > { %22086 = vmatprep.mubr.f32.mxu1 %v27314_v33  ;;  %23283 = vmatprep.mubr.f32.mxu0 %v27314_v33 }
 0x178   : > { %22087 = vmatmul.mubr.f32.gmra.mrb[30].mxu1 %v27326_v13  ;;  %23284 = vmatmul.mubr.f32.gmra.mrb[28].mxu0 %v27326_v13 }
 0x179   : > { %22091 = vmatprep.mubr.f32.mxu1 %v26946_v24  ;;  %23286 = vmatprep.mubr.f32.mxu0 %v27337_v15  ;;  %v356_v24 = vld [vmem:[#allocation2] sm:$0xff] }
 0x17c   : > { %22092 = vmatmul.mubr.f32.vlgmr.msra.gmra.mrb[0].mxu1 %v26948_v25  ;;  %23287 = vmatmul.mubr.f32.gmra.mrb[30].mxu0 %v27347_v41  ;;  %v2300_v25 = vsel %vm236_vm1, %v356_v24, 0  ;;  %v27758_v24 = vand.u32 4294901760, %v10042_v35 }
 0x17d   : > { %22094 = vmatprep.mubr.f32.mxu1 %v27007_v57  ;;  %23291 = vmatprep.mubr.f32.mxu0 %v27007_v57  ;;  %v357_v57 = vld [vmem:[#allocation2 + $0x8] sm:$0xff] }
 0x17e   : > { %22140 = vmatpush3.msra.mxu1 %v27594_v7  ;;  %34812 = vst [vmem:[#allocation35_spill] sm:$0xff] %v27758_v24 }
 0x17f   : > { %22189 = vmatprep.subr.mxu1 %v27746_v63 }
 0x180   : > { %22095 = vmatmul.mubr.f32.gmra.mrb[2].mxu1 %v27009_v58  ;;  %23292 = vmatmul.mubr.f32.vlgmr.msra.gmra.mrb[0].mxu0 %v27009_v58  ;;  %v358_v58 = vld [vmem:[#allocation2 + $0x18] sm:$0xff] }
 0x181   : > { %22097 = vmatprep.mubr.f32.mxu1 %v27015_v1  ;;  %23294 = vmatprep.mubr.f32.mxu0 %v27015_v1  ;;  %v27698_v1 = vand.u32 4294901760, %v2300_v25  ;;  %v2306_v22 = vsel %vm236_vm1, %v358_v58, 0 }
 0x182   : > { %23340 = vmatpush3.msra.mxu0 %v27603_v40  ;;  %v27716_v11 = vand.u32 4294901760, %v2306_v22 }
 0x183   : > { %23389 = vmatprep.subr.mxu0 %v27681_v59  ;;  %34800 = vst [vmem:[#allocation12_spill] sm:$0xff] %v27698_v1 }
 0x184   : > { %22098 = vmatmul.mubr.f32.gmra.mrb[4].mxu1 %v27017_v3  ;;  %23295 = vmatmul.mubr.f32.gmra.mrb[2].mxu0 %v27017_v3  ;;  %v2303_v3 = vsel %vm236_vm1, %v357_v57, 0  ;;  %34803 = vst [vmem:[#allocation17_spill] sm:$0xff] %v27716_v11  ;;  %v10007_v57 = vld [vmem:[#allocation2 + $0x4a] sm:$0xff] }
 0x185   : > { %22100 = vmatprep.mubr.f32.mxu1 %v27033_v18  ;;  %23297 = vmatprep.mubr.f32.mxu0 %v27033_v18  ;;  %v27704_v18 = vand.u32 4294901760, %v2303_v3  ;;  %v10048_v20 = vsel %vm236_vm1, %v10007_v57, 0 }
 0x187   : > { %34801 = vst [vmem:[#allocation13_spill] sm:$0xff] %v27704_v18 }
 0x188   : > { %22101 = vmatmul.mubr.f32.gmra.mrb[6].mxu1 %v27035_v19  ;;  %23298 = vmatmul.mubr.f32.gmra.mrb[4].mxu0 %v27035_v19  ;;  %v27709_v19 = vsub.f32 %v2300_v25, %v27698_v1  ;;  %v2318_v25 = vsel %vm236_vm1, %v362_v45, 0  ;;  %v10010_v45 = vld [vmem:[#allocation2 + $0x6a] sm:$0xff] }
 0x189   : > { %22103 = vmatprep.mubr.f32.mxu1 %v27062_v36  ;;  %23300 = vmatprep.mubr.f32.mxu0 %v27062_v36  ;;  %v10036_v36 = vsel %vm236_vm1, %v10003_v49, 0  ;;  %v363_v49 = vld [vmem:[#allocation2 + $0x50] sm:$0xff]  ;;  %v27786_v12 = vand.u32 4294901760, %v2318_v25 }
 0x18a   : > { %34802 = vst [vmem:[#allocation16_spill] sm:$0xff] %v27709_v19  ;;  %v27727_v46 = vand.u32 4294901760, %v10036_v36  ;;  %v33706_v17 = vand.u32 4294901760, %v27709_v19 }
 0x18b   : > { %34817 = vst [vmem:[#allocation44_spill] sm:$0xff] %v27786_v12 }
 0x18c   : > { %22104 = vmatmul.mubr.f32.gmra.mrb[8].mxu1 %v27064_v37  ;;  %23301 = vmatmul.mubr.f32.gmra.mrb[6].mxu0 %v27064_v37  ;;  %v2309_v37 = vsel %vm236_vm1, %v359_v39, 0  ;;  %34806 = vst [vmem:[#allocation24_spill] sm:$0xff] %v27727_v46  ;;  %v27752_v28 = vsub.f32 %v10036_v36, %v27727_v46  ;;  %v27776_v36 = vsub.f32 %v10039_v32, %v27742_v9 }
 0x18d   : > { %22106 = vmatprep.mubr.f32.mxu1 %v27110_v23  ;;  %23303 = vmatprep.mubr.f32.mxu0 %v27110_v23  ;;  %v27725_v23 = vsub.f32 %v2303_v3, %v27704_v18  ;;  %v27738_v38 = vand.u32 4294901760, %v2309_v37  ;;  %v27792_v32 = vsub.f32 %v2312_v34, %v27756_v0 }
 0x18e   : > { %34810 = vst [vmem:[#allocation31_spill] sm:$0xff] %v27752_v28  ;;  %34816 = vst [vmem:[#allocation42_spill] sm:$0xff] %v27776_v36  ;;  %v33716_v43 = vand.u32 4294901760, %v27752_v28 }
 0x18f   : > { %34805 = vst [vmem:[#allocation21_spill] sm:$0xff] %v27725_v23  ;;  %34808 = vst [vmem:[#allocation28_spill] sm:$0xff] %v27738_v38  ;;  %v33705_v27 = vand.u32 4294901760, %v27725_v23  ;;  %v27762_v58 = vsub.f32 %v2309_v37, %v27738_v38 }
 0x190   : > { %22107 = vmatmul.mubr.f32.gmra.mrb[10].mxu1 %v27112_v31  ;;  %23304 = vmatmul.mubr.f32.gmra.mrb[8].mxu0 %v27112_v31  ;;  %v27736_v31 = vsub.f32 %v2306_v22, %v27716_v11  ;;  %v10008_v22 = vld [vmem:[#allocation2 + $0x52] sm:$0xff]  ;;  %34818 = vst [vmem:[#allocation45_spill] sm:$0xff] %v27792_v32 }
 0x191   : > { %22109 = vmatprep.mubr.f32.mxu1 %v27125_v52  ;;  %23306 = vmatprep.mubr.f32.mxu0 %v27125_v52  ;;  %v10045_v52 = vsel %vm236_vm1, %v10006_v30, 0  ;;  %34813 = vst [vmem:[#allocation37_spill] sm:$0xff] %v27762_v58  ;;  %v27783_v37 = vsub.f32 %v27725_v23, %v33705_v27  ;;  %v2321_v30 = vsel %vm236_vm1, %v363_v49, 0  ;;  %v10051_v44 = vsel %vm236_vm1, %v10008_v22, 0 }
 0x192   : > { %34807 = vst [vmem:[#allocation25_spill] sm:$0xff] %v27736_v31  ;;  %v27766_v3 = vand.u32 4294901760, %v10045_v52  ;;  %v33707_v39 = vand.u32 4294901760, %v27736_v31  ;;  %v27814_v22 = vand.u32 4294901760, %v10048_v20  ;;  %v27824_v34 = vand.u32 4294901760, %v10051_v44 }
 0x193   : > { %v27831_v49 = vsub.f32 %v27752_v28, %v33716_v43  ;;  %v34827_v6 = vand.u32 4294901760, %v27762_v58 }
 0x194   : > { %22110 = vmatmul.mubr.f32.gmra.mrb[12].mxu1 %v27127_v53  ;;  %23307 = vmatmul.mubr.f32.gmra.mrb[10].mxu0 %v27127_v53  ;;  %v27764_v53 = vand.u32 4294901760, %v2315_v56  ;;  %34815 = vst [vmem:[#allocation41_spill] sm:$0xff] %v27766_v3  ;;  %v27804_v57 = vsub.f32 %v10045_v52, %v27766_v3  ;;  %34822 = vst [vmem:[#allocation9_spill] sm:$0xff] %v27814_v22  ;;  %v27820_v52 = vsub.f32 %v2318_v25, %v27786_v12 }
 0x195   : > { %22112 = vmatprep.mubr.f32.mxu1 %v27147_v5  ;;  %23309 = vmatprep.mubr.f32.mxu0 %v27147_v5  ;;  %v27772_v5 = vsub.f32 %v27709_v19, %v33706_v17  ;;  %v10009_v17 = vld [vmem:[#allocation2 + $0x62] sm:$0xff]  ;;  %34825 = vst [vmem:[#allocation14_spill] sm:$0xff] %v27824_v34  ;;  %v27840_v16 = vsub.f32 %v27762_v58, %v34827_v6 }
 0x196   : > { %34814 = vst [vmem:[#allocation39_spill] sm:$0xff] %v27764_v53  ;;  %v27801_v27 = vsub.f32 %v2315_v56, %v27764_v53  ;;  %34821 = vst [vmem:[#allocation8_spill] sm:$0xff] %v27804_v57  ;;  %v10054_v23 = vsel %vm236_vm1, %v10009_v17, 0  ;;  %v27852_v28 = vsub.f32 %v10048_v20, %v27814_v22  ;;  %v27862_v43 = vsub.f32 %v10051_v44, %v27824_v34 }
 0x197   : > { %34823 = vst [vmem:[#allocation10_spill] sm:$0xff] %v27820_v52  ;;  %v27880_v44 = vand.u32 4294901760, %v10054_v23 }
 0x198   : > { %22113 = vmatmul.mubr.f32.gmra.mrb[14].mxu1 %v27149_v10  ;;  %23310 = vmatmul.mubr.f32.gmra.mrb[12].mxu0 %v27149_v10  ;;  %v27795_v10 = vsub.f32 %v10042_v35, %v27758_v24  ;;  %34820 = vst [vmem:[#allocation52_spill] sm:$0xff] %v27801_v27  ;;  %v27811_v35 = vsub.f32 %v27736_v31, %v33707_v39  ;;  %v365_v39 = vld [vmem:[#allocation2 + $0x68] sm:$0xff]  ;;  %v33729_v31 = vand.u32 4294901760, %v27801_v27  ;;  %34829 = vst [vmem:[#allocation18_spill] sm:$0xff] %v27852_v28 }
 0x199   : > { %22115 = vmatprep.mubr.f32.mxu1 %v27169_v54  ;;  %23312 = vmatprep.mubr.f32.mxu0 %v27169_v54  ;;  %v2324_v54 = vsel %vm236_vm1, %v364_v61, 0  ;;  %v27822_v61 = vand.u32 4294901760, %v2321_v30  ;;  %v2327_v19 = vsel %vm236_vm1, %v365_v39, 0  ;;  %34831 = vst [vmem:[#allocation22_spill] sm:$0xff] %v27862_v43  ;;  %v34832_v39 = vand.u32 4294901760, %v27792_v32  ;;  %34835 = vst [vmem:[#allocation26_spill] sm:$0xff] %v27880_v44 }
 0x19a   : > { %34819 = vst [vmem:[#allocation50_spill] sm:$0xff] %v27795_v10  ;;  %v27835_v25 = vand.u32 4294901760, %v2324_v54 }
 0x19b   : > { %34824 = vst [vmem:[#allocation11_spill] sm:$0xff] %v27822_v61  ;;  %v27859_v17 = vsub.f32 %v2321_v30, %v27822_v61  ;;  %v27870_v20 = vsub.f32 %v27792_v32, %v34832_v39  ;;  %v34836_v39 = vand.u32 4294901760, %v27804_v57 }
 0x19c   : > { %22116 = vmatmul.mubr.f32.gmra.mrb[16].mxu1 %v27171_v55  ;;  %23313 = vmatmul.mubr.f32.gmra.mrb[14].mxu0 %v27171_v55  ;;  %34826 = vst [vmem:[#allocation15_spill] sm:$0xff] %v27835_v25  ;;  %v34828_v55 = vand.u32 4294901760, %v27776_v36  ;;  %v27878_v30 = vsub.f32 %v2324_v54, %v27835_v25  ;;  %v369_v54 = vld [vmem:[#allocation2 + $0x98] sm:$0xff] }
 0x19d   : > { %22118 = vmatprep.mubr.f32.mxu1 %v27196_v47  ;;  %23315 = vmatprep.mubr.f32.mxu0 %v27196_v47  ;;  %34830 = vst [vmem:[#allocation19_spill] sm:$0xff] %v27859_v17  ;;  %v27891_v32 = vsub.f32 %v27804_v57, %v34836_v39  ;;  %v10011_v47 = vld [vmem:[#allocation2 + $0x7a] sm:$0xff]  ;;  %v2339_v61 = vsel %vm236_vm1, %v369_v54, 0 }
 0x19e   : > { %v27849_v56 = vsub.f32 %v27776_v36, %v34828_v55  ;;  %v10057_v55 = vsel %vm236_vm1, %v10010_v45, 0  ;;  %34834 = vst [vmem:[#allocation23_spill] sm:$0xff] %v27878_v30  ;;  %v366_v45 = vld [vmem:[#allocation2 + $0x78] sm:$0xff]  ;;  %v10060_v34 = vsel %vm236_vm1, %v10011_v47, 0  ;;  %v34842_v36 = vand.u32 4294901760, %v27852_v28 }
 0x19f   : > { %v27898_v58 = vand.u32 4294901760, %v10057_v55  ;;  %v34845_v47 = vand.u32 4294901760, %v27859_v17 }
 0x1a0   : > { %22119 = vmatmul.mubr.f32.gmra.mrb[18].mxu1 %v27198_v2  ;;  %23316 = vmatmul.mubr.f32.gmra.mrb[16].mxu0 %v27198_v2  ;;  %v34833_v2 = vand.u32 4294901760, %v27795_v10 }
 0x1a1   : > { %22121 = vmatprep.mubr.f32.mxu1 %v27205_v42  ;;  %23318 = vmatprep.mubr.f32.mxu0 %v27205_v42  ;;  %v27886_v42 = vsub.f32 %v27801_v27, %v33729_v31  ;;  %34838 = vst [vmem:[#allocation30_spill] sm:$0xff] %v27898_v58  ;;  %v34839_v31 = vand.u32 4294901760, %v27820_v52  ;;  %v367_v27 = vld [vmem:[#allocation2 + $0x80] sm:$0xff]  ;;  %v27930_v25 = vsub.f32 %v10057_v55, %v27898_v58  ;;  %v34846_v55 = vand.u32 4294901760, %v27862_v43 }
 0x1a2   : > { %v27875_v6 = vsub.f32 %v27795_v10, %v34833_v2  ;;  %v27893_v2 = vand.u32 4294901760, %v2327_v19  ;;  %v2330_v10 = vsel %vm236_vm1, %v366_v45, 0  ;;  %v2333_v57 = vsel %vm236_vm1, %v367_v27, 0  ;;  %v10014_v58 = vld [vmem:[#allocation2 + $0x9a] sm:$0xff] }
 0x1a3   : > { %v27905_v39 = vsub.f32 %v27820_v52, %v34839_v31  ;;  %v27916_v31 = vsub.f32 %v10054_v23, %v27880_v44  ;;  %v10012_v52 = vld [vmem:[#allocation2 + $0x82] sm:$0xff]  ;;  %34843 = vst [vmem:[#allocation36_spill] sm:$0xff] %v27930_v25  ;;  %v27932_v23 = vand.u32 4294901760, %v2330_v10  ;;  %v10013_v44 = vld [vmem:[#allocation2 + $0x92] sm:$0xff]  ;;  %v34860_v53 = vand.u32 4294901760, %v27930_v25 }
 0x1a4   : > { %34837 = vst [vmem:[#allocation27_spill] sm:$0xff] %v27893_v2  ;;  %22122 = vmatmul.mubr.f32.gmra.mrb[20].mxu1 %v27218_v60  ;;  %23319 = vmatmul.mubr.f32.gmra.mrb[18].mxu0 %v27218_v60  ;;  %v27921_v45 = vsub.f32 %v2327_v19, %v27893_v2  ;;  %v27927_v60 = vsub.f32 %v27852_v28, %v34842_v36  ;;  %v10063_v27 = vsel %vm236_vm1, %v10012_v52, 0  ;;  %v10066_v52 = vsel %vm236_vm1, %v10013_v44, 0 }
 0x1a5   : > { %22124 = vmatprep.mubr.f32.mxu1 %v27227_v29  ;;  %23321 = vmatprep.mubr.f32.mxu0 %v27227_v29  ;;  %34840 = vst [vmem:[#allocation32_spill] sm:$0xff] %v27916_v31  ;;  %v368_v29 = vld [vmem:[#allocation2 + $0x90] sm:$0xff]  ;;  %34844 = vst [vmem:[#allocation38_spill] sm:$0xff] %v27932_v23  ;;  %v27941_v36 = vsub.f32 %v27859_v17, %v34845_v47  ;;  %v27946_v28 = vsub.f32 %v27862_v43, %v34846_v55  ;;  %v27957_v17 = vand.u32 4294901760, %v10060_v34 }
 0x1a6   : > { %34841 = vst [vmem:[#allocation34_spill] sm:$0xff] %v27921_v45  ;;  %v2336_v2 = vsel %vm236_vm1, %v368_v29, 0  ;;  %v27961_v43 = vand.u32 4294901760, %v2333_v57  ;;  %v27967_v22 = vsub.f32 %v2330_v10, %v27932_v23  ;;  %v10069_v47 = vsel %vm236_vm1, %v10014_v58, 0  ;;  %v10015_v29 = vld [vmem:[#allocation2 + $0xaa] sm:$0xff]  ;;  %v10016_v23 = vld [vmem:[#allocation2 + $0xb2] sm:$0xff] }
 0x1a7   : > { %34848 = vst [vmem:[#allocation40_spill] sm:$0xff] %v27957_v17  ;;  %v27977_v54 = vand.u32 4294901760, %v2336_v2  ;;  %v27983_v58 = vsub.f32 %v10060_v34, %v27957_v17  ;;  %v371_v55 = vld [vmem:[#allocation2 + $0xb0] sm:$0xff]  ;;  %v34856_v44 = vand.u32 4294901760, %v27916_v31  ;;  %v34857_v3 = vand.u32 4294901760, %v27921_v45  ;;  %v372_v17 = vld [vmem:[#allocation2 + $0xc0] sm:$0xff] }
 0x1a8   : > { %22125 = vmatmul.mubr.f32.gmra.mrb[22].mxu1 %v27232_v48  ;;  %23322 = vmatmul.mubr.f32.gmra.mrb[20].mxu0 %v27232_v48  ;;  %v34847_v48 = vand.u32 4294901760, %v27878_v30  ;;  %34849 = vst [vmem:[#allocation43_spill] sm:$0xff] %v27961_v43  ;;  %34850 = vst [vmem:[#allocation46_spill] sm:$0xff] %v27967_v22  ;;  %v28000_v34 = vsub.f32 %v2333_v57, %v27961_v43  ;;  %v28002_v10 = vand.u32 4294901760, %v10069_v47  ;;  %v10072_v57 = vsel %vm236_vm1, %v10015_v29, 0 }
 0x1a9   : > { %22127 = vmatprep.mubr.f32.mxu1 %v27234_v26  ;;  %23324 = vmatprep.mubr.f32.mxu0 %v27234_v26  ;;  %34852 = vst [vmem:[#allocation48_spill] sm:$0xff] %v27977_v54  ;;  %v370_v26 = vld [vmem:[#allocation2 + $0xa8] sm:$0xff]  ;;  %34853 = vst [vmem:[#allocation49_spill] sm:$0xff] %v27983_v58  ;;  %v27992_v12 = vsub.f32 %v27916_v31, %v34856_v44  ;;  %v28007_v40 = vsub.f32 %v27930_v25, %v34860_v53  ;;  %v10075_v53 = vsel %vm236_vm1, %v10016_v23, 0 }
 0x1aa   : > { %v27954_v19 = vsub.f32 %v27878_v30, %v34847_v48  ;;  %v27969_v48 = vand.u32 4294901760, %v10063_v27  ;;  %v27985_v30 = vand.u32 4294901760, %v10066_v52  ;;  %34858 = vst [vmem:[#allocation54_spill] sm:$0xff] %v28000_v34  ;;  %34859 = vst [vmem:[#allocation55_spill] sm:$0xff] %v28002_v10  ;;  %v2342_v31 = vsel %vm236_vm1, %v370_v26, 0 }
 0x1ab   : > { %v28035_v23 = vsub.f32 %v10069_v47, %v28002_v10  ;;  %v28037_v24 = vand.u32 4294901760, %v2342_v31  ;;  %v28044_v25 = vand.u32 4294901760, %v10075_v53  ;;  %v373_v10 = vld [vmem:[#allocation2 + $0xc8] sm:$0xff] }
 0x1ac   : > { %34851 = vst [vmem:[#allocation47_spill] sm:$0xff] %v27969_v48  ;;  %22128 = vmatmul.mubr.f32.gmra.mrb[24].mxu1 %v27258_v51  ;;  %23325 = vmatmul.mubr.f32.gmra.mrb[22].mxu0 %v27258_v51  ;;  %34854 = vst [vmem:[#allocation51_spill] sm:$0xff] %v27985_v30  ;;  %v27987_v51 = vand.u32 4294901760, %v2339_v61  ;;  %v28011_v44 = vsub.f32 %v10063_v27, %v27969_v48  ;;  %v28026_v26 = vsub.f32 %v10066_v52, %v27985_v30 }
 0x1ad   : > { %22130 = vmatprep.mubr.f32.mxu1 %v27270_v21  ;;  %23327 = vmatprep.mubr.f32.mxu0 %v27270_v21  ;;  %v27997_v21 = vsub.f32 %v27921_v45, %v34857_v3  ;;  %v28017_v3 = vsub.f32 %v2336_v2, %v27977_v54  ;;  %v2345_v45 = vsel %vm236_vm1, %v371_v55, 0  ;;  %v2348_v2 = vsel %vm236_vm1, %v372_v17, 0  ;;  %34865 = vst [vmem:[#allocation60_spill] sm:$0xff] %v28035_v23 }
 0x1ae   : > { %34855 = vst [vmem:[#allocation53_spill] sm:$0xff] %v27987_v51  ;;  %34861 = vst [vmem:[#allocation56_spill] sm:$0xff] %v28011_v44  ;;  %v28040_v27 = vand.u32 4294901760, %v10072_v57  ;;  %v28042_v52 = vand.u32 4294901760, %v2345_v45  ;;  %v34870_v17 = vand.u32 4294901760, %v27967_v22  ;;  %v28055_v55 = vand.u32 4294901760, %v2348_v2 }
 0x1af   : > { %34862 = vst [vmem:[#allocation57_spill] sm:$0xff] %v28017_v3  ;;  %34863 = vst [vmem:[#allocation58_spill] sm:$0xff] %v28026_v26  ;;  %v28084_v29 = vsub.f32 %v10075_v53, %v28044_v25 }
 0x1b0   : > { %22131 = vmatmul.mubr.f32.gmra.mrb[26].mxu1 %v27287_v14  ;;  %23328 = vmatmul.mubr.f32.gmra.mrb[24].mxu0 %v27287_v14  ;;  %v28029_v14 = vsub.f32 %v2339_v61, %v27987_v51  ;;  %34866 = vst [vmem:[#allocation61_spill] sm:$0xff] %v28037_v24  ;;  %34867 = vst [vmem:[#allocation62_spill] sm:$0xff] %v28040_v27  ;;  %v10017_v61 = vld [vmem:[#allocation2 + $0xc2] sm:$0xff]  ;;  %v28051_v47 = vsub.f32 %v27967_v22, %v34870_v17  ;;  %v2351_v17 = vsel %vm236_vm1, %v373_v10, 0  ;;  %v374_v10 = vld [vmem:[#allocation2 + $0xd8] sm:$0xff] }
 0x1b1   : > { %22133 = vmatprep.mubr.f32.mxu1 %v27292_v62  ;;  %23330 = vmatprep.mubr.f32.mxu0 %v27292_v62  ;;  %34868 = vst [vmem:[#allocation63_spill] sm:$0xff] %v28042_v52  ;;  %34869 = vst [vmem:[#allocation64_spill] sm:$0xff] %v28044_v25  ;;  %v34873_v62 = vand.u32 4294901760, %v28000_v34  ;;  %v10078_v51 = vsel %vm236_vm1, %v10017_v61, 0  ;;  %v28078_v48 = vsub.f32 %v10072_v57, %v28040_v27  ;;  %v34878_v61 = vand.u32 4294901760, %v28011_v44 }
 0x1b2   : > { %34864 = vst [vmem:[#allocation59_spill] sm:$0xff] %v28029_v14  ;;  %34871 = vst [vmem:[#allocation65_spill] sm:$0xff] %v28055_v55  ;;  %v28101_v53 = vsub.f32 %v2348_v2, %v28055_v55  ;;  %v28117_v2 = vand.u32 4294901760, %v10078_v51  ;;  %v34887_v55 = vand.u32 4294901760, %v27783_v37 }
 0x1b3   : > { %v28070_v22 = vsub.f32 %v28000_v34, %v34873_v62  ;;  %34875 = vst [vmem:[#allocation67_spill] sm:$0xff] %v28078_v48  ;;  %34877 = vst [vmem:[#allocation69_spill] sm:$0xff] %v28084_v29  ;;  %v10018_v62 = vld [vmem:[#allocation2 + $0xca] sm:$0xff]  ;;  %v28093_v57 = vsub.f32 %v28011_v44, %v34878_v61  ;;  %v34881_v34 = vand.u32 4294901760, %v27772_v5  ;;  %v34883_v44 = vand.u32 4294901760, %v28029_v14 }
 0x1b4   : > { %22134 = vmatmul.mubr.f32.gmra.mrb[28].mxu1 %v27306_v50  ;;  %23331 = vmatmul.mubr.f32.gmra.mrb[26].mxu0 %v27306_v50  ;;  %v34872_v50 = vand.u32 4294901760, %v27983_v58  ;;  %34880 = vst [vmem:[#allocation70_spill] sm:$0xff] %v28101_v53  ;;  %34884 = vst [vmem:[#allocation71_spill] sm:$0xff] %v28117_v2  ;;  %v28145_v37 = vsub.f32 %v10078_v51, %v28117_v2  ;;  %v10022_v2 = vld [vmem:[#allocation2 + $0xfa] sm:$0xff] }
 0x1b5   : > { %22136 = vmatprep.mubr.f32.mxu1 %v27314_v33  ;;  %23333 = vmatprep.mubr.f32.mxu0 %v27314_v33  ;;  %v28074_v33 = vsub.f32 %v2342_v31, %v28037_v24  ;;  %v34882_v31 = vand.u32 4294901760, %v28026_v26 }
 0x1b6   : > { %v28063_v30 = vsub.f32 %v27983_v58, %v34872_v50  ;;  %v28081_v50 = vsub.f32 %v2345_v45, %v28042_v52  ;;  %v34879_v45 = vand.u32 4294901760, %v28017_v3  ;;  %34890 = vst [vmem:[#allocation73_spill] sm:$0xff] %v28145_v37 }
 0x1b7   : > { %34874 = vst [vmem:[#allocation66_spill] sm:$0xff] %v28074_v33  ;;  %v28110_v61 = vsub.f32 %v28026_v26, %v34882_v31  ;;  %v10019_v31 = vld [vmem:[#allocation2 + $0xda] sm:$0xff]  ;;  %v34888_v26 = vand.u32 4294901760, %v27811_v35  ;;  %v34894_v51 = vand.u32 4294901760, %v28074_v33 }
 0x1b8   : > { %34876 = vst [vmem:[#allocation68_spill] sm:$0xff] %v28081_v50  ;;  %22137 = vmatmul.mubr.f32.gmra.mrb[30].mxu1 %v27326_v13  ;;  %23334 = vmatmul.mubr.f32.gmra.mrb[28].mxu0 %v27326_v13  ;;  %v28098_v54 = vsub.f32 %v28017_v3, %v34879_v45  ;;  %v28115_v45 = vsub.f32 %v28029_v14, %v34883_v44  ;;  %v34885_v3 = vand.u32 4294901760, %v28035_v23  ;;  %v10081_v13 = vsel %vm236_vm1, %v10018_v62, 0 }
 0x1b9   : > { %22141 = vmatprep.mubr.f32.mxu1 %v34881_v34  ;;  %23336 = vmatprep.mubr.f32.mxu0 %v27337_v15  ;;  %v28125_v34 = vand.u32 4294901760, %v2351_v17  ;;  %v33812_v58 = vand.u32 4294901760, %v28081_v50  ;;  %v2354_v14 = vsel %vm236_vm1, %v374_v10, 0  ;;  %v34889_v44 = vand.u32 4294901760, %v27831_v49  ;;  %v375_v15 = vld [vmem:[#allocation2 + $0xe0] sm:$0xff] }
 0x1ba   : > { %v28122_v5 = vsub.f32 %v28035_v23, %v34885_v3  ;;  %v10020_v3 = vld [vmem:[#allocation2 + $0xe2] sm:$0xff]  ;;  %v28155_v49 = vand.u32 4294901760, %v2354_v14  ;;  %v28161_v10 = vsub.f32 %v28074_v33, %v34894_v51  ;;  %v34896_v23 = vand.u32 4294901760, %v28084_v29 }
 0x1bb   : > { %34886 = vst [vmem:[#allocation72_spill] sm:$0xff] %v28125_v34  ;;  %v28153_v35 = vsub.f32 %v2351_v17, %v28125_v34  ;;  %v28171_v17 = vsub.f32 %v28081_v50, %v33812_v58  ;;  %v34897_v51 = vand.u32 4294901760, %v27840_v16  ;;  %v34901_v33 = vand.u32 4294901760, %v27870_v20 }
 0x1bc   : > { %22142 = vmatmul.mubr.f32.vlgmr.msra.gmra.mrb[0].mxu1 %v34887_v55  ;;  %23337 = vmatmul.mubr.f32.gmra.mrb[30].mxu0 %v27347_v41  ;;  %v28147_v41 = vand.u32 4294901760, %v10081_v13  ;;  %v10084_v55 = vsel %vm236_vm1, %v10019_v31, 0  ;;  %34893 = vst [vmem:[#allocation76_spill] sm:$0xff] %v28155_v49  ;;  %v34895_v31 = vand.u32 4294901760, %v28078_v48  ;;  %v28176_v34 = vsub.f32 %v28084_v29, %v34896_v23 }
 0x1bd   : > { %22144 = vmatprep.mubr.f32.mxu1 %v34888_v26  ;;  %23341 = vmatprep.mubr.f32.mxu0 %v34889_v44  ;;  %34892 = vst [vmem:[#allocation75_spill] sm:$0xff] %v28153_v35  ;;  %v376_v26 = vld [vmem:[#allocation2 + $0xf0] sm:$0xff]  ;;  %v28188_v50 = vand.u32 4294901760, %v10084_v55  ;;  %v2357_v23 = vsel %vm236_vm1, %v375_v15, 0  ;;  %v10087_v29 = vsel %vm236_vm1, %v10020_v3, 0  ;;  %v34902_v16 = vand.u32 4294901760, %v27875_v6 }
 0x1be   : > { %34891 = vst [vmem:[#allocation74_spill] sm:$0xff] %v28147_v41  ;;  %v10021_v44 = vld [vmem:[#allocation2 + $0xf2] sm:$0xff]  ;;  %22190 = vmatpush3.msra.mxu1 %v27746_v63  ;;  %v28166_v62 = vsub.f32 %v28078_v48, %v34895_v31  ;;  %v34898_v31 = vand.u32 4294901760, %v27849_v56  ;;  %v34899_v48 = vand.u32 4294901760, %v28101_v53  ;;  %v33823_v56 = vand.u32 4294901760, %v28145_v37 }
 0x1bf   : > { %v377_v63 = vld [vmem:[#allocation2 + $0xf8] sm:$0xff]  ;;  %22239 = vmatprep.subr.mxu1 %v27714_v8  ;;  %34900 = vst [vmem:[#allocation77_spill] sm:$0xff] %v28188_v50  ;;  %v28204_v15 = vsub.f32 %v2354_v14, %v28155_v49  ;;  %v10093_v6 = vsel %vm236_vm1, %v10022_v2, 0  ;;  %v28211_v3 = vand.u32 4294901760, %v2357_v23  ;;  %v34908_v14 = vand.u32 4294901760, %v27891_v32 }
 0x1c0   : > { %22145 = vmatmul.mubr.f32.gmra.mrb[2].mxu1 %v34897_v51  ;;  %23342 = vmatmul.mubr.f32.vlgmr.msra.gmra.mrb[0].mxu0 %v34898_v31  ;;  %v28186_v58 = vsub.f32 %v28101_v53, %v34899_v48  ;;  %v28198_v51 = vsub.f32 %v10081_v13, %v28147_v41  ;;  %v2360_v48 = vsel %vm236_vm1, %v376_v26, 0  ;;  %v10090_v31 = vsel %vm236_vm1, %v10021_v44, 0  ;;  %v378_v13 = vld [vmem:[#allocation2 + $0x108] sm:$0xff]  ;;  %v380_v41 = vld [vmem:[#allocation2 + $0x120] sm:$0xff] }
 0x1c1   : > { %22147 = vmatprep.mubr.f32.mxu1 %v34901_v33  ;;  %23344 = vmatprep.mubr.f32.mxu0 %v34902_v16  ;;  %34904 = vst [vmem:[#allocation79_spill] sm:$0xff] %v28204_v15  ;;  %v2363_v20 = vsel %vm236_vm1, %v377_v63, 0  ;;  %34905 = vst [vmem:[#allocation80_spill] sm:$0xff] %v28211_v3  ;;  %v28213_v26 = vand.u32 4294901760, %v10087_v29  ;;  %v34907_v44 = vand.u32 4294901760, %v27886_v42  ;;  %v28222_v2 = vsub.f32 %v10084_v55, %v28188_v50  ;;  %v10023_v33 = vld [vmem:[#allocation2 + $0x10a] sm:$0xff] }
 0x1c2   : > { %34903 = vst [vmem:[#allocation78_spill] sm:$0xff] %v28198_v51  ;;  %23390 = vmatpush3.msra.mxu0 %v27681_v59  ;;  %v28224_v63 = vand.u32 4294901760, %v2360_v48  ;;  %v28226_v16 = vand.u32 4294901760, %v10090_v31  ;;  %v34912_v53 = vand.u32 4294901760, %v27905_v39  ;;  %v34913_v42 = vand.u32 4294901760, %v27927_v60  ;;  %v379_v59 = vld [vmem:[#allocation2 + $0x110] sm:$0xff] }
 0x1c3   : > { %34906 = vst [vmem:[#allocation81_spill] sm:$0xff] %v28213_v26  ;;  %23439 = vmatprep.subr.mxu0 %v27661_v4  ;;  %34909 = vst [vmem:[#allocation82_spill] sm:$0xff] %v28222_v2  ;;  %v28235_v32 = vsub.f32 %v28145_v37, %v33823_v56  ;;  %v28251_v56 = vsub.f32 %v2357_v23, %v28211_v3  ;;  %v28254_v55 = vsub.f32 %v10087_v29, %v28213_v26  ;;  %v10024_v50 = vld [vmem:[#allocation2 + $0x112] sm:$0xff] }
 0x1c4   : > { %22148 = vmatmul.mubr.f32.gmra.mrb[4].mxu1 %v34907_v44  ;;  %23345 = vmatmul.mubr.f32.gmra.mrb[2].mxu0 %v34908_v14  ;;  %34910 = vst [vmem:[#allocation83_spill] sm:$0xff] %v28224_v63  ;;  %34911 = vst [vmem:[#allocation84_spill] sm:$0xff] %v28226_v16  ;;  %v28238_v44 = vand.u32 4294901760, %v2363_v20  ;;  %v28240_v14 = vand.u32 4294901760, %v10093_v6  ;;  %v2366_v37 = vsel %vm236_vm1, %v378_v13, 0  ;;  %v10096_v49 = vsel %vm236_vm1, %v10023_v33, 0 }
 0x1c5   : > { %22150 = vmatprep.mubr.f32.mxu1 %v34912_v53  ;;  %23347 = vmatprep.mubr.f32.mxu0 %v34913_v42  ;;  %v34916_v53 = vand.u32 4294901760, %v28153_v35  ;;  %34917 = vst [vmem:[#allocation87_spill] sm:$0xff] %v28251_v56  ;;  %34918 = vst [vmem:[#allocation88_spill] sm:$0xff] %v28254_v55  ;;  %v34919_v39 = vand.u32 4294901760, %v27941_v36  ;;  %v28264_v23 = vsub.f32 %v2360_v48, %v28224_v63  ;;  %v2369_v13 = vsel %vm236_vm1, %v379_v59, 0 }
 0x1c6   : > { %34914 = vst [vmem:[#allocation85_spill] sm:$0xff] %v28238_v44  ;;  %34915 = vst [vmem:[#allocation86_spill] sm:$0xff] %v28240_v14  ;;  %v28267_v29 = vsub.f32 %v10090_v31, %v28226_v16  ;;  %v34923_v33 = vand.u32 4294901760, %v27954_v19  ;;  %v28281_v48 = vsub.f32 %v2363_v20, %v28238_v44  ;;  %v28284_v31 = vsub.f32 %v10093_v6, %v28240_v14 }
 0x1c7   : > { %v28247_v60 = vsub.f32 %v28153_v35, %v34916_v53  ;;  %v34920_v53 = vand.u32 4294901760, %v27946_v28  ;;  %34921 = vst [vmem:[#allocation89_spill] sm:$0xff] %v28264_v23  ;;  %v34924_v35 = vand.u32 4294901760, %v27992_v12  ;;  %v34925_v28 = vand.u32 4294901760, %v28198_v51 }
 0x1c8   : > { %22151 = vmatmul.mubr.f32.gmra.mrb[6].mxu1 %v34919_v39  ;;  %34922 = vst [vmem:[#allocation90_spill] sm:$0xff] %v28267_v29  ;;  %34926 = vst [vmem:[#allocation91_spill] sm:$0xff] %v28281_v48  ;;  %v28286_v59 = vand.u32 4294901760, %v2366_v37  ;;  %v28288_v19 = vand.u32 4294901760, %v10096_v49  ;;  %v10099_v12 = vsel %vm236_vm1, %v10024_v50, 0  ;;  %v28299_v6 = vand.u32 4294901760, %v2369_v13 }
 0x1c9   : > { %23348 = vmatmul.mubr.f32.gmra.mrb[4].mxu0 %v34920_v53  ;;  %22153 = vmatprep.mubr.f32.mxu1 %v34923_v33  ;;  %v28278_v39 = vsub.f32 %v28198_v51, %v34925_v28  ;;  %34927 = vst [vmem:[#allocation92_spill] sm:$0xff] %v28284_v31  ;;  %v10025_v53 = vld [vmem:[#allocation2 + $0x122] sm:$0xff]  ;;  %v34930_v33 = vand.u32 4294901760, %v28204_v15  ;;  %v34932_v42 = vand.u32 4294901760, %v27997_v21  ;;  %v34933_v51 = vand.u32 4294901760, %v28007_v40 }
 0x1ca   : > { %23350 = vmatprep.mubr.f32.mxu0 %v34924_v35  ;;  %34928 = vst [vmem:[#allocation93_spill] sm:$0xff] %v28286_v59  ;;  %34929 = vst [vmem:[#allocation94_spill] sm:$0xff] %v28288_v19  ;;  %v2372_v35 = vsel %vm236_vm1, %v380_v41, 0  ;;  %v34934_v41 = vand.u32 4294901760, %v28222_v2  ;;  %v34935_v36 = vand.u32 4294901760, %v28051_v47  ;;  %v34936_v21 = vand.u32 4294901760, %v28063_v30 }
 0x1cb   : > { %v28295_v28 = vsub.f32 %v28204_v15, %v34930_v33  ;;  %34931 = vst [vmem:[#allocation95_spill] sm:$0xff] %v28299_v6  ;;  %v10102_v50 = vsel %vm236_vm1, %v10025_v53, 0  ;;  %v28326_v20 = vsub.f32 %v2366_v37, %v28286_v59  ;;  %v28329_v47 = vsub.f32 %v10096_v49, %v28288_v19  ;;  %v10026_v37 = vld [vmem:[#allocation2 + $0x12a] sm:$0xff]  ;;  %v382_v15 = vld [vmem:[#allocation2 + $0x138] sm:$0xff] }
 0x1cc   : > { %22154 = vmatmul.mubr.f32.gmra.mrb[8].mxu1 %v34932_v42  ;;  %v28309_v14 = vsub.f32 %v28222_v2, %v34934_v41  ;;  %v28320_v42 = vand.u32 4294901760, %v2372_v35  ;;  %v381_v41 = vld [vmem:[#allocation2 + $0x128] sm:$0xff]  ;;  %v34942_v53 = vand.u32 4294901760, %v28254_v55  ;;  %v28343_v2 = vsub.f32 %v2369_v13, %v28299_v6 }
 0x1cd   : > { %23351 = vmatmul.mubr.f32.gmra.mrb[6].mxu0 %v34933_v51  ;;  %22156 = vmatprep.mubr.f32.mxu1 %v34935_v36  ;;  %v28318_v51 = vand.u32 4294901760, %v10099_v12  ;;  %34939 = vst [vmem:[#allocation98_spill] sm:$0xff] %v28326_v20  ;;  %34940 = vst [vmem:[#allocation99_spill] sm:$0xff] %v28329_v47  ;;  %v34941_v36 = vand.u32 4294901760, %v28251_v56  ;;  %v34944_v33 = vand.u32 4294901760, %v28070_v22  ;;  %v34945_v49 = vand.u32 4294901760, %v28093_v57 }
 0x1ce   : > { %23353 = vmatprep.mubr.f32.mxu0 %v34936_v21  ;;  %34938 = vst [vmem:[#allocation97_spill] sm:$0xff] %v28320_v42  ;;  %v28340_v40 = vsub.f32 %v28254_v55, %v34942_v53  ;;  %34943 = vst [vmem:[#allocation100_spill] sm:$0xff] %v28343_v2  ;;  %v34946_v30 = vand.u32 4294901760, %v28264_v23  ;;  %v28359_v55 = vand.u32 4294901760, %v10102_v50  ;;  %v2375_v13 = vsel %vm236_vm1, %v381_v41, 0  ;;  %v10027_v22 = vld [vmem:[#allocation2 + $0x13a] sm:$0xff] }
 0x1cf   : > { %34937 = vst [vmem:[#allocation96_spill] sm:$0xff] %v28318_v51  ;;  %v28335_v21 = vsub.f32 %v28251_v56, %v34941_v36  ;;  %v34947_v56 = vand.u32 4294901760, %v28267_v29  ;;  %v34950_v57 = vand.u32 4294901760, %v28110_v61  ;;  %v28376_v41 = vsub.f32 %v2372_v35, %v28320_v42 }
 0x1d0   : > { %22157 = vmatmul.mubr.f32.gmra.mrb[10].mxu1 %v34944_v33  ;;  %v28352_v36 = vsub.f32 %v28264_v23, %v34946_v30  ;;  %34948 = vst [vmem:[#allocation101_spill] sm:$0xff] %v28359_v55  ;;  %v34949_v33 = vand.u32 4294901760, %v28098_v54  ;;  %v28387_v30 = vand.u32 4294901760, %v2375_v13  ;;  %v10108_v35 = vsel %vm236_vm1, %v10027_v22, 0 }
 0x1d1   : > { %23354 = vmatmul.mubr.f32.gmra.mrb[8].mxu0 %v34945_v49  ;;  %v28357_v53 = vsub.f32 %v28267_v29, %v34947_v56  ;;  %v34951_v49 = vand.u32 4294901760, %v28281_v48  ;;  %v28373_v56 = vsub.f32 %v10099_v12, %v28318_v51  ;;  %34953 = vst [vmem:[#allocation103_spill] sm:$0xff] %v28376_v41  ;;  %v34954_v29 = vand.u32 4294901760, %v28284_v31 }
 0x1d2   : > { %22159 = vmatprep.mubr.f32.mxu1 %v34949_v33  ;;  %23356 = vmatprep.mubr.f32.mxu0 %v34950_v57  ;;  %v10105_v57 = vsel %vm236_vm1, %v10026_v37, 0  ;;  %34955 = vst [vmem:[#allocation104_spill] sm:$0xff] %v28387_v30  ;;  %v2378_v12 = vsel %vm236_vm1, %v382_v15, 0  ;;  %v34959_v15 = vand.u32 4294901760, %v28161_v10  ;;  %v34960_v22 = vand.u32 4294901760, %v28166_v62  ;;  %v10028_v33 = vld [vmem:[#allocation2 + $0x142] sm:$0xff] }
 0x1d3   : > { %v28370_v23 = vsub.f32 %v28281_v48, %v34951_v49  ;;  %34952 = vst [vmem:[#allocation102_spill] sm:$0xff] %v28373_v56  ;;  %v28381_v54 = vsub.f32 %v28284_v31, %v34954_v29  ;;  %v34956_v48 = vand.u32 4294901760, %v28115_v45  ;;  %v34957_v29 = vand.u32 4294901760, %v28122_v5  ;;  %v383_v31 = vld [vmem:[#allocation2 + $0x140] sm:$0xff]  ;;  %v384_v37 = vld [vmem:[#allocation2 + $0x150] sm:$0xff] }
 0x1d4   : > { %v28399_v49 = vsub.f32 %v10102_v50, %v28359_v55  ;;  %v34962_v50 = vand.u32 4294901760, %v28326_v20  ;;  %v34963_v10 = vand.u32 4294901760, %v28329_v47  ;;  %v10029_v45 = vld [vmem:[#allocation2 + $0x152] sm:$0xff]  ;;  %v34966_v55 = vand.u32 4294901760, %v28343_v2 }
 0x1d5   : > { %22160 = vmatmul.mubr.f32.gmra.mrb[12].mxu1 %v34956_v48  ;;  %23357 = vmatmul.mubr.f32.gmra.mrb[10].mxu0 %v34957_v29  ;;  %v28408_v29 = vand.u32 4294901760, %v10105_v57  ;;  %v2381_v48 = vsel %vm236_vm1, %v383_v31, 0  ;;  %v10111_v5 = vsel %vm236_vm1, %v10028_v33, 0  ;;  %v2384_v51 = vsel %vm236_vm1, %v384_v37, 0 }
 0x1d6   : > { %34958 = vst [vmem:[#allocation105_spill] sm:$0xff] %v28399_v49  ;;  %22162 = vmatprep.mubr.f32.mxu1 %v34959_v15  ;;  %23359 = vmatprep.mubr.f32.mxu0 %v34960_v22  ;;  %v28413_v61 = vsub.f32 %v28326_v20, %v34962_v50  ;;  %v28418_v62 = vsub.f32 %v28329_v47, %v34963_v10  ;;  %v28420_v15 = vand.u32 4294901760, %v2378_v12  ;;  %v28422_v22 = vand.u32 4294901760, %v10108_v35 }
 0x1d7   : > { %34961 = vst [vmem:[#allocation106_spill] sm:$0xff] %v28408_v29  ;;  %v28429_v42 = vsub.f32 %v28343_v2, %v34966_v55  ;;  %v28432_v50 = vsub.f32 %v2375_v13, %v28387_v30  ;;  %v34968_v10 = vand.u32 4294901760, %v28171_v17  ;;  %v34969_v47 = vand.u32 4294901760, %v28176_v34 }
 0x1d8   : > { %34964 = vst [vmem:[#allocation107_spill] sm:$0xff] %v28420_v15  ;;  %34965 = vst [vmem:[#allocation108_spill] sm:$0xff] %v28422_v22  ;;  %v34970_v55 = vand.u32 4294901760, %v28186_v58  ;;  %v34971_v13 = vand.u32 4294901760, %v28235_v32  ;;  %v34972_v17 = vand.u32 4294901760, %v28373_v56  ;;  %v34973_v34 = vand.u32 4294901760, %v28376_v41 }
 0x1d9   : > { %34967 = vst [vmem:[#allocation109_spill] sm:$0xff] %v28432_v50  ;;  %22163 = vmatmul.mubr.f32.gmra.mrb[14].mxu1 %v34968_v10  ;;  %23360 = vmatmul.mubr.f32.gmra.mrb[12].mxu0 %v34969_v47  ;;  %v28457_v31 = vsub.f32 %v10105_v57, %v28408_v29  ;;  %v10114_v33 = vsel %vm236_vm1, %v10029_v45, 0  ;;  %v385_v58 = vld [vmem:[#allocation2 + $0x158] sm:$0xff]  ;;  %v2688_v37 = vand.u32 4294901760, %v28413_v61  ;;  %v10404_v32 = vand.u32 4294901760, %v28418_v62  ;;  %v386_v45 = vld [vmem:[#allocation2 + $0x168] sm:$0xff] }
 0x1da   : > { %22165 = vmatprep.mubr.f32.mxu1 %v34970_v55  ;;  %23362 = vmatprep.mubr.f32.mxu0 %v34971_v13  ;;  %v28449_v10 = vsub.f32 %v28373_v56, %v34972_v17  ;;  %v28454_v47 = vsub.f32 %v28376_v41, %v34973_v34  ;;  %v28463_v55 = vsub.f32 %v2378_v12, %v28420_v15  ;;  %v10030_v17 = vld [vmem:[#allocation2 + $0x15a] sm:$0xff]  ;;  %v28469_v20 = vand.u32 4294901760, %v2381_v48  ;;  %v10031_v56 = vld [vmem:[#allocation2 + $0x16a] sm:$0xff]  ;;  %v10032_v29 = vld [vmem:[#allocation2 + $0x172] sm:$0xff] }
 0x1db   : > { %34974 = vst [vmem:[#allocation110_spill] sm:$0xff] %v28457_v31  ;;  %v28466_v13 = vsub.f32 %v10108_v35, %v28422_v22  ;;  %v28471_v57 = vand.u32 4294901760, %v10111_v5  ;;  %v28473_v41 = vand.u32 4294901760, %v2384_v51  ;;  %v34980_v61 = vand.u32 4294901760, %v28247_v60 }
 0x1dc   : > { %34975 = vst [vmem:[#allocation111_spill] sm:$0xff] %v28463_v55  ;;  %34977 = vst [vmem:[#allocation113_spill] sm:$0xff] %v28469_v20  ;;  %v34981_v12 = vand.u32 4294901760, %v28278_v39  ;;  %v34982_v35 = vand.u32 4294901760, %v28399_v49  ;;  %v28485_v2 = vand.u32 4294901760, %v10114_v33  ;;  %v2387_v22 = vsel %vm236_vm1, %v385_v58, 0 }
 0x1dd   : > { %34976 = vst [vmem:[#allocation112_spill] sm:$0xff] %v28466_v13  ;;  %34978 = vst [vmem:[#allocation114_spill] sm:$0xff] %v28471_v57  ;;  %22166 = vmatmul.mubr.f32.gmra.mrb[16].mxu1 %v34980_v61  ;;  %v34984_v15 = vand.u32 4294901760, %v28295_v28  ;;  %v34985_v60 = vand.u32 4294901760, %v28309_v14  ;;  %v10414_v39 = vand.u32 4294901760, %v28449_v10  ;;  %v2708_v61 = vand.u32 4294901760, %v28454_v47 }
 0x1de   : > { %34979 = vst [vmem:[#allocation115_spill] sm:$0xff] %v28473_v41  ;;  %23363 = vmatmul.mubr.f32.gmra.mrb[14].mxu0 %v34981_v12  ;;  %v28482_v62 = vsub.f32 %v28399_v49, %v34982_v35  ;;  %34983 = vst [vmem:[#allocation116_spill] sm:$0xff] %v28485_v2  ;;  %v10117_v35 = vsel %vm236_vm1, %v10030_v17, 0  ;;  %v2390_v58 = vsel %vm236_vm1, %v386_v45, 0  ;;  %v10120_v28 = vsel %vm236_vm1, %v10031_v56, 0 }
 0x1df   : > { %22168 = vmatprep.mubr.f32.mxu1 %v34984_v15  ;;  %23365 = vmatprep.mubr.f32.mxu0 %v34985_v60  ;;  %v387_v15 = vld [vmem:[#allocation2 + $0x170] sm:$0xff]  ;;  %v28501_v14 = vsub.f32 %v2381_v48, %v28469_v20  ;;  %v28504_v10 = vsub.f32 %v10111_v5, %v28471_v57  ;;  %v28507_v47 = vsub.f32 %v2384_v51, %v28473_v41  ;;  %v28509_v17 = vand.u32 4294901760, %v2387_v22  ;;  %v10033_v60 = vld [vmem:[#allocation2 + $0x182] sm:$0xff] }
 0x1e0   : > { %v34989_v49 = vand.u32 4294901760, %v28335_v21  ;;  %v34990_v45 = vand.u32 4294901760, %v28340_v40  ;;  %v10424_v56 = vand.u32 4294901760, %v28482_v62  ;;  %v34991_v48 = vand.u32 4294901760, %v28432_v50 }
 0x1e1   : > { %34986 = vst [vmem:[#allocation117_spill] sm:$0xff] %v28501_v14  ;;  %34987 = vst [vmem:[#allocation118_spill] sm:$0xff] %v28507_v47  ;;  %v28520_v5 = vsub.f32 %v10114_v33, %v28485_v2  ;;  %v28522_v51 = vand.u32 4294901760, %v10117_v35  ;;  %v34993_v12 = vand.u32 4294901760, %v28352_v36  ;;  %v34994_v21 = vand.u32 4294901760, %v28357_v53  ;;  %v10034_v2 = vld [vmem:[#allocation2 + $0x18a] sm:$0xff] }
 0x1e2   : > { %34988 = vst [vmem:[#allocation119_spill] sm:$0xff] %v28509_v17  ;;  %22169 = vmatmul.mubr.f32.gmra.mrb[18].mxu1 %v34989_v49  ;;  %23366 = vmatmul.mubr.f32.gmra.mrb[16].mxu0 %v34990_v45  ;;  %v2717_v34 = vsub.f32 %v28432_v50, %v34991_v48  ;;  %v28528_v49 = vand.u32 4294901760, %v2390_v58  ;;  %v28530_v40 = vand.u32 4294901760, %v10120_v28  ;;  %v2393_v62 = vsel %vm236_vm1, %v387_v15, 0 }
 0x1e3   : > { %34992 = vst [vmem:[#allocation120_spill] sm:$0xff] %v28522_v51  ;;  %22171 = vmatprep.mubr.f32.mxu1 %v34993_v12  ;;  %23368 = vmatprep.mubr.f32.mxu0 %v34994_v21  ;;  %v10123_v45 = vsel %vm236_vm1, %v10032_v29, 0  ;;  %v34997_v48 = vand.u32 4294901760, %v28457_v31  ;;  %v34998_v50 = vand.u32 4294901760, %v28463_v55  ;;  %v34999_v12 = vand.u32 4294901760, %v28466_v13 }
 0x1e4   : > { %34995 = vst [vmem:[#allocation121_spill] sm:$0xff] %v28528_v49  ;;  %34996 = vst [vmem:[#allocation122_spill] sm:$0xff] %v28530_v40  ;;  %v10126_v21 = vsel %vm236_vm1, %v10033_v60, 0  ;;  %v28548_v57 = vsub.f32 %v2387_v22, %v28509_v17  ;;  %v28556_v60 = vsub.f32 %v10117_v35, %v28522_v51  ;;  %v28560_v41 = vand.u32 4294901760, %v10123_v45 }
 0x1e5   : > { %v10433_v33 = vsub.f32 %v28457_v31, %v34997_v48  ;;  %v2727_v36 = vsub.f32 %v28463_v55, %v34998_v50  ;;  %v10443_v53 = vsub.f32 %v28466_v13, %v34999_v12  ;;  %v35000_v48 = vand.u32 4294901760, %v28370_v23 }
 0x1e6   : > { %v35001_v50 = vand.u32 4294901760, %v28381_v54  ;;  %35002 = vst [vmem:[#allocation123_spill] sm:$0xff] %v28556_v60  ;;  %v28558_v13 = vand.u32 4294901760, %v2393_v62  ;;  %35004 = vst [vmem:[#allocation125_spill] sm:$0xff] %v28560_v41  ;;  %v28563_v22 = vsub.f32 %v2390_v58, %v28528_v49  ;;  %v28566_v23 = vsub.f32 %v10120_v28, %v28530_v40 }
 0x1e7   : > { %22172 = vmatmul.mubr.f32.gmra.mrb[20].mxu1 %v35000_v48  ;;  %v28568_v48 = vand.u32 4294901760, %v10126_v21  ;;  %v10129_v54 = vsel %vm236_vm1, %v10034_v2, 0  ;;  %v10434_v12 = vand.u32 4294901760, %v10433_v33  ;;  %v2728_v35 = vand.u32 4294901760, %v2727_v36 }
 0x1e8   : > { %23369 = vmatmul.mubr.f32.gmra.mrb[18].mxu0 %v35001_v50  ;;  %35003 = vst [vmem:[#allocation124_spill] sm:$0xff] %v28558_v13  ;;  %22174 = vmatprep.mubr.f32.mxu1 %v2688_v37  ;;  %35005 = vst [vmem:[#allocation126_spill] sm:$0xff] %v28563_v22  ;;  %v2718_v50 = vand.u32 4294901760, %v2717_v34  ;;  %v10444_v29 = vand.u32 4294901760, %v10443_v53  ;;  %v35007_v15 = vand.u32 4294901760, %v28501_v14  ;;  %v35008_v37 = vand.u32 4294901760, %v28504_v10 }
 0x1e9   : > { %23371 = vmatprep.mubr.f32.mxu0 %v10404_v32  ;;  %35006 = vst [vmem:[#allocation127_spill] sm:$0xff] %v28568_v48  ;;  %v35009_v58 = vand.u32 4294901760, %v28507_v47  ;;  %v33890_v31 = vand.u32 4294901760, %v28548_v57  ;;  %v35010_v2 = vand.u32 4294901760, %v28429_v42  ;;  %v28585_v33 = vsub.f32 %v2393_v62, %v28558_v13 }
 0x1ea   : > { %v2737_v55 = vsub.f32 %v28501_v14, %v35007_v15  ;;  %v10453_v32 = vsub.f32 %v28504_v10, %v35008_v37  ;;  %v28588_v36 = vsub.f32 %v10123_v45, %v28560_v41  ;;  %v28590_v53 = vand.u32 4294901760, %v10129_v54 }
 0x1eb   : > { %v2747_v28 = vsub.f32 %v28507_v47, %v35009_v58  ;;  %22175 = vmatmul.mubr.f32.gmra.mrb[22].mxu1 %v35010_v2  ;;  %v35012_v15 = vand.u32 4294901760, %v28520_v5  ;;  %v33895_v42 = vand.u32 4294901760, %v28563_v22  ;;  %v28598_v58 = vsub.f32 %v10126_v21, %v28568_v48 }
 0x1ec   : > { %23372 = vmatmul.mubr.f32.gmra.mrb[20].mxu0 %v10414_v39  ;;  %35011 = vst [vmem:[#allocation128_spill] sm:$0xff] %v28590_v53  ;;  %22177 = vmatprep.mubr.f32.mxu1 %v2708_v61  ;;  %v2738_v62 = vand.u32 4294901760, %v2737_v55  ;;  %v10454_v2 = vand.u32 4294901760, %v10453_v32  ;;  %v2757_v45 = vsub.f32 %v28548_v57, %v33890_v31  ;;  %v35013_v61 = vand.u32 4294901760, %v28556_v60 }
 0x1ed   : > { %23374 = vmatprep.mubr.f32.mxu0 %v10424_v56  ;;  %v10463_v37 = vsub.f32 %v28520_v5, %v35012_v15  ;;  %v2748_v34 = vand.u32 4294901760, %v2747_v28  ;;  %v33894_v15 = vand.u32 4294901760, %v28585_v33  ;;  %v33891_v39 = vand.u32 4294901760, %v28588_v36 }
 0x1ee   : > { %v10473_v56 = vsub.f32 %v28556_v60, %v35013_v61  ;;  %v28609_v21 = vsub.f32 %v10129_v54, %v28590_v53  ;;  %v2767_v32 = vsub.f32 %v28563_v22, %v33895_v42  ;;  %v33893_v28 = vand.u32 4294901760, %v28598_v58  ;;  %v35035_v42 = vld [vmem:[#allocation71_spill] sm:$0xff] }
 0x1ef   : > { %22178 = vmatmul.mubr.f32.gmra.mrb[24].mxu1 %v2718_v50  ;;  %v10464_v55 = vand.u32 4294901760, %v10463_v37  ;;  %v2758_v61 = vand.u32 4294901760, %v2757_v45  ;;  %v2777_v54 = vsub.f32 %v28585_v33, %v33894_v15  ;;  %v35034_v15 = vld [vmem:[#allocation65_spill] sm:$0xff] }
 0x1f0   : > { %23375 = vmatmul.mubr.f32.gmra.mrb[22].mxu0 %v10434_v12  ;;  %22180 = vmatprep.mubr.f32.mxu1 %v2728_v35  ;;  %v35014_v12 = vand.u32 4294901760, %v28566_v23  ;;  %v10474_v31 = vand.u32 4294901760, %v10473_v56  ;;  %v33892_v35 = vand.u32 4294901760, %v28609_v21  ;;  %v2768_v37 = vand.u32 4294901760, %v2767_v32  ;;  %v35018_v32 = vld [vmem:[#allocation41_spill] sm:$0xff] }
 0x1f1   : > { %23377 = vmatprep.mubr.f32.mxu0 %v10444_v29  ;;  %v10493_v29 = vsub.f32 %v28588_v36, %v33891_v39 }
 0x1f2   : > { %v10483_v50 = vsub.f32 %v28566_v23, %v35014_v12  ;;  %v10513_v56 = vsub.f32 %v28609_v21, %v33892_v35  ;;  %v35032_v35 = vld [vmem:[#allocation53_spill] sm:$0xff] }
 0x1f3   : > { %22181 = vmatmul.mubr.f32.gmra.mrb[26].mxu1 %v2738_v62  ;;  %v10503_v62 = vsub.f32 %v28598_v58, %v33893_v28  ;;  %v10494_v45 = vand.u32 4294901760, %v10493_v29  ;;  %v35023_v29 = vld [vmem:[#allocation15_spill] sm:$0xff] }
 0x1f4   : > { %23378 = vmatmul.mubr.f32.gmra.mrb[24].mxu0 %v10454_v2  ;;  %22183 = vmatprep.mubr.f32.mxu1 %v2748_v34  ;;  %v10484_v12 = vand.u32 4294901760, %v10483_v50  ;;  %v2778_v2 = vand.u32 4294901760, %v2777_v54  ;;  %v10514_v34 = vand.u32 4294901760, %v10513_v56  ;;  %v35019_v50 = vld [vmem:[#allocation44_spill] sm:$0xff]  ;;  %v35022_v54 = vld [vmem:[#allocation14_spill] sm:$0xff]  ;;  %v35033_v28 = vld [vmem:[#allocation55_spill] sm:$0xff] }
 0x1f5   : > { %23380 = vmatprep.mubr.f32.mxu0 %v10464_v55  ;;  %v10504_v39 = vand.u32 4294901760, %v10503_v62  ;;  %v35017_v55 = vld [vmem:[#allocation39_spill] sm:$0xff]  ;;  %v35027_v62 = vld [vmem:[#allocation38_spill] sm:$0xff]  ;;  %v35030_v56 = vld [vmem:[#allocation48_spill] sm:$0xff] }
 0x1f7   : > { %22184 = vmatmul.mubr.f32.gmra.mrb[28].mxu1 %v2758_v61  ;;  %v35021_v61 = vld [vmem:[#allocation11_spill] sm:$0xff] }
 0x1f8   : > { %23381 = vmatmul.mubr.f32.gmra.mrb[26].mxu0 %v10474_v31  ;;  %22186 = vmatprep.mubr.f32.mxu1 %v2768_v37  ;;  %v35015_v31 = vld [vmem:[#allocation35_spill] sm:$0xff]  ;;  %v35024_v37 = vld [vmem:[#allocation26_spill] sm:$0xff] }
 0x1f9   : > { %23383 = vmatprep.mubr.f32.mxu0 %v10484_v12  ;;  %v35025_v12 = vld [vmem:[#allocation27_spill] sm:$0xff] }
 0x1fb   : > { %22187 = vmatmul.mubr.f32.gmra.mrb[30].mxu1 %v2778_v2  ;;  %v35028_v2 = vld [vmem:[#allocation40_spill] sm:$0xff] }
 0x1fc   : > { %23384 = vmatmul.mubr.f32.gmra.mrb[28].mxu0 %v10494_v45  ;;  %22191 = vmatprep.mubr.f32.mxu1 %v27698_v1  ;;  %v35029_v45 = vld [vmem:[#allocation47_spill] sm:$0xff]  ;;  %v35099_v1 = vld [vmem:[#allocation105_spill] sm:$0xff] }
 0x1fd   : > { %23386 = vmatprep.mubr.f32.mxu0 %v10504_v39  ;;  %v35016_v39 = vld [vmem:[#allocation6_spill] sm:$0xff] }
 0x1ff   : > { %22192 = vmatmul.mubr.f32.vlgmr.msra.gmra.mrb[0].mxu1 %v27704_v18  ;;  %v35098_v18 = vld [vmem:[#allocation103_spill] sm:$0xff] }
 0x200   : > { %23387 = vmatmul.mubr.f32.gmra.mrb[30].mxu0 %v10514_v34  ;;  %22194 = vmatprep.mubr.f32.mxu1 %v27716_v11  ;;  %v35031_v34 = vld [vmem:[#allocation51_spill] sm:$0xff]  ;;  %v35097_v11 = vld [vmem:[#allocation102_spill] sm:$0xff] }
 0x201   : > { %23391 = vmatprep.mubr.f32.mxu0 %v27727_v46  ;;  %22240 = vmatpush3.msra.mxu1 %v27714_v8  ;;  %v35020_v8 = vld [vmem:[#allocation9_spill] sm:$0xff]  ;;  %v35096_v46 = vld [vmem:[#allocation100_spill] sm:$0xff] }
 0x202   : > { %22289 = vmatprep.subr.mxu1 %v27594_v7 }
 0x203   : > { %22195 = vmatmul.mubr.f32.gmra.mrb[2].mxu1 %v27738_v38  ;;  %v35095_v38 = vld [vmem:[#allocation99_spill] sm:$0xff] }
 0x204   : > { %23392 = vmatmul.mubr.f32.vlgmr.msra.gmra.mrb[0].mxu0 %v27742_v9  ;;  %22197 = vmatprep.mubr.f32.mxu1 %v27756_v0  ;;  %v35093_v0 = vld [vmem:[#allocation92_spill] sm:$0xff]  ;;  %v35094_v9 = vld [vmem:[#allocation98_spill] sm:$0xff] }
 0x205   : > { %23394 = vmatprep.mubr.f32.mxu0 %v35015_v31  ;;  %23440 = vmatpush3.msra.mxu0 %v27661_v4  ;;  %v35026_v4 = vld [vmem:[#allocation30_spill] sm:$0xff]  ;;  %v35092_v31 = vld [vmem:[#allocation91_spill] sm:$0xff] }
 0x206   : > { %23489 = vmatprep.subr.mxu0 %v35016_v39 }
 0x207   : > { %22198 = vmatmul.mubr.f32.gmra.mrb[4].mxu1 %v35017_v55  ;;  %v35091_v55 = vld [vmem:[#allocation90_spill] sm:$0xff] }
 0x208   : > { %23395 = vmatmul.mubr.f32.gmra.mrb[2].mxu0 %v35018_v32  ;;  %22200 = vmatprep.mubr.f32.mxu1 %v35019_v50  ;;  %v35089_v50 = vld [vmem:[#allocation88_spill] sm:$0xff]  ;;  %v35090_v32 = vld [vmem:[#allocation89_spill] sm:$0xff] }
 0x209   : > { %23397 = vmatprep.mubr.f32.mxu0 %v35020_v8  ;;  %v35088_v8 = vld [vmem:[#allocation87_spill] sm:$0xff] }
 0x20b   : > { %22201 = vmatmul.mubr.f32.gmra.mrb[6].mxu1 %v35021_v61  ;;  %v35087_v61 = vld [vmem:[#allocation82_spill] sm:$0xff] }
 0x20c   : > { %23398 = vmatmul.mubr.f32.gmra.mrb[4].mxu0 %v35022_v54  ;;  %22203 = vmatprep.mubr.f32.mxu1 %v35023_v29  ;;  %v35085_v29 = vld [vmem:[#allocation78_spill] sm:$0xff]  ;;  %v35086_v54 = vld [vmem:[#allocation79_spill] sm:$0xff] }
 0x20d   : > { %23400 = vmatprep.mubr.f32.mxu0 %v35024_v37  ;;  %v35084_v37 = vld [vmem:[#allocation75_spill] sm:$0xff] }
 0x20f   : > { %22204 = vmatmul.mubr.f32.gmra.mrb[8].mxu1 %v35025_v12  ;;  %v35083_v12 = vld [vmem:[#allocation73_spill] sm:$0xff] }
 0x210   : > { %23401 = vmatmul.mubr.f32.gmra.mrb[6].mxu0 %v35026_v4  ;;  %22206 = vmatprep.mubr.f32.mxu1 %v35027_v62  ;;  %v35081_v62 = vld [vmem:[#allocation69_spill] sm:$0xff]  ;;  %v35082_v4 = vld [vmem:[#allocation70_spill] sm:$0xff] }
 0x211   : > { %23403 = vmatprep.mubr.f32.mxu0 %v35028_v2  ;;  %v35080_v2 = vld [vmem:[#allocation68_spill] sm:$0xff] }
 0x213   : > { %22207 = vmatmul.mubr.f32.gmra.mrb[10].mxu1 %v27961_v43  ;;  %v35079_v43 = vld [vmem:[#allocation67_spill] sm:$0xff] }
 0x214   : > { %23404 = vmatmul.mubr.f32.gmra.mrb[8].mxu0 %v35029_v45  ;;  %22209 = vmatprep.mubr.f32.mxu1 %v35030_v56  ;;  %v35036_v45 = vld [vmem:[#allocation72_spill] sm:$0xff]  ;;  %v35037_v56 = vld [vmem:[#allocation74_spill] sm:$0xff] }
 0x215   : > { %23406 = vmatprep.mubr.f32.mxu0 %v35031_v34  ;;  %v35038_v34 = vld [vmem:[#allocation76_spill] sm:$0xff] }
 0x217   : > { %22210 = vmatmul.mubr.f32.gmra.mrb[12].mxu1 %v35032_v35  ;;  %v35039_v35 = vld [vmem:[#allocation77_spill] sm:$0xff] }
 0x218   : > { %23407 = vmatmul.mubr.f32.gmra.mrb[10].mxu0 %v35033_v28  ;;  %22212 = vmatprep.mubr.f32.mxu1 %v28037_v24  ;;  %v35077_v24 = vld [vmem:[#allocation60_spill] sm:$0xff]  ;;  %v35078_v28 = vld [vmem:[#allocation66_spill] sm:$0xff] }
 0x219   : > { %23409 = vmatprep.mubr.f32.mxu0 %v28040_v27  ;;  %v35076_v27 = vld [vmem:[#allocation59_spill] sm:$0xff] }
 0x21b   : > { %22213 = vmatmul.mubr.f32.gmra.mrb[14].mxu1 %v28042_v52  ;;  %v35075_v52 = vld [vmem:[#allocation58_spill] sm:$0xff] }
 0x21c   : > { %23410 = vmatmul.mubr.f32.gmra.mrb[12].mxu0 %v28044_v25  ;;  %22215 = vmatprep.mubr.f32.mxu1 %v35034_v15  ;;  %v35040_v15 = vld [vmem:[#allocation86_spill] sm:$0xff]  ;;  %v35074_v25 = vld [vmem:[#allocation57_spill] sm:$0xff] }
 0x21d   : > { %23412 = vmatprep.mubr.f32.mxu0 %v35035_v42  ;;  %v35073_v42 = vld [vmem:[#allocation56_spill] sm:$0xff] }
 0x21f   : > { %22216 = vmatmul.mubr.f32.gmra.mrb[16].mxu1 %v35036_v45  ;;  %v35072_v45 = vld [vmem:[#allocation54_spill] sm:$0xff] }
 0x220   : > { %23413 = vmatmul.mubr.f32.gmra.mrb[14].mxu0 %v35037_v56  ;;  %22218 = vmatprep.mubr.f32.mxu1 %v35038_v34  ;;  %v35041_v34 = vld [vmem:[#allocation96_spill] sm:$0xff]  ;;  %v35071_v56 = vld [vmem:[#allocation49_spill] sm:$0xff] }
 0x221   : > { %23415 = vmatprep.mubr.f32.mxu0 %v35039_v35  ;;  %v35042_v35 = vld [vmem:[#allocation97_spill] sm:$0xff] }
 0x223   : > { %22219 = vmatmul.mubr.f32.gmra.mrb[18].mxu1 %v28211_v3  ;;  %v35043_v3 = vld [vmem:[#allocation101_spill] sm:$0xff] }
 0x224   : > { %23416 = vmatmul.mubr.f32.gmra.mrb[16].mxu0 %v28213_v26  ;;  %22221 = vmatprep.mubr.f32.mxu1 %v28224_v63  ;;  %v35044_v63 = vld [vmem:[#allocation106_spill] sm:$0xff] }
 0x225   : > { %23418 = vmatprep.mubr.f32.mxu0 %v28226_v16  ;;  %v35045_v16 = vld [vmem:[#allocation107_spill] sm:$0xff]  ;;  %v35070_v26 = vld [vmem:[#allocation46_spill] sm:$0xff] }
 0x227   : > { %22222 = vmatmul.mubr.f32.gmra.mrb[20].mxu1 %v28238_v44  ;;  %v35046_v44 = vld [vmem:[#allocation108_spill] sm:$0xff] }
 0x228   : > { %23419 = vmatmul.mubr.f32.gmra.mrb[18].mxu0 %v35040_v15  ;;  %22224 = vmatprep.mubr.f32.mxu1 %v28286_v59  ;;  %v35047_v59 = vld [vmem:[#allocation114_spill] sm:$0xff]  ;;  %v35069_v15 = vld [vmem:[#allocation36_spill] sm:$0xff] }
 0x229   : > { %23421 = vmatprep.mubr.f32.mxu0 %v28288_v19  ;;  %v35048_v19 = vld [vmem:[#allocation115_spill] sm:$0xff] }
 0x22b   : > { %22225 = vmatmul.mubr.f32.gmra.mrb[22].mxu1 %v28299_v6  ;;  %v35049_v6 = vld [vmem:[#allocation116_spill] sm:$0xff] }
 0x22c   : > { %23422 = vmatmul.mubr.f32.gmra.mrb[20].mxu0 %v35041_v34  ;;  %22227 = vmatprep.mubr.f32.mxu1 %v35042_v35  ;;  %v35067_v35 = vld [vmem:[#allocation32_spill] sm:$0xff]  ;;  %v35068_v34 = vld [vmem:[#allocation34_spill] sm:$0xff] }
 0x22d   : > { %23424 = vmatprep.mubr.f32.mxu0 %v35043_v3  ;;  %v35066_v3 = vld [vmem:[#allocation23_spill] sm:$0xff] }
 0x22f   : > { %22228 = vmatmul.mubr.f32.gmra.mrb[24].mxu1 %v28387_v30  ;;  %v35065_v30 = vld [vmem:[#allocation22_spill] sm:$0xff] }
 0x230   : > { %23425 = vmatmul.mubr.f32.gmra.mrb[22].mxu0 %v35044_v63  ;;  %22230 = vmatprep.mubr.f32.mxu1 %v35045_v16  ;;  %v35063_v16 = vld [vmem:[#allocation18_spill] sm:$0xff]  ;;  %v35064_v63 = vld [vmem:[#allocation19_spill] sm:$0xff] }
 0x231   : > { %23427 = vmatprep.mubr.f32.mxu0 %v35046_v44  ;;  %v35050_v44 = vld [vmem:[#allocation16_spill] sm:$0xff] }
 0x233   : > { %22231 = vmatmul.mubr.f32.gmra.mrb[26].mxu1 %v28469_v20  ;;  %v35062_v20 = vld [vmem:[#allocation10_spill] sm:$0xff] }
 0x234   : > { %23428 = vmatmul.mubr.f32.gmra.mrb[24].mxu0 %v35047_v59  ;;  %22233 = vmatprep.mubr.f32.mxu1 %v35048_v19  ;;  %v35051_v59 = vld [vmem:[#allocation21_spill] sm:$0xff]  ;;  %v35061_v19 = vld [vmem:[#allocation8_spill] sm:$0xff] }
 0x235   : > { %23430 = vmatprep.mubr.f32.mxu0 %v35049_v6  ;;  %v35052_v6 = vld [vmem:[#allocation25_spill] sm:$0xff] }
 0x237   : > { %22234 = vmatmul.mubr.f32.gmra.mrb[28].mxu1 %v28509_v17  ;;  %v35053_v17 = vld [vmem:[#allocation31_spill] sm:$0xff] }
 0x238   : > { %23431 = vmatmul.mubr.f32.gmra.mrb[26].mxu0 %v28522_v51  ;;  %22236 = vmatprep.mubr.f32.mxu1 %v28528_v49  ;;  %v35054_v49 = vld [vmem:[#allocation20_spill] sm:$0xff]  ;;  %v35058_v51 = vld [vmem:[#allocation50_spill] sm:$0xff] }
 0x239   : > { %23433 = vmatprep.mubr.f32.mxu0 %v28530_v40  ;;  %v35055_v40 = vld [vmem:[#allocation37_spill] sm:$0xff] }
 0x23b   : > { %22237 = vmatmul.mubr.f32.gmra.mrb[30].mxu1 %v28558_v13  ;;  %v35056_v13 = vld [vmem:[#allocation42_spill] sm:$0xff] }
 0x23c   : > { %23434 = vmatmul.mubr.f32.gmra.mrb[28].mxu0 %v28560_v41  ;;  %22241 = vmatprep.mubr.f32.mxu1 %v35050_v44  ;;  %v35057_v41 = vld [vmem:[#allocation45_spill] sm:$0xff] }
 0x23d   : > { %23436 = vmatprep.mubr.f32.mxu0 %v28568_v48  ;;  %v35059_v48 = vld [vmem:[#allocation7_spill] sm:$0xff] }
 0x23f   : > { %22242 = vmatmul.mubr.f32.vlgmr.msra.gmra.mrb[0].mxu1 %v35051_v59 }
 0x240   : > { %23437 = vmatmul.mubr.f32.gmra.mrb[30].mxu0 %v28590_v53  ;;  %22244 = vmatprep.mubr.f32.mxu1 %v35052_v6  ;;  %v35060_v53 = vld [vmem:[#allocation52_spill] sm:$0xff] }
 0x241   : > { %23441 = vmatprep.mubr.f32.mxu0 %v35053_v17  ;;  %22290 = vmatpush3.msra.mxu1 %v27594_v7 }
 0x242   : > { %22339 = vmatprep.subr.mxu1 %v35054_v49 }
 0x243   : > { %22245 = vmatmul.mubr.f32.gmra.mrb[2].mxu1 %v35055_v40 }
 0x244   : > { %23442 = vmatmul.mubr.f32.vlgmr.msra.gmra.mrb[0].mxu0 %v35056_v13  ;;  %22247 = vmatprep.mubr.f32.mxu1 %v35057_v41 }
 0x245   : > { %23444 = vmatprep.mubr.f32.mxu0 %v35058_v51  ;;  %23490 = vmatpush3.msra.mxu0 %v35016_v39 }
 0x246   : > { %23539 = vmatprep.subr.mxu0 %v35059_v48 }
 0x247   : > { %22248 = vmatmul.mubr.f32.gmra.mrb[4].mxu1 %v35060_v53 }
 0x248   : > { %23445 = vmatmul.mubr.f32.gmra.mrb[2].mxu0 %v35061_v19  ;;  %22250 = vmatprep.mubr.f32.mxu1 %v35062_v20 }
 0x249   : > { %23447 = vmatprep.mubr.f32.mxu0 %v35063_v16 }
 0x24b   : > { %22251 = vmatmul.mubr.f32.gmra.mrb[6].mxu1 %v35064_v63 }
 0x24c   : > { %23448 = vmatmul.mubr.f32.gmra.mrb[4].mxu0 %v35065_v30  ;;  %22253 = vmatprep.mubr.f32.mxu1 %v35066_v3 }
 0x24d   : > { %23450 = vmatprep.mubr.f32.mxu0 %v35067_v35 }
 0x24f   : > { %22254 = vmatmul.mubr.f32.gmra.mrb[8].mxu1 %v35068_v34 }
 0x250   : > { %23451 = vmatmul.mubr.f32.gmra.mrb[6].mxu0 %v35069_v15  ;;  %22256 = vmatprep.mubr.f32.mxu1 %v35070_v26 }
 0x251   : > { %23453 = vmatprep.mubr.f32.mxu0 %v35071_v56 }
 0x253   : > { %22257 = vmatmul.mubr.f32.gmra.mrb[10].mxu1 %v35072_v45 }
 0x254   : > { %23454 = vmatmul.mubr.f32.gmra.mrb[8].mxu0 %v35073_v42  ;;  %22259 = vmatprep.mubr.f32.mxu1 %v35074_v25 }
 0x255   : > { %23456 = vmatprep.mubr.f32.mxu0 %v35075_v52 }
 0x257   : > { %22260 = vmatmul.mubr.f32.gmra.mrb[12].mxu1 %v35076_v27 }
 0x258   : > { %23457 = vmatmul.mubr.f32.gmra.mrb[10].mxu0 %v35077_v24  ;;  %22262 = vmatprep.mubr.f32.mxu1 %v35078_v28 }
 0x259   : > { %23459 = vmatprep.mubr.f32.mxu0 %v35079_v43 }
 0x25b   : > { %22263 = vmatmul.mubr.f32.gmra.mrb[14].mxu1 %v35080_v2 }
 0x25c   : > { %23460 = vmatmul.mubr.f32.gmra.mrb[12].mxu0 %v35081_v62  ;;  %22265 = vmatprep.mubr.f32.mxu1 %v35082_v4 }
 0x25d   : > { %23462 = vmatprep.mubr.f32.mxu0 %v35083_v12 }
 0x25f   : > { %22266 = vmatmul.mubr.f32.gmra.mrb[16].mxu1 %v35084_v37 }
 0x260   : > { %23463 = vmatmul.mubr.f32.gmra.mrb[14].mxu0 %v35085_v29  ;;  %22268 = vmatprep.mubr.f32.mxu1 %v35086_v54 }
 0x261   : > { %23465 = vmatprep.mubr.f32.mxu0 %v35087_v61 }
 0x263   : > { %22269 = vmatmul.mubr.f32.gmra.mrb[18].mxu1 %v35088_v8 }
 0x264   : > { %23466 = vmatmul.mubr.f32.gmra.mrb[16].mxu0 %v35089_v50  ;;  %22271 = vmatprep.mubr.f32.mxu1 %v35090_v32  ;;  %v35100_v50 = vld [vmem:[#allocation109_spill] sm:$0xff]  ;;  %v35101_v32 = vld [vmem:[#allocation110_spill] sm:$0xff] }
 0x265   : > { %23468 = vmatprep.mubr.f32.mxu0 %v35091_v55  ;;  %v35102_v55 = vld [vmem:[#allocation111_spill] sm:$0xff] }
 0x267   : > { %22272 = vmatmul.mubr.f32.gmra.mrb[20].mxu1 %v35092_v31  ;;  %v35103_v31 = vld [vmem:[#allocation112_spill] sm:$0xff] }
 0x268   : > { %23469 = vmatmul.mubr.f32.gmra.mrb[18].mxu0 %v35093_v0  ;;  %22274 = vmatprep.mubr.f32.mxu1 %v35094_v9 }
 0x269   : > { %23471 = vmatprep.mubr.f32.mxu0 %v35095_v38 }
 0x26b   : > { %22275 = vmatmul.mubr.f32.gmra.mrb[22].mxu1 %v35096_v46 }
 0x26c   : > { %23472 = vmatmul.mubr.f32.gmra.mrb[20].mxu0 %v35097_v11  ;;  %22277 = vmatprep.mubr.f32.mxu1 %v35098_v18 }
 0x26d   : > { %23474 = vmatprep.mubr.f32.mxu0 %v35099_v1 }
 0x26f   : > { %22278 = vmatmul.mubr.f32.gmra.mrb[24].mxu1 %v35100_v50 }
 0x270   : > { %23475 = vmatmul.mubr.f32.gmra.mrb[22].mxu0 %v35101_v32  ;;  %22280 = vmatprep.mubr.f32.mxu1 %v35102_v55 }
 0x271   : > { %23477 = vmatprep.mubr.f32.mxu0 %v35103_v31 }
 0x273   : > { %22281 = vmatmul.mubr.f32.gmra.mrb[26].mxu1 %v28501_v14  ;;  %v35104_v14 = vand.u32 4294901760, %v35050_v44  ;;  %v35108_v44 = vand.u32 4294901760, %v35055_v40  ;;  %v35118_v40 = vand.u32 4294901760, %v35066_v3  ;;  %v35125_v3 = vand.u32 4294901760, %v35073_v42 }
 0x274   : > { %23478 = vmatmul.mubr.f32.gmra.mrb[24].mxu0 %v28504_v10  ;;  %22283 = vmatprep.mubr.f32.mxu1 %v28507_v47  ;;  %v35105_v47 = vand.u32 4294901760, %v35051_v59  ;;  %v35110_v59 = vand.u32 4294901760, %v35057_v41  ;;  %v35116_v41 = vand.u32 4294901760, %v35064_v63  ;;  %v35123_v63 = vand.u32 4294901760, %v35071_v56 }
 0x275   : > { %23480 = vmatprep.mubr.f32.mxu0 %v28520_v5  ;;  %v35132_v42 = vand.u32 4294901760, %v35080_v2  ;;  %v35139_v2 = vand.u32 4294901760, %v35087_v61  ;;  %v35150_v61 = vand.u32 4294901760, %v35094_v9  ;;  %v35157_v9 = vand.u32 4294901760, %v35101_v32 }
 0x276   : > { %v35166_v32 = vand.u32 4294901760, %v28548_v57 }
 0x277   : > { %22284 = vmatmul.mubr.f32.gmra.mrb[28].mxu1 %v28548_v57 }
 0x278   : > { %23481 = vmatmul.mubr.f32.gmra.mrb[26].mxu0 %v28556_v60  ;;  %22286 = vmatprep.mubr.f32.mxu1 %v28563_v22  ;;  %v35106_v60 = vand.u32 4294901760, %v35052_v6  ;;  %v35107_v22 = vand.u32 4294901760, %v35053_v17  ;;  %v35112_v6 = vand.u32 4294901760, %v35060_v53  ;;  %v35113_v17 = vand.u32 4294901760, %v35061_v19 }
 0x279   : > { %23483 = vmatprep.mubr.f32.mxu0 %v28566_v23  ;;  %v35120_v19 = vand.u32 4294901760, %v35068_v34  ;;  %v35128_v53 = vand.u32 4294901760, %v35076_v27  ;;  %v35135_v27 = vand.u32 4294901760, %v35083_v12  ;;  %v35143_v12 = vld [vmem:[#allocation89_spill] sm:$0xff] }
 0x27a   : > { %v35144_v56 = vand.u32 4294901760, %v35143_v12  ;;  %v35203_v12 = vld [vmem:[#allocation55_spill] sm:$0xff] }
 0x27b   : > { %22287 = vmatmul.mubr.f32.gmra.mrb[30].mxu1 %v28585_v33 }
 0x27c   : > { %23484 = vmatmul.mubr.f32.gmra.mrb[28].mxu0 %v28588_v36  ;;  %22291 = vmatprep.mubr.f32.mxu1 %v35104_v14  ;;  %v35109_v14 = vand.u32 4294901760, %v35056_v13  ;;  %v35115_v13 = vand.u32 4294901760, %v35063_v16  ;;  %v35122_v16 = vand.u32 4294901760, %v35070_v26  ;;  %v35129_v26 = vand.u32 4294901760, %v35077_v24 }
 0x27d   : > { %23486 = vmatprep.mubr.f32.mxu0 %v28598_v58  ;;  %v35136_v24 = vand.u32 4294901760, %v35084_v37  ;;  %v35145_v37 = vld [vmem:[#allocation90_spill] sm:$0xff] }
 0x27e   : > { %v35146_v34 = vand.u32 4294901760, %v35145_v37  ;;  %v35205_v37 = vld [vmem:[#allocation62_spill] sm:$0xff] }
 0x27f   : > { %22292 = vmatmul.mubr.f32.vlgmr.msra.gmra.mrb[0].mxu1 %v35105_v47  ;;  %v35111_v47 = vand.u32 4294901760, %v35058_v51  ;;  %v35117_v51 = vand.u32 4294901760, %v35065_v30  ;;  %v35124_v30 = vand.u32 4294901760, %v35072_v45 }
 0x280   : > { %23487 = vmatmul.mubr.f32.gmra.mrb[30].mxu0 %v28609_v21  ;;  %22294 = vmatprep.mubr.f32.mxu1 %v35106_v60  ;;  %v35119_v60 = vand.u32 4294901760, %v35067_v35  ;;  %v35131_v35 = vand.u32 4294901760, %v35079_v43  ;;  %v35138_v43 = vand.u32 4294901760, %v35086_v54  ;;  %v35149_v54 = vand.u32 4294901760, %v35093_v0 }
 0x281   : > { %23491 = vmatprep.mubr.f32.mxu0 %v35107_v22  ;;  %22340 = vmatpush3.msra.mxu1 %v35054_v49  ;;  %v35114_v49 = vand.u32 4294901760, %v35062_v20  ;;  %v35121_v20 = vand.u32 4294901760, %v35069_v15  ;;  %v35126_v22 = vand.u32 4294901760, %v35074_v25  ;;  %v35130_v15 = vand.u32 4294901760, %v35078_v28 }
 0x282   : > { %22389 = vmatprep.subr.mxu1 %v27594_v7  ;;  %v35133_v25 = vand.u32 4294901760, %v35081_v62  ;;  %v35137_v28 = vand.u32 4294901760, %v35085_v29  ;;  %v35140_v62 = vand.u32 4294901760, %v35088_v8  ;;  %v35147_v29 = vld [vmem:[#allocation91_spill] sm:$0xff]  ;;  %v35151_v8 = vand.u32 4294901760, %v35095_v38 }
 0x283   : > { %22295 = vmatmul.mubr.f32.gmra.mrb[2].mxu1 %v35108_v44  ;;  %v35148_v44 = vand.u32 4294901760, %v35147_v29  ;;  %v35156_v0 = vand.u32 4294901760, %v35100_v50  ;;  %v35158_v38 = vand.u32 4294901760, %v35102_v55  ;;  %v35165_v50 = vand.u32 4294901760, %v28520_v5  ;;  %v35167_v55 = vld [vmem:[#allocation123_spill] sm:$0xff]  ;;  %v35207_v29 = vld [vmem:[#allocation64_spill] sm:$0xff] }
 0x284   : > { %23492 = vmatmul.mubr.f32.vlgmr.msra.gmra.mrb[0].mxu0 %v35109_v14  ;;  %22297 = vmatprep.mubr.f32.mxu1 %v35110_v59  ;;  %v35152_v14 = vand.u32 4294901760, %v35096_v46  ;;  %v35153_v59 = vand.u32 4294901760, %v35097_v11  ;;  %v35159_v46 = vand.u32 4294901760, %v35103_v31  ;;  %v35160_v11 = vld [vmem:[#allocation117_spill] sm:$0xff]  ;;  %v35169_v31 = vld [vmem:[#allocation126_spill] sm:$0xff]  ;;  %v35173_v5 = vand.u32 4294901760, %v28588_v36 }
 0x285   : > { %23494 = vmatprep.mubr.f32.mxu0 %v35111_v47  ;;  %23540 = vmatpush3.msra.mxu0 %v35059_v48  ;;  %v35127_v48 = vand.u32 4294901760, %v35075_v52  ;;  %v35134_v52 = vand.u32 4294901760, %v35082_v4  ;;  %v35141_v4 = vld [vmem:[#allocation88_spill] sm:$0xff]  ;;  %v35154_v47 = vand.u32 4294901760, %v35098_v18  ;;  %v35162_v18 = vand.u32 4294901760, %v28504_v10 }
 0x286   : > { %23589 = vmatprep.subr.mxu0 %v35016_v39  ;;  %v35142_v45 = vand.u32 4294901760, %v35141_v4  ;;  %v349_v10 = vld [vmem:[%s33592_s1 + $0x8] sm:$0xf]  ;;  %v35178_v36 = vand.u32 4294901760, %v28609_v21  ;;  %v35185_v21 = vld [vmem:[#allocation35_spill] sm:$0xff] }
 0x287   : > { %22298 = vmatmul.mubr.f32.gmra.mrb[4].mxu1 %v35112_v6  ;;  %v35155_v6 = vand.u32 4294901760, %v35099_v1  ;;  %v35163_v1 = vld [vmem:[#allocation118_spill] sm:$0xff]  ;;  %v28899_v57 = vsel %vm516_vm0, %v349_v10, 0  ;;  %v35201_v4 = vld [vmem:[#allocation51_spill] sm:$0xff] }
 0x288   : > { %23495 = vmatmul.mubr.f32.gmra.mrb[2].mxu0 %v35113_v17  ;;  %22300 = vmatprep.mubr.f32.mxu1 %v35114_v49  ;;  %v35161_v17 = vand.u32 4294901760, %v35160_v11  ;;  %v35164_v49 = vand.u32 4294901760, %v35163_v1  ;;  %v35220_v11 = vld [vmem:[#allocation93_spill] sm:$0xff]  ;;  %v35223_v1 = vld [vmem:[#allocation96_spill] sm:$0xff]  ;;  %v35232_v10 = vld [vmem:[#allocation115_spill] sm:$0xff] }
 0x289   : > { %23497 = vmatprep.mubr.f32.mxu0 %v35115_v13  ;;  %v35168_v13 = vand.u32 4294901760, %v35167_v55  ;;  %v35227_v55 = vld [vmem:[#allocation106_spill] sm:$0xff] }
 0x28b   : > { %22301 = vmatmul.mubr.f32.gmra.mrb[6].mxu1 %v35116_v41  ;;  %v35170_v41 = vand.u32 4294901760, %v35169_v31  ;;  %v35229_v31 = vld [vmem:[#allocation108_spill] sm:$0xff] }
 0x28c   : > { %23498 = vmatmul.mubr.f32.gmra.mrb[4].mxu0 %v35117_v51  ;;  %22303 = vmatprep.mubr.f32.mxu1 %v35118_v40  ;;  %v35171_v51 = vand.u32 4294901760, %v28566_v23  ;;  %v35172_v40 = vand.u32 4294901760, %v28585_v33  ;;  %v353_v23 = vld [vmem:[%s33592_s1 + $0x18] sm:$0xf]  ;;  %v35177_v33 = vld [vmem:[#allocation13_spill] sm:$0xff] }
 0x28d   : > { %23500 = vmatprep.mubr.f32.mxu0 %v35119_v60  ;;  %v35174_v60 = vld [vmem:[#allocation12_spill] sm:$0xff] }
 0x28f   : > { %22304 = vmatmul.mubr.f32.gmra.mrb[8].mxu1 %v35120_v19  ;;  %v35175_v19 = vand.u32 4294901760, %v28598_v58 }
 0x290   : > { %23501 = vmatmul.mubr.f32.gmra.mrb[6].mxu0 %v35121_v20  ;;  %22306 = vmatprep.mubr.f32.mxu1 %v35122_v16  ;;  %v28908_v20 = vand.u32 4294901760, %v28899_v57  ;;  %v12075_v16 = vsel %vm516_vm0, %v353_v23, 0  ;;  %v35235_v23 = vld [vmem:[#allocation120_spill] sm:$0xff] }
 0x291   : > { %23503 = vmatprep.mubr.f32.mxu0 %v35123_v63  ;;  %v35179_v63 = vld [vmem:[#allocation17_spill] sm:$0xff]  ;;  %v28917_v58 = vand.u32 4294901760, %v12075_v16 }
 0x292   : > { %35176 = vst [vmem:[#allocation6_spill] sm:$0xff] %v28908_v20 }
 0x293   : > { %22307 = vmatmul.mubr.f32.gmra.mrb[10].mxu1 %v35124_v30  ;;  %v35180_v30 = vld [vmem:[#allocation24_spill] sm:$0xff]  ;;  %35181 = vst [vmem:[#allocation16_spill] sm:$0xff] %v28917_v58 }
 0x294   : > { %23504 = vmatmul.mubr.f32.gmra.mrb[8].mxu0 %v35125_v3  ;;  %22309 = vmatprep.mubr.f32.mxu1 %v35126_v22  ;;  %v35182_v3 = vld [vmem:[#allocation28_spill] sm:$0xff]  ;;  %v35183_v22 = vld [vmem:[#allocation29_spill] sm:$0xff] }
 0x295   : > { %23506 = vmatprep.mubr.f32.mxu0 %v35127_v48  ;;  %v35184_v48 = vld [vmem:[#allocation33_spill] sm:$0xff] }
 0x297   : > { %22310 = vmatmul.mubr.f32.gmra.mrb[12].mxu1 %v35128_v53  ;;  %v35186_v53 = vld [vmem:[#allocation39_spill] sm:$0xff] }
 0x298   : > { %23507 = vmatmul.mubr.f32.gmra.mrb[10].mxu0 %v35129_v26  ;;  %22312 = vmatprep.mubr.f32.mxu1 %v35130_v15  ;;  %v35187_v26 = vld [vmem:[#allocation41_spill] sm:$0xff] }
 0x299   : > { %23509 = vmatprep.mubr.f32.mxu0 %v35131_v35  ;;  %v35189_v15 = vld [vmem:[#allocation9_spill] sm:$0xff]  ;;  %v35190_v35 = vld [vmem:[#allocation11_spill] sm:$0xff] }
 0x29b   : > { %22313 = vmatmul.mubr.f32.gmra.mrb[14].mxu1 %v35132_v42  ;;  %v35191_v42 = vld [vmem:[#allocation14_spill] sm:$0xff] }
 0x29c   : > { %23510 = vmatmul.mubr.f32.gmra.mrb[12].mxu0 %v35133_v25  ;;  %22315 = vmatprep.mubr.f32.mxu1 %v35134_v52  ;;  %v35192_v25 = vld [vmem:[#allocation15_spill] sm:$0xff]  ;;  %v35193_v52 = vld [vmem:[#allocation26_spill] sm:$0xff] }
 0x29d   : > { %23512 = vmatprep.mubr.f32.mxu0 %v35135_v27  ;;  %v35194_v27 = vld [vmem:[#allocation27_spill] sm:$0xff] }
 0x29f   : > { %22316 = vmatmul.mubr.f32.gmra.mrb[16].mxu1 %v35136_v24  ;;  %v35196_v24 = vld [vmem:[#allocation38_spill] sm:$0xff] }
 0x2a0   : > { %23513 = vmatmul.mubr.f32.gmra.mrb[14].mxu0 %v35137_v28  ;;  %22318 = vmatprep.mubr.f32.mxu1 %v35138_v43  ;;  %v35197_v28 = vld [vmem:[#allocation40_spill] sm:$0xff]  ;;  %v35198_v43 = vld [vmem:[#allocation43_spill] sm:$0xff] }
 0x2a1   : > { %23515 = vmatprep.mubr.f32.mxu0 %v35139_v2  ;;  %v35199_v2 = vld [vmem:[#allocation47_spill] sm:$0xff] }
 0x2a3   : > { %22319 = vmatmul.mubr.f32.gmra.mrb[18].mxu1 %v35140_v62  ;;  %v35200_v62 = vld [vmem:[#allocation48_spill] sm:$0xff] }
 0x2a4   : > { %23516 = vmatmul.mubr.f32.gmra.mrb[16].mxu0 %v35142_v45  ;;  %22321 = vmatprep.mubr.f32.mxu1 %v35144_v56  ;;  %v35202_v45 = vld [vmem:[#allocation53_spill] sm:$0xff] }
 0x2a5   : > { %23518 = vmatprep.mubr.f32.mxu0 %v35146_v34  ;;  %v35204_v56 = vld [vmem:[#allocation61_spill] sm:$0xff]  ;;  %v35206_v34 = vld [vmem:[#allocation63_spill] sm:$0xff] }
 0x2a7   : > { %22322 = vmatmul.mubr.f32.gmra.mrb[20].mxu1 %v35148_v44  ;;  %v35208_v44 = vld [vmem:[#allocation65_spill] sm:$0xff] }
 0x2a8   : > { %23519 = vmatmul.mubr.f32.gmra.mrb[18].mxu0 %v35149_v54  ;;  %22324 = vmatprep.mubr.f32.mxu1 %v35150_v61  ;;  %v35209_v54 = vld [vmem:[#allocation71_spill] sm:$0xff]  ;;  %v35210_v61 = vld [vmem:[#allocation72_spill] sm:$0xff] }
 0x2a9   : > { %23521 = vmatprep.mubr.f32.mxu0 %v35151_v8  ;;  %v35211_v8 = vld [vmem:[#allocation74_spill] sm:$0xff] }
 0x2ab   : > { %22325 = vmatmul.mubr.f32.gmra.mrb[22].mxu1 %v35152_v14  ;;  %v35212_v14 = vld [vmem:[#allocation76_spill] sm:$0xff] }
 0x2ac   : > { %23522 = vmatmul.mubr.f32.gmra.mrb[20].mxu0 %v35153_v59  ;;  %22327 = vmatprep.mubr.f32.mxu1 %v35154_v47  ;;  %v35213_v59 = vld [vmem:[#allocation77_spill] sm:$0xff]  ;;  %v35214_v47 = vld [vmem:[#allocation80_spill] sm:$0xff] }
 0x2ad   : > { %23524 = vmatprep.mubr.f32.mxu0 %v35155_v6  ;;  %v35215_v6 = vld [vmem:[#allocation81_spill] sm:$0xff] }
 0x2af   : > { %22328 = vmatmul.mubr.f32.gmra.mrb[24].mxu1 %v35156_v0  ;;  %v35216_v0 = vld [vmem:[#allocation83_spill] sm:$0xff] }
 0x2b0   : > { %23525 = vmatmul.mubr.f32.gmra.mrb[22].mxu0 %v35157_v9  ;;  %22330 = vmatprep.mubr.f32.mxu1 %v35158_v38  ;;  %v35217_v9 = vld [vmem:[#allocation84_spill] sm:$0xff]  ;;  %v35218_v38 = vld [vmem:[#allocation85_spill] sm:$0xff] }
 0x2b1   : > { %23527 = vmatprep.mubr.f32.mxu0 %v35159_v46  ;;  %v35219_v46 = vld [vmem:[#allocation86_spill] sm:$0xff] }
 0x2b3   : > { %22331 = vmatmul.mubr.f32.gmra.mrb[26].mxu1 %v35161_v17  ;;  %v35221_v17 = vld [vmem:[#allocation94_spill] sm:$0xff] }
 0x2b4   : > { %23528 = vmatmul.mubr.f32.gmra.mrb[24].mxu0 %v35162_v18  ;;  %22333 = vmatprep.mubr.f32.mxu1 %v35164_v49  ;;  %v35222_v18 = vld [vmem:[#allocation95_spill] sm:$0xff]  ;;  %v35224_v49 = vld [vmem:[#allocation97_spill] sm:$0xff] }
 0x2b5   : > { %23530 = vmatprep.mubr.f32.mxu0 %v35165_v50  ;;  %v35225_v50 = vld [vmem:[#allocation101_spill] sm:$0xff] }
 0x2b7   : > { %22334 = vmatmul.mubr.f32.gmra.mrb[28].mxu1 %v35166_v32  ;;  %v35226_v32 = vld [vmem:[#allocation104_spill] sm:$0xff] }
 0x2b8   : > { %23531 = vmatmul.mubr.f32.gmra.mrb[26].mxu0 %v35168_v13  ;;  %22336 = vmatprep.mubr.f32.mxu1 %v35170_v41  ;;  %v35228_v13 = vld [vmem:[#allocation107_spill] sm:$0xff]  ;;  %v35230_v41 = vld [vmem:[#allocation113_spill] sm:$0xff] }
 0x2b9   : > { %23533 = vmatprep.mubr.f32.mxu0 %v35171_v51  ;;  %v35231_v51 = vld [vmem:[#allocation114_spill] sm:$0xff] }
 0x2bb   : > { %22337 = vmatmul.mubr.f32.gmra.mrb[30].mxu1 %v35172_v40  ;;  %v35233_v40 = vld [vmem:[#allocation116_spill] sm:$0xff] }
 0x2bc   : > { %23534 = vmatmul.mubr.f32.gmra.mrb[28].mxu0 %v35173_v5  ;;  %22341 = vmatprep.mubr.f32.mxu1 %v35174_v60  ;;  %v28975_v5 = vsub.f32 %v12075_v16, %v28917_v58 }
 0x2bd   : > { %23536 = vmatprep.mubr.f32.mxu0 %v35175_v19  ;;  %v35234_v19 = vld [vmem:[#allocation119_spill] sm:$0xff] }
 0x2bf   : > { %22342 = vmatmul.mubr.f32.vlgmr.msra.gmra.mrb[0].mxu1 %v35177_v33 }
 0x2c0   : > { %23537 = vmatmul.mubr.f32.gmra.mrb[30].mxu0 %v35178_v36  ;;  %22344 = vmatprep.mubr.f32.mxu1 %v35179_v63  ;;  %v35236_v36 = vld [vmem:[#allocation121_spill] sm:$0xff] }
 0x2c1   : > { %23541 = vmatprep.mubr.f32.mxu0 %v35180_v30  ;;  %22390 = vmatpush3.msra.mxu1 %v27594_v7  ;;  %v35188_v7 = vld [vmem:[#allocation44_spill] sm:$0xff] }
 0x2c2   : > { %22439 = vmatprep.subr.mxu1 %v28908_v20 }
 0x2c3   : > { %22345 = vmatmul.mubr.f32.gmra.mrb[2].mxu1 %v35182_v3 }
 0x2c4   : > { %23542 = vmatmul.mubr.f32.vlgmr.msra.gmra.mrb[0].mxu0 %v35183_v22  ;;  %22347 = vmatprep.mubr.f32.mxu1 %v35184_v48 }
 0x2c5   : > { %23544 = vmatprep.mubr.f32.mxu0 %v35185_v21  ;;  %23590 = vmatpush3.msra.mxu0 %v35016_v39  ;;  %v35195_v39 = vld [vmem:[#allocation30_spill] sm:$0xff] }
 0x2c6   : > { %23639 = vmatprep.subr.mxu0 %v28917_v58 }
 0x2c7   : > { %22348 = vmatmul.mubr.f32.gmra.mrb[4].mxu1 %v35186_v53 }
 0x2c8   : > { %23545 = vmatmul.mubr.f32.gmra.mrb[2].mxu0 %v35187_v26  ;;  %22350 = vmatprep.mubr.f32.mxu1 %v35188_v7 }
 0x2c9   : > { %23547 = vmatprep.mubr.f32.mxu0 %v35189_v15 }
 0x2cb   : > { %22351 = vmatmul.mubr.f32.gmra.mrb[6].mxu1 %v35190_v35 }
 0x2cc   : > { %23548 = vmatmul.mubr.f32.gmra.mrb[4].mxu0 %v35191_v42  ;;  %22353 = vmatprep.mubr.f32.mxu1 %v35192_v25 }
 0x2cd   : > { %23550 = vmatprep.mubr.f32.mxu0 %v35193_v52 }
 0x2cf   : > { %22354 = vmatmul.mubr.f32.gmra.mrb[8].mxu1 %v35194_v27 }
 0x2d0   : > { %23551 = vmatmul.mubr.f32.gmra.mrb[6].mxu0 %v35195_v39  ;;  %22356 = vmatprep.mubr.f32.mxu1 %v35196_v24 }
 0x2d1   : > { %23553 = vmatprep.mubr.f32.mxu0 %v35197_v28 }
 0x2d3   : > { %22357 = vmatmul.mubr.f32.gmra.mrb[10].mxu1 %v35198_v43 }
 0x2d4   : > { %23554 = vmatmul.mubr.f32.gmra.mrb[8].mxu0 %v35199_v2  ;;  %22359 = vmatprep.mubr.f32.mxu1 %v35200_v62 }
 0x2d5   : > { %23556 = vmatprep.mubr.f32.mxu0 %v35201_v4 }
 0x2d7   : > { %22360 = vmatmul.mubr.f32.gmra.mrb[12].mxu1 %v35202_v45 }
 0x2d8   : > { %23557 = vmatmul.mubr.f32.gmra.mrb[10].mxu0 %v35203_v12  ;;  %22362 = vmatprep.mubr.f32.mxu1 %v35204_v56 }
 0x2d9   : > { %23559 = vmatprep.mubr.f32.mxu0 %v35205_v37 }
 0x2db   : > { %22363 = vmatmul.mubr.f32.gmra.mrb[14].mxu1 %v35206_v34 }
 0x2dc   : > { %23560 = vmatmul.mubr.f32.gmra.mrb[12].mxu0 %v35207_v29  ;;  %22365 = vmatprep.mubr.f32.mxu1 %v35208_v44 }
 0x2dd   : > { %23562 = vmatprep.mubr.f32.mxu0 %v35209_v54 }
 0x2df   : > { %22366 = vmatmul.mubr.f32.gmra.mrb[16].mxu1 %v35210_v61 }
 0x2e0   : > { %23563 = vmatmul.mubr.f32.gmra.mrb[14].mxu0 %v35211_v8  ;;  %22368 = vmatprep.mubr.f32.mxu1 %v35212_v14 }
 0x2e1   : > { %23565 = vmatprep.mubr.f32.mxu0 %v35213_v59 }
 0x2e3   : > { %22369 = vmatmul.mubr.f32.gmra.mrb[18].mxu1 %v35214_v47 }
 0x2e4   : > { %23566 = vmatmul.mubr.f32.gmra.mrb[16].mxu0 %v35215_v6  ;;  %22371 = vmatprep.mubr.f32.mxu1 %v35216_v0 }
 0x2e5   : > { %23568 = vmatprep.mubr.f32.mxu0 %v35217_v9 }
 0x2e7   : > { %22372 = vmatmul.mubr.f32.gmra.mrb[20].mxu1 %v35218_v38 }
 0x2e8   : > { %23569 = vmatmul.mubr.f32.gmra.mrb[18].mxu0 %v35219_v46  ;;  %22374 = vmatprep.mubr.f32.mxu1 %v35220_v11 }
 0x2e9   : > { %23571 = vmatprep.mubr.f32.mxu0 %v35221_v17 }
 0x2eb   : > { %22375 = vmatmul.mubr.f32.gmra.mrb[22].mxu1 %v35222_v18 }
 0x2ec   : > { %23572 = vmatmul.mubr.f32.gmra.mrb[20].mxu0 %v35223_v1  ;;  %22377 = vmatprep.mubr.f32.mxu1 %v35224_v49 }
 0x2ed   : > { %23574 = vmatprep.mubr.f32.mxu0 %v35225_v50 }
 0x2ef   : > { %22378 = vmatmul.mubr.f32.gmra.mrb[24].mxu1 %v35226_v32 }
 0x2f0   : > { %23575 = vmatmul.mubr.f32.gmra.mrb[22].mxu0 %v35227_v55  ;;  %22380 = vmatprep.mubr.f32.mxu1 %v35228_v13  ;;  %v35237_v13 = vld [vmem:[#allocation122_spill] sm:$0xff] }
 0x2f1   : > { %23577 = vmatprep.mubr.f32.mxu0 %v35229_v31  ;;  %v28982_v31 = vand.u32 4294901760, %v28975_v5 }
 0x2f3   : > { %22381 = vmatmul.mubr.f32.gmra.mrb[26].mxu1 %v35230_v41  ;;  %35238 = vst [vmem:[#allocation21_spill] sm:$0xff] %v28982_v31  ;;  %v35239_v41 = vld [vmem:[#allocation124_spill] sm:$0xff]  ;;  %v12467_v16 = vsub.f32 %v28975_v5, %v28982_v31 }
 0x2f4   : > { %23578 = vmatmul.mubr.f32.gmra.mrb[24].mxu0 %v35231_v51  ;;  %22383 = vmatprep.mubr.f32.mxu1 %v35232_v10  ;;  %v35240_v51 = vld [vmem:[#allocation125_spill] sm:$0xff] }
 0x2f5   : > { %23580 = vmatprep.mubr.f32.mxu0 %v35233_v40  ;;  %v35241_v40 = vld [vmem:[#allocation127_spill] sm:$0xff] }
 0x2f7   : > { %22384 = vmatmul.mubr.f32.gmra.mrb[28].mxu1 %v35234_v19 }
 0x2f8   : > { %23581 = vmatmul.mubr.f32.gmra.mrb[26].mxu0 %v35235_v23  ;;  %22386 = vmatprep.mubr.f32.mxu1 %v35236_v36  ;;  %v35242_v23 = vld [vmem:[#allocation128_spill] sm:$0xff] }
 0x2f9   : > { %23583 = vmatprep.mubr.f32.mxu0 %v35237_v13 }
 0x2fb   : > { %22387 = vmatmul.mubr.f32.gmra.mrb[30].mxu1 %v35239_v41  ;;  %v28995_v41 = vand.u32 4294901760, %v12467_v16 }
 0x2fc   : > { %23584 = vmatmul.mubr.f32.gmra.mrb[28].mxu0 %v35240_v51  ;;  %22391 = vmatprep.mubr.f32.mxu1 %v35174_v60  ;;  %v4177_v60 = vld [vmem:[#allocation2 + $0x2] sm:$0xff] }
 0x2fd   : > { %23586 = vmatprep.mubr.f32.mxu0 %v35241_v40 }
 0x2ff   : > { %22392 = vmatmul.mubr.f32.vlgmr.msra.gmra.mrb[0].mxu1 %v35177_v33  ;;  %v4210_v33 = vsel %vm236_vm1, %v4177_v60, 0  ;;  %v4182_v60 = vld [vmem:[#allocation2 + $0x3a] sm:$0xff] }
 0x300   : > { %23587 = vmatmul.mubr.f32.gmra.mrb[30].mxu0 %v35242_v23  ;;  %22394 = vmatprep.mubr.f32.mxu1 %v35179_v63  ;;  %v4178_v63 = vld [vmem:[#allocation2 + $0xa] sm:$0xff] }
 0x301   : > { %23591 = vmatprep.mubr.f32.mxu0 %v35180_v30  ;;  %22440 = vmatpush3.msra.mxu1 %v28908_v20  ;;  %v4179_v30 = vld [vmem:[#allocation2 + $0x1a] sm:$0xff] }
 0x303   : > { %22395 = vmatmul.mubr.f32.gmra.mrb[2].mxu1 %v35182_v3  ;;  %v29012_v3 = vand.u32 4294901760, %v4210_v33 }
 0x304   : > { %23592 = vmatmul.mubr.f32.vlgmr.msra.gmra.mrb[0].mxu0 %v35183_v22  ;;  %22397 = vmatprep.mubr.f32.mxu1 %v35184_v48  ;;  %v4213_v22 = vsel %vm236_vm1, %v4178_v63, 0  ;;  %v11946_v48 = vld [vmem:[#allocation2 + $0x30] sm:$0xff] }
 0x305   : > { %23594 = vmatprep.mubr.f32.mxu0 %v35185_v21  ;;  %23640 = vmatpush3.msra.mxu0 %v28917_v58  ;;  %35243 = vst [vmem:[#allocation25_spill] sm:$0xff] %v29012_v3  ;;  %v4216_v21 = vsel %vm236_vm1, %v4179_v30, 0 }
 0x306   : > { %23689 = vmatprep.subr.mxu0 %v28995_v41 }
 0x307   : > { %22398 = vmatmul.mubr.f32.gmra.mrb[4].mxu1 %v35186_v53  ;;  %v29018_v53 = vand.u32 4294901760, %v4213_v22 }
 0x308   : > { %23595 = vmatmul.mubr.f32.gmra.mrb[2].mxu0 %v35187_v26  ;;  %22400 = vmatprep.mubr.f32.mxu1 %v35188_v7  ;;  %v4180_v26 = vld [vmem:[#allocation2 + $0x22] sm:$0xff]  ;;  %v29023_v7 = vsub.f32 %v4210_v33, %v29012_v3  ;;  %v11949_v33 = vld [vmem:[#allocation2 + $0x50] sm:$0xff] }
 0x309   : > { %23597 = vmatprep.mubr.f32.mxu0 %v35189_v15  ;;  %35244 = vst [vmem:[#allocation31_spill] sm:$0xff] %v29018_v53  ;;  %v11979_v15 = vsel %vm236_vm1, %v11946_v48, 0 }
 0x30a   : > { %35245 = vst [vmem:[#allocation20_spill] sm:$0xff] %v29023_v7  ;;  %v29041_v16 = vand.u32 4294901760, %v11979_v15 }
 0x30b   : > { %22401 = vmatmul.mubr.f32.gmra.mrb[6].mxu1 %v35190_v35  ;;  %v11947_v35 = vld [vmem:[#allocation2 + $0x38] sm:$0xff] }
 0x30c   : > { %23598 = vmatmul.mubr.f32.gmra.mrb[4].mxu0 %v35191_v42  ;;  %22403 = vmatprep.mubr.f32.mxu1 %v35192_v25  ;;  %v29028_v42 = vsub.f32 %v28899_v57, %v28908_v20  ;;  %v29030_v25 = vand.u32 4294901760, %v4216_v21  ;;  %35249 = vst [vmem:[#allocation50_spill] sm:$0xff] %v29041_v16  ;;  %v11982_v57 = vsel %vm236_vm1, %v11947_v35, 0  ;;  %v29066_v31 = vsub.f32 %v11979_v15, %v29041_v16  ;;  %v4184_v15 = vld [vmem:[#allocation2 + $0x52] sm:$0xff] }
 0x30d   : > { %23600 = vmatprep.mubr.f32.mxu0 %v35193_v52  ;;  %v4219_v52 = vsel %vm236_vm1, %v4180_v26, 0  ;;  %v4183_v26 = vld [vmem:[#allocation2 + $0x4a] sm:$0xff]  ;;  %v29056_v35 = vand.u32 4294901760, %v11982_v57  ;;  %v11952_v20 = vld [vmem:[#allocation2 + $0x78] sm:$0xff] }
 0x30e   : > { %35246 = vst [vmem:[#allocation37_spill] sm:$0xff] %v29030_v25  ;;  %v29052_v30 = vand.u32 4294901760, %v4219_v52  ;;  %35253 = vst [vmem:[#allocation10_spill] sm:$0xff] %v29066_v31 }
 0x30f   : > { %22404 = vmatmul.mubr.f32.gmra.mrb[8].mxu1 %v35194_v27  ;;  %v4181_v27 = vld [vmem:[#allocation2 + $0x32] sm:$0xff]  ;;  %35252 = vst [vmem:[#allocation8_spill] sm:$0xff] %v29056_v35 }
 0x310   : > { %23601 = vmatmul.mubr.f32.gmra.mrb[6].mxu0 %v35195_v39  ;;  %22406 = vmatprep.mubr.f32.mxu1 %v35196_v24  ;;  %v11948_v39 = vld [vmem:[#allocation2 + $0x48] sm:$0xff]  ;;  %v29034_v24 = vand.u32 4294901760, %v29028_v42  ;;  %35251 = vst [vmem:[#allocation52_spill] sm:$0xff] %v29052_v30 }
 0x311   : > { %23603 = vmatprep.mubr.f32.mxu0 %v35197_v28  ;;  %v29039_v28 = vsub.f32 %v4213_v22, %v29018_v53  ;;  %v4222_v22 = vsel %vm236_vm1, %v4181_v27, 0  ;;  %v11985_v48 = vsel %vm236_vm1, %v11948_v39, 0 }
 0x312   : > { %35247 = vst [vmem:[#allocation42_spill] sm:$0xff] %v29034_v24  ;;  %v29070_v27 = vand.u32 4294901760, %v4222_v22  ;;  %v29072_v39 = vand.u32 4294901760, %v11985_v48 }
 0x313   : > { %22407 = vmatmul.mubr.f32.gmra.mrb[10].mxu1 %v35198_v43  ;;  %35248 = vst [vmem:[#allocation45_spill] sm:$0xff] %v29039_v28  ;;  %v4698_v43 = vsub.f32 %v29028_v42, %v29034_v24  ;;  %v35261_v58 = vand.u32 4294901760, %v29039_v28 }
 0x314   : > { %23604 = vmatmul.mubr.f32.gmra.mrb[8].mxu0 %v35199_v2  ;;  %22409 = vmatprep.mubr.f32.mxu1 %v35200_v62  ;;  %v29050_v2 = vsub.f32 %v4216_v21, %v29030_v25  ;;  %v4225_v62 = vsel %vm236_vm1, %v4182_v60, 0  ;;  %35254 = vst [vmem:[#allocation18_spill] sm:$0xff] %v29070_v27  ;;  %35255 = vst [vmem:[#allocation19_spill] sm:$0xff] %v29072_v39  ;;  %v4228_v60 = vsel %vm236_vm1, %v4183_v26, 0  ;;  %v11951_v21 = vld [vmem:[#allocation2 + $0x68] sm:$0xff] }
 0x315   : > { %23606 = vmatprep.mubr.f32.mxu0 %v35201_v4  ;;  %v11988_v4 = vsel %vm236_vm1, %v11949_v33, 0  ;;  %v29060_v63 = vand.u32 4294901760, %v4698_v43  ;;  %v11950_v33 = vld [vmem:[#allocation2 + $0x60] sm:$0xff]  ;;  %v29090_v26 = vsub.f32 %v11982_v57, %v29056_v35  ;;  %v29100_v16 = vand.u32 4294901760, %v4228_v60 }
 0x316   : > { %35250 = vst [vmem:[#allocation7_spill] sm:$0xff] %v29050_v2  ;;  %v29080_v43 = vand.u32 4294901760, %v11988_v4  ;;  %v29106_v57 = vsub.f32 %v4222_v22, %v29070_v27  ;;  %v35267_v22 = vand.u32 4294901760, %v29050_v2 }
 0x317   : > { %22410 = vmatmul.mubr.f32.gmra.mrb[12].mxu1 %v35202_v45  ;;  %v29076_v45 = vsub.f32 %v4219_v52, %v29052_v30  ;;  %22489 = vmatprep.subr.mxu1 %v29060_v63  ;;  %35260 = vst [vmem:[#allocation34_spill] sm:$0xff] %v29090_v26  ;;  %v4185_v52 = vld [vmem:[#allocation2 + $0x62] sm:$0xff]  ;;  %v29097_v30 = vsub.f32 %v29039_v28, %v35261_v58  ;;  %35262 = vst [vmem:[#allocation36_spill] sm:$0xff] %v29100_v16  ;;  %v11994_v58 = vsel %vm236_vm1, %v11951_v21, 0 }
 0x318   : > { %23607 = vmatmul.mubr.f32.gmra.mrb[10].mxu0 %v35203_v12  ;;  %22412 = vmatprep.mubr.f32.mxu1 %v35204_v56  ;;  %v29078_v12 = vand.u32 4294901760, %v4225_v62  ;;  %35258 = vst [vmem:[#allocation32_spill] sm:$0xff] %v29080_v43  ;;  %v35259_v56 = vand.u32 4294901760, %v29023_v7  ;;  %35263 = vst [vmem:[#allocation46_spill] sm:$0xff] %v29106_v57 }
 0x319   : > { %23609 = vmatprep.mubr.f32.mxu0 %v35205_v37  ;;  %35256 = vst [vmem:[#allocation22_spill] sm:$0xff] %v29076_v45  ;;  %v35274_v28 = vand.u32 4294901760, %v29076_v45 }
 0x31a   : > { %35257 = vst [vmem:[#allocation23_spill] sm:$0xff] %v29078_v12  ;;  %v29086_v37 = vsub.f32 %v29023_v7, %v35259_v56  ;;  %v11991_v56 = vsel %vm236_vm1, %v11950_v33, 0  ;;  %v29115_v24 = vsub.f32 %v4225_v62, %v29078_v12  ;;  %v29118_v33 = vsub.f32 %v11988_v4, %v29080_v43 }
 0x31b   : > { %22413 = vmatmul.mubr.f32.gmra.mrb[14].mxu1 %v35206_v34  ;;  %v29109_v34 = vsub.f32 %v11985_v48, %v29072_v39  ;;  %v29125_v48 = vsub.f32 %v29050_v2, %v35267_v22  ;;  %v29128_v21 = vand.u32 4294901760, %v11991_v56  ;;  %v29134_v4 = vsub.f32 %v4228_v60, %v29100_v16  ;;  %v4186_v22 = vld [vmem:[#allocation2 + $0x6a] sm:$0xff]  ;;  %v11953_v2 = vld [vmem:[#allocation2 + $0x80] sm:$0xff] }
 0x31c   : > { %23610 = vmatmul.mubr.f32.gmra.mrb[12].mxu0 %v35207_v29  ;;  %22415 = vmatprep.mubr.f32.mxu1 %v35208_v44  ;;  %v4231_v29 = vsel %vm236_vm1, %v4184_v15, 0  ;;  %35265 = vst [vmem:[#allocation54_spill] sm:$0xff] %v29115_v24  ;;  %35266 = vst [vmem:[#allocation56_spill] sm:$0xff] %v29118_v33  ;;  %v4234_v44 = vsel %vm236_vm1, %v4185_v52, 0  ;;  %v35272_v15 = vand.u32 4294901760, %v29066_v31  ;;  %v29154_v7 = vsub.f32 %v29076_v45, %v35274_v28  ;;  %v11957_v45 = vld [vmem:[#allocation2 + $0xb0] sm:$0xff] }
 0x31d   : > { %23612 = vmatprep.mubr.f32.mxu0 %v35209_v54  ;;  %35264 = vst [vmem:[#allocation49_spill] sm:$0xff] %v29109_v34  ;;  %35268 = vst [vmem:[#allocation57_spill] sm:$0xff] %v29128_v21  ;;  %v29136_v52 = vand.u32 4294901760, %v4231_v29  ;;  %v29138_v54 = vand.u32 4294901760, %v11994_v58  ;;  %v29149_v60 = vand.u32 4294901760, %v4234_v44  ;;  %v11997_v16 = vsel %vm236_vm1, %v11952_v20, 0 }
 0x31e   : > { %35269 = vst [vmem:[#allocation58_spill] sm:$0xff] %v29134_v4  ;;  %v4237_v43 = vsel %vm236_vm1, %v4186_v22, 0 }
 0x31f   : > { %22416 = vmatmul.mubr.f32.gmra.mrb[16].mxu1 %v35210_v61  ;;  %35270 = vst [vmem:[#allocation59_spill] sm:$0xff] %v29136_v52  ;;  %35271 = vst [vmem:[#allocation60_spill] sm:$0xff] %v29138_v54  ;;  %v29145_v61 = vsub.f32 %v29066_v31, %v35272_v15  ;;  %v29166_v31 = vsub.f32 %v11991_v56, %v29128_v21  ;;  %v29173_v20 = vsub.f32 %v4231_v29, %v29136_v52  ;;  %v35313_v52 = vld [vmem:[#allocation116_spill] sm:$0xff] }
 0x320   : > { %23613 = vmatmul.mubr.f32.gmra.mrb[14].mxu0 %v35211_v8  ;;  %22418 = vmatprep.mubr.f32.mxu1 %v35212_v14  ;;  %35273 = vst [vmem:[#allocation66_spill] sm:$0xff] %v29149_v60  ;;  %v33988_v14 = vand.u32 4294901760, %v29115_v24  ;;  %v35275_v8 = vand.u32 4294901760, %v29090_v26  ;;  %v29176_v15 = vsub.f32 %v11994_v58, %v29138_v54  ;;  %v35279_v56 = vand.u32 4294901760, %v29106_v57 }
 0x321   : > { %23615 = vmatprep.mubr.f32.mxu0 %v35213_v59  ;;  %v33989_v59 = vand.u32 4294901760, %v29118_v33  ;;  %35276 = vst [vmem:[#allocation67_spill] sm:$0xff] %v29166_v31  ;;  %35277 = vst [vmem:[#allocation68_spill] sm:$0xff] %v29173_v20  ;;  %v29192_v29 = vsub.f32 %v4234_v44, %v29149_v60  ;;  %v29194_v58 = vand.u32 4294901760, %v11997_v16  ;;  %v4190_v44 = vld [vmem:[#allocation2 + $0x9a] sm:$0xff] }
 0x322   : > { %v29163_v62 = vsub.f32 %v29090_v26, %v35275_v8  ;;  %35278 = vst [vmem:[#allocation69_spill] sm:$0xff] %v29176_v15  ;;  %v12000_v8 = vsel %vm236_vm1, %v11953_v2, 0  ;;  %v4187_v2 = vld [vmem:[#allocation2 + $0x7a] sm:$0xff]  ;;  %v11956_v26 = vld [vmem:[#allocation2 + $0xa8] sm:$0xff] }
 0x323   : > { %22419 = vmatmul.mubr.f32.gmra.mrb[18].mxu1 %v35214_v47  ;;  %v29184_v47 = vsub.f32 %v29106_v57, %v35279_v56  ;;  %35281 = vst [vmem:[#allocation70_spill] sm:$0xff] %v29192_v29  ;;  %35282 = vst [vmem:[#allocation73_spill] sm:$0xff] %v29194_v58  ;;  %v29205_v56 = vsub.f32 %v29118_v33, %v33989_v59  ;;  %v29212_v57 = vand.u32 4294901760, %v12000_v8  ;;  %v4240_v28 = vsel %vm236_vm1, %v4187_v2, 0 }
 0x324   : > { %23616 = vmatmul.mubr.f32.gmra.mrb[16].mxu0 %v35215_v6  ;;  %22421 = vmatprep.mubr.f32.mxu1 %v35216_v0  ;;  %v35280_v6 = vand.u32 4294901760, %v29109_v34  ;;  %v11954_v0 = vld [vmem:[#allocation2 + $0x90] sm:$0xff] }
 0x325   : > { %23618 = vmatprep.mubr.f32.mxu0 %v35217_v9  ;;  %v29200_v9 = vsub.f32 %v29115_v24, %v33988_v14  ;;  %35284 = vst [vmem:[#allocation78_spill] sm:$0xff] %v29212_v57  ;;  %v35285_v14 = vand.u32 4294901760, %v29134_v4  ;;  %v4188_v24 = vld [vmem:[#allocation2 + $0x82] sm:$0xff] }
 0x326   : > { %v29189_v22 = vsub.f32 %v29109_v34, %v35280_v6  ;;  %v29207_v6 = vand.u32 4294901760, %v4237_v43  ;;  %v29244_v34 = vsub.f32 %v12000_v8, %v29212_v57  ;;  %v4243_v33 = vsel %vm236_vm1, %v4188_v24, 0 }
 0x327   : > { %22422 = vmatmul.mubr.f32.gmra.mrb[20].mxu1 %v35218_v38  ;;  %v29219_v59 = vsub.f32 %v29134_v4, %v35285_v14  ;;  %v29230_v14 = vsub.f32 %v11997_v16, %v29194_v58  ;;  %v11955_v4 = vld [vmem:[#allocation2 + $0x98] sm:$0xff]  ;;  %v35288_v38 = vand.u32 4294901760, %v29166_v31  ;;  %v29246_v16 = vand.u32 4294901760, %v4240_v28 }
 0x328   : > { %35283 = vst [vmem:[#allocation75_spill] sm:$0xff] %v29207_v6  ;;  %23619 = vmatmul.mubr.f32.gmra.mrb[18].mxu0 %v35219_v46  ;;  %22424 = vmatprep.mubr.f32.mxu1 %v35220_v11  ;;  %v29235_v2 = vsub.f32 %v4237_v43, %v29207_v6  ;;  %v12003_v11 = vsel %vm236_vm1, %v11954_v0, 0  ;;  %35289 = vst [vmem:[#allocation87_spill] sm:$0xff] %v29244_v34  ;;  %v35291_v0 = vand.u32 4294901760, %v29173_v20  ;;  %v35292_v8 = vand.u32 4294901760, %v29176_v15  ;;  %v11959_v6 = vld [vmem:[#allocation2 + $0xc8] sm:$0xff] }
 0x329   : > { %23621 = vmatprep.mubr.f32.mxu0 %v35221_v17  ;;  %35286 = vst [vmem:[#allocation79_spill] sm:$0xff] %v29230_v14  ;;  %v4189_v17 = vld [vmem:[#allocation2 + $0x92] sm:$0xff]  ;;  %v29241_v46 = vsub.f32 %v29166_v31, %v35288_v38  ;;  %35290 = vst [vmem:[#allocation92_spill] sm:$0xff] %v29246_v16  ;;  %v12006_v24 = vsel %vm236_vm1, %v11955_v4, 0  ;;  %v29271_v43 = vand.u32 4294901760, %v12003_v11  ;;  %v12009_v4 = vsel %vm236_vm1, %v11956_v26, 0 }
 0x32a   : > { %35287 = vst [vmem:[#allocation82_spill] sm:$0xff] %v29235_v2  ;;  %v29255_v38 = vsub.f32 %v29173_v20, %v35291_v0  ;;  %v29260_v31 = vsub.f32 %v29176_v15, %v35292_v8  ;;  %v4246_v20 = vsel %vm236_vm1, %v4189_v17, 0  ;;  %v29275_v15 = vand.u32 4294901760, %v4243_v33  ;;  %v11958_v17 = vld [vmem:[#allocation2 + $0xc0] sm:$0xff]  ;;  %v4192_v8 = vld [vmem:[#allocation2 + $0xb2] sm:$0xff] }
 0x32b   : > { %22425 = vmatmul.mubr.f32.gmra.mrb[22].mxu1 %v35222_v18  ;;  %v35293_v18 = vand.u32 4294901760, %v29192_v29  ;;  %35294 = vst [vmem:[#allocation98_spill] sm:$0xff] %v29271_v43  ;;  %v29281_v57 = vsub.f32 %v4240_v28, %v29246_v16  ;;  %v12012_v0 = vsel %vm236_vm1, %v11957_v45, 0  ;;  %v35300_v28 = vld [vmem:[#allocation108_spill] sm:$0xff]  ;;  %v29297_v45 = vsub.f32 %v12003_v11, %v29271_v43 }
 0x32c   : > { %23622 = vmatmul.mubr.f32.gmra.mrb[20].mxu0 %v35223_v1  ;;  %22427 = vmatprep.mubr.f32.mxu1 %v35224_v49  ;;  %35295 = vst [vmem:[#allocation99_spill] sm:$0xff] %v29275_v15  ;;  %v4249_v49 = vsel %vm236_vm1, %v4190_v44, 0  ;;  %v29291_v44 = vand.u32 4294901760, %v4246_v20  ;;  %v35304_v26 = vand.u32 4294901760, %v29230_v14  ;;  %v29314_v11 = vsub.f32 %v4243_v33, %v29275_v15  ;;  %v4193_v43 = vld [vmem:[#allocation2 + $0xc2] sm:$0xff] }
 0x32d   : > { %23624 = vmatprep.mubr.f32.mxu0 %v35225_v50  ;;  %v29268_v1 = vsub.f32 %v29192_v29, %v35293_v18  ;;  %35296 = vst [vmem:[#allocation100_spill] sm:$0xff] %v29281_v57  ;;  %v29283_v18 = vand.u32 4294901760, %v12006_v24  ;;  %v4191_v50 = vld [vmem:[#allocation2 + $0xaa] sm:$0xff]  ;;  %v35299_v29 = vld [vmem:[#allocation107_spill] sm:$0xff]  ;;  %35301 = vst [vmem:[#allocation105_spill] sm:$0xff] %v29297_v45  ;;  %v29316_v16 = vand.u32 4294901760, %v12012_v0 }
 0x32e   : > { %35298 = vst [vmem:[#allocation103_spill] sm:$0xff] %v29291_v44  ;;  %v29306_v58 = vsub.f32 %v29230_v14, %v35304_v26  ;;  %35306 = vst [vmem:[#allocation111_spill] sm:$0xff] %v29314_v11  ;;  %v35308_v60 = vand.u32 4294901760, %v29244_v34  ;;  %v4252_v14 = vsel %vm236_vm1, %v4191_v50, 0  ;;  %v29331_v33 = vsub.f32 %v4246_v20, %v29291_v44 }
 0x32f   : > { %35297 = vst [vmem:[#allocation102_spill] sm:$0xff] %v29283_v18  ;;  %22428 = vmatmul.mubr.f32.gmra.mrb[24].mxu1 %v35226_v32  ;;  %v29299_v32 = vand.u32 4294901760, %v12009_v4  ;;  %35307 = vst [vmem:[#allocation112_spill] sm:$0xff] %v29316_v16  ;;  %v29325_v26 = vsub.f32 %v12006_v24, %v29283_v18  ;;  %v12015_v15 = vsel %vm236_vm1, %v11958_v17, 0  ;;  %v4255_v21 = vsel %vm236_vm1, %v4192_v8, 0 }
 0x330   : > { %23625 = vmatmul.mubr.f32.gmra.mrb[22].mxu0 %v35227_v55  ;;  %22430 = vmatprep.mubr.f32.mxu1 %v35299_v29  ;;  %v29301_v55 = vand.u32 4294901760, %v4249_v49  ;;  %v35305_v29 = vand.u32 4294901760, %v29235_v2  ;;  %v29321_v54 = vsub.f32 %v29244_v34, %v35308_v60  ;;  %35312 = vst [vmem:[#allocation89_spill] sm:$0xff] %v29331_v33  ;;  %v12018_v60 = vsel %vm236_vm1, %v11959_v6, 0 }
 0x331   : > { %23627 = vmatprep.mubr.f32.mxu0 %v35300_v28  ;;  %35302 = vst [vmem:[#allocation109_spill] sm:$0xff] %v29299_v32  ;;  %35309 = vst [vmem:[#allocation88_spill] sm:$0xff] %v29325_v26  ;;  %v29340_v50 = vsub.f32 %v12009_v4, %v29299_v32  ;;  %v4258_v20 = vsel %vm236_vm1, %v4193_v43, 0  ;;  %v29349_v6 = vsub.f32 %v12012_v0, %v29316_v16  ;;  %v29356_v4 = vand.u32 4294901760, %v4255_v21  ;;  %v35321_v43 = vld [vmem:[#allocation120_spill] sm:$0xff] }
 0x332   : > { %35303 = vst [vmem:[#allocation110_spill] sm:$0xff] %v29301_v55  ;;  %v29311_v28 = vsub.f32 %v29235_v2, %v35305_v29  ;;  %v35310_v29 = vld [vmem:[#allocation113_spill] sm:$0xff]  ;;  %v35311_v2 = vld [vmem:[#allocation114_spill] sm:$0xff]  ;;  %v29358_v24 = vand.u32 4294901760, %v12018_v60  ;;  %v35322_v17 = vand.u32 4294901760, %v29281_v57  ;;  %v29369_v34 = vand.u32 4294901760, %v4258_v20 }
 0x333   : > { %22431 = vmatmul.mubr.f32.gmra.mrb[26].mxu1 %v35310_v29  ;;  %35314 = vst [vmem:[#allocation90_spill] sm:$0xff] %v29340_v50  ;;  %35316 = vst [vmem:[#allocation117_spill] sm:$0xff] %v29349_v6  ;;  %v29354_v29 = vand.u32 4294901760, %v12015_v15  ;;  %v4194_v16 = vld [vmem:[#allocation2 + $0xca] sm:$0xff] }
 0x334   : > { %23628 = vmatmul.mubr.f32.gmra.mrb[24].mxu0 %v35311_v2  ;;  %22433 = vmatprep.mubr.f32.mxu1 %v35232_v10  ;;  %v29343_v2 = vsub.f32 %v4249_v49, %v29301_v55  ;;  %v29351_v10 = vand.u32 4294901760, %v4252_v14  ;;  %35319 = vst [vmem:[#allocation126_spill] sm:$0xff] %v29356_v4  ;;  %35320 = vst [vmem:[#allocation12_spill] sm:$0xff] %v29358_v24  ;;  %v11960_v49 = vld [vmem:[#allocation2 + $0xd8] sm:$0xff]  ;;  %v29365_v0 = vsub.f32 %v29281_v57, %v35322_v17 }
 0x335   : > { %23630 = vmatprep.mubr.f32.mxu0 %v35313_v52  ;;  %35318 = vst [vmem:[#allocation123_spill] sm:$0xff] %v29354_v29  ;;  %35323 = vst [vmem:[#allocation13_spill] sm:$0xff] %v29369_v34  ;;  %v35325_v52 = vand.u32 4294901760, %v29314_v11  ;;  %v29392_v32 = vsub.f32 %v12015_v15, %v29354_v29  ;;  %v29398_v8 = vsub.f32 %v12018_v60, %v29358_v24  ;;  %v4261_v17 = vsel %vm236_vm1, %v4194_v16, 0  ;;  %v4195_v16 = vld [vmem:[#allocation2 + $0xda] sm:$0xff] }
 0x336   : > { %35315 = vst [vmem:[#allocation91_spill] sm:$0xff] %v29343_v2  ;;  %35317 = vst [vmem:[#allocation118_spill] sm:$0xff] %v29351_v10  ;;  %v29415_v60 = vsub.f32 %v4258_v20, %v29369_v34  ;;  %v35340_v34 = vand.u32 4294901760, %v29097_v30 }
 0x337   : > { %22434 = vmatmul.mubr.f32.gmra.mrb[28].mxu1 %v35234_v19  ;;  %v29384_v57 = vsub.f32 %v29314_v11, %v35325_v52  ;;  %v12021_v19 = vsel %vm236_vm1, %v11960_v49, 0  ;;  %35327 = vst [vmem:[#allocation24_spill] sm:$0xff] %v29392_v32  ;;  %35329 = vst [vmem:[#allocation29_spill] sm:$0xff] %v29398_v8  ;;  %v11961_v52 = vld [vmem:[#allocation2 + $0xe0] sm:$0xff]  ;;  %v35331_v49 = vand.u32 4294901760, %v29325_v26 }
 0x338   : > { %23631 = vmatmul.mubr.f32.gmra.mrb[26].mxu0 %v35321_v43  ;;  %22436 = vmatprep.mubr.f32.mxu1 %v35236_v36  ;;  %v35324_v43 = vand.u32 4294901760, %v29297_v45  ;;  %v35330_v11 = vld [vmem:[#allocation124_spill] sm:$0xff]  ;;  %35333 = vst [vmem:[#allocation33_spill] sm:$0xff] %v29415_v60  ;;  %v29431_v20 = vand.u32 4294901760, %v12021_v19 }
 0x339   : > { %23633 = vmatprep.mubr.f32.mxu0 %v35237_v13  ;;  %v29388_v13 = vsub.f32 %v4252_v14, %v29351_v10  ;;  %v29407_v15 = vsub.f32 %v29325_v26, %v35331_v49  ;;  %v35335_v14 = vand.u32 4294901760, %v29340_v50  ;;  %v35336_v26 = vand.u32 4294901760, %v29343_v2 }
 0x33a   : > { %v29377_v55 = vsub.f32 %v29297_v45, %v35324_v43  ;;  %v29395_v43 = vsub.f32 %v4255_v21, %v29356_v4  ;;  %v35332_v21 = vand.u32 4294901760, %v29331_v33  ;;  %35337 = vst [vmem:[#allocation35_spill] sm:$0xff] %v29431_v20  ;;  %v29459_v30 = vsub.f32 %v12021_v19, %v29431_v20  ;;  %v11965_v20 = vld [vmem:[#allocation2 + $0x110] sm:$0xff] }
 0x33b   : > { %35326 = vst [vmem:[#allocation17_spill] sm:$0xff] %v29388_v13  ;;  %22437 = vmatmul.mubr.f32.gmra.mrb[30].mxu1 %v35330_v11  ;;  %v35334_v11 = vand.u32 4294901760, %v29086_v37  ;;  %v29424_v49 = vsub.f32 %v29340_v50, %v35335_v14  ;;  %v11962_v14 = vld [vmem:[#allocation2 + $0xf0] sm:$0xff]  ;;  %v35341_v50 = vand.u32 4294901760, %v29125_v48  ;;  %v35347_v19 = vand.u32 4294901760, %v29388_v13 }
 0x33c   : > { %35328 = vst [vmem:[#allocation28_spill] sm:$0xff] %v29395_v43  ;;  %23634 = vmatmul.mubr.f32.gmra.mrb[28].mxu0 %v35240_v51  ;;  %v29412_v36 = vsub.f32 %v29331_v33, %v35332_v21  ;;  %v29429_v21 = vsub.f32 %v29343_v2, %v35336_v26  ;;  %v35338_v33 = vand.u32 4294901760, %v29349_v6  ;;  %v12024_v51 = vsel %vm236_vm1, %v11961_v52, 0  ;;  %35343 = vst [vmem:[#allocation41_spill] sm:$0xff] %v29459_v30 }
 0x33d   : > { %22441 = vmatprep.mubr.f32.mxu1 %v35334_v11  ;;  %23636 = vmatprep.mubr.f32.mxu0 %v35241_v40  ;;  %v29439_v11 = vand.u32 4294901760, %v4261_v17  ;;  %v34064_v45 = vand.u32 4294901760, %v29395_v43  ;;  %v4264_v2 = vsel %vm236_vm1, %v4195_v16, 0  ;;  %v35342_v26 = vand.u32 4294901760, %v29145_v61  ;;  %v4196_v40 = vld [vmem:[#allocation2 + $0xe2] sm:$0xff] }
 0x33e   : > { %v29436_v37 = vsub.f32 %v29349_v6, %v35338_v33  ;;  %v11963_v33 = vld [vmem:[#allocation2 + $0xf8] sm:$0xff]  ;;  %v29469_v61 = vand.u32 4294901760, %v4264_v2  ;;  %v29475_v16 = vsub.f32 %v29388_v13, %v35347_v19  ;;  %v35349_v6 = vand.u32 4294901760, %v29398_v8 }
 0x33f   : > { %35339 = vst [vmem:[#allocation39_spill] sm:$0xff] %v29439_v11  ;;  %22442 = vmatmul.mubr.f32.vlgmr.msra.gmra.mrb[0].mxu1 %v35340_v34  ;;  %v12027_v34 = vsel %vm236_vm1, %v11962_v14, 0  ;;  %v29467_v48 = vsub.f32 %v4261_v17, %v29439_v11  ;;  %v35348_v14 = vand.u32 4294901760, %v29392_v32  ;;  %v29485_v17 = vsub.f32 %v29395_v43, %v34064_v45 }
 0x340   : > { %23637 = vmatmul.mubr.f32.gmra.mrb[30].mxu0 %v35242_v23  ;;  %22444 = vmatprep.mubr.f32.mxu1 %v35341_v50  ;;  %v29461_v23 = vand.u32 4294901760, %v12024_v51  ;;  %35346 = vst [vmem:[#allocation11_spill] sm:$0xff] %v29469_v61  ;;  %v4197_v50 = vld [vmem:[#allocation2 + $0xf2] sm:$0xff]  ;;  %v29490_v11 = vsub.f32 %v29398_v8, %v35349_v6  ;;  %v35350_v19 = vand.u32 4294901760, %v29154_v7  ;;  %v29502_v43 = vand.u32 4294901760, %v12027_v34 }
 0x341   : > { %23641 = vmatprep.mubr.f32.mxu0 %v35342_v26  ;;  %35345 = vst [vmem:[#allocation9_spill] sm:$0xff] %v29467_v48  ;;  %v11964_v26 = vld [vmem:[#allocation2 + $0x108] sm:$0xff]  ;;  %22490 = vmatpush3.msra.mxu1 %v29060_v63  ;;  %v29480_v52 = vsub.f32 %v29392_v32, %v35348_v14  ;;  %v4198_v63 = vld [vmem:[#allocation2 + $0xfa] sm:$0xff]  ;;  %v35351_v14 = vand.u32 4294901760, %v29163_v62  ;;  %v35352_v32 = vand.u32 4294901760, %v29415_v60  ;;  %v4267_v6 = vsel %vm236_vm1, %v4196_v40, 0 }
 0x342   : > { %35344 = vst [vmem:[#allocation44_spill] sm:$0xff] %v29461_v23  ;;  %22539 = vmatprep.subr.mxu1 %v29028_v42  ;;  %35353 = vst [vmem:[#allocation14_spill] sm:$0xff] %v29502_v43  ;;  %v12030_v8 = vsel %vm236_vm1, %v11963_v33, 0  ;;  %v35354_v13 = vand.u32 4294901760, %v29184_v47  ;;  %v35355_v7 = vand.u32 4294901760, %v29189_v22  ;;  %v34075_v62 = vand.u32 4294901760, %v29459_v30 }
 0x343   : > { %22445 = vmatmul.mubr.f32.gmra.mrb[2].mxu1 %v35350_v19  ;;  %v29500_v45 = vsub.f32 %v29415_v60, %v35352_v32  ;;  %v29512_v19 = vsub.f32 %v12024_v51, %v29461_v23  ;;  %v4270_v32 = vsel %vm236_vm1, %v4197_v50, 0  ;;  %v29518_v40 = vsub.f32 %v4264_v2, %v29469_v61  ;;  %v4199_v51 = vld [vmem:[#allocation2 + $0x10a] sm:$0xff]  ;;  %v4201_v23 = vld [vmem:[#allocation2 + $0x122] sm:$0xff] }
 0x344   : > { %23642 = vmatmul.mubr.f32.vlgmr.msra.gmra.mrb[0].mxu0 %v35351_v14  ;;  %22447 = vmatprep.mubr.f32.mxu1 %v35354_v13  ;;  %v12033_v14 = vsel %vm236_vm1, %v11964_v26, 0  ;;  %v4273_v47 = vsel %vm236_vm1, %v4198_v63, 0  ;;  %v12036_v22 = vsel %vm236_vm1, %v11965_v20, 0  ;;  %v29525_v33 = vand.u32 4294901760, %v4267_v6  ;;  %v11966_v13 = vld [vmem:[#allocation2 + $0x120] sm:$0xff] }
 0x345   : > { %23644 = vmatprep.mubr.f32.mxu0 %v35355_v7  ;;  %35356 = vst [vmem:[#allocation15_spill] sm:$0xff] %v29512_v19  ;;  %35357 = vst [vmem:[#allocation26_spill] sm:$0xff] %v29518_v40  ;;  %23690 = vmatpush3.msra.mxu0 %v28995_v41  ;;  %v29527_v50 = vand.u32 4294901760, %v12030_v8  ;;  %v35360_v26 = vand.u32 4294901760, %v29200_v9  ;;  %v35361_v2 = vand.u32 4294901760, %v29205_v56  ;;  %v29536_v20 = vsub.f32 %v12027_v34, %v29502_v43  ;;  %v4200_v41 = vld [vmem:[#allocation2 + $0x112] sm:$0xff] }
 0x346   : > { %35358 = vst [vmem:[#allocation27_spill] sm:$0xff] %v29525_v33  ;;  %23739 = vmatprep.subr.mxu0 %v28975_v5  ;;  %v29538_v63 = vand.u32 4294901760, %v4270_v32  ;;  %v29540_v7 = vand.u32 4294901760, %v12033_v14  ;;  %v35365_v60 = vand.u32 4294901760, %v29219_v59  ;;  %v35366_v9 = vand.u32 4294901760, %v29241_v46  ;;  %v11967_v43 = vld [vmem:[#allocation2 + $0x128] sm:$0xff] }
 0x347   : > { %35359 = vst [vmem:[#allocation30_spill] sm:$0xff] %v29527_v50  ;;  %22448 = vmatmul.mubr.f32.gmra.mrb[4].mxu1 %v35360_v26  ;;  %35362 = vst [vmem:[#allocation38_spill] sm:$0xff] %v29536_v20  ;;  %v29549_v56 = vsub.f32 %v29459_v30, %v34075_v62  ;;  %v29552_v26 = vand.u32 4294901760, %v4273_v47  ;;  %v29565_v62 = vsub.f32 %v4267_v6, %v29525_v33  ;;  %v4276_v30 = vsel %vm236_vm1, %v4199_v51, 0 }
 0x348   : > { %23645 = vmatmul.mubr.f32.gmra.mrb[2].mxu0 %v35361_v2  ;;  %35363 = vst [vmem:[#allocation40_spill] sm:$0xff] %v29538_v63  ;;  %35364 = vst [vmem:[#allocation43_spill] sm:$0xff] %v29540_v7  ;;  %22450 = vmatprep.mubr.f32.mxu1 %v35365_v60  ;;  %v29554_v2 = vand.u32 4294901760, %v12036_v22  ;;  %v35369_v60 = vand.u32 4294901760, %v29467_v48  ;;  %v29568_v34 = vsub.f32 %v12030_v8, %v29527_v50  ;;  %v12039_v61 = vsel %vm236_vm1, %v11966_v13, 0 }
 0x349   : > { %23647 = vmatprep.mubr.f32.mxu0 %v35366_v9  ;;  %35367 = vst [vmem:[#allocation47_spill] sm:$0xff] %v29552_v26  ;;  %35370 = vst [vmem:[#allocation51_spill] sm:$0xff] %v29565_v62  ;;  %v35372_v59 = vand.u32 4294901760, %v29255_v38  ;;  %v29578_v6 = vsub.f32 %v4270_v32, %v29538_v63  ;;  %v29581_v8 = vsub.f32 %v12033_v14, %v29540_v7  ;;  %v4279_v51 = vsel %vm236_vm1, %v4200_v41, 0 }
 0x34a   : > { %35368 = vst [vmem:[#allocation48_spill] sm:$0xff] %v29554_v2  ;;  %v29561_v46 = vsub.f32 %v29467_v48, %v35369_v60  ;;  %35371 = vst [vmem:[#allocation53_spill] sm:$0xff] %v29568_v34  ;;  %v35373_v60 = vand.u32 4294901760, %v29260_v31  ;;  %v35376_v13 = vand.u32 4294901760, %v29268_v1  ;;  %v35377_v48 = vand.u32 4294901760, %v29306_v58 }
 0x34b   : > { %22451 = vmatmul.mubr.f32.gmra.mrb[6].mxu1 %v35372_v59  ;;  %35374 = vst [vmem:[#allocation55_spill] sm:$0xff] %v29578_v6  ;;  %35375 = vst [vmem:[#allocation61_spill] sm:$0xff] %v29581_v8  ;;  %v35378_v31 = vand.u32 4294901760, %v29512_v19  ;;  %v29595_v32 = vsub.f32 %v4273_v47, %v29552_v26  ;;  %v29598_v14 = vsub.f32 %v12036_v22, %v29554_v2  ;;  %v29600_v41 = vand.u32 4294901760, %v4276_v30 }
 0x34c   : > { %23648 = vmatmul.mubr.f32.gmra.mrb[4].mxu0 %v35373_v60  ;;  %22453 = vmatprep.mubr.f32.mxu1 %v35376_v13  ;;  %v29602_v1 = vand.u32 4294901760, %v12039_v61  ;;  %v12042_v58 = vsel %vm236_vm1, %v11967_v43, 0  ;;  %v11968_v60 = vld [vmem:[#allocation2 + $0x138] sm:$0xff]  ;;  %v35383_v13 = vand.u32 4294901760, %v29518_v40  ;;  %v29613_v22 = vand.u32 4294901760, %v4279_v51 }
 0x34d   : > { %23650 = vmatprep.mubr.f32.mxu0 %v35377_v48  ;;  %v29592_v59 = vsub.f32 %v29512_v19, %v35378_v31  ;;  %35379 = vst [vmem:[#allocation62_spill] sm:$0xff] %v29595_v32  ;;  %35380 = vst [vmem:[#allocation63_spill] sm:$0xff] %v29598_v14  ;;  %v4282_v48 = vsel %vm236_vm1, %v4201_v23, 0  ;;  %v35385_v9 = vand.u32 4294901760, %v29311_v28  ;;  %v35386_v19 = vand.u32 4294901760, %v29321_v54 }
 0x34e   : > { %35381 = vst [vmem:[#allocation64_spill] sm:$0xff] %v29600_v41  ;;  %35382 = vst [vmem:[#allocation65_spill] sm:$0xff] %v29602_v1  ;;  %v29609_v31 = vsub.f32 %v29518_v40, %v35383_v13  ;;  %v35387_v23 = vand.u32 4294901760, %v29536_v20  ;;  %v35388_v38 = vand.u32 4294901760, %v29365_v0  ;;  %v35389_v28 = vand.u32 4294901760, %v29377_v55  ;;  %v4203_v40 = vld [vmem:[#allocation2 + $0x13a] sm:$0xff] }
 0x34f   : > { %35384 = vst [vmem:[#allocation71_spill] sm:$0xff] %v29613_v22  ;;  %22454 = vmatmul.mubr.f32.gmra.mrb[8].mxu1 %v35385_v9  ;;  %v29634_v9 = vand.u32 4294901760, %v4282_v48  ;;  %v12045_v43 = vsel %vm236_vm1, %v11968_v60, 0  ;;  %v29640_v47 = vsub.f32 %v4276_v30, %v29600_v41  ;;  %v29643_v0 = vsub.f32 %v12039_v61, %v29602_v1  ;;  %v11969_v30 = vld [vmem:[#allocation2 + $0x140] sm:$0xff] }
 0x350   : > { %23651 = vmatmul.mubr.f32.gmra.mrb[6].mxu0 %v35386_v19  ;;  %v29623_v2 = vsub.f32 %v29536_v20, %v35387_v23  ;;  %22456 = vmatprep.mubr.f32.mxu1 %v35388_v38  ;;  %v29632_v19 = vand.u32 4294901760, %v12042_v58  ;;  %v4202_v23 = vld [vmem:[#allocation2 + $0x12a] sm:$0xff]  ;;  %v35394_v38 = vand.u32 4294901760, %v29565_v62  ;;  %v35395_v60 = vand.u32 4294901760, %v29568_v34 }
 0x351   : > { %23653 = vmatprep.mubr.f32.mxu0 %v35389_v28  ;;  %35391 = vst [vmem:[#allocation74_spill] sm:$0xff] %v29634_v9  ;;  %35392 = vst [vmem:[#allocation76_spill] sm:$0xff] %v29640_v47  ;;  %v29657_v20 = vsub.f32 %v4279_v51, %v29613_v22  ;;  %v35397_v13 = vand.u32 4294901760, %v29384_v57  ;;  %v35398_v61 = vand.u32 4294901760, %v29407_v15  ;;  %v35399_v55 = vand.u32 4294901760, %v29578_v6  ;;  %v11970_v57 = vld [vmem:[#allocation2 + $0x150] sm:$0xff] }
 0x352   : > { %35390 = vst [vmem:[#allocation72_spill] sm:$0xff] %v29632_v19  ;;  %35393 = vst [vmem:[#allocation77_spill] sm:$0xff] %v29643_v0  ;;  %v29649_v28 = vsub.f32 %v29565_v62, %v35394_v38  ;;  %v29654_v54 = vsub.f32 %v29568_v34, %v35395_v60  ;;  %v35400_v62 = vand.u32 4294901760, %v29581_v8  ;;  %v29673_v34 = vand.u32 4294901760, %v12045_v43 }
 0x353   : > { %35396 = vst [vmem:[#allocation80_spill] sm:$0xff] %v29657_v20  ;;  %22457 = vmatmul.mubr.f32.gmra.mrb[10].mxu1 %v35397_v13  ;;  %v29666_v38 = vsub.f32 %v29578_v6, %v35399_v55  ;;  %v4285_v51 = vsel %vm236_vm1, %v4202_v23, 0  ;;  %v35402_v13 = vand.u32 4294901760, %v29412_v36  ;;  %v35403_v15 = vand.u32 4294901760, %v29424_v49 }
 0x354   : > { %23654 = vmatmul.mubr.f32.gmra.mrb[8].mxu0 %v35398_v61  ;;  %v29671_v60 = vsub.f32 %v29581_v8, %v35400_v62  ;;  %35401 = vst [vmem:[#allocation81_spill] sm:$0xff] %v29673_v34  ;;  %v35404_v61 = vand.u32 4294901760, %v29595_v32  ;;  %v29687_v62 = vsub.f32 %v12042_v58, %v29632_v19  ;;  %v29690_v23 = vsub.f32 %v4282_v48, %v29634_v9 }
 0x355   : > { %22459 = vmatprep.mubr.f32.mxu1 %v35402_v13  ;;  %23656 = vmatprep.mubr.f32.mxu0 %v35403_v15  ;;  %v35407_v8 = vand.u32 4294901760, %v29598_v14  ;;  %v12048_v15 = vsel %vm236_vm1, %v11969_v30, 0  ;;  %v29701_v55 = vand.u32 4294901760, %v4285_v51  ;;  %v4288_v58 = vsel %vm236_vm1, %v4203_v40, 0  ;;  %v11971_v13 = vld [vmem:[#allocation2 + $0x158] sm:$0xff] }
 0x356   : > { %v29684_v6 = vsub.f32 %v29595_v32, %v35404_v61  ;;  %35405 = vst [vmem:[#allocation83_spill] sm:$0xff] %v29687_v62  ;;  %35406 = vst [vmem:[#allocation84_spill] sm:$0xff] %v29690_v23  ;;  %v12051_v48 = vsel %vm236_vm1, %v11970_v57, 0  ;;  %v35409_v32 = vand.u32 4294901760, %v29429_v21  ;;  %v29713_v61 = vsub.f32 %v12045_v43, %v29673_v34  ;;  %v4205_v30 = vld [vmem:[#allocation2 + $0x152] sm:$0xff]  ;;  %v11972_v21 = vld [vmem:[#allocation2 + $0x168] sm:$0xff] }
 0x357   : > { %v29695_v36 = vsub.f32 %v29598_v14, %v35407_v8  ;;  %35408 = vst [vmem:[#allocation85_spill] sm:$0xff] %v29701_v55  ;;  %v35410_v8 = vand.u32 4294901760, %v29436_v37  ;;  %v4204_v14 = vld [vmem:[#allocation2 + $0x142] sm:$0xff]  ;;  %v35412_v40 = vand.u32 4294901760, %v29475_v16  ;;  %v35413_v57 = vand.u32 4294901760, %v29480_v52 }
 0x358   : > { %22460 = vmatmul.mubr.f32.gmra.mrb[12].mxu1 %v35409_v32  ;;  %35411 = vst [vmem:[#allocation86_spill] sm:$0xff] %v29713_v61  ;;  %v35415_v43 = vand.u32 4294901760, %v29640_v47  ;;  %v35416_v16 = vand.u32 4294901760, %v29643_v0  ;;  %v35419_v34 = vand.u32 4294901760, %v29657_v20  ;;  %v4291_v32 = vsel %vm236_vm1, %v4204_v14, 0 }
 0x359   : > { %23657 = vmatmul.mubr.f32.gmra.mrb[10].mxu0 %v35410_v8  ;;  %22462 = vmatprep.mubr.f32.mxu1 %v35412_v40  ;;  %v29722_v8 = vand.u32 4294901760, %v12048_v15  ;;  %v29734_v40 = vand.u32 4294901760, %v4288_v58  ;;  %v12054_v37 = vsel %vm236_vm1, %v11971_v13, 0  ;;  %v4294_v19 = vsel %vm236_vm1, %v4205_v30, 0 }
 0x35a   : > { %23659 = vmatprep.mubr.f32.mxu0 %v35413_v57  ;;  %v29727_v49 = vsub.f32 %v29640_v47, %v35415_v43  ;;  %v29732_v52 = vsub.f32 %v29643_v0, %v35416_v16  ;;  %v29736_v57 = vand.u32 4294901760, %v12051_v48  ;;  %v29743_v9 = vsub.f32 %v29657_v20, %v35419_v34 }
 0x35b   : > { %35414 = vst [vmem:[#allocation93_spill] sm:$0xff] %v29722_v8  ;;  %35417 = vst [vmem:[#allocation94_spill] sm:$0xff] %v29734_v40  ;;  %v29746_v43 = vsub.f32 %v4285_v51, %v29701_v55  ;;  %v35421_v16 = vand.u32 4294901760, %v29485_v17  ;;  %v35422_v0 = vand.u32 4294901760, %v29490_v11  ;;  %v35423_v34 = vand.u32 4294901760, %v29500_v45  ;;  %v4206_v45 = vld [vmem:[#allocation2 + $0x15a] sm:$0xff] }
 0x35c   : > { %35418 = vst [vmem:[#allocation95_spill] sm:$0xff] %v29736_v57  ;;  %v35424_v51 = vand.u32 4294901760, %v29549_v56  ;;  %v35425_v17 = vand.u32 4294901760, %v29687_v62  ;;  %v35426_v11 = vand.u32 4294901760, %v29690_v23  ;;  %v29771_v14 = vsub.f32 %v12048_v15, %v29722_v8  ;;  %v11975_v8 = vld [vmem:[#allocation2 + $0x188] sm:$0xff] }
 0x35d   : > { %35420 = vst [vmem:[#allocation96_spill] sm:$0xff] %v29746_v43  ;;  %22463 = vmatmul.mubr.f32.gmra.mrb[14].mxu1 %v35421_v16  ;;  %23660 = vmatmul.mubr.f32.gmra.mrb[12].mxu0 %v35422_v0  ;;  %v12057_v13 = vsel %vm236_vm1, %v11972_v21, 0  ;;  %v4598_v30 = vand.u32 4294901760, %v29727_v49  ;;  %v12347_v56 = vand.u32 4294901760, %v29732_v52  ;;  %v29783_v47 = vand.u32 4294901760, %v4291_v32  ;;  %v4207_v21 = vld [vmem:[#allocation2 + $0x16a] sm:$0xff] }
 0x35e   : > { %22465 = vmatprep.mubr.f32.mxu1 %v35423_v34  ;;  %23662 = vmatprep.mubr.f32.mxu0 %v35424_v51  ;;  %v29763_v16 = vsub.f32 %v29687_v62, %v35425_v17  ;;  %v29768_v0 = vsub.f32 %v29690_v23, %v35426_v11  ;;  %35427 = vst [vmem:[#allocation97_spill] sm:$0xff] %v29771_v14  ;;  %v11973_v17 = vld [vmem:[#allocation2 + $0x170] sm:$0xff]  ;;  %v29785_v15 = vand.u32 4294901760, %v12054_v37  ;;  %v29787_v23 = vand.u32 4294901760, %v4294_v19  ;;  %v11974_v62 = vld [vmem:[#allocation2 + $0x180] sm:$0xff] }
 0x35f   : > { %v29777_v34 = vsub.f32 %v4288_v58, %v29734_v40  ;;  %v29780_v51 = vsub.f32 %v12051_v48, %v29736_v57  ;;  %35430 = vst [vmem:[#allocation106_spill] sm:$0xff] %v29783_v47  ;;  %v35433_v49 = vand.u32 4294901760, %v29561_v46  ;;  %v35434_v58 = vand.u32 4294901760, %v29592_v59 }
 0x360   : > { %35431 = vst [vmem:[#allocation115_spill] sm:$0xff] %v29785_v15  ;;  %35432 = vst [vmem:[#allocation119_spill] sm:$0xff] %v29787_v23  ;;  %v35435_v48 = vand.u32 4294901760, %v29713_v61  ;;  %v29799_v20 = vand.u32 4294901760, %v12057_v13  ;;  %v4297_v57 = vsel %vm236_vm1, %v4206_v45, 0  ;;  %v35437_v40 = vand.u32 4294901760, %v29609_v31 }
 0x361   : > { %35428 = vst [vmem:[#allocation101_spill] sm:$0xff] %v29777_v34  ;;  %35429 = vst [vmem:[#allocation104_spill] sm:$0xff] %v29780_v51  ;;  %22466 = vmatmul.mubr.f32.gmra.mrb[16].mxu1 %v35433_v49  ;;  %23663 = vmatmul.mubr.f32.gmra.mrb[14].mxu0 %v35434_v58  ;;  %v35438_v46 = vand.u32 4294901760, %v29623_v2  ;;  %v12357_v59 = vand.u32 4294901760, %v29763_v16  ;;  %v4618_v49 = vand.u32 4294901760, %v29768_v0  ;;  %v4300_v45 = vsel %vm236_vm1, %v4207_v21, 0 }
 0x362   : > { %v29796_v52 = vsub.f32 %v29713_v61, %v35435_v48  ;;  %35436 = vst [vmem:[#allocation121_spill] sm:$0xff] %v29799_v20  ;;  %22468 = vmatprep.mubr.f32.mxu1 %v35437_v40  ;;  %v12060_v48 = vsel %vm236_vm1, %v11973_v17, 0  ;;  %v12063_v31 = vsel %vm236_vm1, %v11974_v62, 0  ;;  %v4208_v40 = vld [vmem:[#allocation2 + $0x172] sm:$0xff]  ;;  %v29815_v2 = vsub.f32 %v4291_v32, %v29783_v47 }
 0x363   : > { %23665 = vmatprep.mubr.f32.mxu0 %v35438_v46  ;;  %v29818_v16 = vsub.f32 %v12054_v37, %v29785_v15  ;;  %v29821_v0 = vsub.f32 %v4294_v19, %v29787_v23  ;;  %v29823_v17 = vand.u32 4294901760, %v4297_v57  ;;  %v11976_v46 = vld [vmem:[#allocation2 + $0x198] sm:$0xff]  ;;  %v35442_v61 = vand.u32 4294901760, %v29649_v28 }
 0x364   : > { %35439 = vst [vmem:[#allocation122_spill] sm:$0xff] %v29815_v2  ;;  %v35443_v21 = vand.u32 4294901760, %v29654_v54  ;;  %v12367_v62 = vand.u32 4294901760, %v29796_v52  ;;  %v35444_v32 = vand.u32 4294901760, %v29746_v43  ;;  %v29834_v37 = vsub.f32 %v12057_v13, %v29799_v20  ;;  %v11977_v20 = vld [vmem:[#allocation2 + $0x1a0] sm:$0xff] }
 0x365   : > { %35440 = vst [vmem:[#allocation125_spill] sm:$0xff] %v29821_v0  ;;  %35441 = vst [vmem:[#allocation127_spill] sm:$0xff] %v29823_v17  ;;  %22469 = vmatmul.mubr.f32.gmra.mrb[18].mxu1 %v35442_v61  ;;  %v29836_v19 = vand.u32 4294901760, %v12060_v48  ;;  %v35446_v58 = vand.u32 4294901760, %v29666_v38  ;;  %v35447_v28 = vand.u32 4294901760, %v29671_v60  ;;  %v29842_v61 = vand.u32 4294901760, %v4300_v45 }
 0x366   : > { %23666 = vmatmul.mubr.f32.gmra.mrb[16].mxu0 %v35443_v21  ;;  %v4627_v11 = vsub.f32 %v29746_v43, %v35444_v32  ;;  %v29844_v54 = vand.u32 4294901760, %v12063_v31  ;;  %v4303_v52 = vsel %vm236_vm1, %v4208_v40, 0  ;;  %v12066_v21 = vsel %vm236_vm1, %v11975_v8, 0 }
 0x367   : > { %35445 = vst [vmem:[#allocation128_spill] sm:$0xff] %v29836_v19  ;;  %22471 = vmatprep.mubr.f32.mxu1 %v35446_v58  ;;  %23668 = vmatprep.mubr.f32.mxu0 %v35447_v28  ;;  %35448 = vst [vmem:[#allocation107_spill] sm:$0xff] %v29842_v61  ;;  %v35450_v32 = vand.u32 4294901760, %v29771_v14  ;;  %v35451_v43 = vand.u32 4294901760, %v29777_v34  ;;  %v35452_v58 = vand.u32 4294901760, %v29780_v51  ;;  %v12069_v28 = vsel %vm236_vm1, %v11976_v46, 0 }
 0x368   : > { %35449 = vst [vmem:[#allocation108_spill] sm:$0xff] %v29844_v54  ;;  %v29862_v15 = vsub.f32 %v4297_v57, %v29823_v17  ;;  %v29870_v46 = vsub.f32 %v12060_v48, %v29836_v19  ;;  %v29874_v23 = vand.u32 4294901760, %v12066_v21  ;;  %v29877_v57 = vsub.f32 %v4300_v45, %v29842_v61 }
 0x369   : > { %v12376_v13 = vsub.f32 %v29771_v14, %v35450_v32  ;;  %v4637_v38 = vsub.f32 %v29777_v34, %v35451_v43  ;;  %v12386_v60 = vsub.f32 %v29780_v51, %v35452_v58  ;;  %v35453_v32 = vand.u32 4294901760, %v29684_v6 }
 0x36a   : > { %v35454_v43 = vand.u32 4294901760, %v29695_v36  ;;  %35455 = vst [vmem:[#allocation113_spill] sm:$0xff] %v29870_v46  ;;  %v29872_v51 = vand.u32 4294901760, %v4303_v52  ;;  %35457 = vst [vmem:[#allocation116_spill] sm:$0xff] %v29874_v23  ;;  %v29880_v6 = vsub.f32 %v12063_v31, %v29844_v54  ;;  %v12072_v36 = vsel %vm236_vm1, %v11977_v20, 0 }
 0x36b   : > { %22472 = vmatmul.mubr.f32.gmra.mrb[20].mxu1 %v35453_v32  ;;  %35458 = vst [vmem:[#allocation120_spill] sm:$0xff] %v29877_v57  ;;  %v29882_v32 = vand.u32 4294901760, %v12069_v28  ;;  %v12377_v58 = vand.u32 4294901760, %v12376_v13  ;;  %v4638_v48 = vand.u32 4294901760, %v4637_v38  ;;  %v12387_v8 = vand.u32 4294901760, %v12386_v60 }
 0x36c   : > { %23669 = vmatmul.mubr.f32.gmra.mrb[18].mxu0 %v35454_v43  ;;  %35456 = vst [vmem:[#allocation114_spill] sm:$0xff] %v29872_v51  ;;  %22474 = vmatprep.mubr.f32.mxu1 %v4598_v30  ;;  %v4628_v43 = vand.u32 4294901760, %v4627_v11  ;;  %v35460_v40 = vand.u32 4294901760, %v29815_v2  ;;  %v35461_v30 = vand.u32 4294901760, %v29818_v16  ;;  %v35462_v45 = vand.u32 4294901760, %v29821_v0 }
 0x36d   : > { %23671 = vmatprep.mubr.f32.mxu0 %v12347_v56  ;;  %35459 = vst [vmem:[#allocation124_spill] sm:$0xff] %v29882_v32  ;;  %v34142_v14 = vand.u32 4294901760, %v29862_v15  ;;  %v35463_v20 = vand.u32 4294901760, %v29743_v9  ;;  %v29899_v13 = vsub.f32 %v4303_v52, %v29872_v51  ;;  %v29902_v38 = vsub.f32 %v12066_v21, %v29874_v23 }
 0x36e   : > { %v4647_v34 = vsub.f32 %v29815_v2, %v35460_v40  ;;  %v12396_v56 = vsub.f32 %v29818_v16, %v35461_v30  ;;  %v4657_v31 = vsub.f32 %v29821_v0, %v35462_v45  ;;  %v29904_v60 = vand.u32 4294901760, %v12072_v36 }
 0x36f   : > { %22475 = vmatmul.mubr.f32.gmra.mrb[22].mxu1 %v35463_v20  ;;  %v35465_v40 = vand.u32 4294901760, %v29834_v37  ;;  %v34147_v9 = vand.u32 4294901760, %v29877_v57  ;;  %v29912_v45 = vsub.f32 %v12069_v28, %v29882_v32  ;;  %v4667_v21 = vsub.f32 %v29862_v15, %v34142_v14 }
 0x370   : > { %23672 = vmatmul.mubr.f32.gmra.mrb[20].mxu0 %v12357_v59  ;;  %35464 = vst [vmem:[#allocation129_spill] sm:$0xff] %v29904_v60  ;;  %22477 = vmatprep.mubr.f32.mxu1 %v4618_v49  ;;  %v4648_v52 = vand.u32 4294901760, %v4647_v34  ;;  %v12397_v20 = vand.u32 4294901760, %v12396_v56  ;;  %v4658_v11 = vand.u32 4294901760, %v4657_v31  ;;  %v35466_v49 = vand.u32 4294901760, %v29870_v46 }
 0x371   : > { %23674 = vmatprep.mubr.f32.mxu0 %v12367_v62  ;;  %v12406_v30 = vsub.f32 %v29834_v37, %v35465_v40  ;;  %v34146_v40 = vand.u32 4294901760, %v29899_v13  ;;  %v34143_v59 = vand.u32 4294901760, %v29902_v38  ;;  %v29923_v28 = vsub.f32 %v12072_v36, %v29904_v60 }
 0x372   : > { %v12416_v62 = vsub.f32 %v29870_v46, %v35466_v49  ;;  %v4677_v56 = vsub.f32 %v29877_v57, %v34147_v9  ;;  %v34145_v31 = vand.u32 4294901760, %v29912_v45  ;;  %v4668_v49 = vand.u32 4294901760, %v4667_v21  ;;  %v35488_v9 = vld [vmem:[#allocation35_spill] sm:$0xff] }
 0x373   : > { %22478 = vmatmul.mubr.f32.gmra.mrb[24].mxu1 %v4628_v43  ;;  %v12407_v34 = vand.u32 4294901760, %v12406_v30  ;;  %v4687_v36 = vsub.f32 %v29899_v13, %v34146_v40  ;;  %v35487_v40 = vld [vmem:[#allocation13_spill] sm:$0xff] }
 0x374   : > { %23675 = vmatmul.mubr.f32.gmra.mrb[22].mxu0 %v12377_v58  ;;  %22480 = vmatprep.mubr.f32.mxu1 %v4638_v48  ;;  %v35467_v58 = vand.u32 4294901760, %v29880_v6  ;;  %v12417_v14 = vand.u32 4294901760, %v12416_v62  ;;  %v34144_v48 = vand.u32 4294901760, %v29923_v28  ;;  %v4678_v30 = vand.u32 4294901760, %v4677_v56  ;;  %v35470_v56 = vld [vmem:[#allocation52_spill] sm:$0xff] }
 0x375   : > { %23677 = vmatprep.mubr.f32.mxu0 %v12387_v8  ;;  %v12436_v8 = vsub.f32 %v29902_v38, %v34143_v59 }
 0x376   : > { %v12426_v43 = vsub.f32 %v29880_v6, %v35467_v58  ;;  %v12456_v62 = vsub.f32 %v29923_v28, %v34144_v48  ;;  %v35485_v48 = vld [vmem:[#allocation110_spill] sm:$0xff] }
 0x377   : > { %22481 = vmatmul.mubr.f32.gmra.mrb[26].mxu1 %v4648_v52  ;;  %v12446_v52 = vsub.f32 %v29912_v45, %v34145_v31  ;;  %v12437_v21 = vand.u32 4294901760, %v12436_v8  ;;  %v35476_v8 = vld [vmem:[#allocation60_spill] sm:$0xff] }
 0x378   : > { %23678 = vmatmul.mubr.f32.gmra.mrb[24].mxu0 %v12397_v20  ;;  %22483 = vmatprep.mubr.f32.mxu1 %v4658_v11  ;;  %v12427_v58 = vand.u32 4294901760, %v12426_v43  ;;  %v4688_v20 = vand.u32 4294901760, %v4687_v36  ;;  %v12457_v11 = vand.u32 4294901760, %v12456_v62  ;;  %v35472_v43 = vld [vmem:[#allocation32_spill] sm:$0xff]  ;;  %v35475_v36 = vld [vmem:[#allocation59_spill] sm:$0xff] }
 0x379   : > { %23680 = vmatprep.mubr.f32.mxu0 %v12407_v34  ;;  %v12447_v59 = vand.u32 4294901760, %v12446_v52  ;;  %v35469_v34 = vld [vmem:[#allocation6_spill] sm:$0xff]  ;;  %v35479_v52 = vld [vmem:[#allocation75_spill] sm:$0xff]  ;;  %v35486_v31 = vld [vmem:[#allocation112_spill] sm:$0xff] }
 0x37a   : > { %v35483_v62 = vld [vmem:[#allocation99_spill] sm:$0xff] }
 0x37b   : > { %22484 = vmatmul.mubr.f32.gmra.mrb[28].mxu1 %v4668_v49  ;;  %v35473_v49 = vld [vmem:[#allocation36_spill] sm:$0xff] }
 0x37c   : > { %23681 = vmatmul.mubr.f32.gmra.mrb[26].mxu0 %v12417_v14  ;;  %22486 = vmatprep.mubr.f32.mxu1 %v4678_v30  ;;  %v35468_v14 = vld [vmem:[#allocation50_spill] sm:$0xff] }
 0x37d   : > { %23683 = vmatprep.mubr.f32.mxu0 %v12427_v58  ;;  %v35477_v30 = vld [vmem:[#allocation66_spill] sm:$0xff]  ;;  %v35478_v58 = vld [vmem:[#allocation73_spill] sm:$0xff] }
 0x37f   : > { %22487 = vmatmul.mubr.f32.gmra.mrb[30].mxu1 %v4688_v20  ;;  %v35481_v20 = vld [vmem:[#allocation92_spill] sm:$0xff] }
 0x380   : > { %23684 = vmatmul.mubr.f32.gmra.mrb[28].mxu0 %v12437_v21  ;;  %22491 = vmatprep.mubr.f32.mxu1 %v29012_v3  ;;  %v35482_v21 = vld [vmem:[#allocation98_spill] sm:$0xff] }
 0x381   : > { %23686 = vmatprep.mubr.f32.mxu0 %v12447_v59  ;;  %v35471_v59 = vld [vmem:[#allocation16_spill] sm:$0xff]  ;;  %v35552_v3 = vld [vmem:[#allocation86_spill] sm:$0xff] }
 0x383   : > { %22492 = vmatmul.mubr.f32.vlgmr.msra.gmra.mrb[0].mxu1 %v29018_v53  ;;  %v35551_v53 = vld [vmem:[#allocation84_spill] sm:$0xff] }
 0x384   : > { %23687 = vmatmul.mubr.f32.gmra.mrb[30].mxu0 %v12457_v11  ;;  %22494 = vmatprep.mubr.f32.mxu1 %v29030_v25  ;;  %v35484_v11 = vld [vmem:[#allocation109_spill] sm:$0xff]  ;;  %v35550_v25 = vld [vmem:[#allocation83_spill] sm:$0xff] }
 0x385   : > { %23691 = vmatprep.mubr.f32.mxu0 %v35468_v14  ;;  %22540 = vmatpush3.msra.mxu1 %v29028_v42  ;;  %v35474_v42 = vld [vmem:[#allocation57_spill] sm:$0xff]  ;;  %v35549_v14 = vld [vmem:[#allocation80_spill] sm:$0xff] }
 0x386   : > { %22589 = vmatprep.subr.mxu1 %v35469_v34 }
 0x387   : > { %22495 = vmatmul.mubr.f32.gmra.mrb[2].mxu1 %v35470_v56  ;;  %v35548_v56 = vld [vmem:[#allocation77_spill] sm:$0xff] }
 0x388   : > { %23692 = vmatmul.mubr.f32.vlgmr.msra.gmra.mrb[0].mxu0 %v29056_v35  ;;  %22497 = vmatprep.mubr.f32.mxu1 %v29070_v27  ;;  %v35546_v27 = vld [vmem:[#allocation63_spill] sm:$0xff]  ;;  %v35547_v35 = vld [vmem:[#allocation76_spill] sm:$0xff] }
 0x389   : > { %23694 = vmatprep.mubr.f32.mxu0 %v29072_v39  ;;  %23740 = vmatpush3.msra.mxu0 %v28975_v5  ;;  %v35480_v5 = vld [vmem:[#allocation78_spill] sm:$0xff] }
 0x38a   : > { %23789 = vmatprep.subr.mxu0 %v35471_v59  ;;  %v35545_v39 = vld [vmem:[#allocation62_spill] sm:$0xff] }
 0x38b   : > { %22498 = vmatmul.mubr.f32.gmra.mrb[4].mxu1 %v29078_v12  ;;  %v35544_v12 = vld [vmem:[#allocation61_spill] sm:$0xff] }
 0x38c   : > { %23695 = vmatmul.mubr.f32.gmra.mrb[2].mxu0 %v35472_v43  ;;  %22500 = vmatprep.mubr.f32.mxu1 %v35473_v49  ;;  %v35542_v49 = vld [vmem:[#allocation53_spill] sm:$0xff]  ;;  %v35543_v43 = vld [vmem:[#allocation55_spill] sm:$0xff] }
 0x38d   : > { %23697 = vmatprep.mubr.f32.mxu0 %v35474_v42  ;;  %v35541_v42 = vld [vmem:[#allocation51_spill] sm:$0xff] }
 0x38f   : > { %22501 = vmatmul.mubr.f32.gmra.mrb[6].mxu1 %v35475_v36  ;;  %v35540_v36 = vld [vmem:[#allocation38_spill] sm:$0xff] }
 0x390   : > { %23698 = vmatmul.mubr.f32.gmra.mrb[4].mxu0 %v35476_v8  ;;  %22503 = vmatprep.mubr.f32.mxu1 %v35477_v30  ;;  %v35538_v30 = vld [vmem:[#allocation15_spill] sm:$0xff]  ;;  %v35539_v8 = vld [vmem:[#allocation26_spill] sm:$0xff] }
 0x391   : > { %23700 = vmatprep.mubr.f32.mxu0 %v35478_v58  ;;  %v35537_v58 = vld [vmem:[#allocation9_spill] sm:$0xff] }
 0x393   : > { %22504 = vmatmul.mubr.f32.gmra.mrb[8].mxu1 %v35479_v52  ;;  %v35536_v52 = vld [vmem:[#allocation41_spill] sm:$0xff] }
 0x394   : > { %23701 = vmatmul.mubr.f32.gmra.mrb[6].mxu0 %v35480_v5  ;;  %22506 = vmatprep.mubr.f32.mxu1 %v35481_v20  ;;  %v35534_v20 = vld [vmem:[#allocation29_spill] sm:$0xff] }
 0x395   : > { %23703 = vmatprep.mubr.f32.mxu0 %v35482_v21  ;;  %v35533_v21 = vld [vmem:[#allocation28_spill] sm:$0xff]  ;;  %v35535_v5 = vld [vmem:[#allocation33_spill] sm:$0xff] }
 0x397   : > { %22507 = vmatmul.mubr.f32.gmra.mrb[10].mxu1 %v35483_v62  ;;  %v35532_v62 = vld [vmem:[#allocation24_spill] sm:$0xff] }
 0x398   : > { %23704 = vmatmul.mubr.f32.gmra.mrb[8].mxu0 %v29283_v18  ;;  %22509 = vmatprep.mubr.f32.mxu1 %v29291_v44  ;;  %v35489_v18 = vld [vmem:[#allocation39_spill] sm:$0xff]  ;;  %v35490_v44 = vld [vmem:[#allocation44_spill] sm:$0xff] }
 0x399   : > { %23706 = vmatprep.mubr.f32.mxu0 %v35484_v11  ;;  %v35491_v11 = vld [vmem:[#allocation11_spill] sm:$0xff] }
 0x39b   : > { %22510 = vmatmul.mubr.f32.gmra.mrb[12].mxu1 %v35485_v48  ;;  %v35492_v48 = vld [vmem:[#allocation14_spill] sm:$0xff] }
 0x39c   : > { %23707 = vmatmul.mubr.f32.gmra.mrb[10].mxu0 %v35486_v31  ;;  %22512 = vmatprep.mubr.f32.mxu1 %v29351_v10  ;;  %v35530_v10 = vld [vmem:[#allocation117_spill] sm:$0xff] }
 0x39d   : > { %23709 = vmatprep.mubr.f32.mxu0 %v29354_v29  ;;  %v35529_v29 = vld [vmem:[#allocation91_spill] sm:$0xff]  ;;  %v35531_v31 = vld [vmem:[#allocation17_spill] sm:$0xff] }
 0x39f   : > { %22513 = vmatmul.mubr.f32.gmra.mrb[14].mxu1 %v29356_v4  ;;  %v35528_v4 = vld [vmem:[#allocation90_spill] sm:$0xff] }
 0x3a0   : > { %23710 = vmatmul.mubr.f32.gmra.mrb[12].mxu0 %v29358_v24  ;;  %22515 = vmatprep.mubr.f32.mxu1 %v35487_v40  ;;  %v35493_v40 = vld [vmem:[#allocation48_spill] sm:$0xff]  ;;  %v35527_v24 = vld [vmem:[#allocation89_spill] sm:$0xff] }
 0x3a1   : > { %23712 = vmatprep.mubr.f32.mxu0 %v35488_v9  ;;  %v35526_v9 = vld [vmem:[#allocation88_spill] sm:$0xff] }
 0x3a3   : > { %22516 = vmatmul.mubr.f32.gmra.mrb[16].mxu1 %v35489_v18  ;;  %v35525_v18 = vld [vmem:[#allocation111_spill] sm:$0xff] }
 0x3a4   : > { %23713 = vmatmul.mubr.f32.gmra.mrb[14].mxu0 %v35490_v44  ;;  %22518 = vmatprep.mubr.f32.mxu1 %v35491_v11  ;;  %v35494_v11 = vld [vmem:[#allocation72_spill] sm:$0xff]  ;;  %v35524_v44 = vld [vmem:[#allocation105_spill] sm:$0xff] }
 0x3a5   : > { %23715 = vmatprep.mubr.f32.mxu0 %v35492_v48  ;;  %v35495_v48 = vld [vmem:[#allocation74_spill] sm:$0xff] }
 0x3a7   : > { %22519 = vmatmul.mubr.f32.gmra.mrb[18].mxu1 %v29525_v33  ;;  %v35496_v33 = vld [vmem:[#allocation81_spill] sm:$0xff] }
 0x3a8   : > { %23716 = vmatmul.mubr.f32.gmra.mrb[16].mxu0 %v29527_v50  ;;  %22521 = vmatprep.mubr.f32.mxu1 %v29538_v63  ;;  %v35497_v63 = vld [vmem:[#allocation93_spill] sm:$0xff]  ;;  %v35523_v50 = vld [vmem:[#allocation100_spill] sm:$0xff] }
 0x3a9   : > { %23718 = vmatprep.mubr.f32.mxu0 %v29540_v7  ;;  %v35498_v7 = vld [vmem:[#allocation94_spill] sm:$0xff] }
 0x3ab   : > { %22522 = vmatmul.mubr.f32.gmra.mrb[20].mxu1 %v29552_v26  ;;  %v35499_v26 = vld [vmem:[#allocation95_spill] sm:$0xff] }
 0x3ac   : > { %23719 = vmatmul.mubr.f32.gmra.mrb[18].mxu0 %v35493_v40  ;;  %22524 = vmatprep.mubr.f32.mxu1 %v29600_v41  ;;  %v35500_v41 = vld [vmem:[#allocation115_spill] sm:$0xff] }
 0x3ad   : > { %23721 = vmatprep.mubr.f32.mxu0 %v29602_v1  ;;  %v35501_v1 = vld [vmem:[#allocation119_spill] sm:$0xff] }
 0x3ae   : > { %v35522_v40 = vld [vmem:[#allocation87_spill] sm:$0xff] }
 0x3af   : > { %22525 = vmatmul.mubr.f32.gmra.mrb[22].mxu1 %v29613_v22  ;;  %v35502_v22 = vld [vmem:[#allocation121_spill] sm:$0xff] }
 0x3b0   : > { %23722 = vmatmul.mubr.f32.gmra.mrb[20].mxu0 %v35494_v11  ;;  %22527 = vmatprep.mubr.f32.mxu1 %v35495_v48  ;;  %v35520_v48 = vld [vmem:[#allocation79_spill] sm:$0xff]  ;;  %v35521_v11 = vld [vmem:[#allocation82_spill] sm:$0xff] }
 0x3b1   : > { %23724 = vmatprep.mubr.f32.mxu0 %v35496_v33  ;;  %v35519_v33 = vld [vmem:[#allocation70_spill] sm:$0xff] }
 0x3b3   : > { %22528 = vmatmul.mubr.f32.gmra.mrb[24].mxu1 %v29701_v55  ;;  %v35518_v55 = vld [vmem:[#allocation69_spill] sm:$0xff] }
 0x3b4   : > { %23725 = vmatmul.mubr.f32.gmra.mrb[22].mxu0 %v35497_v63  ;;  %22530 = vmatprep.mubr.f32.mxu1 %v35498_v7  ;;  %v35516_v7 = vld [vmem:[#allocation67_spill] sm:$0xff]  ;;  %v35517_v63 = vld [vmem:[#allocation68_spill] sm:$0xff] }
 0x3b5   : > { %23727 = vmatprep.mubr.f32.mxu0 %v35499_v26  ;;  %v35503_v26 = vld [vmem:[#allocation20_spill] sm:$0xff] }
 0x3b7   : > { %22531 = vmatmul.mubr.f32.gmra.mrb[26].mxu1 %v29783_v47  ;;  %v35515_v47 = vld [vmem:[#allocation58_spill] sm:$0xff] }
 0x3b8   : > { %23728 = vmatmul.mubr.f32.gmra.mrb[24].mxu0 %v35500_v41  ;;  %22533 = vmatprep.mubr.f32.mxu1 %v35501_v1  ;;  %v35504_v41 = vld [vmem:[#allocation45_spill] sm:$0xff]  ;;  %v35514_v1 = vld [vmem:[#allocation56_spill] sm:$0xff] }
 0x3b9   : > { %23730 = vmatprep.mubr.f32.mxu0 %v35502_v22  ;;  %v35505_v22 = vld [vmem:[#allocation7_spill] sm:$0xff] }
 0x3bb   : > { %22534 = vmatmul.mubr.f32.gmra.mrb[28].mxu1 %v29823_v17  ;;  %v35506_v17 = vld [vmem:[#allocation10_spill] sm:$0xff] }
 0x3bc   : > { %23731 = vmatmul.mubr.f32.gmra.mrb[26].mxu0 %v29836_v19  ;;  %22536 = vmatprep.mubr.f32.mxu1 %v29842_v61  ;;  %v35507_v61 = vld [vmem:[#allocation42_spill] sm:$0xff]  ;;  %v35511_v19 = vld [vmem:[#allocation49_spill] sm:$0xff] }
 0x3bd   : > { %23733 = vmatprep.mubr.f32.mxu0 %v29844_v54  ;;  %v35508_v54 = vld [vmem:[#allocation22_spill] sm:$0xff] }
 0x3bf   : > { %22537 = vmatmul.mubr.f32.gmra.mrb[30].mxu1 %v29872_v51  ;;  %v35509_v51 = vld [vmem:[#allocation34_spill] sm:$0xff] }
 0x3c0   : > { %23734 = vmatmul.mubr.f32.gmra.mrb[28].mxu0 %v29874_v23  ;;  %22541 = vmatprep.mubr.f32.mxu1 %v35503_v26  ;;  %v35510_v23 = vld [vmem:[#allocation46_spill] sm:$0xff] }
 0x3c1   : > { %23736 = vmatprep.mubr.f32.mxu0 %v29882_v32  ;;  %v35512_v32 = vld [vmem:[#allocation21_spill] sm:$0xff] }
 0x3c3   : > { %22542 = vmatmul.mubr.f32.vlgmr.msra.gmra.mrb[0].mxu1 %v35504_v41 }
 0x3c4   : > { %23737 = vmatmul.mubr.f32.gmra.mrb[30].mxu0 %v29904_v60  ;;  %22544 = vmatprep.mubr.f32.mxu1 %v35505_v22  ;;  %v35513_v60 = vld [vmem:[#allocation54_spill] sm:$0xff] }
 0x3c5   : > { %23741 = vmatprep.mubr.f32.mxu0 %v35506_v17  ;;  %22590 = vmatpush3.msra.mxu1 %v35469_v34 }
 0x3c6   : > { %22639 = vmatprep.subr.mxu1 %v35507_v61 }
 0x3c7   : > { %22545 = vmatmul.mubr.f32.gmra.mrb[2].mxu1 %v35508_v54 }
 0x3c8   : > { %23742 = vmatmul.mubr.f32.vlgmr.msra.gmra.mrb[0].mxu0 %v35509_v51  ;;  %22547 = vmatprep.mubr.f32.mxu1 %v35510_v23 }
 0x3c9   : > { %23744 = vmatprep.mubr.f32.mxu0 %v35511_v19  ;;  %23790 = vmatpush3.msra.mxu0 %v35471_v59 }
 0x3ca   : > { %23839 = vmatprep.subr.mxu0 %v35512_v32 }
 0x3cb   : > { %22548 = vmatmul.mubr.f32.gmra.mrb[4].mxu1 %v35513_v60 }
 0x3cc   : > { %23745 = vmatmul.mubr.f32.gmra.mrb[2].mxu0 %v35514_v1  ;;  %22550 = vmatprep.mubr.f32.mxu1 %v35515_v47 }
 0x3cd   : > { %23747 = vmatprep.mubr.f32.mxu0 %v35516_v7 }
 0x3cf   : > { %22551 = vmatmul.mubr.f32.gmra.mrb[6].mxu1 %v35517_v63 }
 0x3d0   : > { %23748 = vmatmul.mubr.f32.gmra.mrb[4].mxu0 %v35518_v55  ;;  %22553 = vmatprep.mubr.f32.mxu1 %v35519_v33 }
 0x3d1   : > { %23750 = vmatprep.mubr.f32.mxu0 %v35520_v48 }
 0x3d3   : > { %22554 = vmatmul.mubr.f32.gmra.mrb[8].mxu1 %v35521_v11 }
 0x3d4   : > { %23751 = vmatmul.mubr.f32.gmra.mrb[6].mxu0 %v35522_v40  ;;  %22556 = vmatprep.mubr.f32.mxu1 %v35523_v50 }
 0x3d5   : > { %23753 = vmatprep.mubr.f32.mxu0 %v35524_v44 }
 0x3d7   : > { %22557 = vmatmul.mubr.f32.gmra.mrb[10].mxu1 %v35525_v18 }
 0x3d8   : > { %23754 = vmatmul.mubr.f32.gmra.mrb[8].mxu0 %v35526_v9  ;;  %22559 = vmatprep.mubr.f32.mxu1 %v35527_v24 }
 0x3d9   : > { %23756 = vmatprep.mubr.f32.mxu0 %v35528_v4 }
 0x3db   : > { %22560 = vmatmul.mubr.f32.gmra.mrb[12].mxu1 %v35529_v29 }
 0x3dc   : > { %23757 = vmatmul.mubr.f32.gmra.mrb[10].mxu0 %v35530_v10  ;;  %22562 = vmatprep.mubr.f32.mxu1 %v35531_v31 }
 0x3dd   : > { %23759 = vmatprep.mubr.f32.mxu0 %v35532_v62 }
 0x3df   : > { %22563 = vmatmul.mubr.f32.gmra.mrb[14].mxu1 %v35533_v21 }
 0x3e0   : > { %23760 = vmatmul.mubr.f32.gmra.mrb[12].mxu0 %v35534_v20  ;;  %22565 = vmatprep.mubr.f32.mxu1 %v35535_v5 }
 0x3e1   : > { %23762 = vmatprep.mubr.f32.mxu0 %v35536_v52 }
 0x3e3   : > { %22566 = vmatmul.mubr.f32.gmra.mrb[16].mxu1 %v35537_v58 }
 0x3e4   : > { %23763 = vmatmul.mubr.f32.gmra.mrb[14].mxu0 %v35538_v30  ;;  %22568 = vmatprep.mubr.f32.mxu1 %v35539_v8 }
 0x3e5   : > { %23765 = vmatprep.mubr.f32.mxu0 %v35540_v36 }
 0x3e7   : > { %22569 = vmatmul.mubr.f32.gmra.mrb[18].mxu1 %v35541_v42 }
 0x3e8   : > { %23766 = vmatmul.mubr.f32.gmra.mrb[16].mxu0 %v35542_v49  ;;  %22571 = vmatprep.mubr.f32.mxu1 %v35543_v43  ;;  %v35553_v49 = vld [vmem:[#allocation96_spill] sm:$0xff]  ;;  %v35554_v43 = vld [vmem:[#allocation97_spill] sm:$0xff] }
 0x3e9   : > { %23768 = vmatprep.mubr.f32.mxu0 %v35544_v12  ;;  %v35555_v12 = vld [vmem:[#allocation101_spill] sm:$0xff] }
 0x3eb   : > { %22572 = vmatmul.mubr.f32.gmra.mrb[20].mxu1 %v35545_v39  ;;  %v35556_v39 = vld [vmem:[#allocation104_spill] sm:$0xff] }
 0x3ec   : > { %23769 = vmatmul.mubr.f32.gmra.mrb[18].mxu0 %v35546_v27  ;;  %22574 = vmatprep.mubr.f32.mxu1 %v35547_v35 }
 0x3ed   : > { %23771 = vmatprep.mubr.f32.mxu0 %v35548_v56 }
 0x3ef   : > { %22575 = vmatmul.mubr.f32.gmra.mrb[22].mxu1 %v35549_v14 }
 0x3f0   : > { %23772 = vmatmul.mubr.f32.gmra.mrb[20].mxu0 %v35550_v25  ;;  %22577 = vmatprep.mubr.f32.mxu1 %v35551_v53 }
 0x3f1   : > { %23774 = vmatprep.mubr.f32.mxu0 %v35552_v3 }
 0x3f3   : > { %22578 = vmatmul.mubr.f32.gmra.mrb[24].mxu1 %v35553_v49 }
 0x3f4   : > { %23775 = vmatmul.mubr.f32.gmra.mrb[22].mxu0 %v35554_v43  ;;  %22580 = vmatprep.mubr.f32.mxu1 %v35555_v12 }
 0x3f5   : > { %23777 = vmatprep.mubr.f32.mxu0 %v35556_v39 }
 0x3f7   : > { %22581 = vmatmul.mubr.f32.gmra.mrb[26].mxu1 %v29815_v2  ;;  %v35557_v2 = vand.u32 4294901760, %v35503_v26  ;;  %v35561_v26 = vand.u32 4294901760, %v35508_v54  ;;  %v35571_v54 = vand.u32 4294901760, %v35519_v33  ;;  %v35578_v33 = vand.u32 4294901760, %v35526_v9 }
 0x3f8   : > { %23778 = vmatmul.mubr.f32.gmra.mrb[24].mxu0 %v29818_v16  ;;  %22583 = vmatprep.mubr.f32.mxu1 %v29821_v0  ;;  %v35558_v0 = vand.u32 4294901760, %v35504_v41  ;;  %v35563_v41 = vand.u32 4294901760, %v35510_v23  ;;  %v35569_v23 = vand.u32 4294901760, %v35517_v63  ;;  %v35576_v63 = vand.u32 4294901760, %v35524_v44 }
 0x3f9   : > { %23780 = vmatprep.mubr.f32.mxu0 %v29834_v37  ;;  %v35583_v44 = vand.u32 4294901760, %v35531_v31  ;;  %v35585_v9 = vand.u32 4294901760, %v35533_v21  ;;  %v35591_v31 = vand.u32 4294901760, %v35539_v8  ;;  %v35602_v8 = vand.u32 4294901760, %v35546_v27 }
 0x3fa   : > { %v35609_v27 = vand.u32 4294901760, %v35553_v49  ;;  %v35618_v49 = vand.u32 4294901760, %v29834_v37  ;;  %v35626_v37 = vand.u32 4294901760, %v29902_v38 }
 0x3fb   : > { %22584 = vmatmul.mubr.f32.gmra.mrb[28].mxu1 %v29862_v15 }
 0x3fc   : > { %23781 = vmatmul.mubr.f32.gmra.mrb[26].mxu0 %v29870_v46  ;;  %22586 = vmatprep.mubr.f32.mxu1 %v29877_v57  ;;  %v35559_v46 = vand.u32 4294901760, %v35505_v22  ;;  %v35560_v57 = vand.u32 4294901760, %v35506_v17  ;;  %v35565_v22 = vand.u32 4294901760, %v35513_v60  ;;  %v35566_v17 = vand.u32 4294901760, %v35514_v1 }
 0x3fd   : > { %23783 = vmatprep.mubr.f32.mxu0 %v29880_v6  ;;  %v35573_v1 = vand.u32 4294901760, %v35521_v11  ;;  %v35581_v60 = vand.u32 4294901760, %v35529_v29  ;;  %v35588_v29 = vand.u32 4294901760, %v35536_v52  ;;  %v35596_v52 = vld [vmem:[#allocation55_spill] sm:$0xff] }
 0x3ff   : > { %22587 = vmatmul.mubr.f32.gmra.mrb[30].mxu1 %v29899_v13 }
 0x400   : > { %23784 = vmatmul.mubr.f32.gmra.mrb[28].mxu0 %v29902_v38  ;;  %22591 = vmatprep.mubr.f32.mxu1 %v35557_v2  ;;  %v35562_v2 = vand.u32 4294901760, %v35509_v51  ;;  %v35568_v51 = vand.u32 4294901760, %v35516_v7  ;;  %v35575_v7 = vand.u32 4294901760, %v35523_v50  ;;  %v35582_v50 = vand.u32 4294901760, %v35530_v10 }
 0x401   : > { %23786 = vmatprep.mubr.f32.mxu0 %v29912_v45  ;;  %v35589_v10 = vand.u32 4294901760, %v35537_v58  ;;  %v35598_v58 = vld [vmem:[#allocation61_spill] sm:$0xff]  ;;  %v35631_v38 = vand.u32 4294901760, %v29923_v28 }
 0x402   : > { %v35599_v11 = vand.u32 4294901760, %v35598_v58  ;;  %v35658_v58 = vld [vmem:[#allocation123_spill] sm:$0xff] }
 0x403   : > { %22592 = vmatmul.mubr.f32.vlgmr.msra.gmra.mrb[0].mxu1 %v35558_v0  ;;  %v35564_v0 = vand.u32 4294901760, %v35511_v19  ;;  %v35570_v19 = vand.u32 4294901760, %v35518_v55  ;;  %v35577_v55 = vand.u32 4294901760, %v35525_v18  ;;  %v35584_v18 = vand.u32 4294901760, %v35532_v62 }
 0x404   : > { %23787 = vmatmul.mubr.f32.gmra.mrb[30].mxu0 %v29923_v28  ;;  %22594 = vmatprep.mubr.f32.mxu1 %v35559_v46  ;;  %v35572_v46 = vand.u32 4294901760, %v35520_v48  ;;  %v35592_v48 = vand.u32 4294901760, %v35540_v36  ;;  %v35597_v62 = vand.u32 4294901760, %v35596_v52  ;;  %v35603_v36 = vand.u32 4294901760, %v35547_v35  ;;  %v35638_v28 = vld [vmem:[#allocation19_spill] sm:$0xff]  ;;  %v35656_v52 = vld [vmem:[#allocation112_spill] sm:$0xff] }
 0x405   : > { %23791 = vmatprep.mubr.f32.mxu0 %v35560_v57  ;;  %22640 = vmatpush3.msra.mxu1 %v35507_v61  ;;  %v35567_v61 = vand.u32 4294901760, %v35515_v47  ;;  %v35574_v47 = vand.u32 4294901760, %v35522_v40  ;;  %v35579_v57 = vand.u32 4294901760, %v35527_v24  ;;  %v35586_v24 = vand.u32 4294901760, %v35534_v20 }
 0x406   : > { %22689 = vmatprep.subr.mxu1 %v35469_v34  ;;  %v35590_v40 = vand.u32 4294901760, %v35538_v30  ;;  %v35593_v20 = vand.u32 4294901760, %v35541_v42  ;;  %v35600_v30 = vld [vmem:[#allocation62_spill] sm:$0xff]  ;;  %v35604_v42 = vand.u32 4294901760, %v35548_v56  ;;  %v35610_v35 = vand.u32 4294901760, %v35554_v43 }
 0x407   : > { %22595 = vmatmul.mubr.f32.gmra.mrb[2].mxu1 %v35561_v26  ;;  %v35601_v26 = vand.u32 4294901760, %v35600_v30  ;;  %v35611_v56 = vand.u32 4294901760, %v35555_v12  ;;  %v35619_v43 = vand.u32 4294901760, %v29862_v15  ;;  %v35620_v12 = vld [vmem:[#allocation113_spill] sm:$0xff]  ;;  %v35660_v30 = vld [vmem:[#allocation12_spill] sm:$0xff] }
 0x408   : > { %23792 = vmatmul.mubr.f32.vlgmr.msra.gmra.mrb[0].mxu0 %v35562_v2  ;;  %22597 = vmatprep.mubr.f32.mxu1 %v35563_v41  ;;  %v35605_v2 = vand.u32 4294901760, %v35549_v14  ;;  %v35606_v41 = vand.u32 4294901760, %v35550_v25  ;;  %v35612_v14 = vand.u32 4294901760, %v35556_v39  ;;  %v35613_v25 = vld [vmem:[#allocation122_spill] sm:$0xff]  ;;  %v35622_v39 = vld [vmem:[#allocation120_spill] sm:$0xff] }
 0x409   : > { %23794 = vmatprep.mubr.f32.mxu0 %v35564_v0  ;;  %23840 = vmatpush3.msra.mxu0 %v35512_v32  ;;  %v35580_v32 = vand.u32 4294901760, %v35528_v4  ;;  %v35587_v4 = vand.u32 4294901760, %v35535_v5  ;;  %v35594_v5 = vld [vmem:[#allocation53_spill] sm:$0xff]  ;;  %v35607_v0 = vand.u32 4294901760, %v35551_v53  ;;  %v35615_v53 = vand.u32 4294901760, %v29818_v16 }
 0x40a   : > { %23889 = vmatprep.subr.mxu0 %v35471_v59  ;;  %v35595_v21 = vand.u32 4294901760, %v35594_v5  ;;  %v350_v16 = vld [vmem:[%s33592_s1 + $0xc] sm:$0xf] }
 0x40b   : > { %22598 = vmatmul.mubr.f32.gmra.mrb[4].mxu1 %v35565_v22  ;;  %v35608_v22 = vand.u32 4294901760, %v35552_v3  ;;  %v35616_v3 = vld [vmem:[#allocation125_spill] sm:$0xff]  ;;  %v30213_v15 = vsel %vm516_vm0, %v350_v16, 0  ;;  %v35685_v16 = vld [vmem:[#allocation119_spill] sm:$0xff] }
 0x40c   : > { %23795 = vmatmul.mubr.f32.gmra.mrb[2].mxu0 %v35566_v17  ;;  %22600 = vmatprep.mubr.f32.mxu1 %v35567_v61  ;;  %v35614_v17 = vand.u32 4294901760, %v35613_v25  ;;  %v35617_v61 = vand.u32 4294901760, %v35616_v3  ;;  %v35654_v5 = vld [vmem:[#allocation109_spill] sm:$0xff]  ;;  %v35673_v25 = vld [vmem:[#allocation64_spill] sm:$0xff] }
 0x40d   : > { %23797 = vmatprep.mubr.f32.mxu0 %v35568_v51  ;;  %v35621_v51 = vand.u32 4294901760, %v35620_v12  ;;  %v35676_v3 = vld [vmem:[#allocation72_spill] sm:$0xff]  ;;  %v35680_v12 = vld [vmem:[#allocation93_spill] sm:$0xff] }
 0x40f   : > { %22601 = vmatmul.mubr.f32.gmra.mrb[6].mxu1 %v35569_v23  ;;  %v35623_v23 = vand.u32 4294901760, %v35622_v39  ;;  %v35682_v39 = vld [vmem:[#allocation95_spill] sm:$0xff] }
 0x410   : > { %23798 = vmatmul.mubr.f32.gmra.mrb[4].mxu0 %v35570_v19  ;;  %22603 = vmatprep.mubr.f32.mxu1 %v35571_v54  ;;  %v35624_v19 = vand.u32 4294901760, %v29880_v6  ;;  %v35625_v54 = vand.u32 4294901760, %v29899_v13  ;;  %v354_v6 = vld [vmem:[%s33592_s1 + $0x1c] sm:$0xf] }
 0x411   : > { %23800 = vmatprep.mubr.f32.mxu0 %v35572_v46  ;;  %v35627_v46 = vld [vmem:[#allocation25_spill] sm:$0xff]  ;;  %v35630_v13 = vld [vmem:[#allocation31_spill] sm:$0xff] }
 0x413   : > { %22604 = vmatmul.mubr.f32.gmra.mrb[8].mxu1 %v35573_v1  ;;  %v35628_v1 = vand.u32 4294901760, %v29912_v45 }
 0x414   : > { %23801 = vmatmul.mubr.f32.gmra.mrb[6].mxu0 %v35574_v47  ;;  %22606 = vmatprep.mubr.f32.mxu1 %v35575_v7  ;;  %v30222_v47 = vand.u32 4294901760, %v30213_v15  ;;  %v14017_v7 = vsel %vm516_vm0, %v354_v6, 0  ;;  %v35688_v6 = vld [vmem:[#allocation128_spill] sm:$0xff] }
 0x415   : > { %23803 = vmatprep.mubr.f32.mxu0 %v35576_v63  ;;  %v35632_v63 = vld [vmem:[#allocation37_spill] sm:$0xff]  ;;  %v30231_v45 = vand.u32 4294901760, %v14017_v7 }
 0x416   : > { %35629 = vst [vmem:[#allocation6_spill] sm:$0xff] %v30222_v47 }
 0x417   : > { %22607 = vmatmul.mubr.f32.gmra.mrb[10].mxu1 %v35577_v55  ;;  %v35633_v55 = vld [vmem:[#allocation50_spill] sm:$0xff]  ;;  %35634 = vst [vmem:[#allocation16_spill] sm:$0xff] %v30231_v45 }
 0x418   : > { %23804 = vmatmul.mubr.f32.gmra.mrb[8].mxu0 %v35578_v33  ;;  %22609 = vmatprep.mubr.f32.mxu1 %v35579_v57  ;;  %v35635_v33 = vld [vmem:[#allocation52_spill] sm:$0xff] }
 0x419   : > { %23806 = vmatprep.mubr.f32.mxu0 %v35580_v32  ;;  %v35636_v57 = vld [vmem:[#allocation8_spill] sm:$0xff]  ;;  %v35637_v32 = vld [vmem:[#allocation18_spill] sm:$0xff] }
 0x41b   : > { %22610 = vmatmul.mubr.f32.gmra.mrb[12].mxu1 %v35581_v60  ;;  %v35639_v60 = vld [vmem:[#allocation23_spill] sm:$0xff] }
 0x41c   : > { %23807 = vmatmul.mubr.f32.gmra.mrb[10].mxu0 %v35582_v50  ;;  %22612 = vmatprep.mubr.f32.mxu1 %v35583_v44  ;;  %v35640_v50 = vld [vmem:[#allocation32_spill] sm:$0xff]  ;;  %v35642_v44 = vld [vmem:[#allocation57_spill] sm:$0xff] }
 0x41d   : > { %23809 = vmatprep.mubr.f32.mxu0 %v35584_v18  ;;  %v35643_v18 = vld [vmem:[#allocation59_spill] sm:$0xff] }
 0x41f   : > { %22613 = vmatmul.mubr.f32.gmra.mrb[14].mxu1 %v35585_v9  ;;  %v35644_v9 = vld [vmem:[#allocation60_spill] sm:$0xff] }
 0x420   : > { %23810 = vmatmul.mubr.f32.gmra.mrb[12].mxu0 %v35586_v24  ;;  %22615 = vmatprep.mubr.f32.mxu1 %v35587_v4  ;;  %v35645_v24 = vld [vmem:[#allocation66_spill] sm:$0xff]  ;;  %v35646_v4 = vld [vmem:[#allocation73_spill] sm:$0xff] }
 0x421   : > { %23812 = vmatprep.mubr.f32.mxu0 %v35588_v29  ;;  %v35647_v29 = vld [vmem:[#allocation75_spill] sm:$0xff] }
 0x423   : > { %22616 = vmatmul.mubr.f32.gmra.mrb[16].mxu1 %v35589_v10  ;;  %v35649_v10 = vld [vmem:[#allocation92_spill] sm:$0xff] }
 0x424   : > { %23813 = vmatmul.mubr.f32.gmra.mrb[14].mxu0 %v35590_v40  ;;  %22618 = vmatprep.mubr.f32.mxu1 %v35591_v31  ;;  %v35650_v40 = vld [vmem:[#allocation98_spill] sm:$0xff]  ;;  %v35651_v31 = vld [vmem:[#allocation99_spill] sm:$0xff] }
 0x425   : > { %23815 = vmatprep.mubr.f32.mxu0 %v35592_v48  ;;  %v35652_v48 = vld [vmem:[#allocation102_spill] sm:$0xff] }
 0x427   : > { %22619 = vmatmul.mubr.f32.gmra.mrb[18].mxu1 %v35593_v20  ;;  %v35653_v20 = vld [vmem:[#allocation103_spill] sm:$0xff] }
 0x428   : > { %23816 = vmatmul.mubr.f32.gmra.mrb[16].mxu0 %v35595_v21  ;;  %22621 = vmatprep.mubr.f32.mxu1 %v35597_v62  ;;  %v35655_v21 = vld [vmem:[#allocation110_spill] sm:$0xff] }
 0x429   : > { %23818 = vmatprep.mubr.f32.mxu0 %v35599_v11  ;;  %v35657_v62 = vld [vmem:[#allocation118_spill] sm:$0xff] }
 0x42a   : > { %v35659_v11 = vld [vmem:[#allocation126_spill] sm:$0xff] }
 0x42b   : > { %22622 = vmatmul.mubr.f32.gmra.mrb[20].mxu1 %v35601_v26  ;;  %v35661_v26 = vld [vmem:[#allocation13_spill] sm:$0xff] }
 0x42c   : > { %23819 = vmatmul.mubr.f32.gmra.mrb[18].mxu0 %v35602_v8  ;;  %22624 = vmatprep.mubr.f32.mxu1 %v35603_v36  ;;  %v35662_v8 = vld [vmem:[#allocation35_spill] sm:$0xff] }
 0x42d   : > { %23821 = vmatprep.mubr.f32.mxu0 %v35604_v42  ;;  %v35663_v36 = vld [vmem:[#allocation39_spill] sm:$0xff]  ;;  %v35664_v42 = vld [vmem:[#allocation44_spill] sm:$0xff] }
 0x42f   : > { %22625 = vmatmul.mubr.f32.gmra.mrb[22].mxu1 %v35605_v2  ;;  %v35665_v2 = vld [vmem:[#allocation11_spill] sm:$0xff] }
 0x430   : > { %23822 = vmatmul.mubr.f32.gmra.mrb[20].mxu0 %v35606_v41  ;;  %22627 = vmatprep.mubr.f32.mxu1 %v35607_v0  ;;  %v35666_v41 = vld [vmem:[#allocation14_spill] sm:$0xff]  ;;  %v35667_v0 = vld [vmem:[#allocation27_spill] sm:$0xff] }
 0x431   : > { %23824 = vmatprep.mubr.f32.mxu0 %v35608_v22  ;;  %v35668_v22 = vld [vmem:[#allocation30_spill] sm:$0xff] }
 0x433   : > { %22628 = vmatmul.mubr.f32.gmra.mrb[24].mxu1 %v35609_v27  ;;  %v35669_v27 = vld [vmem:[#allocation40_spill] sm:$0xff] }
 0x434   : > { %23825 = vmatmul.mubr.f32.gmra.mrb[22].mxu0 %v35610_v35  ;;  %22630 = vmatprep.mubr.f32.mxu1 %v35611_v56  ;;  %v35670_v35 = vld [vmem:[#allocation43_spill] sm:$0xff] }
 0x435   : > { %23827 = vmatprep.mubr.f32.mxu0 %v35612_v14  ;;  %v35671_v56 = vld [vmem:[#allocation47_spill] sm:$0xff]  ;;  %v35672_v14 = vld [vmem:[#allocation48_spill] sm:$0xff] }
 0x437   : > { %22631 = vmatmul.mubr.f32.gmra.mrb[26].mxu1 %v35614_v17  ;;  %v35674_v17 = vld [vmem:[#allocation65_spill] sm:$0xff] }
 0x438   : > { %23828 = vmatmul.mubr.f32.gmra.mrb[24].mxu0 %v35615_v53  ;;  %22633 = vmatprep.mubr.f32.mxu1 %v35617_v61  ;;  %v35675_v53 = vld [vmem:[#allocation71_spill] sm:$0xff]  ;;  %v35677_v61 = vld [vmem:[#allocation74_spill] sm:$0xff] }
 0x439   : > { %23830 = vmatprep.mubr.f32.mxu0 %v35618_v49  ;;  %v35678_v49 = vld [vmem:[#allocation81_spill] sm:$0xff] }
 0x43b   : > { %22634 = vmatmul.mubr.f32.gmra.mrb[28].mxu1 %v35619_v43  ;;  %v35679_v43 = vld [vmem:[#allocation85_spill] sm:$0xff] }
 0x43c   : > { %23831 = vmatmul.mubr.f32.gmra.mrb[26].mxu0 %v35621_v51  ;;  %22636 = vmatprep.mubr.f32.mxu1 %v35623_v23  ;;  %v35681_v51 = vld [vmem:[#allocation94_spill] sm:$0xff] }
 0x43d   : > { %23833 = vmatprep.mubr.f32.mxu0 %v35624_v19  ;;  %v35683_v23 = vld [vmem:[#allocation106_spill] sm:$0xff]  ;;  %v35684_v19 = vld [vmem:[#allocation115_spill] sm:$0xff] }
 0x43f   : > { %22637 = vmatmul.mubr.f32.gmra.mrb[30].mxu1 %v35625_v54  ;;  %v35686_v54 = vld [vmem:[#allocation121_spill] sm:$0xff] }
 0x440   : > { %23834 = vmatmul.mubr.f32.gmra.mrb[28].mxu0 %v35626_v37  ;;  %22641 = vmatprep.mubr.f32.mxu1 %v35627_v46  ;;  %v30289_v37 = vsub.f32 %v14017_v7, %v30231_v45 }
 0x441   : > { %23836 = vmatprep.mubr.f32.mxu0 %v35628_v1  ;;  %v35687_v1 = vld [vmem:[#allocation127_spill] sm:$0xff] }
 0x443   : > { %22642 = vmatmul.mubr.f32.vlgmr.msra.gmra.mrb[0].mxu1 %v35630_v13 }
 0x444   : > { %23837 = vmatmul.mubr.f32.gmra.mrb[30].mxu0 %v35631_v38  ;;  %22644 = vmatprep.mubr.f32.mxu1 %v35632_v63  ;;  %v35689_v38 = vld [vmem:[#allocation107_spill] sm:$0xff] }
 0x445   : > { %23841 = vmatprep.mubr.f32.mxu0 %v35633_v55  ;;  %22690 = vmatpush3.msra.mxu1 %v35469_v34  ;;  %v35641_v34 = vld [vmem:[#allocation36_spill] sm:$0xff] }
 0x446   : > { %22739 = vmatprep.subr.mxu1 %v30222_v47 }
 0x447   : > { %22645 = vmatmul.mubr.f32.gmra.mrb[2].mxu1 %v35635_v33 }
 0x448   : > { %23842 = vmatmul.mubr.f32.vlgmr.msra.gmra.mrb[0].mxu0 %v35636_v57  ;;  %22647 = vmatprep.mubr.f32.mxu1 %v35637_v32 }
 0x449   : > { %23844 = vmatprep.mubr.f32.mxu0 %v35638_v28  ;;  %23890 = vmatpush3.msra.mxu0 %v35471_v59  ;;  %v35648_v59 = vld [vmem:[#allocation78_spill] sm:$0xff] }
 0x44a   : > { %23939 = vmatprep.subr.mxu0 %v30231_v45 }
 0x44b   : > { %22648 = vmatmul.mubr.f32.gmra.mrb[4].mxu1 %v35639_v60 }
 0x44c   : > { %23845 = vmatmul.mubr.f32.gmra.mrb[2].mxu0 %v35640_v50  ;;  %22650 = vmatprep.mubr.f32.mxu1 %v35641_v34 }
 0x44d   : > { %23847 = vmatprep.mubr.f32.mxu0 %v35642_v44 }
 0x44f   : > { %22651 = vmatmul.mubr.f32.gmra.mrb[6].mxu1 %v35643_v18 }
 0x450   : > { %23848 = vmatmul.mubr.f32.gmra.mrb[4].mxu0 %v35644_v9  ;;  %22653 = vmatprep.mubr.f32.mxu1 %v35645_v24 }
 0x451   : > { %23850 = vmatprep.mubr.f32.mxu0 %v35646_v4 }
 0x453   : > { %22654 = vmatmul.mubr.f32.gmra.mrb[8].mxu1 %v35647_v29 }
 0x454   : > { %23851 = vmatmul.mubr.f32.gmra.mrb[6].mxu0 %v35648_v59  ;;  %22656 = vmatprep.mubr.f32.mxu1 %v35649_v10 }
 0x455   : > { %23853 = vmatprep.mubr.f32.mxu0 %v35650_v40 }
 0x457   : > { %22657 = vmatmul.mubr.f32.gmra.mrb[10].mxu1 %v35651_v31 }
 0x458   : > { %23854 = vmatmul.mubr.f32.gmra.mrb[8].mxu0 %v35652_v48  ;;  %22659 = vmatprep.mubr.f32.mxu1 %v35653_v20 }
 0x459   : > { %23856 = vmatprep.mubr.f32.mxu0 %v35654_v5 }
 0x45b   : > { %22660 = vmatmul.mubr.f32.gmra.mrb[12].mxu1 %v35655_v21 }
 0x45c   : > { %23857 = vmatmul.mubr.f32.gmra.mrb[10].mxu0 %v35656_v52  ;;  %22662 = vmatprep.mubr.f32.mxu1 %v35657_v62 }
 0x45d   : > { %23859 = vmatprep.mubr.f32.mxu0 %v35658_v58 }
 0x45f   : > { %22663 = vmatmul.mubr.f32.gmra.mrb[14].mxu1 %v35659_v11 }
 0x460   : > { %23860 = vmatmul.mubr.f32.gmra.mrb[12].mxu0 %v35660_v30  ;;  %22665 = vmatprep.mubr.f32.mxu1 %v35661_v26 }
 0x461   : > { %23862 = vmatprep.mubr.f32.mxu0 %v35662_v8 }
 0x463   : > { %22666 = vmatmul.mubr.f32.gmra.mrb[16].mxu1 %v35663_v36 }
 0x464   : > { %23863 = vmatmul.mubr.f32.gmra.mrb[14].mxu0 %v35664_v42  ;;  %22668 = vmatprep.mubr.f32.mxu1 %v35665_v2 }
 0x465   : > { %23865 = vmatprep.mubr.f32.mxu0 %v35666_v41 }
 0x467   : > { %22669 = vmatmul.mubr.f32.gmra.mrb[18].mxu1 %v35667_v0 }
 0x468   : > { %23866 = vmatmul.mubr.f32.gmra.mrb[16].mxu0 %v35668_v22  ;;  %22671 = vmatprep.mubr.f32.mxu1 %v35669_v27 }
 0x469   : > { %23868 = vmatprep.mubr.f32.mxu0 %v35670_v35 }
 0x46b   : > { %22672 = vmatmul.mubr.f32.gmra.mrb[20].mxu1 %v35671_v56 }
 0x46c   : > { %23869 = vmatmul.mubr.f32.gmra.mrb[18].mxu0 %v35672_v14  ;;  %22674 = vmatprep.mubr.f32.mxu1 %v35673_v25 }
 0x46d   : > { %23871 = vmatprep.mubr.f32.mxu0 %v35674_v17 }
 0x46f   : > { %22675 = vmatmul.mubr.f32.gmra.mrb[22].mxu1 %v35675_v53 }
 0x470   : > { %23872 = vmatmul.mubr.f32.gmra.mrb[20].mxu0 %v35676_v3  ;;  %22677 = vmatprep.mubr.f32.mxu1 %v35677_v61 }
 0x471   : > { %23874 = vmatprep.mubr.f32.mxu0 %v35678_v49 }
 0x473   : > { %22678 = vmatmul.mubr.f32.gmra.mrb[24].mxu1 %v35679_v43 }
 0x474   : > { %23875 = vmatmul.mubr.f32.gmra.mrb[22].mxu0 %v35680_v12  ;;  %22680 = vmatprep.mubr.f32.mxu1 %v35681_v51  ;;  %v35690_v51 = vld [vmem:[#allocation108_spill] sm:$0xff] }
 0x475   : > { %23877 = vmatprep.mubr.f32.mxu0 %v35682_v39  ;;  %v30296_v39 = vand.u32 4294901760, %v30289_v37 }
 0x477   : > { %22681 = vmatmul.mubr.f32.gmra.mrb[26].mxu1 %v35683_v23  ;;  %35691 = vst [vmem:[#allocation20_spill] sm:$0xff] %v30296_v39  ;;  %v35692_v23 = vld [vmem:[#allocation114_spill] sm:$0xff]  ;;  %v14409_v7 = vsub.f32 %v30289_v37, %v30296_v39 }
 0x478   : > { %23878 = vmatmul.mubr.f32.gmra.mrb[24].mxu0 %v35684_v19  ;;  %22683 = vmatprep.mubr.f32.mxu1 %v35685_v16  ;;  %v35693_v19 = vld [vmem:[#allocation116_spill] sm:$0xff] }
 0x479   : > { %23880 = vmatprep.mubr.f32.mxu0 %v35686_v54  ;;  %v35694_v54 = vld [vmem:[#allocation124_spill] sm:$0xff] }
 0x47b   : > { %22684 = vmatmul.mubr.f32.gmra.mrb[28].mxu1 %v35687_v1 }
 0x47c   : > { %23881 = vmatmul.mubr.f32.gmra.mrb[26].mxu0 %v35688_v6  ;;  %22686 = vmatprep.mubr.f32.mxu1 %v35689_v38  ;;  %v35695_v6 = vld [vmem:[#allocation129_spill] sm:$0xff] }
 0x47d   : > { %23883 = vmatprep.mubr.f32.mxu0 %v35690_v51 }
 0x47f   : > { %22687 = vmatmul.mubr.f32.gmra.mrb[30].mxu1 %v35692_v23  ;;  %v30309_v23 = vand.u32 4294901760, %v14409_v7 }
 0x480   : > { %23884 = vmatmul.mubr.f32.gmra.mrb[28].mxu0 %v35693_v19  ;;  %22691 = vmatprep.mubr.f32.mxu1 %v35627_v46  ;;  %v6119_v46 = vld [vmem:[#allocation2 + $0x18] sm:$0xff] }
 0x481   : > { %23886 = vmatprep.mubr.f32.mxu0 %v35694_v54 }
 0x483   : > { %22692 = vmatmul.mubr.f32.vlgmr.msra.gmra.mrb[0].mxu1 %v35630_v13  ;;  %v6152_v13 = vsel %vm236_vm1, %v6119_v46, 0  ;;  %v6124_v46 = vld [vmem:[#allocation2 + $0x50] sm:$0xff] }
 0x484   : > { %23887 = vmatmul.mubr.f32.gmra.mrb[30].mxu0 %v35695_v6  ;;  %22694 = vmatprep.mubr.f32.mxu1 %v35632_v63  ;;  %v6120_v63 = vld [vmem:[#allocation2 + $0x20] sm:$0xff] }
 0x485   : > { %23891 = vmatprep.mubr.f32.mxu0 %v35633_v55  ;;  %22740 = vmatpush3.msra.mxu1 %v30222_v47  ;;  %v6121_v55 = vld [vmem:[#allocation2 + $0x30] sm:$0xff] }
 0x487   : > { %22695 = vmatmul.mubr.f32.gmra.mrb[2].mxu1 %v35635_v33  ;;  %v30326_v33 = vand.u32 4294901760, %v6152_v13 }
 0x488   : > { %23892 = vmatmul.mubr.f32.vlgmr.msra.gmra.mrb[0].mxu0 %v35636_v57  ;;  %22697 = vmatprep.mubr.f32.mxu1 %v35637_v32  ;;  %v6155_v57 = vsel %vm236_vm1, %v6120_v63, 0  ;;  %v13888_v32 = vld [vmem:[#allocation2 + $0x31] sm:$0xff] }
 0x489   : > { %23894 = vmatprep.mubr.f32.mxu0 %v35638_v28  ;;  %23940 = vmatpush3.msra.mxu0 %v30231_v45  ;;  %35696 = vst [vmem:[#allocation45_spill] sm:$0xff] %v30326_v33  ;;  %v6158_v28 = vsel %vm236_vm1, %v6121_v55, 0 }
 0x48a   : > { %23989 = vmatprep.subr.mxu0 %v30309_v23 }
 0x48b   : > { %22698 = vmatmul.mubr.f32.gmra.mrb[4].mxu1 %v35639_v60  ;;  %v30332_v60 = vand.u32 4294901760, %v6155_v57 }
 0x48c   : > { %23895 = vmatmul.mubr.f32.gmra.mrb[2].mxu0 %v35640_v50  ;;  %22700 = vmatprep.mubr.f32.mxu1 %v35641_v34  ;;  %v6122_v50 = vld [vmem:[#allocation2 + $0x38] sm:$0xff]  ;;  %v30337_v34 = vsub.f32 %v6152_v13, %v30326_v33 }
 0x48d   : > { %23897 = vmatprep.mubr.f32.mxu0 %v35642_v44  ;;  %35697 = vst [vmem:[#allocation7_spill] sm:$0xff] %v30332_v60  ;;  %v13921_v44 = vsel %vm236_vm1, %v13888_v32, 0  ;;  %v13891_v13 = vld [vmem:[#allocation2 + $0x51] sm:$0xff] }
 0x48e   : > { %35698 = vst [vmem:[#allocation10_spill] sm:$0xff] %v30337_v34  ;;  %v30355_v7 = vand.u32 4294901760, %v13921_v44 }
 0x48f   : > { %22701 = vmatmul.mubr.f32.gmra.mrb[6].mxu1 %v35643_v18  ;;  %v13889_v18 = vld [vmem:[#allocation2 + $0x39] sm:$0xff] }
 0x490   : > { %23898 = vmatmul.mubr.f32.gmra.mrb[4].mxu0 %v35644_v9  ;;  %22703 = vmatprep.mubr.f32.mxu1 %v35645_v24  ;;  %v30342_v9 = vsub.f32 %v30213_v15, %v30222_v47  ;;  %v30344_v24 = vand.u32 4294901760, %v6158_v28  ;;  %35702 = vst [vmem:[#allocation46_spill] sm:$0xff] %v30355_v7  ;;  %v13924_v15 = vsel %vm236_vm1, %v13889_v18, 0  ;;  %v30380_v39 = vsub.f32 %v13921_v44, %v30355_v7  ;;  %v6126_v44 = vld [vmem:[#allocation2 + $0x68] sm:$0xff]  ;;  %v13894_v47 = vld [vmem:[#allocation2 + $0x79] sm:$0xff] }
 0x491   : > { %23900 = vmatprep.mubr.f32.mxu0 %v35646_v4  ;;  %v6161_v4 = vsel %vm236_vm1, %v6122_v50, 0  ;;  %v6125_v50 = vld [vmem:[#allocation2 + $0x60] sm:$0xff]  ;;  %v30370_v18 = vand.u32 4294901760, %v13924_v15 }
 0x492   : > { %35699 = vst [vmem:[#allocation42_spill] sm:$0xff] %v30344_v24  ;;  %v30366_v55 = vand.u32 4294901760, %v6161_v4  ;;  %35706 = vst [vmem:[#allocation56_spill] sm:$0xff] %v30380_v39 }
 0x493   : > { %22704 = vmatmul.mubr.f32.gmra.mrb[8].mxu1 %v35647_v29  ;;  %v6123_v29 = vld [vmem:[#allocation2 + $0x48] sm:$0xff]  ;;  %35705 = vst [vmem:[#allocation54_spill] sm:$0xff] %v30370_v18 }
 0x494   : > { %23901 = vmatmul.mubr.f32.gmra.mrb[6].mxu0 %v35648_v59  ;;  %22706 = vmatprep.mubr.f32.mxu1 %v35649_v10  ;;  %v13890_v59 = vld [vmem:[#allocation2 + $0x49] sm:$0xff]  ;;  %v30348_v10 = vand.u32 4294901760, %v30342_v9  ;;  %35704 = vst [vmem:[#allocation21_spill] sm:$0xff] %v30366_v55 }
 0x495   : > { %23903 = vmatprep.mubr.f32.mxu0 %v35650_v40  ;;  %v30353_v40 = vsub.f32 %v6155_v57, %v30332_v60  ;;  %v6164_v57 = vsel %vm236_vm1, %v6123_v29, 0  ;;  %v13927_v32 = vsel %vm236_vm1, %v13890_v59, 0 }
 0x496   : > { %35700 = vst [vmem:[#allocation22_spill] sm:$0xff] %v30348_v10  ;;  %v30384_v29 = vand.u32 4294901760, %v6164_v57  ;;  %v30386_v59 = vand.u32 4294901760, %v13927_v32 }
 0x497   : > { %22707 = vmatmul.mubr.f32.gmra.mrb[10].mxu1 %v35651_v31  ;;  %35701 = vst [vmem:[#allocation34_spill] sm:$0xff] %v30353_v40  ;;  %v6640_v31 = vsub.f32 %v30342_v9, %v30348_v10  ;;  %v35714_v45 = vand.u32 4294901760, %v30353_v40 }
 0x498   : > { %23904 = vmatmul.mubr.f32.gmra.mrb[8].mxu0 %v35652_v48  ;;  %22709 = vmatprep.mubr.f32.mxu1 %v35653_v20  ;;  %v30364_v48 = vsub.f32 %v6158_v28, %v30344_v24  ;;  %v6167_v20 = vsel %vm236_vm1, %v6124_v46, 0  ;;  %35707 = vst [vmem:[#allocation58_spill] sm:$0xff] %v30384_v29  ;;  %35708 = vst [vmem:[#allocation67_spill] sm:$0xff] %v30386_v59  ;;  %v6170_v46 = vsel %vm236_vm1, %v6125_v50, 0  ;;  %v13893_v28 = vld [vmem:[#allocation2 + $0x69] sm:$0xff] }
 0x499   : > { %23906 = vmatprep.mubr.f32.mxu0 %v35654_v5  ;;  %v13930_v5 = vsel %vm236_vm1, %v13891_v13, 0  ;;  %v30374_v63 = vand.u32 4294901760, %v6640_v31  ;;  %v13892_v13 = vld [vmem:[#allocation2 + $0x61] sm:$0xff]  ;;  %v30404_v50 = vsub.f32 %v13924_v15, %v30370_v18  ;;  %v30414_v7 = vand.u32 4294901760, %v6170_v46 }
 0x49a   : > { %35703 = vst [vmem:[#allocation49_spill] sm:$0xff] %v30364_v48  ;;  %v30394_v31 = vand.u32 4294901760, %v13930_v5  ;;  %v30420_v15 = vsub.f32 %v6164_v57, %v30384_v29  ;;  %v35720_v57 = vand.u32 4294901760, %v30364_v48 }
 0x49b   : > { %22710 = vmatmul.mubr.f32.gmra.mrb[12].mxu1 %v35655_v21  ;;  %v30390_v21 = vsub.f32 %v6161_v4, %v30366_v55  ;;  %22789 = vmatprep.subr.mxu1 %v30374_v63  ;;  %35713 = vst [vmem:[#allocation79_spill] sm:$0xff] %v30404_v50  ;;  %v6127_v4 = vld [vmem:[#allocation2 + $0x78] sm:$0xff]  ;;  %v30411_v55 = vsub.f32 %v30353_v40, %v35714_v45  ;;  %35715 = vst [vmem:[#allocation82_spill] sm:$0xff] %v30414_v7  ;;  %v13936_v45 = vsel %vm236_vm1, %v13893_v28, 0 }
 0x49c   : > { %23907 = vmatmul.mubr.f32.gmra.mrb[10].mxu0 %v35656_v52  ;;  %22712 = vmatprep.mubr.f32.mxu1 %v35657_v62  ;;  %v30392_v52 = vand.u32 4294901760, %v6167_v20  ;;  %35711 = vst [vmem:[#allocation70_spill] sm:$0xff] %v30394_v31  ;;  %v35712_v62 = vand.u32 4294901760, %v30337_v34  ;;  %35716 = vst [vmem:[#allocation87_spill] sm:$0xff] %v30420_v15 }
 0x49d   : > { %23909 = vmatprep.mubr.f32.mxu0 %v35658_v58  ;;  %35709 = vst [vmem:[#allocation68_spill] sm:$0xff] %v30390_v21  ;;  %v35727_v40 = vand.u32 4294901760, %v30390_v21 }
 0x49e   : > { %35710 = vst [vmem:[#allocation69_spill] sm:$0xff] %v30392_v52  ;;  %v30400_v58 = vsub.f32 %v30337_v34, %v35712_v62  ;;  %v13933_v62 = vsel %vm236_vm1, %v13892_v13, 0  ;;  %v30429_v10 = vsub.f32 %v6167_v20, %v30392_v52  ;;  %v30432_v13 = vsub.f32 %v13930_v5, %v30394_v31 }
 0x49f   : > { %22713 = vmatmul.mubr.f32.gmra.mrb[14].mxu1 %v35659_v11  ;;  %v30423_v11 = vsub.f32 %v13927_v32, %v30386_v59  ;;  %v30439_v32 = vsub.f32 %v30364_v48, %v35720_v57  ;;  %v30442_v28 = vand.u32 4294901760, %v13933_v62  ;;  %v30448_v5 = vsub.f32 %v6170_v46, %v30414_v7  ;;  %v6128_v57 = vld [vmem:[#allocation2 + $0x80] sm:$0xff] }
 0x4a0   : > { %23910 = vmatmul.mubr.f32.gmra.mrb[12].mxu0 %v35660_v30  ;;  %22715 = vmatprep.mubr.f32.mxu1 %v35661_v26  ;;  %v6173_v30 = vsel %vm236_vm1, %v6126_v44, 0  ;;  %35718 = vst [vmem:[#allocation105_spill] sm:$0xff] %v30429_v10  ;;  %35719 = vst [vmem:[#allocation111_spill] sm:$0xff] %v30432_v13  ;;  %v6176_v26 = vsel %vm236_vm1, %v6127_v4, 0  ;;  %v35725_v44 = vand.u32 4294901760, %v30380_v39  ;;  %v13895_v48 = vld [vmem:[#allocation2 + $0x81] sm:$0xff]  ;;  %v30468_v34 = vsub.f32 %v30390_v21, %v35727_v40 }
 0x4a1   : > { %23912 = vmatprep.mubr.f32.mxu0 %v35662_v8  ;;  %35717 = vst [vmem:[#allocation100_spill] sm:$0xff] %v30423_v11  ;;  %35721 = vst [vmem:[#allocation88_spill] sm:$0xff] %v30442_v28  ;;  %v30450_v4 = vand.u32 4294901760, %v6173_v30  ;;  %v30452_v8 = vand.u32 4294901760, %v13936_v45  ;;  %v30463_v46 = vand.u32 4294901760, %v6176_v26  ;;  %v13939_v7 = vsel %vm236_vm1, %v13894_v47, 0 }
 0x4a2   : > { %35722 = vst [vmem:[#allocation89_spill] sm:$0xff] %v30448_v5  ;;  %v6179_v31 = vsel %vm236_vm1, %v6128_v57, 0  ;;  %v13899_v21 = vld [vmem:[#allocation2 + $0xb1] sm:$0xff] }
 0x4a3   : > { %22716 = vmatmul.mubr.f32.gmra.mrb[16].mxu1 %v35663_v36  ;;  %35723 = vst [vmem:[#allocation90_spill] sm:$0xff] %v30450_v4  ;;  %35724 = vst [vmem:[#allocation91_spill] sm:$0xff] %v30452_v8  ;;  %v30459_v36 = vsub.f32 %v30380_v39, %v35725_v44  ;;  %v30480_v39 = vsub.f32 %v13933_v62, %v30442_v28  ;;  %v30487_v47 = vsub.f32 %v6173_v30, %v30450_v4  ;;  %v35766_v4 = vld [vmem:[#allocation121_spill] sm:$0xff] }
 0x4a4   : > { %23913 = vmatmul.mubr.f32.gmra.mrb[14].mxu0 %v35664_v42  ;;  %22718 = vmatprep.mubr.f32.mxu1 %v35665_v2  ;;  %35726 = vst [vmem:[#allocation117_spill] sm:$0xff] %v30463_v46  ;;  %v34242_v2 = vand.u32 4294901760, %v30429_v10  ;;  %v35728_v42 = vand.u32 4294901760, %v30404_v50  ;;  %v30490_v44 = vsub.f32 %v13936_v45, %v30452_v8  ;;  %v35732_v62 = vand.u32 4294901760, %v30420_v15 }
 0x4a5   : > { %23915 = vmatprep.mubr.f32.mxu0 %v35666_v41  ;;  %v34243_v41 = vand.u32 4294901760, %v30432_v13  ;;  %35729 = vst [vmem:[#allocation17_spill] sm:$0xff] %v30480_v39  ;;  %35730 = vst [vmem:[#allocation24_spill] sm:$0xff] %v30487_v47  ;;  %v30506_v30 = vsub.f32 %v6176_v26, %v30463_v46  ;;  %v30508_v45 = vand.u32 4294901760, %v13939_v7  ;;  %v6132_v26 = vld [vmem:[#allocation2 + $0xb0] sm:$0xff] }
 0x4a6   : > { %v30477_v20 = vsub.f32 %v30404_v50, %v35728_v42  ;;  %35731 = vst [vmem:[#allocation28_spill] sm:$0xff] %v30490_v44  ;;  %v13942_v42 = vsel %vm236_vm1, %v13895_v48, 0  ;;  %v6129_v48 = vld [vmem:[#allocation2 + $0x90] sm:$0xff] }
 0x4a7   : > { %22719 = vmatmul.mubr.f32.gmra.mrb[18].mxu1 %v35667_v0  ;;  %v30498_v0 = vsub.f32 %v30420_v15, %v35732_v62  ;;  %35734 = vst [vmem:[#allocation29_spill] sm:$0xff] %v30506_v30  ;;  %35735 = vst [vmem:[#allocation33_spill] sm:$0xff] %v30508_v45  ;;  %v30519_v62 = vsub.f32 %v30432_v13, %v34243_v41  ;;  %v30526_v15 = vand.u32 4294901760, %v13942_v42  ;;  %v6182_v40 = vsel %vm236_vm1, %v6129_v48, 0  ;;  %v13898_v50 = vld [vmem:[#allocation2 + $0xa9] sm:$0xff] }
 0x4a8   : > { %23916 = vmatmul.mubr.f32.gmra.mrb[16].mxu0 %v35668_v22  ;;  %22721 = vmatprep.mubr.f32.mxu1 %v35669_v27  ;;  %v35733_v22 = vand.u32 4294901760, %v30423_v11  ;;  %v13896_v27 = vld [vmem:[#allocation2 + $0x91] sm:$0xff] }
 0x4a9   : > { %23918 = vmatprep.mubr.f32.mxu0 %v35670_v35  ;;  %v30514_v35 = vsub.f32 %v30429_v10, %v34242_v2  ;;  %35737 = vst [vmem:[#allocation9_spill] sm:$0xff] %v30526_v15  ;;  %v35738_v2 = vand.u32 4294901760, %v30448_v5  ;;  %v6130_v10 = vld [vmem:[#allocation2 + $0x98] sm:$0xff] }
 0x4aa   : > { %v30503_v57 = vsub.f32 %v30423_v11, %v35733_v22  ;;  %v30521_v22 = vand.u32 4294901760, %v6179_v31  ;;  %v30558_v11 = vsub.f32 %v13942_v42, %v30526_v15  ;;  %v6185_v13 = vsel %vm236_vm1, %v6130_v10, 0 }
 0x4ab   : > { %22722 = vmatmul.mubr.f32.gmra.mrb[20].mxu1 %v35671_v56  ;;  %v30533_v41 = vsub.f32 %v30448_v5, %v35738_v2  ;;  %v30544_v2 = vsub.f32 %v13939_v7, %v30508_v45  ;;  %v13897_v5 = vld [vmem:[#allocation2 + $0x99] sm:$0xff]  ;;  %v35741_v56 = vand.u32 4294901760, %v30480_v39  ;;  %v30560_v7 = vand.u32 4294901760, %v6182_v40 }
 0x4ac   : > { %35736 = vst [vmem:[#allocation41_spill] sm:$0xff] %v30521_v22  ;;  %23919 = vmatmul.mubr.f32.gmra.mrb[18].mxu0 %v35672_v14  ;;  %22724 = vmatprep.mubr.f32.mxu1 %v35673_v25  ;;  %v30549_v48 = vsub.f32 %v6179_v31, %v30521_v22  ;;  %v13945_v25 = vsel %vm236_vm1, %v13896_v27, 0  ;;  %35742 = vst [vmem:[#allocation38_spill] sm:$0xff] %v30558_v11  ;;  %v35744_v27 = vand.u32 4294901760, %v30487_v47  ;;  %v35745_v42 = vand.u32 4294901760, %v30490_v44  ;;  %v13901_v22 = vld [vmem:[#allocation2 + $0xc9] sm:$0xff] }
 0x4ad   : > { %23921 = vmatprep.mubr.f32.mxu0 %v35674_v17  ;;  %35739 = vst [vmem:[#allocation15_spill] sm:$0xff] %v30544_v2  ;;  %v6131_v17 = vld [vmem:[#allocation2 + $0xa8] sm:$0xff]  ;;  %v30555_v14 = vsub.f32 %v30480_v39, %v35741_v56  ;;  %35743 = vst [vmem:[#allocation51_spill] sm:$0xff] %v30560_v7  ;;  %v13948_v10 = vsel %vm236_vm1, %v13897_v5, 0  ;;  %v30585_v31 = vand.u32 4294901760, %v13945_v25  ;;  %v13951_v5 = vsel %vm236_vm1, %v13898_v50, 0 }
 0x4ae   : > { %35740 = vst [vmem:[#allocation26_spill] sm:$0xff] %v30549_v48  ;;  %v30569_v56 = vsub.f32 %v30487_v47, %v35744_v27  ;;  %v30574_v39 = vsub.f32 %v30490_v44, %v35745_v42  ;;  %v6188_v47 = vsel %vm236_vm1, %v6131_v17, 0  ;;  %v30589_v44 = vand.u32 4294901760, %v6185_v13  ;;  %v13900_v17 = vld [vmem:[#allocation2 + $0xc1] sm:$0xff] }
 0x4af   : > { %22725 = vmatmul.mubr.f32.gmra.mrb[22].mxu1 %v35675_v53  ;;  %v35746_v53 = vand.u32 4294901760, %v30506_v30  ;;  %35747 = vst [vmem:[#allocation63_spill] sm:$0xff] %v30585_v31  ;;  %v30595_v15 = vsub.f32 %v6182_v40, %v30560_v7  ;;  %v13954_v27 = vsel %vm236_vm1, %v13899_v21, 0  ;;  %v35753_v40 = vld [vmem:[#allocation95_spill] sm:$0xff]  ;;  %v30611_v21 = vsub.f32 %v13945_v25, %v30585_v31  ;;  %v6134_v42 = vld [vmem:[#allocation2 + $0xc8] sm:$0xff] }
 0x4b0   : > { %23922 = vmatmul.mubr.f32.gmra.mrb[20].mxu0 %v35676_v3  ;;  %22727 = vmatprep.mubr.f32.mxu1 %v35677_v61  ;;  %35748 = vst [vmem:[#allocation76_spill] sm:$0xff] %v30589_v44  ;;  %v6191_v61 = vsel %vm236_vm1, %v6132_v26, 0  ;;  %v30605_v26 = vand.u32 4294901760, %v6188_v47  ;;  %v35757_v50 = vand.u32 4294901760, %v30544_v2  ;;  %v30628_v25 = vsub.f32 %v6185_v13, %v30589_v44  ;;  %v6135_v31 = vld [vmem:[#allocation2 + $0xd8] sm:$0xff] }
 0x4b1   : > { %23924 = vmatprep.mubr.f32.mxu0 %v35678_v49  ;;  %v30582_v3 = vsub.f32 %v30506_v30, %v35746_v53  ;;  %35749 = vst [vmem:[#allocation77_spill] sm:$0xff] %v30595_v15  ;;  %v30597_v53 = vand.u32 4294901760, %v13948_v10  ;;  %v6133_v49 = vld [vmem:[#allocation2 + $0xc0] sm:$0xff]  ;;  %v35752_v30 = vld [vmem:[#allocation94_spill] sm:$0xff]  ;;  %35754 = vst [vmem:[#allocation84_spill] sm:$0xff] %v30611_v21  ;;  %v30630_v7 = vand.u32 4294901760, %v13954_v27 }
 0x4b2   : > { %35751 = vst [vmem:[#allocation83_spill] sm:$0xff] %v30605_v26  ;;  %v30620_v45 = vsub.f32 %v30544_v2, %v35757_v50  ;;  %35759 = vst [vmem:[#allocation97_spill] sm:$0xff] %v30628_v25  ;;  %v35761_v46 = vand.u32 4294901760, %v30558_v11  ;;  %v6194_v2 = vsel %vm236_vm1, %v6133_v49, 0  ;;  %v30645_v13 = vsub.f32 %v6188_v47, %v30605_v26 }
 0x4b3   : > { %35750 = vst [vmem:[#allocation80_spill] sm:$0xff] %v30597_v53  ;;  %22728 = vmatmul.mubr.f32.gmra.mrb[24].mxu1 %v35679_v43  ;;  %v30613_v43 = vand.u32 4294901760, %v13951_v5  ;;  %35760 = vst [vmem:[#allocation101_spill] sm:$0xff] %v30630_v7  ;;  %v30639_v50 = vsub.f32 %v13948_v10, %v30597_v53  ;;  %v13957_v44 = vsel %vm236_vm1, %v13900_v17, 0  ;;  %v6197_v28 = vsel %vm236_vm1, %v6134_v42, 0 }
 0x4b4   : > { %23925 = vmatmul.mubr.f32.gmra.mrb[22].mxu0 %v35680_v12  ;;  %22730 = vmatprep.mubr.f32.mxu1 %v35752_v30  ;;  %v30615_v12 = vand.u32 4294901760, %v6191_v61  ;;  %v35758_v30 = vand.u32 4294901760, %v30549_v48  ;;  %v30635_v8 = vsub.f32 %v30558_v11, %v35761_v46  ;;  %35765 = vst [vmem:[#allocation53_spill] sm:$0xff] %v30645_v13  ;;  %v13960_v46 = vsel %vm236_vm1, %v13901_v22, 0 }
 0x4b5   : > { %23927 = vmatprep.mubr.f32.mxu0 %v35753_v40  ;;  %35755 = vst [vmem:[#allocation86_spill] sm:$0xff] %v30613_v43  ;;  %35762 = vst [vmem:[#allocation104_spill] sm:$0xff] %v30639_v50  ;;  %v30654_v49 = vsub.f32 %v13951_v5, %v30613_v43  ;;  %v6200_v47 = vsel %vm236_vm1, %v6135_v31, 0  ;;  %v30663_v22 = vsub.f32 %v13954_v27, %v30630_v7  ;;  %v30670_v5 = vand.u32 4294901760, %v6197_v28  ;;  %v35774_v31 = vld [vmem:[#allocation128_spill] sm:$0xff] }
 0x4b6   : > { %35756 = vst [vmem:[#allocation96_spill] sm:$0xff] %v30615_v12  ;;  %v30625_v40 = vsub.f32 %v30549_v48, %v35758_v30  ;;  %v35763_v30 = vld [vmem:[#allocation106_spill] sm:$0xff]  ;;  %v35764_v48 = vld [vmem:[#allocation115_spill] sm:$0xff]  ;;  %v30672_v10 = vand.u32 4294901760, %v13960_v46  ;;  %v35775_v17 = vand.u32 4294901760, %v30595_v15  ;;  %v30683_v11 = vand.u32 4294901760, %v6200_v47 }
 0x4b7   : > { %22731 = vmatmul.mubr.f32.gmra.mrb[26].mxu1 %v35763_v30  ;;  %35767 = vst [vmem:[#allocation55_spill] sm:$0xff] %v30654_v49  ;;  %35769 = vst [vmem:[#allocation62_spill] sm:$0xff] %v30663_v22  ;;  %v30668_v30 = vand.u32 4294901760, %v13957_v44  ;;  %v6136_v7 = vld [vmem:[#allocation2 + $0xe0] sm:$0xff] }
 0x4b8   : > { %23928 = vmatmul.mubr.f32.gmra.mrb[24].mxu0 %v35764_v48  ;;  %22733 = vmatprep.mubr.f32.mxu1 %v35685_v16  ;;  %v30657_v48 = vsub.f32 %v6191_v61, %v30615_v12  ;;  %v30665_v16 = vand.u32 4294901760, %v6194_v2  ;;  %35772 = vst [vmem:[#allocation113_spill] sm:$0xff] %v30670_v5  ;;  %35773 = vst [vmem:[#allocation120_spill] sm:$0xff] %v30672_v10  ;;  %v13902_v61 = vld [vmem:[#allocation2 + $0xd9] sm:$0xff]  ;;  %v30679_v27 = vsub.f32 %v30595_v15, %v35775_v17 }
 0x4b9   : > { %23930 = vmatprep.mubr.f32.mxu0 %v35766_v4  ;;  %35771 = vst [vmem:[#allocation125_spill] sm:$0xff] %v30668_v30  ;;  %35776 = vst [vmem:[#allocation25_spill] sm:$0xff] %v30683_v11  ;;  %v35778_v4 = vand.u32 4294901760, %v30628_v25  ;;  %v30706_v43 = vsub.f32 %v13957_v44, %v30668_v30  ;;  %v30712_v42 = vsub.f32 %v13960_v46, %v30672_v10  ;;  %v6203_v17 = vsel %vm236_vm1, %v6136_v7, 0  ;;  %v6137_v7 = vld [vmem:[#allocation2 + $0xf0] sm:$0xff] }
 0x4ba   : > { %35768 = vst [vmem:[#allocation61_spill] sm:$0xff] %v30657_v48  ;;  %35770 = vst [vmem:[#allocation122_spill] sm:$0xff] %v30665_v16  ;;  %v30729_v46 = vsub.f32 %v6200_v47, %v30683_v11  ;;  %v35793_v11 = vand.u32 4294901760, %v30411_v55 }
 0x4bb   : > { %22734 = vmatmul.mubr.f32.gmra.mrb[28].mxu1 %v35687_v1  ;;  %v30698_v15 = vsub.f32 %v30628_v25, %v35778_v4  ;;  %v13963_v1 = vsel %vm236_vm1, %v13902_v61, 0  ;;  %35780 = vst [vmem:[#allocation37_spill] sm:$0xff] %v30706_v43  ;;  %35782 = vst [vmem:[#allocation52_spill] sm:$0xff] %v30712_v42  ;;  %v13903_v4 = vld [vmem:[#allocation2 + $0xe1] sm:$0xff]  ;;  %v35783_v25 = vld [vmem:[#allocation114_spill] sm:$0xff]  ;;  %v35784_v61 = vand.u32 4294901760, %v30639_v50 }
 0x4bc   : > { %23931 = vmatmul.mubr.f32.gmra.mrb[26].mxu0 %v35774_v31  ;;  %22736 = vmatprep.mubr.f32.mxu1 %v35689_v38  ;;  %v35777_v31 = vand.u32 4294901760, %v30611_v21  ;;  %35786 = vst [vmem:[#allocation8_spill] sm:$0xff] %v30729_v46  ;;  %v30745_v47 = vand.u32 4294901760, %v13963_v1 }
 0x4bd   : > { %23933 = vmatprep.mubr.f32.mxu0 %v35690_v51  ;;  %v30702_v51 = vsub.f32 %v6194_v2, %v30665_v16  ;;  %v30721_v44 = vsub.f32 %v30639_v50, %v35784_v61  ;;  %v35788_v2 = vand.u32 4294901760, %v30654_v49  ;;  %v35789_v50 = vand.u32 4294901760, %v30657_v48 }
 0x4be   : > { %v30691_v12 = vsub.f32 %v30611_v21, %v35777_v31  ;;  %v30709_v31 = vsub.f32 %v6197_v28, %v30670_v5  ;;  %v35785_v28 = vand.u32 4294901760, %v30645_v13  ;;  %35790 = vst [vmem:[#allocation18_spill] sm:$0xff] %v30745_v47  ;;  %v30773_v55 = vsub.f32 %v13963_v1, %v30745_v47  ;;  %v13907_v47 = vld [vmem:[#allocation2 + $0x111] sm:$0xff] }
 0x4bf   : > { %35779 = vst [vmem:[#allocation31_spill] sm:$0xff] %v30702_v51  ;;  %22737 = vmatmul.mubr.f32.gmra.mrb[30].mxu1 %v35783_v25  ;;  %v35787_v25 = vand.u32 4294901760, %v30400_v58  ;;  %v30738_v61 = vsub.f32 %v30654_v49, %v35788_v2  ;;  %v13904_v2 = vld [vmem:[#allocation2 + $0xf1] sm:$0xff]  ;;  %v35794_v49 = vand.u32 4294901760, %v30439_v32  ;;  %v35800_v1 = vand.u32 4294901760, %v30702_v51 }
 0x4c0   : > { %35781 = vst [vmem:[#allocation50_spill] sm:$0xff] %v30709_v31  ;;  %23934 = vmatmul.mubr.f32.gmra.mrb[28].mxu0 %v35693_v19  ;;  %v30726_v38 = vsub.f32 %v30645_v13, %v35785_v28  ;;  %v30743_v28 = vsub.f32 %v30657_v48, %v35789_v50  ;;  %v35791_v13 = vand.u32 4294901760, %v30663_v22  ;;  %v13966_v19 = vsel %vm236_vm1, %v13903_v4, 0  ;;  %35796 = vst [vmem:[#allocation23_spill] sm:$0xff] %v30773_v55 }
 0x4c1   : > { %22741 = vmatprep.mubr.f32.mxu1 %v35787_v25  ;;  %23936 = vmatprep.mubr.f32.mxu0 %v35694_v54  ;;  %v30753_v25 = vand.u32 4294901760, %v6203_v17  ;;  %v34318_v21 = vand.u32 4294901760, %v30709_v31  ;;  %v6206_v48 = vsel %vm236_vm1, %v6137_v7, 0  ;;  %v35795_v50 = vand.u32 4294901760, %v30459_v36  ;;  %v6138_v54 = vld [vmem:[#allocation2 + $0xf8] sm:$0xff] }
 0x4c2   : > { %v30750_v58 = vsub.f32 %v30663_v22, %v35791_v13  ;;  %v13905_v13 = vld [vmem:[#allocation2 + $0xf9] sm:$0xff]  ;;  %v30783_v36 = vand.u32 4294901760, %v6206_v48  ;;  %v30789_v7 = vsub.f32 %v30702_v51, %v35800_v1  ;;  %v35802_v22 = vand.u32 4294901760, %v30712_v42 }
 0x4c3   : > { %35792 = vst [vmem:[#allocation19_spill] sm:$0xff] %v30753_v25  ;;  %22742 = vmatmul.mubr.f32.vlgmr.msra.gmra.mrb[0].mxu1 %v35793_v11  ;;  %v13969_v11 = vsel %vm236_vm1, %v13904_v2, 0  ;;  %v30781_v32 = vsub.f32 %v6203_v17, %v30753_v25  ;;  %v35801_v2 = vand.u32 4294901760, %v30706_v43  ;;  %v30799_v17 = vsub.f32 %v30709_v31, %v34318_v21 }
 0x4c4   : > { %23937 = vmatmul.mubr.f32.gmra.mrb[30].mxu0 %v35695_v6  ;;  %22744 = vmatprep.mubr.f32.mxu1 %v35794_v49  ;;  %v30775_v6 = vand.u32 4294901760, %v13966_v19  ;;  %35799 = vst [vmem:[#allocation57_spill] sm:$0xff] %v30783_v36  ;;  %v6139_v49 = vld [vmem:[#allocation2 + $0x108] sm:$0xff]  ;;  %v30804_v25 = vsub.f32 %v30712_v42, %v35802_v22  ;;  %v35803_v1 = vand.u32 4294901760, %v30468_v34  ;;  %v30816_v31 = vand.u32 4294901760, %v13969_v11 }
 0x4c5   : > { %23941 = vmatprep.mubr.f32.mxu0 %v35795_v50  ;;  %35798 = vst [vmem:[#allocation36_spill] sm:$0xff] %v30781_v32  ;;  %v13906_v50 = vld [vmem:[#allocation2 + $0x109] sm:$0xff]  ;;  %22790 = vmatpush3.msra.mxu1 %v30374_v63  ;;  %v30794_v4 = vsub.f32 %v30706_v43, %v35801_v2  ;;  %v35804_v2 = vand.u32 4294901760, %v30477_v20  ;;  %v35805_v43 = vand.u32 4294901760, %v30729_v46  ;;  %v6209_v22 = vsel %vm236_vm1, %v6138_v54, 0 }
 0x4c6   : > { %35797 = vst [vmem:[#allocation32_spill] sm:$0xff] %v30775_v6  ;;  %v6140_v63 = vld [vmem:[#allocation2 + $0x110] sm:$0xff]  ;;  %22839 = vmatprep.subr.mxu1 %v30342_v9  ;;  %35806 = vst [vmem:[#allocation59_spill] sm:$0xff] %v30816_v31  ;;  %v13972_v42 = vsel %vm236_vm1, %v13905_v13, 0  ;;  %v35807_v51 = vand.u32 4294901760, %v30498_v0  ;;  %v35808_v34 = vand.u32 4294901760, %v30503_v57  ;;  %v30832_v54 = vsub.f32 %v6206_v48, %v30783_v36 }
 0x4c7   : > { %22745 = vmatmul.mubr.f32.gmra.mrb[2].mxu1 %v35803_v1  ;;  %v30814_v21 = vsub.f32 %v30729_v46, %v35805_v43  ;;  %v34329_v20 = vand.u32 4294901760, %v30773_v55  ;;  %v30826_v1 = vsub.f32 %v13966_v19, %v30775_v6  ;;  %v6212_v43 = vsel %vm236_vm1, %v6139_v49, 0  ;;  %v6141_v19 = vld [vmem:[#allocation2 + $0x120] sm:$0xff]  ;;  %v6143_v6 = vld [vmem:[#allocation2 + $0x138] sm:$0xff] }
 0x4c8   : > { %23942 = vmatmul.mubr.f32.vlgmr.msra.gmra.mrb[0].mxu0 %v35804_v2  ;;  %22747 = vmatprep.mubr.f32.mxu1 %v35807_v51  ;;  %v13975_v2 = vsel %vm236_vm1, %v13906_v50, 0  ;;  %35810 = vst [vmem:[#allocation66_spill] sm:$0xff] %v30832_v54  ;;  %v6215_v0 = vsel %vm236_vm1, %v6140_v63, 0  ;;  %v13978_v57 = vsel %vm236_vm1, %v13907_v47, 0  ;;  %v30839_v13 = vand.u32 4294901760, %v6209_v22  ;;  %v13908_v51 = vld [vmem:[#allocation2 + $0x121] sm:$0xff] }
 0x4c9   : > { %23944 = vmatprep.mubr.f32.mxu0 %v35808_v34  ;;  %35809 = vst [vmem:[#allocation60_spill] sm:$0xff] %v30826_v1  ;;  %23990 = vmatpush3.msra.mxu0 %v30309_v23  ;;  %v30841_v49 = vand.u32 4294901760, %v13972_v42  ;;  %v35813_v50 = vand.u32 4294901760, %v30514_v35  ;;  %v35814_v48 = vand.u32 4294901760, %v30519_v62  ;;  %v30850_v47 = vsub.f32 %v13969_v11, %v30816_v31  ;;  %v6142_v23 = vld [vmem:[#allocation2 + $0x128] sm:$0xff] }
 0x4ca   : > { %35811 = vst [vmem:[#allocation73_spill] sm:$0xff] %v30839_v13  ;;  %24039 = vmatprep.subr.mxu0 %v30289_v37  ;;  %v30852_v63 = vand.u32 4294901760, %v6212_v43  ;;  %v30854_v34 = vand.u32 4294901760, %v13975_v2  ;;  %v35818_v46 = vand.u32 4294901760, %v30533_v41  ;;  %v35819_v35 = vand.u32 4294901760, %v30555_v14  ;;  %v13909_v31 = vld [vmem:[#allocation2 + $0x129] sm:$0xff] }
 0x4cb   : > { %35812 = vst [vmem:[#allocation75_spill] sm:$0xff] %v30841_v49  ;;  %22748 = vmatmul.mubr.f32.gmra.mrb[4].mxu1 %v35813_v50  ;;  %35815 = vst [vmem:[#allocation78_spill] sm:$0xff] %v30850_v47  ;;  %v30863_v62 = vsub.f32 %v30773_v55, %v34329_v20  ;;  %v30866_v50 = vand.u32 4294901760, %v6215_v0  ;;  %v30879_v20 = vsub.f32 %v6209_v22, %v30839_v13  ;;  %v6218_v55 = vsel %vm236_vm1, %v6141_v19, 0 }
 0x4cc   : > { %23945 = vmatmul.mubr.f32.gmra.mrb[2].mxu0 %v35814_v48  ;;  %35816 = vst [vmem:[#allocation92_spill] sm:$0xff] %v30852_v63  ;;  %35817 = vst [vmem:[#allocation98_spill] sm:$0xff] %v30854_v34  ;;  %22750 = vmatprep.mubr.f32.mxu1 %v35818_v46  ;;  %v30868_v48 = vand.u32 4294901760, %v13978_v57  ;;  %v35822_v46 = vand.u32 4294901760, %v30781_v32  ;;  %v30882_v11 = vsub.f32 %v13972_v42, %v30841_v49  ;;  %v13981_v36 = vsel %vm236_vm1, %v13908_v51, 0 }
 0x4cd   : > { %23947 = vmatprep.mubr.f32.mxu0 %v35819_v35  ;;  %35820 = vst [vmem:[#allocation99_spill] sm:$0xff] %v30866_v50  ;;  %35823 = vst [vmem:[#allocation103_spill] sm:$0xff] %v30879_v20  ;;  %v35825_v41 = vand.u32 4294901760, %v30569_v56  ;;  %v30892_v22 = vsub.f32 %v6212_v43, %v30852_v63  ;;  %v30895_v42 = vsub.f32 %v13975_v2, %v30854_v34  ;;  %v6221_v19 = vsel %vm236_vm1, %v6142_v23, 0 }
 0x4ce   : > { %35821 = vst [vmem:[#allocation102_spill] sm:$0xff] %v30868_v48  ;;  %v30875_v14 = vsub.f32 %v30781_v32, %v35822_v46  ;;  %35824 = vst [vmem:[#allocation109_spill] sm:$0xff] %v30882_v11  ;;  %v35826_v46 = vand.u32 4294901760, %v30574_v39  ;;  %v35829_v51 = vand.u32 4294901760, %v30582_v3  ;;  %v35830_v32 = vand.u32 4294901760, %v30620_v45 }
 0x4cf   : > { %22751 = vmatmul.mubr.f32.gmra.mrb[6].mxu1 %v35825_v41  ;;  %35827 = vst [vmem:[#allocation110_spill] sm:$0xff] %v30892_v22  ;;  %35828 = vst [vmem:[#allocation112_spill] sm:$0xff] %v30895_v42  ;;  %v35831_v39 = vand.u32 4294901760, %v30826_v1  ;;  %v30909_v43 = vsub.f32 %v6215_v0, %v30866_v50  ;;  %v30912_v2 = vsub.f32 %v13978_v57, %v30868_v48  ;;  %v30914_v23 = vand.u32 4294901760, %v6218_v55 }
 0x4d0   : > { %23948 = vmatmul.mubr.f32.gmra.mrb[4].mxu0 %v35826_v46  ;;  %22753 = vmatprep.mubr.f32.mxu1 %v35829_v51  ;;  %v30916_v3 = vand.u32 4294901760, %v13981_v36  ;;  %v13984_v45 = vsel %vm236_vm1, %v13909_v31, 0  ;;  %v13910_v46 = vld [vmem:[#allocation2 + $0x139] sm:$0xff]  ;;  %v35836_v51 = vand.u32 4294901760, %v30832_v54  ;;  %v30927_v57 = vand.u32 4294901760, %v6221_v19 }
 0x4d1   : > { %23950 = vmatprep.mubr.f32.mxu0 %v35830_v32  ;;  %v30906_v41 = vsub.f32 %v30826_v1, %v35831_v39  ;;  %35832 = vst [vmem:[#allocation118_spill] sm:$0xff] %v30909_v43  ;;  %35833 = vst [vmem:[#allocation123_spill] sm:$0xff] %v30912_v2  ;;  %v6224_v32 = vsel %vm236_vm1, %v6143_v6, 0  ;;  %v35838_v35 = vand.u32 4294901760, %v30625_v40  ;;  %v35839_v1 = vand.u32 4294901760, %v30635_v8 }
 0x4d2   : > { %35834 = vst [vmem:[#allocation126_spill] sm:$0xff] %v30914_v23  ;;  %35835 = vst [vmem:[#allocation12_spill] sm:$0xff] %v30916_v3  ;;  %v30923_v39 = vsub.f32 %v30832_v54, %v35836_v51  ;;  %v35840_v6 = vand.u32 4294901760, %v30850_v47  ;;  %v35841_v56 = vand.u32 4294901760, %v30679_v27  ;;  %v35842_v40 = vand.u32 4294901760, %v30691_v12  ;;  %v6145_v54 = vld [vmem:[#allocation2 + $0x150] sm:$0xff] }
 0x4d3   : > { %35837 = vst [vmem:[#allocation13_spill] sm:$0xff] %v30927_v57  ;;  %22754 = vmatmul.mubr.f32.gmra.mrb[8].mxu1 %v35838_v35  ;;  %v30948_v35 = vand.u32 4294901760, %v6224_v32  ;;  %v13987_v31 = vsel %vm236_vm1, %v13910_v46, 0  ;;  %v30954_v0 = vsub.f32 %v6218_v55, %v30914_v23  ;;  %v30957_v27 = vsub.f32 %v13981_v36, %v30916_v3  ;;  %v13911_v55 = vld [vmem:[#allocation2 + $0x141] sm:$0xff] }
 0x4d4   : > { %23951 = vmatmul.mubr.f32.gmra.mrb[6].mxu0 %v35839_v1  ;;  %v30937_v48 = vsub.f32 %v30850_v47, %v35840_v6  ;;  %22756 = vmatprep.mubr.f32.mxu1 %v35841_v56  ;;  %v30946_v1 = vand.u32 4294901760, %v13984_v45  ;;  %v6144_v6 = vld [vmem:[#allocation2 + $0x140] sm:$0xff]  ;;  %v35847_v56 = vand.u32 4294901760, %v30879_v20  ;;  %v35848_v46 = vand.u32 4294901760, %v30882_v11 }
 0x4d5   : > { %23953 = vmatprep.mubr.f32.mxu0 %v35842_v40  ;;  %35844 = vst [vmem:[#allocation39_spill] sm:$0xff] %v30948_v35  ;;  %35845 = vst [vmem:[#allocation44_spill] sm:$0xff] %v30954_v0  ;;  %v30971_v47 = vsub.f32 %v6221_v19, %v30927_v57  ;;  %v35850_v51 = vand.u32 4294901760, %v30698_v15  ;;  %v35851_v36 = vand.u32 4294901760, %v30721_v44  ;;  %v35852_v12 = vand.u32 4294901760, %v30892_v22  ;;  %v13912_v15 = vld [vmem:[#allocation2 + $0x151] sm:$0xff] }
 0x4d6   : > { %35843 = vst [vmem:[#allocation35_spill] sm:$0xff] %v30946_v1  ;;  %35846 = vst [vmem:[#allocation11_spill] sm:$0xff] %v30957_v27  ;;  %v30963_v40 = vsub.f32 %v30879_v20, %v35847_v56  ;;  %v30968_v8 = vsub.f32 %v30882_v11, %v35848_v46  ;;  %v35853_v20 = vand.u32 4294901760, %v30895_v42  ;;  %v30987_v11 = vand.u32 4294901760, %v13987_v31 }
 0x4d7   : > { %35849 = vst [vmem:[#allocation14_spill] sm:$0xff] %v30971_v47  ;;  %22757 = vmatmul.mubr.f32.gmra.mrb[10].mxu1 %v35850_v51  ;;  %v30980_v56 = vsub.f32 %v30892_v22, %v35852_v12  ;;  %v6227_v19 = vsel %vm236_vm1, %v6144_v6, 0  ;;  %v35855_v51 = vand.u32 4294901760, %v30726_v38  ;;  %v35856_v44 = vand.u32 4294901760, %v30738_v61 }
 0x4d8   : > { %23954 = vmatmul.mubr.f32.gmra.mrb[8].mxu0 %v35851_v36  ;;  %v30985_v46 = vsub.f32 %v30895_v42, %v35853_v20  ;;  %35854 = vst [vmem:[#allocation27_spill] sm:$0xff] %v30987_v11  ;;  %v35857_v36 = vand.u32 4294901760, %v30909_v43  ;;  %v31001_v20 = vsub.f32 %v13984_v45, %v30946_v1  ;;  %v31004_v6 = vsub.f32 %v6224_v32, %v30948_v35 }
 0x4d9   : > { %22759 = vmatprep.mubr.f32.mxu1 %v35855_v51  ;;  %23956 = vmatprep.mubr.f32.mxu0 %v35856_v44  ;;  %v35860_v42 = vand.u32 4294901760, %v30912_v2  ;;  %v13990_v44 = vsel %vm236_vm1, %v13911_v55, 0  ;;  %v31015_v12 = vand.u32 4294901760, %v6227_v19  ;;  %v6230_v45 = vsel %vm236_vm1, %v6145_v54, 0  ;;  %v13913_v51 = vld [vmem:[#allocation2 + $0x159] sm:$0xff]  ;;  %v6147_v55 = vld [vmem:[#allocation2 + $0x168] sm:$0xff] }
 0x4da   : > { %v30998_v22 = vsub.f32 %v30909_v43, %v35857_v36  ;;  %35858 = vst [vmem:[#allocation30_spill] sm:$0xff] %v31001_v20  ;;  %35859 = vst [vmem:[#allocation40_spill] sm:$0xff] %v31004_v6  ;;  %v13993_v32 = vsel %vm236_vm1, %v13912_v15, 0  ;;  %v35862_v43 = vand.u32 4294901760, %v30743_v28  ;;  %v31027_v36 = vsub.f32 %v13987_v31, %v30987_v11  ;;  %v13914_v28 = vld [vmem:[#allocation2 + $0x169] sm:$0xff] }
 0x4db   : > { %v31009_v38 = vsub.f32 %v30912_v2, %v35860_v42  ;;  %35861 = vst [vmem:[#allocation43_spill] sm:$0xff] %v31015_v12  ;;  %v35863_v42 = vand.u32 4294901760, %v30750_v58  ;;  %v6146_v2 = vld [vmem:[#allocation2 + $0x158] sm:$0xff]  ;;  %v35865_v54 = vand.u32 4294901760, %v30789_v7  ;;  %v35866_v15 = vand.u32 4294901760, %v30794_v4 }
 0x4dc   : > { %22760 = vmatmul.mubr.f32.gmra.mrb[12].mxu1 %v35862_v43  ;;  %35864 = vst [vmem:[#allocation47_spill] sm:$0xff] %v31027_v36  ;;  %v35868_v31 = vand.u32 4294901760, %v30954_v0  ;;  %v35869_v7 = vand.u32 4294901760, %v30957_v27  ;;  %v35872_v11 = vand.u32 4294901760, %v30971_v47  ;;  %v6233_v43 = vsel %vm236_vm1, %v6146_v2, 0 }
 0x4dd   : > { %23957 = vmatmul.mubr.f32.gmra.mrb[10].mxu0 %v35863_v42  ;;  %22762 = vmatprep.mubr.f32.mxu1 %v35865_v54  ;;  %v31036_v42 = vand.u32 4294901760, %v13990_v44  ;;  %v31048_v54 = vand.u32 4294901760, %v6230_v45  ;;  %v13996_v58 = vsel %vm236_vm1, %v13913_v51, 0  ;;  %v6236_v1 = vsel %vm236_vm1, %v6147_v55, 0 }
 0x4de   : > { %23959 = vmatprep.mubr.f32.mxu0 %v35866_v15  ;;  %v31041_v61 = vsub.f32 %v30954_v0, %v35868_v31  ;;  %v31046_v4 = vsub.f32 %v30957_v27, %v35869_v7  ;;  %v31050_v15 = vand.u32 4294901760, %v13993_v32  ;;  %v31057_v35 = vsub.f32 %v30971_v47, %v35872_v11 }
 0x4df   : > { %35867 = vst [vmem:[#allocation48_spill] sm:$0xff] %v31036_v42  ;;  %35870 = vst [vmem:[#allocation64_spill] sm:$0xff] %v31048_v54  ;;  %v31060_v31 = vsub.f32 %v6227_v19, %v31015_v12  ;;  %v35874_v7 = vand.u32 4294901760, %v30799_v17  ;;  %v35875_v27 = vand.u32 4294901760, %v30804_v25  ;;  %v35876_v11 = vand.u32 4294901760, %v30814_v21  ;;  %v6148_v21 = vld [vmem:[#allocation2 + $0x170] sm:$0xff] }
 0x4e0   : > { %35871 = vst [vmem:[#allocation65_spill] sm:$0xff] %v31050_v15  ;;  %v35877_v19 = vand.u32 4294901760, %v30863_v62  ;;  %v35878_v17 = vand.u32 4294901760, %v31001_v20  ;;  %v35879_v25 = vand.u32 4294901760, %v31004_v6  ;;  %v31085_v2 = vsub.f32 %v13990_v44, %v31036_v42  ;;  %v13917_v42 = vld [vmem:[#allocation2 + $0x189] sm:$0xff] }
 0x4e1   : > { %35873 = vst [vmem:[#allocation71_spill] sm:$0xff] %v31060_v31  ;;  %22763 = vmatmul.mubr.f32.gmra.mrb[14].mxu1 %v35874_v7  ;;  %23960 = vmatmul.mubr.f32.gmra.mrb[12].mxu0 %v35875_v27  ;;  %v13999_v51 = vsel %vm236_vm1, %v13914_v28, 0  ;;  %v6540_v55 = vand.u32 4294901760, %v31041_v61  ;;  %v14289_v62 = vand.u32 4294901760, %v31046_v4  ;;  %v31097_v0 = vand.u32 4294901760, %v6233_v43  ;;  %v6149_v28 = vld [vmem:[#allocation2 + $0x180] sm:$0xff] }
 0x4e2   : > { %22765 = vmatprep.mubr.f32.mxu1 %v35876_v11  ;;  %23962 = vmatprep.mubr.f32.mxu0 %v35877_v19  ;;  %v31077_v7 = vsub.f32 %v31001_v20, %v35878_v17  ;;  %v31082_v27 = vsub.f32 %v31004_v6, %v35879_v25  ;;  %35880 = vst [vmem:[#allocation72_spill] sm:$0xff] %v31085_v2  ;;  %v13915_v17 = vld [vmem:[#allocation2 + $0x171] sm:$0xff]  ;;  %v31099_v44 = vand.u32 4294901760, %v13996_v58  ;;  %v31101_v6 = vand.u32 4294901760, %v6236_v1  ;;  %v13916_v20 = vld [vmem:[#allocation2 + $0x181] sm:$0xff] }
 0x4e3   : > { %v31091_v11 = vsub.f32 %v6230_v45, %v31048_v54  ;;  %v31094_v19 = vsub.f32 %v13993_v32, %v31050_v15  ;;  %35883 = vst [vmem:[#allocation85_spill] sm:$0xff] %v31097_v0  ;;  %v35886_v61 = vand.u32 4294901760, %v30875_v14  ;;  %v35887_v45 = vand.u32 4294901760, %v30906_v41 }
 0x4e4   : > { %35884 = vst [vmem:[#allocation93_spill] sm:$0xff] %v31099_v44  ;;  %35885 = vst [vmem:[#allocation119_spill] sm:$0xff] %v31101_v6  ;;  %v35888_v32 = vand.u32 4294901760, %v31027_v36  ;;  %v31113_v47 = vand.u32 4294901760, %v13999_v51  ;;  %v6239_v15 = vsel %vm236_vm1, %v6148_v21, 0  ;;  %v35890_v54 = vand.u32 4294901760, %v30923_v39 }
 0x4e5   : > { %35881 = vst [vmem:[#allocation74_spill] sm:$0xff] %v31091_v11  ;;  %35882 = vst [vmem:[#allocation81_spill] sm:$0xff] %v31094_v19  ;;  %22766 = vmatmul.mubr.f32.gmra.mrb[16].mxu1 %v35886_v61  ;;  %23963 = vmatmul.mubr.f32.gmra.mrb[14].mxu0 %v35887_v45  ;;  %v35891_v14 = vand.u32 4294901760, %v30937_v48  ;;  %v14299_v41 = vand.u32 4294901760, %v31077_v7  ;;  %v6560_v61 = vand.u32 4294901760, %v31082_v27  ;;  %v6242_v21 = vsel %vm236_vm1, %v6149_v28, 0 }
 0x4e6   : > { %v31110_v4 = vsub.f32 %v31027_v36, %v35888_v32  ;;  %35889 = vst [vmem:[#allocation127_spill] sm:$0xff] %v31113_v47  ;;  %22768 = vmatprep.mubr.f32.mxu1 %v35890_v54  ;;  %v14002_v32 = vsel %vm236_vm1, %v13915_v17, 0  ;;  %v14005_v39 = vsel %vm236_vm1, %v13916_v20, 0  ;;  %v6150_v54 = vld [vmem:[#allocation2 + $0x188] sm:$0xff]  ;;  %v31129_v48 = vsub.f32 %v6233_v43, %v31097_v0 }
 0x4e7   : > { %23965 = vmatprep.mubr.f32.mxu0 %v35891_v14  ;;  %v31132_v7 = vsub.f32 %v13996_v58, %v31099_v44  ;;  %v31135_v27 = vsub.f32 %v6236_v1, %v31101_v6  ;;  %v31137_v17 = vand.u32 4294901760, %v6239_v15  ;;  %v13918_v14 = vld [vmem:[#allocation2 + $0x199] sm:$0xff]  ;;  %v35895_v36 = vand.u32 4294901760, %v30963_v40 }
 0x4e8   : > { %35892 = vst [vmem:[#allocation107_spill] sm:$0xff] %v31129_v48  ;;  %v35896_v28 = vand.u32 4294901760, %v30968_v8  ;;  %v14309_v20 = vand.u32 4294901760, %v31110_v4  ;;  %v35897_v43 = vand.u32 4294901760, %v31060_v31  ;;  %v31148_v58 = vsub.f32 %v13999_v51, %v31113_v47  ;;  %v13919_v47 = vld [vmem:[#allocation2 + $0x1a1] sm:$0xff] }
 0x4e9   : > { %35893 = vst [vmem:[#allocation108_spill] sm:$0xff] %v31135_v27  ;;  %35894 = vst [vmem:[#allocation116_spill] sm:$0xff] %v31137_v17  ;;  %22769 = vmatmul.mubr.f32.gmra.mrb[18].mxu1 %v35895_v36  ;;  %v31150_v1 = vand.u32 4294901760, %v14002_v32  ;;  %v35899_v45 = vand.u32 4294901760, %v30980_v56  ;;  %v35900_v40 = vand.u32 4294901760, %v30985_v46  ;;  %v31156_v36 = vand.u32 4294901760, %v6242_v21 }
 0x4ea   : > { %23966 = vmatmul.mubr.f32.gmra.mrb[16].mxu0 %v35896_v28  ;;  %v6569_v25 = vsub.f32 %v31060_v31, %v35897_v43  ;;  %v31158_v8 = vand.u32 4294901760, %v14005_v39  ;;  %v6245_v4 = vsel %vm236_vm1, %v6150_v54, 0  ;;  %v14008_v28 = vsel %vm236_vm1, %v13917_v42, 0 }
 0x4eb   : > { %35898 = vst [vmem:[#allocation124_spill] sm:$0xff] %v31150_v1  ;;  %22771 = vmatprep.mubr.f32.mxu1 %v35899_v45  ;;  %23968 = vmatprep.mubr.f32.mxu0 %v35900_v40  ;;  %35901 = vst [vmem:[#allocation129_spill] sm:$0xff] %v31156_v36  ;;  %v35903_v43 = vand.u32 4294901760, %v31085_v2  ;;  %v35904_v31 = vand.u32 4294901760, %v31091_v11  ;;  %v35905_v45 = vand.u32 4294901760, %v31094_v19  ;;  %v14011_v40 = vsel %vm236_vm1, %v13918_v14, 0 }
 0x4ec   : > { %35902 = vst [vmem:[#allocation94_spill] sm:$0xff] %v31158_v8  ;;  %v31176_v44 = vsub.f32 %v6239_v15, %v31137_v17  ;;  %v31184_v14 = vsub.f32 %v14002_v32, %v31150_v1  ;;  %v31188_v6 = vand.u32 4294901760, %v14008_v28  ;;  %v31191_v15 = vsub.f32 %v6242_v21, %v31156_v36 }
 0x4ed   : > { %v14318_v51 = vsub.f32 %v31085_v2, %v35903_v43  ;;  %v6579_v56 = vsub.f32 %v31091_v11, %v35904_v31  ;;  %v14328_v46 = vsub.f32 %v31094_v19, %v35905_v45  ;;  %v35906_v43 = vand.u32 4294901760, %v30998_v22 }
 0x4ee   : > { %v35907_v31 = vand.u32 4294901760, %v31009_v38  ;;  %35908 = vst [vmem:[#allocation95_spill] sm:$0xff] %v31184_v14  ;;  %v31186_v19 = vand.u32 4294901760, %v6245_v4  ;;  %35910 = vst [vmem:[#allocation115_spill] sm:$0xff] %v31188_v6  ;;  %v31194_v22 = vsub.f32 %v14005_v39, %v31158_v8  ;;  %v14014_v38 = vsel %vm236_vm1, %v13919_v47, 0 }
 0x4ef   : > { %22772 = vmatmul.mubr.f32.gmra.mrb[20].mxu1 %v35906_v43  ;;  %35911 = vst [vmem:[#allocation121_spill] sm:$0xff] %v31191_v15  ;;  %v31196_v43 = vand.u32 4294901760, %v14011_v40  ;;  %v14319_v45 = vand.u32 4294901760, %v14318_v51  ;;  %v6580_v32 = vand.u32 4294901760, %v6579_v56  ;;  %v14329_v42 = vand.u32 4294901760, %v14328_v46 }
 0x4f0   : > { %23969 = vmatmul.mubr.f32.gmra.mrb[18].mxu0 %v35907_v31  ;;  %35909 = vst [vmem:[#allocation106_spill] sm:$0xff] %v31186_v19  ;;  %22774 = vmatprep.mubr.f32.mxu1 %v6540_v55  ;;  %v6570_v31 = vand.u32 4294901760, %v6569_v25  ;;  %v35913_v54 = vand.u32 4294901760, %v31129_v48  ;;  %v35914_v55 = vand.u32 4294901760, %v31132_v7  ;;  %v35915_v21 = vand.u32 4294901760, %v31135_v27 }
 0x4f1   : > { %23971 = vmatprep.mubr.f32.mxu0 %v14289_v62  ;;  %35912 = vst [vmem:[#allocation128_spill] sm:$0xff] %v31196_v43  ;;  %v34396_v2 = vand.u32 4294901760, %v31176_v44  ;;  %v35916_v47 = vand.u32 4294901760, %v31057_v35  ;;  %v31213_v51 = vsub.f32 %v6245_v4, %v31186_v19  ;;  %v31216_v56 = vsub.f32 %v14008_v28, %v31188_v6 }
 0x4f2   : > { %v6589_v11 = vsub.f32 %v31129_v48, %v35913_v54  ;;  %v14338_v62 = vsub.f32 %v31132_v7, %v35914_v55  ;;  %v6599_v39 = vsub.f32 %v31135_v27, %v35915_v21  ;;  %v31218_v46 = vand.u32 4294901760, %v14014_v38 }
 0x4f3   : > { %22775 = vmatmul.mubr.f32.gmra.mrb[22].mxu1 %v35916_v47  ;;  %v35918_v54 = vand.u32 4294901760, %v31148_v58  ;;  %v34401_v35 = vand.u32 4294901760, %v31191_v15  ;;  %v31226_v21 = vsub.f32 %v14011_v40, %v31196_v43  ;;  %v6609_v28 = vsub.f32 %v31176_v44, %v34396_v2 }
 0x4f4   : > { %23972 = vmatmul.mubr.f32.gmra.mrb[20].mxu0 %v14299_v41  ;;  %35917 = vst [vmem:[#allocation114_spill] sm:$0xff] %v31218_v46  ;;  %22777 = vmatprep.mubr.f32.mxu1 %v6560_v61  ;;  %v6590_v4 = vand.u32 4294901760, %v6589_v11  ;;  %v14339_v47 = vand.u32 4294901760, %v14338_v62  ;;  %v6600_v25 = vand.u32 4294901760, %v6599_v39  ;;  %v35919_v61 = vand.u32 4294901760, %v31184_v14 }
 0x4f5   : > { %23974 = vmatprep.mubr.f32.mxu0 %v14309_v20  ;;  %v14348_v55 = vsub.f32 %v31148_v58, %v35918_v54  ;;  %v34400_v54 = vand.u32 4294901760, %v31213_v51  ;;  %v34397_v41 = vand.u32 4294901760, %v31216_v56  ;;  %v31237_v40 = vsub.f32 %v14014_v38, %v31218_v46 }
 0x4f6   : > { %v14358_v20 = vsub.f32 %v31184_v14, %v35919_v61  ;;  %v6619_v62 = vsub.f32 %v31191_v15, %v34401_v35  ;;  %v34399_v39 = vand.u32 4294901760, %v31226_v21  ;;  %v6610_v61 = vand.u32 4294901760, %v6609_v28  ;;  %v35941_v35 = vld [vmem:[#allocation18_spill] sm:$0xff] }
 0x4f7   : > { %22778 = vmatmul.mubr.f32.gmra.mrb[24].mxu1 %v6570_v31  ;;  %v14349_v11 = vand.u32 4294901760, %v14348_v55  ;;  %v6629_v38 = vsub.f32 %v31213_v51, %v34400_v54  ;;  %v35940_v54 = vld [vmem:[#allocation25_spill] sm:$0xff] }
 0x4f8   : > { %23975 = vmatmul.mubr.f32.gmra.mrb[22].mxu0 %v14319_v45  ;;  %22780 = vmatprep.mubr.f32.mxu1 %v6580_v32  ;;  %v35920_v45 = vand.u32 4294901760, %v31194_v22  ;;  %v14359_v2 = vand.u32 4294901760, %v14358_v20  ;;  %v34398_v32 = vand.u32 4294901760, %v31237_v40  ;;  %v6620_v55 = vand.u32 4294901760, %v6619_v62  ;;  %v35923_v62 = vld [vmem:[#allocation21_spill] sm:$0xff] }
 0x4f9   : > { %23977 = vmatprep.mubr.f32.mxu0 %v14329_v42  ;;  %v14378_v42 = vsub.f32 %v31216_v56, %v34397_v41 }
 0x4fa   : > { %v14368_v31 = vsub.f32 %v31194_v22, %v35920_v45  ;;  %v14398_v20 = vsub.f32 %v31237_v40, %v34398_v32  ;;  %v35938_v32 = vld [vmem:[#allocation96_spill] sm:$0xff] }
 0x4fb   : > { %22781 = vmatmul.mubr.f32.gmra.mrb[26].mxu1 %v6590_v4  ;;  %v14388_v4 = vsub.f32 %v31226_v21, %v34399_v39  ;;  %v14379_v28 = vand.u32 4294901760, %v14378_v42  ;;  %v35929_v42 = vld [vmem:[#allocation91_spill] sm:$0xff]  ;;  %v35939_v39 = vld [vmem:[#allocation101_spill] sm:$0xff] }
 0x4fc   : > { %23978 = vmatmul.mubr.f32.gmra.mrb[24].mxu0 %v14339_v47  ;;  %22783 = vmatprep.mubr.f32.mxu1 %v6600_v25  ;;  %v14369_v45 = vand.u32 4294901760, %v14368_v31  ;;  %v6630_v47 = vand.u32 4294901760, %v6629_v38  ;;  %v14399_v25 = vand.u32 4294901760, %v14398_v20  ;;  %v35925_v31 = vld [vmem:[#allocation70_spill] sm:$0xff]  ;;  %v35936_v20 = vld [vmem:[#allocation76_spill] sm:$0xff] }
 0x4fd   : > { %23980 = vmatprep.mubr.f32.mxu0 %v14349_v11  ;;  %v14389_v41 = vand.u32 4294901760, %v14388_v4  ;;  %v35922_v11 = vld [vmem:[#allocation6_spill] sm:$0xff]  ;;  %v35932_v4 = vld [vmem:[#allocation41_spill] sm:$0xff] }
 0x4fe   : > { %v35928_v38 = vld [vmem:[#allocation90_spill] sm:$0xff] }
 0x4ff   : > { %22784 = vmatmul.mubr.f32.gmra.mrb[28].mxu1 %v6610_v61  ;;  %v35926_v61 = vld [vmem:[#allocation82_spill] sm:$0xff] }
 0x500   : > { %23981 = vmatmul.mubr.f32.gmra.mrb[26].mxu0 %v14359_v2  ;;  %22786 = vmatprep.mubr.f32.mxu1 %v6620_v55  ;;  %v35921_v2 = vld [vmem:[#allocation46_spill] sm:$0xff]  ;;  %v35930_v55 = vld [vmem:[#allocation117_spill] sm:$0xff] }
 0x501   : > { %23983 = vmatprep.mubr.f32.mxu0 %v14369_v45  ;;  %v35931_v45 = vld [vmem:[#allocation33_spill] sm:$0xff] }
 0x503   : > { %22787 = vmatmul.mubr.f32.gmra.mrb[30].mxu1 %v6630_v47  ;;  %v35934_v47 = vld [vmem:[#allocation51_spill] sm:$0xff] }
 0x504   : > { %23984 = vmatmul.mubr.f32.gmra.mrb[28].mxu0 %v14379_v28  ;;  %22791 = vmatprep.mubr.f32.mxu1 %v30326_v33  ;;  %v35935_v28 = vld [vmem:[#allocation63_spill] sm:$0xff] }
 0x505   : > { %23986 = vmatprep.mubr.f32.mxu0 %v14389_v41  ;;  %v35924_v41 = vld [vmem:[#allocation16_spill] sm:$0xff]  ;;  %v36005_v33 = vld [vmem:[#allocation47_spill] sm:$0xff] }
 0x507   : > { %22792 = vmatmul.mubr.f32.vlgmr.msra.gmra.mrb[0].mxu1 %v30332_v60  ;;  %v36004_v60 = vld [vmem:[#allocation40_spill] sm:$0xff] }
 0x508   : > { %23987 = vmatmul.mubr.f32.gmra.mrb[30].mxu0 %v14399_v25  ;;  %22794 = vmatprep.mubr.f32.mxu1 %v30344_v24  ;;  %v35937_v25 = vld [vmem:[#allocation86_spill] sm:$0xff] }
 0x509   : > { %23991 = vmatprep.mubr.f32.mxu0 %v35921_v2  ;;  %22840 = vmatpush3.msra.mxu1 %v30342_v9  ;;  %v35927_v9 = vld [vmem:[#allocation88_spill] sm:$0xff]  ;;  %v36002_v2 = vld [vmem:[#allocation14_spill] sm:$0xff] }
 0x50a   : > { %22889 = vmatprep.subr.mxu1 %v35922_v11  ;;  %v36003_v24 = vld [vmem:[#allocation30_spill] sm:$0xff] }
 0x50b   : > { %22795 = vmatmul.mubr.f32.gmra.mrb[2].mxu1 %v35923_v62  ;;  %v36001_v62 = vld [vmem:[#allocation11_spill] sm:$0xff] }
 0x50c   : > { %23992 = vmatmul.mubr.f32.vlgmr.msra.gmra.mrb[0].mxu0 %v30370_v18  ;;  %22797 = vmatprep.mubr.f32.mxu1 %v30384_v29  ;;  %v35999_v29 = vld [vmem:[#allocation123_spill] sm:$0xff]  ;;  %v36000_v18 = vld [vmem:[#allocation44_spill] sm:$0xff] }
 0x50d   : > { %23994 = vmatprep.mubr.f32.mxu0 %v30386_v59  ;;  %24040 = vmatpush3.msra.mxu0 %v30289_v37  ;;  %v35933_v37 = vld [vmem:[#allocation9_spill] sm:$0xff]  ;;  %v35998_v59 = vld [vmem:[#allocation118_spill] sm:$0xff] }
 0x50e   : > { %24089 = vmatprep.subr.mxu0 %v35924_v41 }
 0x50f   : > { %22798 = vmatmul.mubr.f32.gmra.mrb[4].mxu1 %v30392_v52  ;;  %v35997_v52 = vld [vmem:[#allocation112_spill] sm:$0xff] }
 0x510   : > { %23995 = vmatmul.mubr.f32.gmra.mrb[2].mxu0 %v35925_v31  ;;  %22800 = vmatprep.mubr.f32.mxu1 %v35926_v61  ;;  %v35995_v61 = vld [vmem:[#allocation109_spill] sm:$0xff]  ;;  %v35996_v31 = vld [vmem:[#allocation110_spill] sm:$0xff] }
 0x511   : > { %23997 = vmatprep.mubr.f32.mxu0 %v35927_v9  ;;  %v35994_v9 = vld [vmem:[#allocation103_spill] sm:$0xff] }
 0x513   : > { %22801 = vmatmul.mubr.f32.gmra.mrb[6].mxu1 %v35928_v38  ;;  %v35993_v38 = vld [vmem:[#allocation78_spill] sm:$0xff] }
 0x514   : > { %23998 = vmatmul.mubr.f32.gmra.mrb[4].mxu0 %v35929_v42  ;;  %22803 = vmatprep.mubr.f32.mxu1 %v35930_v55  ;;  %v35991_v55 = vld [vmem:[#allocation60_spill] sm:$0xff]  ;;  %v35992_v42 = vld [vmem:[#allocation66_spill] sm:$0xff] }
 0x515   : > { %24000 = vmatprep.mubr.f32.mxu0 %v35931_v45  ;;  %v35990_v45 = vld [vmem:[#allocation36_spill] sm:$0xff] }
 0x517   : > { %22804 = vmatmul.mubr.f32.gmra.mrb[8].mxu1 %v35932_v4  ;;  %v35989_v4 = vld [vmem:[#allocation23_spill] sm:$0xff] }
 0x518   : > { %24001 = vmatmul.mubr.f32.gmra.mrb[6].mxu0 %v35933_v37  ;;  %22806 = vmatprep.mubr.f32.mxu1 %v35934_v47  ;;  %v35987_v47 = vld [vmem:[#allocation52_spill] sm:$0xff] }
 0x519   : > { %24003 = vmatprep.mubr.f32.mxu0 %v35935_v28  ;;  %v35986_v28 = vld [vmem:[#allocation50_spill] sm:$0xff]  ;;  %v35988_v37 = vld [vmem:[#allocation8_spill] sm:$0xff] }
 0x51b   : > { %22807 = vmatmul.mubr.f32.gmra.mrb[10].mxu1 %v35936_v20  ;;  %v35985_v20 = vld [vmem:[#allocation37_spill] sm:$0xff] }
 0x51c   : > { %24004 = vmatmul.mubr.f32.gmra.mrb[8].mxu0 %v30597_v53  ;;  %22809 = vmatprep.mubr.f32.mxu1 %v30605_v26  ;;  %v35942_v53 = vld [vmem:[#allocation19_spill] sm:$0xff]  ;;  %v35943_v26 = vld [vmem:[#allocation32_spill] sm:$0xff] }
 0x51d   : > { %24006 = vmatprep.mubr.f32.mxu0 %v35937_v25  ;;  %v35944_v25 = vld [vmem:[#allocation57_spill] sm:$0xff] }
 0x51f   : > { %22810 = vmatmul.mubr.f32.gmra.mrb[12].mxu1 %v35938_v32  ;;  %v35945_v32 = vld [vmem:[#allocation59_spill] sm:$0xff] }
 0x520   : > { %24007 = vmatmul.mubr.f32.gmra.mrb[10].mxu0 %v35939_v39  ;;  %22812 = vmatprep.mubr.f32.mxu1 %v30665_v16  ;;  %v35983_v16 = vld [vmem:[#allocation62_spill] sm:$0xff]  ;;  %v35984_v39 = vld [vmem:[#allocation31_spill] sm:$0xff] }
 0x521   : > { %24009 = vmatprep.mubr.f32.mxu0 %v30668_v30  ;;  %v35982_v30 = vld [vmem:[#allocation61_spill] sm:$0xff] }
 0x523   : > { %22813 = vmatmul.mubr.f32.gmra.mrb[14].mxu1 %v30670_v5  ;;  %v35981_v5 = vld [vmem:[#allocation55_spill] sm:$0xff] }
 0x524   : > { %24010 = vmatmul.mubr.f32.gmra.mrb[12].mxu0 %v30672_v10  ;;  %22815 = vmatprep.mubr.f32.mxu1 %v35940_v54  ;;  %v35946_v54 = vld [vmem:[#allocation102_spill] sm:$0xff]  ;;  %v35980_v10 = vld [vmem:[#allocation53_spill] sm:$0xff] }
 0x525   : > { %24012 = vmatprep.mubr.f32.mxu0 %v35941_v35  ;;  %v35979_v35 = vld [vmem:[#allocation104_spill] sm:$0xff] }
 0x527   : > { %22816 = vmatmul.mubr.f32.gmra.mrb[16].mxu1 %v35942_v53  ;;  %v35978_v53 = vld [vmem:[#allocation97_spill] sm:$0xff] }
 0x528   : > { %24013 = vmatmul.mubr.f32.gmra.mrb[14].mxu0 %v35943_v26  ;;  %22818 = vmatprep.mubr.f32.mxu1 %v35944_v25  ;;  %v35947_v25 = vld [vmem:[#allocation35_spill] sm:$0xff]  ;;  %v35977_v26 = vld [vmem:[#allocation84_spill] sm:$0xff] }
 0x529   : > { %24015 = vmatprep.mubr.f32.mxu0 %v35945_v32  ;;  %v35948_v32 = vld [vmem:[#allocation39_spill] sm:$0xff] }
 0x52b   : > { %22819 = vmatmul.mubr.f32.gmra.mrb[18].mxu1 %v30839_v13  ;;  %v35949_v13 = vld [vmem:[#allocation27_spill] sm:$0xff] }
 0x52c   : > { %24016 = vmatmul.mubr.f32.gmra.mrb[16].mxu0 %v30841_v49  ;;  %22821 = vmatprep.mubr.f32.mxu1 %v30852_v63  ;;  %v35950_v63 = vld [vmem:[#allocation48_spill] sm:$0xff]  ;;  %v35976_v49 = vld [vmem:[#allocation77_spill] sm:$0xff] }
 0x52d   : > { %24018 = vmatprep.mubr.f32.mxu0 %v30854_v34  ;;  %v35951_v34 = vld [vmem:[#allocation64_spill] sm:$0xff] }
 0x52f   : > { %22822 = vmatmul.mubr.f32.gmra.mrb[20].mxu1 %v30866_v50  ;;  %v35952_v50 = vld [vmem:[#allocation65_spill] sm:$0xff] }
 0x530   : > { %24019 = vmatmul.mubr.f32.gmra.mrb[18].mxu0 %v35946_v54  ;;  %22824 = vmatprep.mubr.f32.mxu1 %v30914_v23  ;;  %v35953_v23 = vld [vmem:[#allocation93_spill] sm:$0xff]  ;;  %v35975_v54 = vld [vmem:[#allocation38_spill] sm:$0xff] }
 0x531   : > { %24021 = vmatprep.mubr.f32.mxu0 %v30916_v3  ;;  %v35954_v3 = vld [vmem:[#allocation119_spill] sm:$0xff] }
 0x533   : > { %22825 = vmatmul.mubr.f32.gmra.mrb[22].mxu1 %v30927_v57  ;;  %v35955_v57 = vld [vmem:[#allocation127_spill] sm:$0xff] }
 0x534   : > { %24022 = vmatmul.mubr.f32.gmra.mrb[20].mxu0 %v35947_v25  ;;  %22827 = vmatprep.mubr.f32.mxu1 %v35948_v32  ;;  %v35973_v32 = vld [vmem:[#allocation15_spill] sm:$0xff]  ;;  %v35974_v25 = vld [vmem:[#allocation26_spill] sm:$0xff] }
 0x535   : > { %24024 = vmatprep.mubr.f32.mxu0 %v35949_v13  ;;  %v35972_v13 = vld [vmem:[#allocation29_spill] sm:$0xff] }
 0x537   : > { %22828 = vmatmul.mubr.f32.gmra.mrb[24].mxu1 %v31015_v12  ;;  %v35971_v12 = vld [vmem:[#allocation28_spill] sm:$0xff] }
 0x538   : > { %24025 = vmatmul.mubr.f32.gmra.mrb[22].mxu0 %v35950_v63  ;;  %22830 = vmatprep.mubr.f32.mxu1 %v35951_v34  ;;  %v35969_v34 = vld [vmem:[#allocation17_spill] sm:$0xff]  ;;  %v35970_v63 = vld [vmem:[#allocation24_spill] sm:$0xff] }
 0x539   : > { %24027 = vmatprep.mubr.f32.mxu0 %v35952_v50  ;;  %v35956_v50 = vld [vmem:[#allocation10_spill] sm:$0xff] }
 0x53b   : > { %22831 = vmatmul.mubr.f32.gmra.mrb[26].mxu1 %v31097_v0  ;;  %v35968_v0 = vld [vmem:[#allocation89_spill] sm:$0xff] }
 0x53c   : > { %24028 = vmatmul.mubr.f32.gmra.mrb[24].mxu0 %v35953_v23  ;;  %22833 = vmatprep.mubr.f32.mxu1 %v35954_v3  ;;  %v35957_v23 = vld [vmem:[#allocation34_spill] sm:$0xff]  ;;  %v35967_v3 = vld [vmem:[#allocation111_spill] sm:$0xff] }
 0x53d   : > { %24030 = vmatprep.mubr.f32.mxu0 %v35955_v57  ;;  %v35958_v57 = vld [vmem:[#allocation49_spill] sm:$0xff] }
 0x53f   : > { %22834 = vmatmul.mubr.f32.gmra.mrb[28].mxu1 %v31137_v17  ;;  %v35959_v17 = vld [vmem:[#allocation56_spill] sm:$0xff] }
 0x540   : > { %24031 = vmatmul.mubr.f32.gmra.mrb[26].mxu0 %v31150_v1  ;;  %22836 = vmatprep.mubr.f32.mxu1 %v31156_v36  ;;  %v35960_v36 = vld [vmem:[#allocation22_spill] sm:$0xff]  ;;  %v35964_v1 = vld [vmem:[#allocation100_spill] sm:$0xff] }
 0x541   : > { %24033 = vmatprep.mubr.f32.mxu0 %v31158_v8  ;;  %v35961_v8 = vld [vmem:[#allocation68_spill] sm:$0xff] }
 0x543   : > { %22837 = vmatmul.mubr.f32.gmra.mrb[30].mxu1 %v31186_v19  ;;  %v35962_v19 = vld [vmem:[#allocation79_spill] sm:$0xff] }
 0x544   : > { %24034 = vmatmul.mubr.f32.gmra.mrb[28].mxu0 %v31188_v6  ;;  %22841 = vmatprep.mubr.f32.mxu1 %v35956_v50  ;;  %v35963_v6 = vld [vmem:[#allocation87_spill] sm:$0xff] }
 0x545   : > { %24036 = vmatprep.mubr.f32.mxu0 %v31196_v43  ;;  %v35965_v43 = vld [vmem:[#allocation20_spill] sm:$0xff] }
 0x547   : > { %22842 = vmatmul.mubr.f32.vlgmr.msra.gmra.mrb[0].mxu1 %v35957_v23 }
 0x548   : > { %24037 = vmatmul.mubr.f32.gmra.mrb[30].mxu0 %v31218_v46  ;;  %22844 = vmatprep.mubr.f32.mxu1 %v35958_v57  ;;  %v35966_v46 = vld [vmem:[#allocation105_spill] sm:$0xff] }
 0x549   : > { %24041 = vmatprep.mubr.f32.mxu0 %v35959_v17  ;;  %22890 = vmatpush3.msra.mxu1 %v35922_v11 }
 0x54a   : > { %22939 = vmatprep.subr.mxu1 %v35960_v36 }
 0x54b   : > { %22845 = vmatmul.mubr.f32.gmra.mrb[2].mxu1 %v35961_v8 }
 0x54c   : > { %24042 = vmatmul.mubr.f32.vlgmr.msra.gmra.mrb[0].mxu0 %v35962_v19  ;;  %22847 = vmatprep.mubr.f32.mxu1 %v35963_v6 }
 0x54d   : > { %24044 = vmatprep.mubr.f32.mxu0 %v35964_v1  ;;  %24090 = vmatpush3.msra.mxu0 %v35924_v41 }
 0x54e   : > { %24139 = vmatprep.subr.mxu0 %v35965_v43 }
 0x54f   : > { %22848 = vmatmul.mubr.f32.gmra.mrb[4].mxu1 %v35966_v46 }
 0x550   : > { %24045 = vmatmul.mubr.f32.gmra.mrb[2].mxu0 %v35967_v3  ;;  %22850 = vmatprep.mubr.f32.mxu1 %v35968_v0 }
 0x551   : > { %24047 = vmatprep.mubr.f32.mxu0 %v35969_v34 }
 0x553   : > { %22851 = vmatmul.mubr.f32.gmra.mrb[6].mxu1 %v35970_v63 }
 0x554   : > { %24048 = vmatmul.mubr.f32.gmra.mrb[4].mxu0 %v35971_v12  ;;  %22853 = vmatprep.mubr.f32.mxu1 %v35972_v13 }
 0x555   : > { %24050 = vmatprep.mubr.f32.mxu0 %v35973_v32 }
 0x557   : > { %22854 = vmatmul.mubr.f32.gmra.mrb[8].mxu1 %v35974_v25 }
 0x558   : > { %24051 = vmatmul.mubr.f32.gmra.mrb[6].mxu0 %v35975_v54  ;;  %22856 = vmatprep.mubr.f32.mxu1 %v35976_v49 }
 0x559   : > { %24053 = vmatprep.mubr.f32.mxu0 %v35977_v26 }
 0x55b   : > { %22857 = vmatmul.mubr.f32.gmra.mrb[10].mxu1 %v35978_v53 }
 0x55c   : > { %24054 = vmatmul.mubr.f32.gmra.mrb[8].mxu0 %v35979_v35  ;;  %22859 = vmatprep.mubr.f32.mxu1 %v35980_v10 }
 0x55d   : > { %24056 = vmatprep.mubr.f32.mxu0 %v35981_v5 }
 0x55f   : > { %22860 = vmatmul.mubr.f32.gmra.mrb[12].mxu1 %v35982_v30 }
 0x560   : > { %24057 = vmatmul.mubr.f32.gmra.mrb[10].mxu0 %v35983_v16  ;;  %22862 = vmatprep.mubr.f32.mxu1 %v35984_v39 }
 0x561   : > { %24059 = vmatprep.mubr.f32.mxu0 %v35985_v20 }
 0x563   : > { %22863 = vmatmul.mubr.f32.gmra.mrb[14].mxu1 %v35986_v28 }
 0x564   : > { %24060 = vmatmul.mubr.f32.gmra.mrb[12].mxu0 %v35987_v47  ;;  %22865 = vmatprep.mubr.f32.mxu1 %v35988_v37 }
 0x565   : > { %24062 = vmatprep.mubr.f32.mxu0 %v35989_v4 }
 0x567   : > { %22866 = vmatmul.mubr.f32.gmra.mrb[16].mxu1 %v35990_v45 }
 0x568   : > { %24063 = vmatmul.mubr.f32.gmra.mrb[14].mxu0 %v35991_v55  ;;  %22868 = vmatprep.mubr.f32.mxu1 %v35992_v42 }
 0x569   : > { %24065 = vmatprep.mubr.f32.mxu0 %v35993_v38 }
 0x56b   : > { %22869 = vmatmul.mubr.f32.gmra.mrb[18].mxu1 %v35994_v9 }
 0x56c   : > { %24066 = vmatmul.mubr.f32.gmra.mrb[16].mxu0 %v35995_v61  ;;  %22871 = vmatprep.mubr.f32.mxu1 %v35996_v31  ;;  %v36006_v61 = vld [vmem:[#allocation71_spill] sm:$0xff]  ;;  %v36007_v31 = vld [vmem:[#allocation72_spill] sm:$0xff] }
 0x56d   : > { %24068 = vmatprep.mubr.f32.mxu0 %v35997_v52  ;;  %v36008_v52 = vld [vmem:[#allocation74_spill] sm:$0xff] }
 0x56f   : > { %22872 = vmatmul.mubr.f32.gmra.mrb[20].mxu1 %v35998_v59  ;;  %v36009_v59 = vld [vmem:[#allocation81_spill] sm:$0xff] }
 0x570   : > { %24069 = vmatmul.mubr.f32.gmra.mrb[18].mxu0 %v35999_v29  ;;  %22874 = vmatprep.mubr.f32.mxu1 %v36000_v18 }
 0x571   : > { %24071 = vmatprep.mubr.f32.mxu0 %v36001_v62 }
 0x573   : > { %22875 = vmatmul.mubr.f32.gmra.mrb[22].mxu1 %v36002_v2 }
 0x574   : > { %24072 = vmatmul.mubr.f32.gmra.mrb[20].mxu0 %v36003_v24  ;;  %22877 = vmatprep.mubr.f32.mxu1 %v36004_v60 }
 0x575   : > { %24074 = vmatprep.mubr.f32.mxu0 %v36005_v33 }
 0x577   : > { %22878 = vmatmul.mubr.f32.gmra.mrb[24].mxu1 %v36006_v61 }
 0x578   : > { %24075 = vmatmul.mubr.f32.gmra.mrb[22].mxu0 %v36007_v31  ;;  %22880 = vmatprep.mubr.f32.mxu1 %v36008_v52 }
 0x579   : > { %24077 = vmatprep.mubr.f32.mxu0 %v36009_v59 }
 0x57b   : > { %22881 = vmatmul.mubr.f32.gmra.mrb[26].mxu1 %v31129_v48  ;;  %v36010_v48 = vand.u32 4294901760, %v35956_v50  ;;  %v36014_v50 = vand.u32 4294901760, %v35961_v8  ;;  %v36024_v8 = vand.u32 4294901760, %v35972_v13  ;;  %v36031_v13 = vand.u32 4294901760, %v35979_v35 }
 0x57c   : > { %24078 = vmatmul.mubr.f32.gmra.mrb[24].mxu0 %v31132_v7  ;;  %22883 = vmatprep.mubr.f32.mxu1 %v31135_v27  ;;  %v36011_v27 = vand.u32 4294901760, %v35957_v23  ;;  %v36016_v23 = vand.u32 4294901760, %v35963_v6  ;;  %v36022_v6 = vand.u32 4294901760, %v35970_v63  ;;  %v36029_v63 = vand.u32 4294901760, %v35977_v26 }
 0x57d   : > { %24080 = vmatprep.mubr.f32.mxu0 %v31148_v58  ;;  %v36036_v26 = vand.u32 4294901760, %v35984_v39  ;;  %v36038_v35 = vand.u32 4294901760, %v35986_v28  ;;  %v36044_v39 = vand.u32 4294901760, %v35992_v42  ;;  %v36055_v42 = vand.u32 4294901760, %v35999_v29 }
 0x57e   : > { %v36062_v29 = vand.u32 4294901760, %v36006_v61  ;;  %v36071_v61 = vand.u32 4294901760, %v31148_v58  ;;  %v36080_v58 = vld [vmem:[#allocation45_spill] sm:$0xff] }
 0x57f   : > { %22884 = vmatmul.mubr.f32.gmra.mrb[28].mxu1 %v31176_v44 }
 0x580   : > { %24081 = vmatmul.mubr.f32.gmra.mrb[26].mxu0 %v31184_v14  ;;  %22886 = vmatprep.mubr.f32.mxu1 %v31191_v15  ;;  %v36012_v14 = vand.u32 4294901760, %v35958_v57  ;;  %v36013_v15 = vand.u32 4294901760, %v35959_v17  ;;  %v36018_v57 = vand.u32 4294901760, %v35966_v46  ;;  %v36019_v17 = vand.u32 4294901760, %v35967_v3 }
 0x581   : > { %24083 = vmatprep.mubr.f32.mxu0 %v31194_v22  ;;  %v36026_v3 = vand.u32 4294901760, %v35974_v25  ;;  %v36034_v46 = vand.u32 4294901760, %v35982_v30  ;;  %v36041_v30 = vand.u32 4294901760, %v35989_v4  ;;  %v36049_v4 = vld [vmem:[#allocation110_spill] sm:$0xff] }
 0x583   : > { %22887 = vmatmul.mubr.f32.gmra.mrb[30].mxu1 %v31213_v51 }
 0x584   : > { %24084 = vmatmul.mubr.f32.gmra.mrb[28].mxu0 %v31216_v56  ;;  %22891 = vmatprep.mubr.f32.mxu1 %v36010_v48  ;;  %v36015_v48 = vand.u32 4294901760, %v35962_v19  ;;  %v36021_v19 = vand.u32 4294901760, %v35969_v34  ;;  %v36028_v34 = vand.u32 4294901760, %v35976_v49  ;;  %v36035_v49 = vand.u32 4294901760, %v35983_v16 }
 0x585   : > { %24086 = vmatprep.mubr.f32.mxu0 %v31226_v21  ;;  %v36042_v16 = vand.u32 4294901760, %v35990_v45  ;;  %v36051_v45 = vld [vmem:[#allocation112_spill] sm:$0xff] }
 0x586   : > { %v36052_v25 = vand.u32 4294901760, %v36051_v45  ;;  %v36112_v45 = vld [vmem:[#allocation25_spill] sm:$0xff] }
 0x587   : > { %22892 = vmatmul.mubr.f32.vlgmr.msra.gmra.mrb[0].mxu1 %v36011_v27  ;;  %v36017_v27 = vand.u32 4294901760, %v35964_v1  ;;  %v36023_v1 = vand.u32 4294901760, %v35971_v12  ;;  %v36030_v12 = vand.u32 4294901760, %v35978_v53  ;;  %v36037_v53 = vand.u32 4294901760, %v35985_v20 }
 0x588   : > { %24087 = vmatmul.mubr.f32.gmra.mrb[30].mxu0 %v31237_v40  ;;  %22894 = vmatprep.mubr.f32.mxu1 %v36012_v14  ;;  %v36025_v14 = vand.u32 4294901760, %v35973_v32  ;;  %v36045_v32 = vand.u32 4294901760, %v35993_v38  ;;  %v36050_v20 = vand.u32 4294901760, %v36049_v4  ;;  %v36056_v38 = vand.u32 4294901760, %v36000_v18  ;;  %v36110_v4 = vld [vmem:[#allocation113_spill] sm:$0xff] }
 0x589   : > { %24091 = vmatprep.mubr.f32.mxu0 %v36013_v15  ;;  %22940 = vmatpush3.msra.mxu1 %v35960_v36  ;;  %v36020_v36 = vand.u32 4294901760, %v35968_v0  ;;  %v36027_v0 = vand.u32 4294901760, %v35975_v54  ;;  %v36032_v15 = vand.u32 4294901760, %v35980_v10  ;;  %v36039_v10 = vand.u32 4294901760, %v35987_v47 }
 0x58a   : > { %22989 = vmatprep.subr.mxu1 %v35922_v11  ;;  %v36043_v54 = vand.u32 4294901760, %v35991_v55  ;;  %v36046_v47 = vand.u32 4294901760, %v35994_v9  ;;  %v36053_v55 = vld [vmem:[#allocation118_spill] sm:$0xff]  ;;  %v36057_v9 = vand.u32 4294901760, %v36001_v62  ;;  %v36063_v18 = vand.u32 4294901760, %v36007_v31 }
 0x58b   : > { %22895 = vmatmul.mubr.f32.gmra.mrb[2].mxu1 %v36014_v50  ;;  %v36054_v50 = vand.u32 4294901760, %v36053_v55  ;;  %v36064_v62 = vand.u32 4294901760, %v36008_v52  ;;  %v36072_v31 = vand.u32 4294901760, %v31176_v44  ;;  %v36073_v52 = vld [vmem:[#allocation95_spill] sm:$0xff]  ;;  %v36081_v44 = vand.u32 4294901760, %v31226_v21  ;;  %v36086_v21 = vld [vmem:[#allocation21_spill] sm:$0xff] }
 0x58c   : > { %24092 = vmatmul.mubr.f32.vlgmr.msra.gmra.mrb[0].mxu0 %v36015_v48  ;;  %22897 = vmatprep.mubr.f32.mxu1 %v36016_v23  ;;  %v36058_v48 = vand.u32 4294901760, %v36002_v2  ;;  %v36059_v23 = vand.u32 4294901760, %v36003_v24  ;;  %v36065_v2 = vand.u32 4294901760, %v36009_v59  ;;  %v36066_v24 = vld [vmem:[#allocation107_spill] sm:$0xff]  ;;  %v36075_v59 = vld [vmem:[#allocation121_spill] sm:$0xff] }
 0x58d   : > { %24094 = vmatprep.mubr.f32.mxu0 %v36017_v27  ;;  %24140 = vmatpush3.msra.mxu0 %v35965_v43  ;;  %v36033_v43 = vand.u32 4294901760, %v35981_v5  ;;  %v36040_v5 = vand.u32 4294901760, %v35988_v37  ;;  %v36047_v37 = vld [vmem:[#allocation109_spill] sm:$0xff]  ;;  %v36060_v27 = vand.u32 4294901760, %v36004_v60  ;;  %v36068_v60 = vand.u32 4294901760, %v31132_v7  ;;  %v36114_v55 = vld [vmem:[#allocation19_spill] sm:$0xff] }
 0x58e   : > { %24189 = vmatprep.subr.mxu0 %v35924_v41  ;;  %v36048_v28 = vand.u32 4294901760, %v36047_v37  ;;  %v36078_v7 = vand.u32 4294901760, %v31213_v51  ;;  %v36108_v37 = vld [vmem:[#allocation122_spill] sm:$0xff] }
 0x58f   : > { %22898 = vmatmul.mubr.f32.gmra.mrb[4].mxu1 %v36018_v57  ;;  %v36061_v57 = vand.u32 4294901760, %v36005_v33  ;;  %v36069_v33 = vld [vmem:[#allocation108_spill] sm:$0xff] }
 0x590   : > { %24095 = vmatmul.mubr.f32.gmra.mrb[2].mxu0 %v36019_v17  ;;  %22900 = vmatprep.mubr.f32.mxu1 %v36020_v36  ;;  %v36067_v17 = vand.u32 4294901760, %v36066_v24  ;;  %v36070_v36 = vand.u32 4294901760, %v36069_v33  ;;  %v36127_v24 = vld [vmem:[#allocation35_spill] sm:$0xff] }
 0x591   : > { %24097 = vmatprep.mubr.f32.mxu0 %v36021_v19  ;;  %v36074_v19 = vand.u32 4294901760, %v36073_v52  ;;  %v36130_v33 = vld [vmem:[#allocation43_spill] sm:$0xff]  ;;  %v36134_v52 = vld [vmem:[#allocation85_spill] sm:$0xff] }
 0x593   : > { %22901 = vmatmul.mubr.f32.gmra.mrb[6].mxu1 %v36022_v6  ;;  %v36076_v6 = vand.u32 4294901760, %v36075_v59  ;;  %v36136_v59 = vld [vmem:[#allocation119_spill] sm:$0xff] }
 0x594   : > { %24098 = vmatmul.mubr.f32.gmra.mrb[4].mxu0 %v36023_v1  ;;  %22903 = vmatprep.mubr.f32.mxu1 %v36024_v8  ;;  %v36077_v1 = vand.u32 4294901760, %v31194_v22  ;;  %v36079_v8 = vand.u32 4294901760, %v31216_v56  ;;  %v36083_v22 = vand.u32 4294901760, %v31237_v40  ;;  %v36085_v56 = vld [vmem:[#allocation46_spill] sm:$0xff]  ;;  %v36090_v40 = vld [vmem:[#allocation69_spill] sm:$0xff] }
 0x595   : > { %24100 = vmatprep.mubr.f32.mxu0 %v36025_v14  ;;  %v355_v14 = vld [vmem:[%s33592_s1 + $0x20] sm:$0xf] }
 0x596   : > { %v15959_v51 = vsel %vm516_vm0, %v355_v14, 0  ;;  %v36141_v14 = vld [vmem:[#allocation94_spill] sm:$0xff] }
 0x597   : > { %22904 = vmatmul.mubr.f32.gmra.mrb[8].mxu1 %v36026_v3  ;;  %v36082_v3 = vld [vmem:[#allocation7_spill] sm:$0xff] }
 0x598   : > { %24101 = vmatmul.mubr.f32.gmra.mrb[6].mxu0 %v36027_v0  ;;  %22906 = vmatprep.mubr.f32.mxu1 %v36028_v34  ;;  %v36084_v0 = vld [vmem:[#allocation42_spill] sm:$0xff]  ;;  %v31536_v34 = vand.u32 4294901760, %v15959_v51 }
 0x599   : > { %24103 = vmatprep.mubr.f32.mxu0 %v36029_v63  ;;  %v36087_v63 = vld [vmem:[#allocation54_spill] sm:$0xff] }
 0x59b   : > { %22907 = vmatmul.mubr.f32.gmra.mrb[10].mxu1 %v36030_v12  ;;  %v36088_v12 = vld [vmem:[#allocation58_spill] sm:$0xff] }
 0x59c   : > { %24104 = vmatmul.mubr.f32.gmra.mrb[8].mxu0 %v36031_v13  ;;  %22909 = vmatprep.mubr.f32.mxu1 %v36032_v15  ;;  %v36089_v13 = vld [vmem:[#allocation67_spill] sm:$0xff]  ;;  %v36091_v15 = vld [vmem:[#allocation70_spill] sm:$0xff] }
 0x59d   : > { %24106 = vmatprep.mubr.f32.mxu0 %v36033_v43  ;;  %v36092_v43 = vld [vmem:[#allocation82_spill] sm:$0xff] }
 0x59f   : > { %22910 = vmatmul.mubr.f32.gmra.mrb[12].mxu1 %v36034_v46  ;;  %v36094_v46 = vld [vmem:[#allocation90_spill] sm:$0xff] }
 0x5a0   : > { %24107 = vmatmul.mubr.f32.gmra.mrb[10].mxu0 %v36035_v49  ;;  %22912 = vmatprep.mubr.f32.mxu1 %v36036_v26  ;;  %v36095_v49 = vld [vmem:[#allocation91_spill] sm:$0xff]  ;;  %v36096_v26 = vld [vmem:[#allocation117_spill] sm:$0xff] }
 0x5a1   : > { %24109 = vmatprep.mubr.f32.mxu0 %v36037_v53  ;;  %v36097_v53 = vld [vmem:[#allocation33_spill] sm:$0xff] }
 0x5a3   : > { %22913 = vmatmul.mubr.f32.gmra.mrb[14].mxu1 %v36038_v35  ;;  %v36098_v35 = vld [vmem:[#allocation41_spill] sm:$0xff] }
 0x5a4   : > { %24110 = vmatmul.mubr.f32.gmra.mrb[12].mxu0 %v36039_v10  ;;  %22915 = vmatprep.mubr.f32.mxu1 %v36040_v5  ;;  %v36100_v10 = vld [vmem:[#allocation51_spill] sm:$0xff] }
 0x5a5   : > { %24112 = vmatprep.mubr.f32.mxu0 %v36041_v30  ;;  %v36101_v5 = vld [vmem:[#allocation63_spill] sm:$0xff]  ;;  %v36102_v30 = vld [vmem:[#allocation76_spill] sm:$0xff] }
 0x5a7   : > { %22916 = vmatmul.mubr.f32.gmra.mrb[16].mxu1 %v36042_v16  ;;  %v36103_v16 = vld [vmem:[#allocation80_spill] sm:$0xff] }
 0x5a8   : > { %24113 = vmatmul.mubr.f32.gmra.mrb[14].mxu0 %v36043_v54  ;;  %22918 = vmatprep.mubr.f32.mxu1 %v36044_v39  ;;  %v36104_v54 = vld [vmem:[#allocation83_spill] sm:$0xff]  ;;  %v36105_v39 = vld [vmem:[#allocation86_spill] sm:$0xff] }
 0x5a9   : > { %24115 = vmatprep.mubr.f32.mxu0 %v36045_v32  ;;  %v36106_v32 = vld [vmem:[#allocation96_spill] sm:$0xff] }
 0x5ab   : > { %22919 = vmatmul.mubr.f32.gmra.mrb[18].mxu1 %v36046_v47  ;;  %v36107_v47 = vld [vmem:[#allocation101_spill] sm:$0xff] }
 0x5ac   : > { %24116 = vmatmul.mubr.f32.gmra.mrb[16].mxu0 %v36048_v28  ;;  %22921 = vmatprep.mubr.f32.mxu1 %v36050_v20  ;;  %v36109_v28 = vld [vmem:[#allocation125_spill] sm:$0xff]  ;;  %v36111_v20 = vld [vmem:[#allocation120_spill] sm:$0xff] }
 0x5ad   : > { %24118 = vmatprep.mubr.f32.mxu0 %v36052_v25  ;;  %v36113_v25 = vld [vmem:[#allocation18_spill] sm:$0xff] }
 0x5af   : > { %22922 = vmatmul.mubr.f32.gmra.mrb[20].mxu1 %v36054_v50  ;;  %v36115_v50 = vld [vmem:[#allocation32_spill] sm:$0xff] }
 0x5b0   : > { %24119 = vmatmul.mubr.f32.gmra.mrb[18].mxu0 %v36055_v42  ;;  %22924 = vmatprep.mubr.f32.mxu1 %v36056_v38  ;;  %v36116_v42 = vld [vmem:[#allocation57_spill] sm:$0xff]  ;;  %v36117_v38 = vld [vmem:[#allocation59_spill] sm:$0xff] }
 0x5b1   : > { %24121 = vmatprep.mubr.f32.mxu0 %v36057_v9  ;;  %v36118_v9 = vld [vmem:[#allocation73_spill] sm:$0xff] }
 0x5b3   : > { %22925 = vmatmul.mubr.f32.gmra.mrb[22].mxu1 %v36058_v48  ;;  %v36119_v48 = vld [vmem:[#allocation75_spill] sm:$0xff] }
 0x5b4   : > { %24122 = vmatmul.mubr.f32.gmra.mrb[20].mxu0 %v36059_v23  ;;  %22927 = vmatprep.mubr.f32.mxu1 %v36060_v27  ;;  %v36120_v23 = vld [vmem:[#allocation92_spill] sm:$0xff]  ;;  %v36121_v27 = vld [vmem:[#allocation98_spill] sm:$0xff] }
 0x5b5   : > { %24124 = vmatprep.mubr.f32.mxu0 %v36061_v57  ;;  %v36122_v57 = vld [vmem:[#allocation99_spill] sm:$0xff] }
 0x5b7   : > { %22928 = vmatmul.mubr.f32.gmra.mrb[24].mxu1 %v36062_v29  ;;  %v36123_v29 = vld [vmem:[#allocation102_spill] sm:$0xff] }
 0x5b8   : > { %24125 = vmatmul.mubr.f32.gmra.mrb[22].mxu0 %v36063_v18  ;;  %22930 = vmatprep.mubr.f32.mxu1 %v36064_v62  ;;  %v36124_v18 = vld [vmem:[#allocation126_spill] sm:$0xff]  ;;  %v36125_v62 = vld [vmem:[#allocation12_spill] sm:$0xff] }
 0x5b9   : > { %24127 = vmatprep.mubr.f32.mxu0 %v36065_v2  ;;  %v36126_v2 = vld [vmem:[#allocation13_spill] sm:$0xff] }
 0x5bb   : > { %22931 = vmatmul.mubr.f32.gmra.mrb[26].mxu1 %v36067_v17  ;;  %v36128_v17 = vld [vmem:[#allocation39_spill] sm:$0xff] }
 0x5bc   : > { %24128 = vmatmul.mubr.f32.gmra.mrb[24].mxu0 %v36068_v60  ;;  %22933 = vmatprep.mubr.f32.mxu1 %v36070_v36  ;;  %v36129_v60 = vld [vmem:[#allocation27_spill] sm:$0xff]  ;;  %v36131_v36 = vld [vmem:[#allocation48_spill] sm:$0xff] }
 0x5bd   : > { %24130 = vmatprep.mubr.f32.mxu0 %v36071_v61  ;;  %v36132_v61 = vld [vmem:[#allocation64_spill] sm:$0xff] }
 0x5bf   : > { %22934 = vmatmul.mubr.f32.gmra.mrb[28].mxu1 %v36072_v31  ;;  %v36133_v31 = vld [vmem:[#allocation65_spill] sm:$0xff] }
 0x5c0   : > { %24131 = vmatmul.mubr.f32.gmra.mrb[26].mxu0 %v36074_v19  ;;  %22936 = vmatprep.mubr.f32.mxu1 %v36076_v6  ;;  %v36135_v19 = vld [vmem:[#allocation93_spill] sm:$0xff]  ;;  %v36137_v6 = vld [vmem:[#allocation127_spill] sm:$0xff] }
 0x5c1   : > { %24133 = vmatprep.mubr.f32.mxu0 %v36077_v1  ;;  %v31593_v1 = vsub.f32 %v15959_v51, %v31536_v34 }
 0x5c3   : > { %22937 = vmatmul.mubr.f32.gmra.mrb[30].mxu1 %v36078_v7  ;;  %v36138_v7 = vld [vmem:[#allocation116_spill] sm:$0xff] }
 0x5c4   : > { %24134 = vmatmul.mubr.f32.gmra.mrb[28].mxu0 %v36079_v8  ;;  %22941 = vmatprep.mubr.f32.mxu1 %v36080_v58  ;;  %v36139_v8 = vld [vmem:[#allocation124_spill] sm:$0xff] }
 0x5c5   : > { %24136 = vmatprep.mubr.f32.mxu0 %v36081_v44  ;;  %v36140_v44 = vld [vmem:[#allocation129_spill] sm:$0xff] }
 0x5c7   : > { %22942 = vmatmul.mubr.f32.vlgmr.msra.gmra.mrb[0].mxu1 %v36082_v3 }
 0x5c8   : > { %24137 = vmatmul.mubr.f32.gmra.mrb[30].mxu0 %v36083_v22  ;;  %22944 = vmatprep.mubr.f32.mxu1 %v36084_v0  ;;  %v31600_v22 = vand.u32 4294901760, %v31593_v1 }
 0x5c9   : > { %24141 = vmatprep.mubr.f32.mxu0 %v36085_v56  ;;  %22990 = vmatpush3.msra.mxu1 %v35922_v11  ;;  %v36093_v11 = vld [vmem:[#allocation88_spill] sm:$0xff] }
 0x5ca   : > { %v16351_v51 = vsub.f32 %v31593_v1, %v31600_v22 }
 0x5cb   : > { %22945 = vmatmul.mubr.f32.gmra.mrb[2].mxu1 %v36086_v21 }
 0x5cc   : > { %24142 = vmatmul.mubr.f32.vlgmr.msra.gmra.mrb[0].mxu0 %v36087_v63  ;;  %22947 = vmatprep.mubr.f32.mxu1 %v36088_v12 }
 0x5cd   : > { %24144 = vmatprep.mubr.f32.mxu0 %v36089_v13  ;;  %24190 = vmatpush3.msra.mxu0 %v35924_v41  ;;  %v36099_v41 = vld [vmem:[#allocation9_spill] sm:$0xff] }
 0x5ce   : > { %24239 = vmatprep.subr.mxu0 %v31536_v34 }
 0x5cf   : > { %22948 = vmatmul.mubr.f32.gmra.mrb[4].mxu1 %v36090_v40 }
 0x5d0   : > { %24145 = vmatmul.mubr.f32.gmra.mrb[2].mxu0 %v36091_v15  ;;  %22950 = vmatprep.mubr.f32.mxu1 %v36092_v43 }
 0x5d1   : > { %24147 = vmatprep.mubr.f32.mxu0 %v36093_v11 }
 0x5d3   : > { %22951 = vmatmul.mubr.f32.gmra.mrb[6].mxu1 %v36094_v46 }
 0x5d4   : > { %24148 = vmatmul.mubr.f32.gmra.mrb[4].mxu0 %v36095_v49  ;;  %22953 = vmatprep.mubr.f32.mxu1 %v36096_v26 }
 0x5d5   : > { %24150 = vmatprep.mubr.f32.mxu0 %v36097_v53 }
 0x5d7   : > { %22954 = vmatmul.mubr.f32.gmra.mrb[8].mxu1 %v36098_v35 }
 0x5d8   : > { %24151 = vmatmul.mubr.f32.gmra.mrb[6].mxu0 %v36099_v41  ;;  %22956 = vmatprep.mubr.f32.mxu1 %v36100_v10 }
 0x5d9   : > { %24153 = vmatprep.mubr.f32.mxu0 %v36101_v5 }
 0x5db   : > { %22957 = vmatmul.mubr.f32.gmra.mrb[10].mxu1 %v36102_v30 }
 0x5dc   : > { %24154 = vmatmul.mubr.f32.gmra.mrb[8].mxu0 %v36103_v16  ;;  %22959 = vmatprep.mubr.f32.mxu1 %v36104_v54 }
 0x5dd   : > { %24156 = vmatprep.mubr.f32.mxu0 %v36105_v39 }
 0x5df   : > { %22960 = vmatmul.mubr.f32.gmra.mrb[12].mxu1 %v36106_v32 }
 0x5e0   : > { %24157 = vmatmul.mubr.f32.gmra.mrb[10].mxu0 %v36107_v47  ;;  %22962 = vmatprep.mubr.f32.mxu1 %v36108_v37 }
 0x5e1   : > { %24159 = vmatprep.mubr.f32.mxu0 %v36109_v28 }
 0x5e3   : > { %22963 = vmatmul.mubr.f32.gmra.mrb[14].mxu1 %v36110_v4 }
 0x5e4   : > { %24160 = vmatmul.mubr.f32.gmra.mrb[12].mxu0 %v36111_v20  ;;  %22965 = vmatprep.mubr.f32.mxu1 %v36112_v45 }
 0x5e5   : > { %24162 = vmatprep.mubr.f32.mxu0 %v36113_v25 }
 0x5e7   : > { %22966 = vmatmul.mubr.f32.gmra.mrb[16].mxu1 %v36114_v55 }
 0x5e8   : > { %24163 = vmatmul.mubr.f32.gmra.mrb[14].mxu0 %v36115_v50  ;;  %22968 = vmatprep.mubr.f32.mxu1 %v36116_v42 }
 0x5e9   : > { %24165 = vmatprep.mubr.f32.mxu0 %v36117_v38 }
 0x5eb   : > { %22969 = vmatmul.mubr.f32.gmra.mrb[18].mxu1 %v36118_v9 }
 0x5ec   : > { %24166 = vmatmul.mubr.f32.gmra.mrb[16].mxu0 %v36119_v48  ;;  %22971 = vmatprep.mubr.f32.mxu1 %v36120_v23 }
 0x5ed   : > { %24168 = vmatprep.mubr.f32.mxu0 %v36121_v27 }
 0x5ef   : > { %22972 = vmatmul.mubr.f32.gmra.mrb[20].mxu1 %v36122_v57 }
 0x5f0   : > { %24169 = vmatmul.mubr.f32.gmra.mrb[18].mxu0 %v36123_v29  ;;  %22974 = vmatprep.mubr.f32.mxu1 %v36124_v18 }
 0x5f1   : > { %24171 = vmatprep.mubr.f32.mxu0 %v36125_v62 }
 0x5f3   : > { %22975 = vmatmul.mubr.f32.gmra.mrb[22].mxu1 %v36126_v2 }
 0x5f4   : > { %24172 = vmatmul.mubr.f32.gmra.mrb[20].mxu0 %v36127_v24  ;;  %22977 = vmatprep.mubr.f32.mxu1 %v36128_v17 }
 0x5f5   : > { %24174 = vmatprep.mubr.f32.mxu0 %v36129_v60 }
 0x5f7   : > { %22978 = vmatmul.mubr.f32.gmra.mrb[24].mxu1 %v36130_v33 }
 0x5f8   : > { %24175 = vmatmul.mubr.f32.gmra.mrb[22].mxu0 %v36131_v36  ;;  %22980 = vmatprep.mubr.f32.mxu1 %v36132_v61 }
 0x5f9   : > { %24177 = vmatprep.mubr.f32.mxu0 %v36133_v31 }
 0x5fb   : > { %22981 = vmatmul.mubr.f32.gmra.mrb[26].mxu1 %v36134_v52  ;;  %v36142_v52 = vld [vmem:[#allocation106_spill] sm:$0xff] }
 0x5fc   : > { %24178 = vmatmul.mubr.f32.gmra.mrb[24].mxu0 %v36135_v19  ;;  %22983 = vmatprep.mubr.f32.mxu1 %v36136_v59  ;;  %v36143_v19 = vld [vmem:[#allocation115_spill] sm:$0xff] }
 0x5fd   : > { %24180 = vmatprep.mubr.f32.mxu0 %v36137_v6  ;;  %v36144_v6 = vld [vmem:[#allocation128_spill] sm:$0xff] }
 0x5ff   : > { %22984 = vmatmul.mubr.f32.gmra.mrb[28].mxu1 %v36138_v7 }
 0x600   : > { %24181 = vmatmul.mubr.f32.gmra.mrb[26].mxu0 %v36139_v8  ;;  %22986 = vmatprep.mubr.f32.mxu1 %v36140_v44  ;;  %v36145_v8 = vld [vmem:[#allocation114_spill] sm:$0xff] }
 0x601   : > { %24183 = vmatprep.mubr.f32.mxu0 %v36141_v14  ;;  %v31612_v14 = vand.u32 4294901760, %v16351_v51 }
 0x603   : > { %22987 = vmatmul.mubr.f32.gmra.mrb[30].mxu1 %v36142_v52 }
 0x604   : > { %24184 = vmatmul.mubr.f32.gmra.mrb[28].mxu0 %v36143_v19  ;;  %22991 = vmatprep.mubr.f32.mxu1 %v36080_v58  ;;  %v15830_v58 = vld [vmem:[#allocation2 + $0x32] sm:$0xff] }
 0x605   : > { %24186 = vmatprep.mubr.f32.mxu0 %v36144_v6 }
 0x607   : > { %22992 = vmatmul.mubr.f32.vlgmr.msra.gmra.mrb[0].mxu1 %v36082_v3  ;;  %v15863_v3 = vsel %vm236_vm1, %v15830_v58, 0 }
 0x608   : > { %24187 = vmatmul.mubr.f32.gmra.mrb[30].mxu0 %v36145_v8  ;;  %22994 = vmatprep.mubr.f32.mxu1 %v36084_v0  ;;  %v15831_v0 = vld [vmem:[#allocation2 + $0x3a] sm:$0xff] }
 0x609   : > { %24191 = vmatprep.mubr.f32.mxu0 %v36085_v56  ;;  %v15832_v56 = vld [vmem:[#allocation2 + $0x4a] sm:$0xff] }
 0x60b   : > { %22995 = vmatmul.mubr.f32.gmra.mrb[2].mxu1 %v36086_v21  ;;  %v31659_v21 = vand.u32 4294901760, %v15863_v3 }
 0x60c   : > { %24192 = vmatmul.mubr.f32.vlgmr.msra.gmra.mrb[0].mxu0 %v36087_v63  ;;  %22997 = vmatprep.mubr.f32.mxu1 %v36088_v12  ;;  %v15866_v63 = vsel %vm236_vm1, %v15831_v0, 0  ;;  %v15869_v12 = vsel %vm236_vm1, %v15832_v56, 0 }
 0x60d   : > { %24194 = vmatprep.mubr.f32.mxu0 %v36089_v13  ;;  %24240 = vmatpush3.msra.mxu0 %v31536_v34  ;;  %v15833_v13 = vld [vmem:[#allocation2 + $0x52] sm:$0xff] }
 0x60e   : > { %24289 = vmatprep.subr.mxu0 %v31612_v14 }
 0x60f   : > { %22998 = vmatmul.mubr.f32.gmra.mrb[4].mxu1 %v36090_v40  ;;  %v15834_v40 = vld [vmem:[#allocation2 + $0x62] sm:$0xff] }
 0x610   : > { %24195 = vmatmul.mubr.f32.gmra.mrb[2].mxu0 %v36091_v15  ;;  %23000 = vmatprep.mubr.f32.mxu1 %v36092_v43  ;;  %v31665_v15 = vand.u32 4294901760, %v15866_v63  ;;  %v31670_v43 = vsub.f32 %v15863_v3, %v31659_v21 }
 0x611   : > { %24197 = vmatprep.mubr.f32.mxu0 %v36093_v11  ;;  %v31672_v11 = vand.u32 4294901760, %v15869_v12 }
 0x613   : > { %23001 = vmatmul.mubr.f32.gmra.mrb[6].mxu1 %v36094_v46  ;;  %v15872_v46 = vsel %vm236_vm1, %v15833_v13, 0 }
 0x614   : > { %24198 = vmatmul.mubr.f32.gmra.mrb[4].mxu0 %v36095_v49  ;;  %23003 = vmatprep.mubr.f32.mxu1 %v36096_v26  ;;  %v15875_v49 = vsel %vm236_vm1, %v15834_v40, 0  ;;  %v15835_v26 = vld [vmem:[#allocation2 + $0x6a] sm:$0xff] }
 0x615   : > { %24200 = vmatprep.mubr.f32.mxu0 %v36097_v53  ;;  %v31679_v53 = vsub.f32 %v15866_v63, %v31665_v15  ;;  %v15843_v40 = vld [vmem:[#allocation2 + $0xca] sm:$0xff] }
 0x617   : > { %23004 = vmatmul.mubr.f32.gmra.mrb[8].mxu1 %v36098_v35  ;;  %v31681_v35 = vand.u32 4294901760, %v15872_v46 }
 0x618   : > { %24201 = vmatmul.mubr.f32.gmra.mrb[6].mxu0 %v36099_v41  ;;  %23006 = vmatprep.mubr.f32.mxu1 %v36100_v10  ;;  %v15836_v41 = vld [vmem:[#allocation2 + $0x7a] sm:$0xff]  ;;  %v36146_v10 = vld [vmem:[#allocation85_spill] sm:$0xff] }
 0x619   : > { %24203 = vmatprep.mubr.f32.mxu0 %v36101_v5  ;;  %v36147_v5 = vld [vmem:[#allocation93_spill] sm:$0xff] }
 0x61b   : > { %23007 = vmatmul.mubr.f32.gmra.mrb[10].mxu1 %v36102_v30  ;;  %v34482_v30 = vand.u32 4294901760, %v31670_v43 }
 0x61c   : > { %24204 = vmatmul.mubr.f32.gmra.mrb[8].mxu0 %v36103_v16  ;;  %23009 = vmatprep.mubr.f32.mxu1 %v36104_v54  ;;  %v31687_v16 = vsub.f32 %v15869_v12, %v31672_v11  ;;  %v31689_v54 = vand.u32 4294901760, %v15875_v49 }
 0x61d   : > { %24206 = vmatprep.mubr.f32.mxu0 %v36105_v39  ;;  %v15878_v39 = vsel %vm236_vm1, %v15835_v26, 0 }
 0x61f   : > { %23010 = vmatmul.mubr.f32.gmra.mrb[12].mxu1 %v36106_v32  ;;  %v36148_v32 = vld [vmem:[#allocation127_spill] sm:$0xff] }
 0x620   : > { %24207 = vmatmul.mubr.f32.gmra.mrb[10].mxu0 %v36107_v47  ;;  %23012 = vmatprep.mubr.f32.mxu1 %v36108_v37  ;;  %v15837_v47 = vld [vmem:[#allocation2 + $0x82] sm:$0xff]  ;;  %v15881_v37 = vsel %vm236_vm1, %v15836_v41, 0 }
 0x621   : > { %24209 = vmatprep.mubr.f32.mxu0 %v36109_v28  ;;  %v34481_v28 = vand.u32 4294901760, %v31679_v53 }
 0x623   : > { %23013 = vmatmul.mubr.f32.gmra.mrb[14].mxu1 %v36110_v4  ;;  %v31697_v4 = vsub.f32 %v15872_v46, %v31681_v35 }
 0x624   : > { %24210 = vmatmul.mubr.f32.gmra.mrb[12].mxu0 %v36111_v20  ;;  %23015 = vmatprep.mubr.f32.mxu1 %v36112_v45  ;;  %v31699_v20 = vand.u32 4294901760, %v15878_v39  ;;  %v15838_v45 = vld [vmem:[#allocation2 + $0x92] sm:$0xff] }
 0x625   : > { %24212 = vmatprep.mubr.f32.mxu0 %v36113_v25  ;;  %v36149_v25 = vld [vmem:[#allocation124_spill] sm:$0xff] }
 0x627   : > { %23016 = vmatmul.mubr.f32.gmra.mrb[16].mxu1 %v36114_v55  ;;  %v16030_v55 = vsub.f32 %v31670_v43, %v34482_v30 }
 0x628   : > { %24213 = vmatmul.mubr.f32.gmra.mrb[14].mxu0 %v36115_v50  ;;  %23018 = vmatprep.mubr.f32.mxu1 %v36116_v42  ;;  %v34480_v50 = vand.u32 4294901760, %v31687_v16  ;;  %v31708_v42 = vsub.f32 %v15875_v49, %v31689_v54 }
 0x629   : > { %24215 = vmatprep.mubr.f32.mxu0 %v36117_v38  ;;  %v15884_v38 = vsel %vm236_vm1, %v15837_v47, 0 }
 0x62b   : > { %23019 = vmatmul.mubr.f32.gmra.mrb[18].mxu1 %v36118_v9  ;;  %v36150_v9 = vld [vmem:[#allocation94_spill] sm:$0xff] }
 0x62c   : > { %24216 = vmatmul.mubr.f32.gmra.mrb[16].mxu0 %v36119_v48  ;;  %23021 = vmatprep.mubr.f32.mxu1 %v36120_v23  ;;  %v31713_v48 = vand.u32 4294901760, %v15881_v37  ;;  %v15887_v23 = vsel %vm236_vm1, %v15838_v45, 0 }
 0x62d   : > { %24218 = vmatprep.mubr.f32.mxu0 %v36121_v27  ;;  %v15839_v27 = vld [vmem:[#allocation2 + $0x9a] sm:$0xff] }
 0x62f   : > { %23022 = vmatmul.mubr.f32.gmra.mrb[20].mxu1 %v36122_v57  ;;  %v15840_v57 = vld [vmem:[#allocation2 + $0xaa] sm:$0xff] }
 0x630   : > { %24219 = vmatmul.mubr.f32.gmra.mrb[18].mxu0 %v36123_v29  ;;  %23024 = vmatprep.mubr.f32.mxu1 %v36124_v18  ;;  %v34478_v29 = vand.u32 4294901760, %v31697_v4  ;;  %v31718_v18 = vsub.f32 %v15878_v39, %v31699_v20 }
 0x631   : > { %24221 = vmatprep.mubr.f32.mxu0 %v36125_v62  ;;  %v31720_v62 = vand.u32 4294901760, %v15884_v38 }
 0x633   : > { %23025 = vmatmul.mubr.f32.gmra.mrb[22].mxu1 %v36126_v2  ;;  %v16031_v2 = vand.u32 4294901760, %v16030_v55 }
 0x634   : > { %24222 = vmatmul.mubr.f32.gmra.mrb[20].mxu0 %v36127_v24  ;;  %23027 = vmatprep.mubr.f32.mxu1 %v36128_v17  ;;  %v16040_v24 = vsub.f32 %v31679_v53, %v34481_v28  ;;  %v16050_v17 = vsub.f32 %v31687_v16, %v34480_v50  ;;  %v15853_v50 = vld [vmem:[#allocation2 + $0x142] sm:$0xff] }
 0x635   : > { %24224 = vmatprep.mubr.f32.mxu0 %v36129_v60  ;;  %v34476_v60 = vand.u32 4294901760, %v31708_v42 }
 0x636   : > { %v16041_v51 = vand.u32 4294901760, %v16040_v24  ;;  %v16051_v56 = vand.u32 4294901760, %v16050_v17 }
 0x637   : > { %23028 = vmatmul.mubr.f32.gmra.mrb[24].mxu1 %v36130_v33  ;;  %v31733_v33 = vsub.f32 %v15881_v37, %v31713_v48  ;;  %v16070_v63 = vsub.f32 %v31708_v42, %v34476_v60 }
 0x638   : > { %24225 = vmatmul.mubr.f32.gmra.mrb[22].mxu0 %v36131_v36  ;;  %23030 = vmatprep.mubr.f32.mxu1 %v36132_v61  ;;  %v31735_v36 = vand.u32 4294901760, %v15887_v23  ;;  %v15890_v61 = vsel %vm236_vm1, %v15839_v27, 0 }
 0x639   : > { %24227 = vmatprep.mubr.f32.mxu0 %v36133_v31  ;;  %v15893_v31 = vsel %vm236_vm1, %v15840_v57, 0  ;;  %v31748_v58 = vand.u32 4294901760, %v15890_v61  ;;  %v34473_v12 = vand.u32 4294901760, %v31733_v33  ;;  %v16071_v37 = vand.u32 4294901760, %v16070_v63 }
 0x63a   : > { %v31750_v3 = vand.u32 4294901760, %v15893_v31  ;;  %v31758_v13 = vsub.f32 %v15887_v23, %v31735_v36 }
 0x63b   : > { %23031 = vmatmul.mubr.f32.gmra.mrb[26].mxu1 %v36146_v10  ;;  %v16090_v45 = vsub.f32 %v31733_v33, %v34473_v12 }
 0x63c   : > { %24228 = vmatmul.mubr.f32.gmra.mrb[24].mxu0 %v36147_v5  ;;  %23033 = vmatprep.mubr.f32.mxu1 %v36136_v59  ;;  %v16060_v59 = vsub.f32 %v31697_v4, %v34478_v29  ;;  %v31768_v5 = vsub.f32 %v15890_v61, %v31748_v58  ;;  %v31771_v39 = vsub.f32 %v15893_v31, %v31750_v3 }
 0x63d   : > { %24230 = vmatprep.mubr.f32.mxu0 %v36148_v32  ;;  %v15902_v32 = vsel %vm236_vm1, %v15843_v40, 0  ;;  %v16091_v31 = vand.u32 4294901760, %v16090_v45 }
 0x63e   : > { %v16061_v49 = vand.u32 4294901760, %v16060_v59  ;;  %36152 = vst [vmem:[#allocation6_spill] sm:$0xff] %v31768_v5  ;;  %36153 = vst [vmem:[#allocation16_spill] sm:$0xff] %v31771_v39  ;;  %v31786_v27 = vand.u32 4294901760, %v15902_v32  ;;  %v34468_v17 = vand.u32 4294901760, %v31768_v5 }
 0x63f   : > { %23034 = vmatmul.mubr.f32.gmra.mrb[28].mxu1 %v36138_v7  ;;  %v34474_v7 = vand.u32 4294901760, %v31718_v18 }
 0x640   : > { %24231 = vmatmul.mubr.f32.gmra.mrb[26].mxu0 %v36149_v25  ;;  %23036 = vmatprep.mubr.f32.mxu1 %v36140_v44  ;;  %v15842_v44 = vld [vmem:[#allocation2 + $0xc2] sm:$0xff]  ;;  %v34470_v25 = vand.u32 4294901760, %v31758_v13 }
 0x641   : > { %24233 = vmatprep.mubr.f32.mxu0 %v36150_v9  ;;  %v15899_v46 = vsel %vm236_vm1, %v15842_v44, 0  ;;  %v16080_v26 = vsub.f32 %v31718_v18, %v34474_v7  ;;  %v15852_v7 = vld [vmem:[#allocation2 + $0x13a] sm:$0xff] }
 0x642   : > { %v31779_v55 = vand.u32 4294901760, %v15899_v46 }
 0x643   : > { %23037 = vmatmul.mubr.f32.gmra.mrb[30].mxu1 %v36142_v52  ;;  %v15841_v52 = vld [vmem:[#allocation2 + $0xb2] sm:$0xff]  ;;  %v16081_v9 = vand.u32 4294901760, %v16080_v26 }
 0x644   : > { %24234 = vmatmul.mubr.f32.gmra.mrb[28].mxu0 %v36143_v19  ;;  %v36151_v19 = vmov 0.0   ;;  %v15896_v0 = vsel %vm236_vm1, %v15841_v52, 0  ;;  %v16110_v52 = vsub.f32 %v31758_v13, %v34470_v25  ;;  %v31800_v59 = vsub.f32 %v15899_v46, %v31779_v55 }
 0x645   : > { %24236 = vmatprep.mubr.f32.mxu0 %v36144_v6  ;;  %17901 = vmatprep.mubr.f32.mxu1 %v36151_v19  ;;  %v31745_v6 = vsub.f32 %v15884_v38, %v31720_v62  ;;  %v31765_v10 = vand.u32 4294901760, %v15896_v0  ;;  %v15845_v38 = vld [vmem:[#allocation2 + $0xe2] sm:$0xff]  ;;  %v16120_v46 = vsub.f32 %v31768_v5, %v34468_v17 }
 0x646   : > { %v15908_v61 = vsel %vm236_vm1, %v15845_v38, 0  ;;  %36155 = vst [vmem:[#allocation34_spill] sm:$0xff] %v31800_v59 }
 0x647   : > { %v34471_v41 = vand.u32 4294901760, %v31745_v6  ;;  %v31784_v23 = vsub.f32 %v15896_v0, %v31765_v10  ;;  %v31810_v40 = vand.u32 4294901760, %v15908_v61 }
 0x648   : > { %24237 = vmatmul.mubr.f32.gmra.mrb[30].mxu0 %v36145_v8  ;;  %v15844_v8 = vld [vmem:[#allocation2 + $0xda] sm:$0xff] }
 0x649   : > { %24241 = vmatprep.mubr.f32.mxu0 %v16031_v2  ;;  %v15905_v47 = vsel %vm236_vm1, %v15844_v8, 0  ;;  %36154 = vst [vmem:[#allocation10_spill] sm:$0xff] %v31784_v23  ;;  %v15846_v2 = vld [vmem:[#allocation2 + $0xf2] sm:$0xff]  ;;  %v16100_v24 = vsub.f32 %v31745_v6, %v34471_v41  ;;  %v34472_v0 = vand.u32 4294901760, %v31784_v23  ;;  %v15848_v8 = vld [vmem:[#allocation2 + $0x10a] sm:$0xff] }
 0x64a   : > { %v31788_v57 = vand.u32 4294901760, %v15905_v47  ;;  %v15911_v44 = vsel %vm236_vm1, %v15846_v2, 0  ;;  %v15917_v38 = vsel %vm236_vm1, %v15848_v8, 0 }
 0x64b   : > { %v31819_v45 = vand.u32 4294901760, %v15911_v44  ;;  %v16140_v2 = vsub.f32 %v31784_v23, %v34472_v0  ;;  %v31839_v0 = vand.u32 4294901760, %v15917_v38  ;;  %v15860_v23 = vld [vmem:[#allocation2 + $0x19a] sm:$0xff] }
 0x64c   : > { %24242 = vmatmul.mubr.f32.vlgmr.msra.gmra.mrb[0].mxu0 %v16041_v51  ;;  %v15847_v51 = vld [vmem:[#allocation2 + $0xfa] sm:$0xff]  ;;  %v31808_v63 = vsub.f32 %v15905_v47, %v31788_v57 }
 0x64d   : > { %24244 = vmatprep.mubr.f32.mxu0 %v16051_v56  ;;  %24290 = vmatpush3.msra.mxu0 %v31612_v14  ;;  %v34469_v14 = vand.u32 4294901760, %v31771_v39  ;;  %v31805_v56 = vsub.f32 %v15902_v32, %v31786_v27  ;;  %v34475_v32 = vand.u32 4294901760, %v31800_v59  ;;  %v15914_v47 = vsel %vm236_vm1, %v15847_v51, 0 }
 0x64e   : > { %24339 = vmatprep.subr.mxu0 %v31593_v1  ;;  %36157 = vst [vmem:[#allocation56_spill] sm:$0xff] %v31808_v63  ;;  %v34479_v17 = vand.u32 4294901760, %v31808_v63  ;;  %v31831_v41 = vand.u32 4294901760, %v15914_v47  ;;  %v31837_v8 = vsub.f32 %v15911_v44, %v31819_v45  ;;  %v31859_v29 = vsub.f32 %v15917_v38, %v31839_v0 }
 0x64f   : > { %36156 = vst [vmem:[#allocation49_spill] sm:$0xff] %v31805_v56  ;;  %v16130_v26 = vsub.f32 %v31771_v39, %v34469_v14  ;;  %v16121_v14 = vand.u32 4294901760, %v16120_v46  ;;  %v16150_v51 = vsub.f32 %v31800_v59, %v34475_v32  ;;  %v16141_v46 = vand.u32 4294901760, %v16140_v2 }
 0x650   : > { %24245 = vmatmul.mubr.f32.gmra.mrb[2].mxu0 %v16061_v49  ;;  %v16101_v49 = vand.u32 4294901760, %v16100_v24  ;;  %v34477_v24 = vand.u32 4294901760, %v31805_v56  ;;  %36159 = vst [vmem:[#allocation68_spill] sm:$0xff] %v31837_v8  ;;  %v31851_v32 = vsub.f32 %v15914_v47, %v31831_v41  ;;  %v15929_v2 = vsel %vm236_vm1, %v15852_v7, 0  ;;  %36161 = vst [vmem:[#allocation87_spill] sm:$0xff] %v31859_v29 }
 0x651   : > { %24247 = vmatprep.mubr.f32.mxu0 %v16071_v37  ;;  %v16111_v37 = vand.u32 4294901760, %v16110_v52  ;;  %v15850_v52 = vld [vmem:[#allocation2 + $0x122] sm:$0xff]  ;;  %v16131_v25 = vand.u32 4294901760, %v16130_v26 }
 0x652   : > { %v16160_v26 = vsub.f32 %v31805_v56, %v34477_v24  ;;  %36160 = vst [vmem:[#allocation79_spill] sm:$0xff] %v31851_v32  ;;  %v34486_v24 = vand.u32 4294901760, %v31837_v8 }
 0x654   : > { %24248 = vmatmul.mubr.f32.gmra.mrb[4].mxu0 %v16081_v9  ;;  %v15849_v9 = vld [vmem:[#allocation2 + $0x112] sm:$0xff]  ;;  %v16161_v28 = vand.u32 4294901760, %v16160_v26  ;;  %v16190_v26 = vsub.f32 %v31837_v8, %v34486_v24  ;;  %v36167_v24 = vand.u32 4294901760, %v31851_v32 }
 0x655   : > { %24250 = vmatprep.mubr.f32.mxu0 %v16091_v31  ;;  %v31829_v31 = vsub.f32 %v15908_v61, %v31810_v40  ;;  %v15920_v12 = vsel %vm236_vm1, %v15849_v9, 0  ;;  %v15851_v61 = vld [vmem:[#allocation2 + $0x12a] sm:$0xff] }
 0x656   : > { %v31853_v9 = vand.u32 4294901760, %v15920_v12  ;;  %v15926_v60 = vsel %vm236_vm1, %v15851_v61, 0  ;;  %v31868_v61 = vand.u32 4294901760, %v15929_v2 }
 0x657   : > { %36158 = vst [vmem:[#allocation22_spill] sm:$0xff] %v31829_v31  ;;  %v34483_v44 = vand.u32 4294901760, %v31829_v31  ;;  %v31866_v30 = vand.u32 4294901760, %v15926_v60 }
 0x658   : > { %24251 = vmatmul.mubr.f32.gmra.mrb[6].mxu0 %v16101_v49  ;;  %v15923_v49 = vsel %vm236_vm1, %v15850_v52, 0  ;;  %v16151_v52 = vand.u32 4294901760, %v16150_v51  ;;  %v31872_v38 = vsub.f32 %v15920_v12, %v31853_v9  ;;  %v15932_v51 = vsel %vm236_vm1, %v15853_v50, 0 }
 0x659   : > { %24253 = vmatprep.mubr.f32.mxu0 %v16111_v37  ;;  %v16170_v37 = vsub.f32 %v31808_v63, %v34479_v17  ;;  %v31861_v17 = vand.u32 4294901760, %v15923_v49  ;;  %v16180_v47 = vsub.f32 %v31829_v31, %v34483_v44  ;;  %v31887_v12 = vsub.f32 %v15929_v2, %v31868_v61 }
 0x65a   : > { %36162 = vst [vmem:[#allocation100_spill] sm:$0xff] %v31872_v38  ;;  %v31889_v50 = vand.u32 4294901760, %v15932_v51  ;;  %v16200_v44 = vsub.f32 %v31851_v32, %v36167_v24  ;;  %v36171_v32 = vand.u32 4294901760, %v31872_v38 }
 0x65b   : > { %v16171_v7 = vand.u32 4294901760, %v16170_v37  ;;  %v31880_v19 = vsub.f32 %v15923_v49, %v31861_v17  ;;  %v15855_v37 = vld [vmem:[#allocation2 + $0x15a] sm:$0xff]  ;;  %36165 = vst [vmem:[#allocation111_spill] sm:$0xff] %v31887_v12  ;;  %v16181_v31 = vand.u32 4294901760, %v16180_v47  ;;  %v15857_v47 = vld [vmem:[#allocation2 + $0x172] sm:$0xff] }
 0x65c   : > { %24254 = vmatmul.mubr.f32.gmra.mrb[8].mxu0 %v16121_v14  ;;  %v15854_v14 = vld [vmem:[#allocation2 + $0x152] sm:$0xff]  ;;  %36166 = vst [vmem:[#allocation89_spill] sm:$0xff] %v31889_v50  ;;  %v15938_v56 = vsel %vm236_vm1, %v15855_v37, 0  ;;  %v31906_v49 = vsub.f32 %v15932_v51, %v31889_v50 }
 0x65d   : > { %24256 = vmatprep.mubr.f32.mxu0 %v16131_v25  ;;  %36163 = vst [vmem:[#allocation20_spill] sm:$0xff] %v31880_v19  ;;  %v31884_v25 = vsub.f32 %v15926_v60, %v31866_v30  ;;  %v36169_v60 = vand.u32 4294901760, %v31859_v29  ;;  %v31914_v37 = vand.u32 4294901760, %v15938_v56  ;;  %v36174_v59 = vand.u32 4294901760, %v31880_v19 }
 0x65e   : > { %36170 = vst [vmem:[#allocation24_spill] sm:$0xff] %v31906_v49 }
 0x65f   : > { %36164 = vst [vmem:[#allocation105_spill] sm:$0xff] %v31884_v25  ;;  %v16210_v2 = vsub.f32 %v31859_v29, %v36169_v60  ;;  %v16220_v60 = vsub.f32 %v31872_v38, %v36171_v32  ;;  %36173 = vst [vmem:[#allocation29_spill] sm:$0xff] %v31914_v37  ;;  %v16230_v24 = vsub.f32 %v31880_v19, %v36174_v59  ;;  %v15859_v29 = vld [vmem:[#allocation2 + $0x18a] sm:$0xff]  ;;  %v36176_v32 = vand.u32 4294901760, %v31884_v25 }
 0x660   : > { %24257 = vmatmul.mubr.f32.gmra.mrb[10].mxu0 %v16141_v46  ;;  %v15935_v46 = vsel %vm236_vm1, %v15854_v14, 0  ;;  %v16191_v14 = vand.u32 4294901760, %v16190_v26  ;;  %v16201_v26 = vand.u32 4294901760, %v16200_v44  ;;  %v36177_v38 = vand.u32 4294901760, %v31887_v12 }
 0x661   : > { %24259 = vmatprep.mubr.f32.mxu0 %v16151_v52  ;;  %v15856_v52 = vld [vmem:[#allocation2 + $0x16a] sm:$0xff]  ;;  %v31895_v8 = vand.u32 4294901760, %v15935_v46  ;;  %v16221_v59 = vand.u32 4294901760, %v16220_v60  ;;  %v16231_v39 = vand.u32 4294901760, %v16230_v24  ;;  %v36180_v19 = vand.u32 4294901760, %v31906_v49 }
 0x663   : > { %36168 = vst [vmem:[#allocation17_spill] sm:$0xff] %v31895_v8  ;;  %v31912_v63 = vsub.f32 %v15935_v46, %v31895_v8  ;;  %v16240_v46 = vsub.f32 %v31884_v25, %v36176_v32 }
 0x664   : > { %24260 = vmatmul.mubr.f32.gmra.mrb[12].mxu0 %v16161_v28  ;;  %v15941_v28 = vsel %vm236_vm1, %v15856_v52, 0  ;;  %v16211_v52 = vand.u32 4294901760, %v16210_v2  ;;  %v15953_v2 = vsel %vm236_vm1, %v15860_v23, 0 }
 0x665   : > { %24262 = vmatprep.mubr.f32.mxu0 %v16171_v7  ;;  %v15858_v7 = vld [vmem:[#allocation2 + $0x182] sm:$0xff]  ;;  %36172 = vst [vmem:[#allocation28_spill] sm:$0xff] %v31912_v63  ;;  %v31919_v51 = vand.u32 4294901760, %v15941_v28  ;;  %v16241_v60 = vand.u32 4294901760, %v16240_v46 }
 0x666   : > { %v15947_v44 = vsel %vm236_vm1, %v15858_v7, 0 }
 0x667   : > { %36175 = vst [vmem:[#allocation15_spill] sm:$0xff] %v31919_v51  ;;  %v31937_v32 = vsub.f32 %v15941_v28, %v31919_v51  ;;  %v31939_v25 = vand.u32 4294901760, %v15947_v44 }
 0x668   : > { %24263 = vmatmul.mubr.f32.gmra.mrb[14].mxu0 %v16181_v31  ;;  %v15944_v31 = vsel %vm236_vm1, %v15857_v47, 0  ;;  %v31932_v47 = vsub.f32 %v15938_v56, %v31914_v37  ;;  %v16260_v56 = vsub.f32 %v31906_v49, %v36180_v19 }
 0x669   : > { %24265 = vmatprep.mubr.f32.mxu0 %v16191_v14  ;;  %v16250_v14 = vsub.f32 %v31887_v12, %v36177_v38  ;;  %v31934_v7 = vand.u32 4294901760, %v15944_v31  ;;  %36179 = vst [vmem:[#allocation38_spill] sm:$0xff] %v31939_v25  ;;  %v15950_v38 = vsel %vm236_vm1, %v15859_v29, 0  ;;  %v34518_v23 = vand.u32 4294901760, %v31937_v32 }
 0x66a   : > { %v34517_v28 = vand.u32 4294901760, %v31932_v47  ;;  %v31953_v29 = vand.u32 4294901760, %v15950_v38  ;;  %v31957_v46 = vsub.f32 %v15947_v44, %v31939_v25 }
 0x66b   : > { %36178 = vst [vmem:[#allocation26_spill] sm:$0xff] %v31934_v7  ;;  %v16251_v12 = vand.u32 4294901760, %v16250_v14  ;;  %v31951_v5 = vsub.f32 %v15944_v31, %v31934_v7  ;;  %v31959_v14 = vand.u32 4294901760, %v15953_v2  ;;  %v16290_v49 = vsub.f32 %v31937_v32, %v34518_v23 }
 0x66c   : > { %24266 = vmatmul.mubr.f32.gmra.mrb[16].mxu0 %v16201_v26  ;;  %v15861_v26 = vld [vmem:[#allocation2 + $0x1a2] sm:$0xff]  ;;  %36183 = vst [vmem:[#allocation84_spill] sm:$0xff] %v31953_v29 }
 0x66d   : > { %24268 = vmatprep.mubr.f32.mxu0 %v16211_v52  ;;  %v36181_v52 = vand.u32 4294901760, %v31912_v63  ;;  %36182 = vst [vmem:[#allocation77_spill] sm:$0xff] %v31951_v5  ;;  %36184 = vst [vmem:[#allocation97_spill] sm:$0xff] %v31959_v14  ;;  %v15956_v19 = vsel %vm236_vm1, %v15861_v26, 0  ;;  %v34519_v31 = vand.u32 4294901760, %v31951_v5  ;;  %v34525_v26 = vand.u32 4294901760, %v31957_v46 }
 0x66f   : > { %v16270_v24 = vsub.f32 %v31912_v63, %v36181_v52  ;;  %v16280_v52 = vsub.f32 %v31932_v47, %v34517_v28  ;;  %v31967_v63 = vsub.f32 %v15950_v38, %v31953_v29  ;;  %v16300_v38 = vsub.f32 %v31951_v5, %v34519_v31 }
 0x670   : > { %24269 = vmatmul.mubr.f32.gmra.mrb[18].mxu0 %v16221_v59  ;;  %v16261_v59 = vand.u32 4294901760, %v16260_v56  ;;  %v16310_v23 = vsub.f32 %v31957_v46, %v34525_v26  ;;  %v36200_v26 = vld [vmem:[#allocation22_spill] sm:$0xff] }
 0x671   : > { %24271 = vmatprep.mubr.f32.mxu0 %v16231_v39  ;;  %v31969_v39 = vand.u32 4294901760, %v15956_v19  ;;  %v16271_v44 = vand.u32 4294901760, %v16270_v24  ;;  %v16281_v56 = vand.u32 4294901760, %v16280_v52  ;;  %v34524_v28 = vand.u32 4294901760, %v31967_v63 }
 0x672   : > { %v16291_v24 = vand.u32 4294901760, %v16290_v49  ;;  %v16311_v5 = vand.u32 4294901760, %v16310_v23  ;;  %v36188_v23 = vld [vmem:[#allocation6_spill] sm:$0xff] }
 0x673   : > { %36185 = vst [vmem:[#allocation104_spill] sm:$0xff] %v31969_v39  ;;  %v16320_v52 = vsub.f32 %v31967_v63, %v34524_v28 }
 0x674   : > { %24272 = vmatmul.mubr.f32.gmra.mrb[20].mxu0 %v16241_v60  ;;  %v31976_v60 = vsub.f32 %v15953_v2, %v31959_v14 }
 0x675   : > { %24274 = vmatprep.mubr.f32.mxu0 %v16251_v12  ;;  %v31983_v12 = vsub.f32 %v15956_v19, %v31969_v39  ;;  %v16321_v19 = vand.u32 4294901760, %v16320_v52 }
 0x676   : > { %v34523_v2 = vand.u32 4294901760, %v31976_v60 }
 0x677   : > { %v34522_v31 = vand.u32 4294901760, %v31983_v12 }
 0x678   : > { %24275 = vmatmul.mubr.f32.gmra.mrb[22].mxu0 %v16261_v59  ;;  %v16301_v59 = vand.u32 4294901760, %v16300_v38  ;;  %v16330_v49 = vsub.f32 %v31976_v60, %v34523_v2 }
 0x679   : > { %24277 = vmatprep.mubr.f32.mxu0 %v16271_v44  ;;  %v16340_v44 = vsub.f32 %v31983_v12, %v34522_v31  ;;  %v36197_v31 = vld [vmem:[#allocation56_spill] sm:$0xff] }
 0x67b   : > { %v16341_v38 = vand.u32 4294901760, %v16340_v44 }
 0x67c   : > { %24278 = vmatmul.mubr.f32.gmra.mrb[24].mxu0 %v16281_v56  ;;  %v16331_v56 = vand.u32 4294901760, %v16330_v49  ;;  %v36192_v49 = vld [vmem:[#allocation10_spill] sm:$0xff] }
 0x67d   : > { %24280 = vmatprep.mubr.f32.mxu0 %v16291_v24  ;;  %v36189_v24 = vld [vmem:[#allocation16_spill] sm:$0xff] }
 0x680   : > { %24281 = vmatmul.mubr.f32.gmra.mrb[26].mxu0 %v16301_v59 }
 0x681   : > { %24283 = vmatprep.mubr.f32.mxu0 %v16311_v5 }
 0x684   : > { %24284 = vmatmul.mubr.f32.gmra.mrb[28].mxu0 %v16321_v19  ;;  %v36193_v19 = vld [vmem:[#allocation34_spill] sm:$0xff] }
 0x685   : > { %24286 = vmatprep.mubr.f32.mxu0 %v16331_v56 }
 0x688   : > { %24287 = vmatmul.mubr.f32.gmra.mrb[30].mxu0 %v16341_v38  ;;  %v36196_v38 = vld [vmem:[#allocation49_spill] sm:$0xff] }
 0x689   : > { %24291 = vmatprep.mubr.f32.mxu0 %v31659_v21 }
 0x68c   : > { %24292 = vmatmul.mubr.f32.vlgmr.msra.gmra.mrb[0].mxu0 %v31665_v15 }
 0x68d   : > { %24294 = vmatprep.mubr.f32.mxu0 %v31672_v11  ;;  %24340 = vmatpush3.msra.mxu0 %v31593_v1 }
 0x68e   : > { %24389 = vmatprep.subr.mxu0 %v31536_v34 }
 0x690   : > { %24295 = vmatmul.mubr.f32.gmra.mrb[2].mxu0 %v31681_v35 }
 0x691   : > { %24297 = vmatprep.mubr.f32.mxu0 %v31689_v54 }
 0x694   : > { %24298 = vmatmul.mubr.f32.gmra.mrb[4].mxu0 %v31699_v20 }
 0x695   : > { %24300 = vmatprep.mubr.f32.mxu0 %v31713_v48 }
 0x698   : > { %24301 = vmatmul.mubr.f32.gmra.mrb[6].mxu0 %v31720_v62 }
 0x699   : > { %24303 = vmatprep.mubr.f32.mxu0 %v31735_v36 }
 0x69c   : > { %24304 = vmatmul.mubr.f32.gmra.mrb[8].mxu0 %v31748_v58 }
 0x69d   : > { %24306 = vmatprep.mubr.f32.mxu0 %v31750_v3 }
 0x6a0   : > { %24307 = vmatmul.mubr.f32.gmra.mrb[10].mxu0 %v31765_v10 }
 0x6a1   : > { %24309 = vmatprep.mubr.f32.mxu0 %v31779_v55 }
 0x6a4   : > { %24310 = vmatmul.mubr.f32.gmra.mrb[12].mxu0 %v31786_v27 }
 0x6a5   : > { %24312 = vmatprep.mubr.f32.mxu0 %v31788_v57 }
 0x6a8   : > { %24313 = vmatmul.mubr.f32.gmra.mrb[14].mxu0 %v31810_v40 }
 0x6a9   : > { %24315 = vmatprep.mubr.f32.mxu0 %v31819_v45 }
 0x6ac   : > { %24316 = vmatmul.mubr.f32.gmra.mrb[16].mxu0 %v31831_v41 }
 0x6ad   : > { %24318 = vmatprep.mubr.f32.mxu0 %v31839_v0 }
 0x6b0   : > { %24319 = vmatmul.mubr.f32.gmra.mrb[18].mxu0 %v31853_v9 }
 0x6b1   : > { %24321 = vmatprep.mubr.f32.mxu0 %v31861_v17 }
 0x6b4   : > { %24322 = vmatmul.mubr.f32.gmra.mrb[20].mxu0 %v31866_v30 }
 0x6b5   : > { %24324 = vmatprep.mubr.f32.mxu0 %v31868_v61 }
 0x6b8   : > { %24325 = vmatmul.mubr.f32.gmra.mrb[22].mxu0 %v31889_v50 }
 0x6b9   : > { %24327 = vmatprep.mubr.f32.mxu0 %v31895_v8  ;;  %v36222_v8 = vld [vmem:[#allocation77_spill] sm:$0xff] }
 0x6bc   : > { %24328 = vmatmul.mubr.f32.gmra.mrb[24].mxu0 %v31914_v37 }
 0x6bd   : > { %24330 = vmatprep.mubr.f32.mxu0 %v31919_v51  ;;  %v36216_v51 = vld [vmem:[#allocation24_spill] sm:$0xff] }
 0x6c0   : > { %24331 = vmatmul.mubr.f32.gmra.mrb[26].mxu0 %v31934_v7 }
 0x6c1   : > { %24333 = vmatprep.mubr.f32.mxu0 %v31939_v25  ;;  %v36212_v25 = vld [vmem:[#allocation105_spill] sm:$0xff] }
 0x6c4   : > { %24334 = vmatmul.mubr.f32.gmra.mrb[28].mxu0 %v31953_v29 }
 0x6c5   : > { %24336 = vmatprep.mubr.f32.mxu0 %v31959_v14  ;;  %v36208_v14 = vld [vmem:[#allocation100_spill] sm:$0xff] }
 0x6c8   : > { %24337 = vmatmul.mubr.f32.gmra.mrb[30].mxu0 %v31969_v39 }
 0x6c9   : > { %24341 = vmatprep.mubr.f32.mxu0 %v31670_v43 }
 0x6cc   : > { %24342 = vmatmul.mubr.f32.vlgmr.msra.gmra.mrb[0].mxu0 %v31679_v53 }
 0x6cd   : > { %24344 = vmatprep.mubr.f32.mxu0 %v31687_v16  ;;  %24390 = vmatpush3.msra.mxu0 %v31536_v34 }
 0x6ce   : > { %24439 = vmatprep.subr.mxu0 %v31600_v22 }
 0x6d0   : > { %24345 = vmatmul.mubr.f32.gmra.mrb[2].mxu0 %v31697_v4 }
 0x6d1   : > { %24347 = vmatprep.mubr.f32.mxu0 %v31708_v42 }
 0x6d4   : > { %24348 = vmatmul.mubr.f32.gmra.mrb[4].mxu0 %v31718_v18 }
 0x6d5   : > { %24350 = vmatprep.mubr.f32.mxu0 %v31733_v33 }
 0x6d8   : > { %24351 = vmatmul.mubr.f32.gmra.mrb[6].mxu0 %v31745_v6 }
 0x6d9   : > { %24353 = vmatprep.mubr.f32.mxu0 %v31758_v13 }
 0x6da   : > { %v32044_v1 = vpop.f32.mrb[0].mxu1 }
 0x6db   : > { %36186 = vst [vmem:[#allocation53_spill] sm:$0xff] %v32044_v1  ;;  %v32046_v5 = vpop.f32.mrb[1].mxu1  ;;  %v36204_v1 = vld [vmem:[#allocation79_spill] sm:$0xff] }
 0x6dc   : > { %36187 = vst [vmem:[#allocation55_spill] sm:$0xff] %v32046_v5  ;;  %24354 = vmatmul.mubr.f32.gmra.mrb[8].mxu0 %v36188_v23 }
 0x6dd   : > { %24356 = vmatprep.mubr.f32.mxu0 %v36189_v24 }
 0x6de   : > { %v32050_v59 = vpop.f32.mrb[2].mxu1 }
 0x6df   : > { %36190 = vst [vmem:[#allocation61_spill] sm:$0xff] %v32050_v59  ;;  %v32052_v52 = vpop.f32.mrb[3].mxu1  ;;  %v36201_v59 = vld [vmem:[#allocation68_spill] sm:$0xff] }
 0x6e0   : > { %36191 = vst [vmem:[#allocation62_spill] sm:$0xff] %v32052_v52  ;;  %24357 = vmatmul.mubr.f32.gmra.mrb[10].mxu0 %v36192_v49 }
 0x6e1   : > { %24359 = vmatprep.mubr.f32.mxu0 %v36193_v19 }
 0x6e2   : > { %v32056_v44 = vpop.f32.mrb[4].mxu1 }
 0x6e3   : > { %36194 = vst [vmem:[#allocation31_spill] sm:$0xff] %v32056_v44  ;;  %v32058_v56 = vpop.f32.mrb[5].mxu1  ;;  %v36205_v44 = vld [vmem:[#allocation87_spill] sm:$0xff] }
 0x6e4   : > { %36195 = vst [vmem:[#allocation37_spill] sm:$0xff] %v32058_v56  ;;  %24360 = vmatmul.mubr.f32.gmra.mrb[12].mxu0 %v36196_v38 }
 0x6e5   : > { %24362 = vmatprep.mubr.f32.mxu0 %v36197_v31 }
 0x6e6   : > { %v32062_v2 = vpop.f32.mrb[6].mxu1 }
 0x6e7   : > { %36198 = vst [vmem:[#allocation50_spill] sm:$0xff] %v32062_v2  ;;  %v32064_v28 = vpop.f32.mrb[7].mxu1  ;;  %v36209_v2 = vld [vmem:[#allocation20_spill] sm:$0xff] }
 0x6e8   : > { %36199 = vst [vmem:[#allocation52_spill] sm:$0xff] %v32064_v28  ;;  %24363 = vmatmul.mubr.f32.gmra.mrb[14].mxu0 %v36200_v26 }
 0x6e9   : > { %24365 = vmatprep.mubr.f32.mxu0 %v36201_v59 }
 0x6ea   : > { %v32068_v52 = vpop.f32.mrb[8].mxu1 }
 0x6eb   : > { %36202 = vst [vmem:[#allocation8_spill] sm:$0xff] %v32068_v52  ;;  %v32070_v5 = vpop.f32.mrb[9].mxu1  ;;  %v36213_v52 = vld [vmem:[#allocation111_spill] sm:$0xff] }
 0x6ec   : > { %36203 = vst [vmem:[#allocation23_spill] sm:$0xff] %v32070_v5  ;;  %24366 = vmatmul.mubr.f32.gmra.mrb[16].mxu0 %v36204_v1 }
 0x6ed   : > { %24368 = vmatprep.mubr.f32.mxu0 %v36205_v44 }
 0x6ee   : > { %v32074_v56 = vpop.f32.mrb[10].mxu1 }
 0x6ef   : > { %36206 = vst [vmem:[#allocation36_spill] sm:$0xff] %v32074_v56  ;;  %v32076_v39 = vpop.f32.mrb[11].mxu1  ;;  %v36217_v56 = vld [vmem:[#allocation28_spill] sm:$0xff] }
 0x6f0   : > { %36207 = vst [vmem:[#allocation60_spill] sm:$0xff] %v32076_v39  ;;  %24369 = vmatmul.mubr.f32.gmra.mrb[18].mxu0 %v36208_v14 }
 0x6f1   : > { %24371 = vmatprep.mubr.f32.mxu0 %v36209_v2 }
 0x6f2   : > { %v32080_v28 = vpop.f32.mrb[12].mxu1 }
 0x6f3   : > { %36210 = vst [vmem:[#allocation66_spill] sm:$0xff] %v32080_v28  ;;  %v32082_v29 = vpop.f32.mrb[13].mxu1 }
 0x6f4   : > { %36211 = vst [vmem:[#allocation78_spill] sm:$0xff] %v32082_v29  ;;  %24372 = vmatmul.mubr.f32.gmra.mrb[20].mxu0 %v36212_v25 }
 0x6f5   : > { %24374 = vmatprep.mubr.f32.mxu0 %v36213_v52 }
 0x6f6   : > { %v32086_v5 = vpop.f32.mrb[14].mxu1 }
 0x6f7   : > { %36214 = vst [vmem:[#allocation103_spill] sm:$0xff] %v32086_v5  ;;  %v32088_v7 = vpop.f32.mrb[15].mxu1 }
 0x6f8   : > { %36215 = vst [vmem:[#allocation123_spill] sm:$0xff] %v32088_v7  ;;  %24375 = vmatmul.mubr.f32.gmra.mrb[22].mxu0 %v36216_v51 }
 0x6f9   : > { %24377 = vmatprep.mubr.f32.mxu0 %v36217_v56 }
 0x6fa   : > { %v32092_v39 = vpop.f32.mrb[16].mxu1 }
 0x6fb   : > { %36218 = vst [vmem:[#allocation44_spill] sm:$0xff] %v32092_v39  ;;  %v32094_v37 = vpop.f32.mrb[17].mxu1 }
 0x6fc   : > { %36219 = vst [vmem:[#allocation11_spill] sm:$0xff] %v32094_v37  ;;  %24378 = vmatmul.mubr.f32.gmra.mrb[24].mxu0 %v31932_v47 }
 0x6fd   : > { %24380 = vmatprep.mubr.f32.mxu0 %v31937_v32 }
 0x6fe   : > { %v32098_v29 = vpop.f32.mrb[18].mxu1 }
 0x6ff   : > { %36220 = vst [vmem:[#allocation14_spill] sm:$0xff] %v32098_v29  ;;  %v32100_v28 = vpop.f32.mrb[19].mxu1 }
 0x700   : > { %36221 = vst [vmem:[#allocation30_spill] sm:$0xff] %v32100_v28  ;;  %24381 = vmatmul.mubr.f32.gmra.mrb[26].mxu0 %v36222_v8  ;;  %v36227_v28 = vand.u32 4294901760, %v31670_v43  ;;  %v36231_v43 = vand.u32 4294901760, %v31697_v4  ;;  %v36235_v4 = vand.u32 4294901760, %v31745_v6  ;;  %v36242_v6 = vand.u32 4294901760, %v36197_v31 }
 0x701   : > { %24383 = vmatprep.mubr.f32.mxu0 %v31957_v46  ;;  %v36249_v31 = vand.u32 4294901760, %v36212_v25  ;;  %v36256_v25 = vand.u32 4294901760, %v31957_v46  ;;  %v36265_v46 = vld [vmem:[#allocation38_spill] sm:$0xff] }
 0x702   : > { %v32104_v7 = vpop.f32.mrb[20].mxu1 }
 0x703   : > { %36223 = vst [vmem:[#allocation40_spill] sm:$0xff] %v32104_v7  ;;  %v32106_v5 = vpop.f32.mrb[21].mxu1  ;;  %v36229_v7 = vand.u32 4294901760, %v31679_v53 }
 0x704   : > { %36224 = vst [vmem:[#allocation47_spill] sm:$0xff] %v32106_v5  ;;  %24384 = vmatmul.mubr.f32.gmra.mrb[28].mxu0 %v31967_v63  ;;  %v36230_v5 = vand.u32 4294901760, %v31687_v16  ;;  %v36233_v16 = vand.u32 4294901760, %v31718_v18  ;;  %v36239_v18 = vand.u32 4294901760, %v36192_v49  ;;  %v36246_v49 = vand.u32 4294901760, %v36205_v44 }
 0x705   : > { %24386 = vmatprep.mubr.f32.mxu0 %v31976_v60  ;;  %v36253_v44 = vand.u32 4294901760, %v31932_v47  ;;  %v36263_v47 = vld [vmem:[#allocation15_spill] sm:$0xff] }
 0x706   : > { %v32110_v37 = vpop.f32.mrb[22].mxu1 }
 0x707   : > { %36225 = vst [vmem:[#allocation71_spill] sm:$0xff] %v32110_v37  ;;  %v32112_v39 = vpop.f32.mrb[23].mxu1 }
 0x708   : > { %36226 = vst [vmem:[#allocation72_spill] sm:$0xff] %v32112_v39  ;;  %24387 = vmatmul.mubr.f32.gmra.mrb[30].mxu0 %v31983_v12 }
 0x709   : > { %24391 = vmatprep.mubr.f32.mxu0 %v36227_v28  ;;  %v36232_v28 = vand.u32 4294901760, %v31708_v42  ;;  %v36236_v42 = vand.u32 4294901760, %v31758_v13  ;;  %v36243_v13 = vand.u32 4294901760, %v36200_v26  ;;  %v36250_v26 = vand.u32 4294901760, %v36213_v52 }
 0x70a   : > { %v32117_v29 = vpop.f32.mrb[24].mxu1  ;;  %v36257_v52 = vand.u32 4294901760, %v31967_v63  ;;  %v36261_v63 = vld [vmem:[#allocation17_spill] sm:$0xff] }
 0x70b   : > { %v32119_v50 = vpop.f32.mrb[25].mxu1 }
 0x70c   : > { %36228 = vst [vmem:[#allocation74_spill] sm:$0xff] %v32119_v50  ;;  %24392 = vmatmul.mubr.f32.vlgmr.msra.gmra.mrb[0].mxu0 %v36229_v7 }
 0x70d   : > { %24394 = vmatprep.mubr.f32.mxu0 %v36230_v5  ;;  %24440 = vmatpush3.msra.mxu0 %v31600_v22  ;;  %v36234_v22 = vand.u32 4294901760, %v31733_v33  ;;  %v36240_v33 = vand.u32 4294901760, %v36193_v19  ;;  %v36247_v19 = vand.u32 4294901760, %v36208_v14  ;;  %v36254_v14 = vand.u32 4294901760, %v31937_v32  ;;  %v36264_v32 = vld [vmem:[#allocation26_spill] sm:$0xff] }
 0x70e   : > { %24489 = vmatprep.subr.mxu0 %v31536_v34  ;;  %v32127_v39 = vpop.f32.mrb[26].mxu1 }
 0x70f   : > { %v32129_v37 = vpop.f32.mrb[27].mxu1 }
 0x710   : > { %24395 = vmatmul.mubr.f32.gmra.mrb[2].mxu0 %v36231_v43  ;;  %v36237_v43 = vand.u32 4294901760, %v36188_v23  ;;  %v36244_v23 = vand.u32 4294901760, %v36201_v59  ;;  %v36251_v59 = vand.u32 4294901760, %v36216_v51  ;;  %v36258_v51 = vand.u32 4294901760, %v31976_v60  ;;  %v36266_v60 = vld [vmem:[#allocation84_spill] sm:$0xff] }
 0x711   : > { %24397 = vmatprep.mubr.f32.mxu0 %v36232_v28  ;;  %v36238_v28 = vand.u32 4294901760, %v36189_v24  ;;  %v36245_v24 = vand.u32 4294901760, %v36204_v1  ;;  %v36252_v1 = vand.u32 4294901760, %v36217_v56  ;;  %v36259_v56 = vand.u32 4294901760, %v31983_v12  ;;  %v36267_v12 = vld [vmem:[#allocation97_spill] sm:$0xff] }
 0x712   : > { %v32135_v50 = vpop.f32.mrb[28].mxu1 }
 0x713   : > { %v32137_v53 = vpop.f32.mrb[29].mxu1 }
 0x714   : > { %24398 = vmatmul.mubr.f32.gmra.mrb[4].mxu0 %v36233_v16  ;;  %v36241_v16 = vand.u32 4294901760, %v36196_v38  ;;  %v36248_v38 = vand.u32 4294901760, %v36209_v2  ;;  %v36255_v2 = vand.u32 4294901760, %v36222_v8  ;;  %v36262_v8 = vld [vmem:[#allocation29_spill] sm:$0xff] }
 0x715   : > { %24400 = vmatprep.mubr.f32.mxu0 %v36234_v22  ;;  %v36268_v22 = vld [vmem:[#allocation104_spill] sm:$0xff] }
 0x716   : > { %v32143_v7 = vpop.f32.mrb[30].mxu1 }
 0x717   : > { %v32145_v5 = vpop.f32.mrb[31].mxu1 }
 0x718   : > { %24401 = vmatmul.mubr.f32.gmra.mrb[6].mxu0 %v36235_v4 }
 0x719   : > { %24403 = vmatprep.mubr.f32.mxu0 %v36236_v42 }
 0x71c   : > { %24404 = vmatmul.mubr.f32.gmra.mrb[8].mxu0 %v36237_v43 }
 0x71d   : > { %24406 = vmatprep.mubr.f32.mxu0 %v36238_v28 }
 0x720   : > { %24407 = vmatmul.mubr.f32.gmra.mrb[10].mxu0 %v36239_v18 }
 0x721   : > { %24409 = vmatprep.mubr.f32.mxu0 %v36240_v33 }
 0x724   : > { %24410 = vmatmul.mubr.f32.gmra.mrb[12].mxu0 %v36241_v16  ;;  %v36303_v16 = vld [vmem:[#allocation78_spill] sm:$0xff] }
 0x725   : > { %24412 = vmatprep.mubr.f32.mxu0 %v36242_v6 }
 0x728   : > { %24413 = vmatmul.mubr.f32.gmra.mrb[14].mxu0 %v36243_v13  ;;  %v36277_v13 = vld [vmem:[#allocation31_spill] sm:$0xff] }
 0x729   : > { %24415 = vmatprep.mubr.f32.mxu0 %v36244_v23 }
 0x72c   : > { %24416 = vmatmul.mubr.f32.gmra.mrb[16].mxu0 %v36245_v24 }
 0x72d   : > { %24418 = vmatprep.mubr.f32.mxu0 %v36246_v49 }
 0x730   : > { %24419 = vmatmul.mubr.f32.gmra.mrb[18].mxu0 %v36247_v19 }
 0x731   : > { %24421 = vmatprep.mubr.f32.mxu0 %v36248_v38 }
 0x734   : > { %24422 = vmatmul.mubr.f32.gmra.mrb[20].mxu0 %v36249_v31  ;;  %v36280_v31 = vld [vmem:[#allocation37_spill] sm:$0xff] }
 0x735   : > { %24424 = vmatprep.mubr.f32.mxu0 %v36250_v26 }
 0x738   : > { %24425 = vmatmul.mubr.f32.gmra.mrb[22].mxu0 %v36251_v59 }
 0x739   : > { %24427 = vmatprep.mubr.f32.mxu0 %v36252_v1 }
 0x73c   : > { %24428 = vmatmul.mubr.f32.gmra.mrb[24].mxu0 %v36253_v44 }
 0x73d   : > { %24430 = vmatprep.mubr.f32.mxu0 %v36254_v14 }
 0x740   : > { %24431 = vmatmul.mubr.f32.gmra.mrb[26].mxu0 %v36255_v2 }
 0x741   : > { %24433 = vmatprep.mubr.f32.mxu0 %v36256_v25 }
 0x744   : > { %24434 = vmatmul.mubr.f32.gmra.mrb[28].mxu0 %v36257_v52 }
 0x745   : > { %24436 = vmatprep.mubr.f32.mxu0 %v36258_v51 }
 0x748   : > { %24437 = vmatmul.mubr.f32.gmra.mrb[30].mxu0 %v36259_v56 }
 0x749   : > { %24441 = vmatprep.mubr.f32.mxu0 %v31659_v21 }
 0x74c   : > { %24442 = vmatmul.mubr.f32.vlgmr.msra.gmra.mrb[0].mxu0 %v31665_v15 }
 0x74d   : > { %24444 = vmatprep.mubr.f32.mxu0 %v31672_v11  ;;  %24490 = vmatpush3.msra.mxu0 %v31536_v34  ;;  %v36260_v34 = vld [vmem:[#allocation89_spill] sm:$0xff] }
 0x750   : > { %24445 = vmatmul.mubr.f32.gmra.mrb[2].mxu0 %v31681_v35 }
 0x751   : > { %24447 = vmatprep.mubr.f32.mxu0 %v31689_v54 }
 0x754   : > { %24448 = vmatmul.mubr.f32.gmra.mrb[4].mxu0 %v31699_v20 }
 0x755   : > { %24450 = vmatprep.mubr.f32.mxu0 %v31713_v48 }
 0x758   : > { %24451 = vmatmul.mubr.f32.gmra.mrb[6].mxu0 %v31720_v62 }
 0x759   : > { %24453 = vmatprep.mubr.f32.mxu0 %v31735_v36 }
 0x75c   : > { %24454 = vmatmul.mubr.f32.gmra.mrb[8].mxu0 %v31748_v58 }
 0x75d   : > { %24456 = vmatprep.mubr.f32.mxu0 %v31750_v3 }
 0x760   : > { %24457 = vmatmul.mubr.f32.gmra.mrb[10].mxu0 %v31765_v10 }
 0x761   : > { %24459 = vmatprep.mubr.f32.mxu0 %v31779_v55 }
 0x764   : > { %24460 = vmatmul.mubr.f32.gmra.mrb[12].mxu0 %v31786_v27 }
 0x765   : > { %24462 = vmatprep.mubr.f32.mxu0 %v31788_v57 }
 0x768   : > { %24463 = vmatmul.mubr.f32.gmra.mrb[14].mxu0 %v31810_v40 }
 0x769   : > { %24465 = vmatprep.mubr.f32.mxu0 %v31819_v45 }
 0x76c   : > { %24466 = vmatmul.mubr.f32.gmra.mrb[16].mxu0 %v31831_v41 }
 0x76d   : > { %24468 = vmatprep.mubr.f32.mxu0 %v31839_v0 }
 0x770   : > { %24469 = vmatmul.mubr.f32.gmra.mrb[18].mxu0 %v31853_v9 }
 0x771   : > { %24471 = vmatprep.mubr.f32.mxu0 %v31861_v17 }
 0x774   : > { %24472 = vmatmul.mubr.f32.gmra.mrb[20].mxu0 %v31866_v30 }
 0x775   : > { %24474 = vmatprep.mubr.f32.mxu0 %v31868_v61 }
 0x778   : > { %24475 = vmatmul.mubr.f32.gmra.mrb[22].mxu0 %v36260_v34 }
 0x779   : > { %24477 = vmatprep.mubr.f32.mxu0 %v36261_v63 }
 0x77c   : > { %24478 = vmatmul.mubr.f32.gmra.mrb[24].mxu0 %v36262_v8 }
 0x77d   : > { %24480 = vmatprep.mubr.f32.mxu0 %v36263_v47 }
 0x780   : > { %24481 = vmatmul.mubr.f32.gmra.mrb[26].mxu0 %v36264_v32 }
 0x781   : > { %24483 = vmatprep.mubr.f32.mxu0 %v36265_v46 }
 0x784   : > { %24484 = vmatmul.mubr.f32.gmra.mrb[28].mxu0 %v36266_v60 }
 0x785   : > { %24486 = vmatprep.mubr.f32.mxu0 %v36267_v12 }
 0x788   : > { %24487 = vmatmul.mubr.f32.gmra.mrb[30].mxu0 %v36268_v22 }
 0x789   : > { %24491 = vmatprep.mubr.f32.mxu0 %v31659_v21 }
 0x78c   : > { %24492 = vmatmul.mubr.f32.vlgmr.msra.gmra.mrb[0].mxu0 %v31665_v15  ;;  %v36269_v15 = vld [vmem:[#allocation53_spill] sm:$0xff] }
 0x78d   : > { %24494 = vmatprep.mubr.f32.mxu0 %v31672_v11 }
 0x790   : > { %24495 = vmatmul.mubr.f32.gmra.mrb[2].mxu0 %v31681_v35 }
 0x791   : > { %24497 = vmatprep.mubr.f32.mxu0 %v31689_v54 }
 0x794   : > { %24498 = vmatmul.mubr.f32.gmra.mrb[4].mxu0 %v31699_v20 }
 0x795   : > { %24500 = vmatprep.mubr.f32.mxu0 %v31713_v48 }
 0x798   : > { %24501 = vmatmul.mubr.f32.gmra.mrb[6].mxu0 %v31720_v62 }
 0x799   : > { %24503 = vmatprep.mubr.f32.mxu0 %v31735_v36 }
 0x79c   : > { %24504 = vmatmul.mubr.f32.gmra.mrb[8].mxu0 %v31748_v58 }
 0x79d   : > { %24506 = vmatprep.mubr.f32.mxu0 %v31750_v3 }
 0x7a0   : > { %24507 = vmatmul.mubr.f32.gmra.mrb[10].mxu0 %v31765_v10 }
 0x7a1   : > { %24509 = vmatprep.mubr.f32.mxu0 %v31779_v55 }
 0x7a4   : > { %24510 = vmatmul.mubr.f32.gmra.mrb[12].mxu0 %v31786_v27 }
 0x7a5   : > { %24512 = vmatprep.mubr.f32.mxu0 %v31788_v57 }
 0x7a8   : > { %24513 = vmatmul.mubr.f32.gmra.mrb[14].mxu0 %v31810_v40 }
 0x7a9   : > { %24515 = vmatprep.mubr.f32.mxu0 %v31819_v45 }
 0x7ac   : > { %24516 = vmatmul.mubr.f32.gmra.mrb[16].mxu0 %v31831_v41  ;;  %v36272_v41 = vld [vmem:[#allocation61_spill] sm:$0xff] }
 0x7ad   : > { %24518 = vmatprep.mubr.f32.mxu0 %v31839_v0 }
 0x7b0   : > { %24519 = vmatmul.mubr.f32.gmra.mrb[18].mxu0 %v31853_v9 }
 0x7b1   : > { %24521 = vmatprep.mubr.f32.mxu0 %v31861_v17  ;;  %v36274_v17 = vld [vmem:[#allocation62_spill] sm:$0xff] }
 0x7b4   : > { %24522 = vmatmul.mubr.f32.gmra.mrb[20].mxu0 %v31866_v30  ;;  %v36270_v30 = vld [vmem:[#allocation55_spill] sm:$0xff] }
 0x7b5   : > { %24524 = vmatprep.mubr.f32.mxu0 %v31868_v61 }
 0x7b8   : > { %24525 = vmatmul.mubr.f32.gmra.mrb[22].mxu0 %v36260_v34 }
 0x7b9   : > { %24527 = vmatprep.mubr.f32.mxu0 %v36261_v63 }
 0x7bc   : > { %24528 = vmatmul.mubr.f32.gmra.mrb[24].mxu0 %v36262_v8 }
 0x7bd   : > { %24530 = vmatprep.mubr.f32.mxu0 %v36263_v47  ;;  %v36284_v47 = vld [vmem:[#allocation50_spill] sm:$0xff] }
 0x7c0   : > { %24531 = vmatmul.mubr.f32.gmra.mrb[26].mxu0 %v36264_v32 }
 0x7c1   : > { %24533 = vmatprep.mubr.f32.mxu0 %v36265_v46 }
 0x7c4   : > { %24534 = vmatmul.mubr.f32.gmra.mrb[28].mxu0 %v36266_v60 }
 0x7c5   : > { %24536 = vmatprep.mubr.f32.mxu0 %v36267_v12 }
 0x7c8   : > { %24537 = vmatmul.mubr.f32.gmra.mrb[30].mxu0 %v36268_v22 }
 0x85f   : > { %v24493_v21 = vpop.f32.mrb[0].mxu0 }
 0x860   : > { %v24923_v11 = vadd.f32 %v24493_v21, %v36269_v15  ;;  %v17550_v35 = vpop.f32.mrb[1].mxu0  ;;  %v36285_v21 = vld [vmem:[#allocation52_spill] sm:$0xff] }
 0x861   : > { %v24924_v54 = vadd.f32 %v17550_v35, %v36270_v30 }
 0x862   : > { %17774 = vst.msk [vmem:[%s32267_s12 + $0x8] sm:$0xff] %vm17772_vm4, %v24923_v11  ;;  %v17809_v20 = vand.u32 4294901760, %v24923_v11  ;;  %v18642_v48 = vmul.f32 %v24923_v11, %v24923_v11 }
 0x863   : > { %17773 = vst.msk [vmem:[%s32267_s12] sm:$0xff] %vm17772_vm4, %v24924_v54  ;;  %v17806_v62 = vand.u32 4294901760, %v24924_v54  ;;  %v32275_v36 = vmul.f32 %v24924_v54, %v24924_v54  ;;  %v24496_v58 = vpop.f32.mrb[2].mxu0 }
 0x864   : > { %v32277_v3 = vsub.f32 %v24923_v11, %v17809_v20  ;;  %v24925_v10 = vadd.f32 %v24496_v58, %v36272_v41  ;;  %v17562_v55 = vpop.f32.mrb[3].mxu0  ;;  %v18677_v27 = vand.u32 4294901760, %v18642_v48 }
 0x865   : > { %v32280_v57 = vsub.f32 %v24924_v54, %v17806_v62  ;;  %v24926_v0 = vadd.f32 %v17562_v55, %v36274_v17  ;;  %v32283_v40 = vpack.c.bf16 %v17809_v20, %v17806_v62  ;;  %v34544_v45 = vand.u32 4294901760, %v32275_v36  ;;  %v36289_v17 = vld [vmem:[#allocation8_spill] sm:$0xff] }
 0x866   : > { %36271 = vst [vmem:[#allocation81_spill] sm:$0xff] %v32277_v3  ;;  %17776 = vst.msk [vmem:[%s32267_s12 + $0x18] sm:$0xff] %vm17772_vm4, %v24925_v10  ;;  %v17815_v9 = vand.u32 4294901760, %v24925_v10  ;;  %v32288_v61 = vmul.f32 %v24925_v10, %v24925_v10  ;;  %v34553_v4 = vand.u32 4294901760, %v32277_v3  ;;  %v32291_v42 = vsub.f32 %v18642_v48, %v18677_v27 }
 0x867   : > { %36273 = vst [vmem:[#allocation109_spill] sm:$0xff] %v32280_v57  ;;  %36275 = vst [vmem:[#allocation110_spill] sm:$0xff] %v32283_v40  ;;  %v17812_v43 = vand.u32 4294901760, %v24926_v0  ;;  %v32295_v28 = vmul.f32 %v24926_v0, %v24926_v0  ;;  %v24499_v18 = vpop.f32.mrb[4].mxu0  ;;  %v34554_v33 = vand.u32 4294901760, %v32280_v57  ;;  %v32308_v19 = vpack.c.bf16 %v18677_v27, %v34544_v45 }
 0x868   : > { %36276 = vst [vmem:[#allocation112_spill] sm:$0xff] %v32291_v42  ;;  %17775 = vst.msk [vmem:[%s32267_s12 + $0x10] sm:$0xff] %vm17772_vm4, %v24926_v0  ;;  %v32300_v6 = vsub.f32 %v24925_v10, %v17815_v9  ;;  %v24927_v23 = vadd.f32 %v24499_v18, %v36277_v13  ;;  %v17574_v24 = vpop.f32.mrb[5].mxu0  ;;  %v17918_v49 = vsub.f32 %v32277_v3, %v34553_v4 }
 0x869   : > { %36278 = vst [vmem:[#allocation118_spill] sm:$0xff] %v32308_v19  ;;  %v32310_v38 = vsub.f32 %v24926_v0, %v17812_v43  ;;  %v24928_v26 = vadd.f32 %v17574_v24, %v36280_v31  ;;  %v32313_v59 = vpack.c.bf16 %v17815_v9, %v17812_v43  ;;  %v17911_v1 = vsub.f32 %v32280_v57, %v34554_v33 }
 0x86a   : > { %17778 = vst.msk [vmem:[%s32267_s12 + $0x28] sm:$0xff] %vm17772_vm4, %v24927_v23  ;;  %v17821_v44 = vand.u32 4294901760, %v24927_v23  ;;  %v32320_v14 = vmul.f32 %v24927_v23, %v24927_v23  ;;  %v17919_v2 = vand.u32 4294901760, %v17918_v49  ;;  %v34551_v25 = vand.u32 4294901760, %v32300_v6 }
 0x86b   : > { %36279 = vst [vmem:[#allocation107_spill] sm:$0xff] %v32310_v38  ;;  %36281 = vst [vmem:[#allocation108_spill] sm:$0xff] %v32313_v59  ;;  %v17818_v52 = vand.u32 4294901760, %v24928_v26  ;;  %v32325_v51 = vmul.f32 %v24928_v26, %v24928_v26  ;;  %v24502_v56 = vpop.f32.mrb[6].mxu0  ;;  %v17912_v34 = vand.u32 4294901760, %v17911_v1  ;;  %v34552_v63 = vand.u32 4294901760, %v32310_v38 }
 0x86c   : > { %36282 = vst [vmem:[#allocation95_spill] sm:$0xff] %v32320_v14  ;;  %17777 = vst.msk [vmem:[%s32267_s12 + $0x20] sm:$0xff] %vm17772_vm4, %v24928_v26  ;;  %v32328_v8 = vsub.f32 %v24927_v23, %v17821_v44  ;;  %v24929_v32 = vadd.f32 %v24502_v56, %v36284_v47  ;;  %v17586_v46 = vpop.f32.mrb[7].mxu0  ;;  %v17932_v60 = vsub.f32 %v32300_v6, %v34551_v25  ;;  %v36290_v23 = vld [vmem:[#allocation23_spill] sm:$0xff]  ;;  %v36345_v14 = vld [vmem:[#allocation74_spill] sm:$0xff] }
 0x86d   : > { %36283 = vst [vmem:[#allocation121_spill] sm:$0xff] %v32325_v51  ;;  %v32336_v22 = vsub.f32 %v24928_v26, %v17818_v52  ;;  %v24930_v15 = vadd.f32 %v17586_v46, %v36285_v21  ;;  %v32339_v11 = vpack.c.bf16 %v17821_v44, %v17818_v52  ;;  %v32341_v35 = vpack.c.bf16 %v17919_v2, %v17912_v34  ;;  %v36311_v25 = vld [vmem:[#allocation123_spill] sm:$0xff] }
 0x86e   : > { %17780 = vst.msk [vmem:[%s32267_s12 + $0x38] sm:$0xff] %vm17772_vm4, %v24929_v32  ;;  %v17827_v30 = vand.u32 4294901760, %v24929_v32  ;;  %v32345_v54 = vmul.f32 %v24929_v32, %v24929_v32  ;;  %v17925_v20 = vsub.f32 %v32310_v38, %v34552_v63  ;;  %v17933_v48 = vand.u32 4294901760, %v17932_v60  ;;  %v36294_v60 = vld [vmem:[#allocation36_spill] sm:$0xff] }
 0x86f   : > { %36286 = vst [vmem:[#allocation45_spill] sm:$0xff] %v32339_v11  ;;  %17779 = vst.msk [vmem:[%s32267_s12 + $0x30] sm:$0xff] %vm17772_vm4, %v24930_v15  ;;  %v17824_v62 = vand.u32 4294901760, %v24930_v15  ;;  %v32352_v58 = vmul.f32 %v24930_v15, %v24930_v15  ;;  %v24505_v41 = vpop.f32.mrb[8].mxu0  ;;  %v34549_v10 = vand.u32 4294901760, %v32336_v22  ;;  %v34548_v55 = vand.u32 4294901760, %v32328_v8 }
 0x870   : > { %36287 = vst [vmem:[#allocation7_spill] sm:$0xff] %v32345_v54  ;;  %v32356_v27 = vsub.f32 %v24929_v32, %v17827_v30  ;;  %v24931_v0 = vadd.f32 %v24505_v41, %v36289_v17  ;;  %v17598_v9 = vpop.f32.mrb[9].mxu0  ;;  %v17926_v43 = vand.u32 4294901760, %v17925_v20 }
 0x871   : > { %36288 = vst [vmem:[#allocation42_spill] sm:$0xff] %v32352_v58  ;;  %v32361_v13 = vsub.f32 %v24930_v15, %v17824_v62  ;;  %v24932_v24 = vadd.f32 %v17598_v9, %v36290_v23  ;;  %v32364_v49 = vpack.c.bf16 %v17827_v30, %v17824_v62  ;;  %v17939_v31 = vsub.f32 %v32336_v22, %v34549_v10  ;;  %v36295_v62 = vld [vmem:[#allocation60_spill] sm:$0xff] }
 0x872   : > { %17782 = vst.msk [vmem:[%s32267_s12 + $0x48] sm:$0xff] %vm17772_vm4, %v24931_v0  ;;  %v17833_v26 = vand.u32 4294901760, %v24931_v0  ;;  %v32371_v1 = vmul.f32 %v24931_v0, %v24931_v0  ;;  %v32373_v44 = vpack.c.bf16 %v17933_v48, %v17926_v43  ;;  %v17946_v2 = vsub.f32 %v32328_v8, %v34548_v55 }
 0x873   : > { %36291 = vst [vmem:[#allocation46_spill] sm:$0xff] %v32364_v49  ;;  %17781 = vst.msk [vmem:[%s32267_s12 + $0x40] sm:$0xff] %vm17772_vm4, %v24932_v24  ;;  %v17830_v52 = vand.u32 4294901760, %v24932_v24  ;;  %v32380_v56 = vmul.f32 %v24932_v24, %v24932_v24  ;;  %v24508_v34 = vpop.f32.mrb[10].mxu0  ;;  %v17940_v47 = vand.u32 4294901760, %v17939_v31  ;;  %v34546_v32 = vand.u32 4294901760, %v32361_v13 }
 0x874   : > { %36292 = vst [vmem:[#allocation21_spill] sm:$0xff] %v32371_v1  ;;  %v32383_v46 = vsub.f32 %v24931_v0, %v17833_v26  ;;  %v24933_v21 = vadd.f32 %v24508_v34, %v36294_v60  ;;  %v17610_v15 = vpop.f32.mrb[11].mxu0  ;;  %v17947_v30 = vand.u32 4294901760, %v17946_v2  ;;  %v34545_v20 = vand.u32 4294901760, %v32356_v27 }
 0x875   : > { %36293 = vst [vmem:[#allocation54_spill] sm:$0xff] %v32380_v56  ;;  %v32387_v48 = vsub.f32 %v24932_v24, %v17830_v52  ;;  %v24934_v41 = vadd.f32 %v17610_v15, %v36295_v62  ;;  %v32390_v17 = vpack.c.bf16 %v17833_v26, %v17830_v52  ;;  %v17953_v9 = vsub.f32 %v32361_v13, %v34546_v32  ;;  %v36301_v15 = vld [vmem:[#allocation66_spill] sm:$0xff] }
 0x876   : > { %17784 = vst.msk [vmem:[%s32267_s12 + $0x58] sm:$0xff] %vm17772_vm4, %v24933_v21  ;;  %v17839_v0 = vand.u32 4294901760, %v24933_v21  ;;  %v32397_v43 = vmul.f32 %v24933_v21, %v24933_v21  ;;  %v32399_v23 = vpack.c.bf16 %v17947_v30, %v17940_v47  ;;  %v17960_v24 = vsub.f32 %v32356_v27, %v34545_v20 }
 0x877   : > { %36296 = vst [vmem:[#allocation58_spill] sm:$0xff] %v32390_v17  ;;  %17783 = vst.msk [vmem:[%s32267_s12 + $0x50] sm:$0xff] %vm17772_vm4, %v24934_v41  ;;  %v17836_v31 = vand.u32 4294901760, %v24934_v41  ;;  %v32406_v26 = vmul.f32 %v24934_v41, %v24934_v41  ;;  %v24511_v2 = vpop.f32.mrb[12].mxu0  ;;  %v17954_v52 = vand.u32 4294901760, %v17953_v9  ;;  %v34547_v34 = vand.u32 4294901760, %v32387_v48 }
 0x878   : > { %36297 = vst [vmem:[#allocation67_spill] sm:$0xff] %v32397_v43  ;;  %36298 = vst [vmem:[#allocation69_spill] sm:$0xff] %v32399_v23  ;;  %v32409_v60 = vsub.f32 %v24933_v21, %v17839_v0  ;;  %v24935_v47 = vadd.f32 %v24511_v2, %v36301_v15  ;;  %v17622_v30 = vpop.f32.mrb[13].mxu0  ;;  %v17961_v62 = vand.u32 4294901760, %v17960_v24  ;;  %v34550_v18 = vand.u32 4294901760, %v32383_v46 }
 0x879   : > { %36299 = vst [vmem:[#allocation70_spill] sm:$0xff] %v32406_v26  ;;  %v32413_v12 = vsub.f32 %v24934_v41, %v17836_v31  ;;  %v24936_v45 = vadd.f32 %v17622_v30, %v36303_v16  ;;  %v32416_v20 = vpack.c.bf16 %v17839_v0, %v17836_v31  ;;  %v17967_v9 = vsub.f32 %v32387_v48, %v34547_v34  ;;  %v36309_v34 = vld [vmem:[#allocation103_spill] sm:$0xff] }
 0x87a   : > { %36300 = vst [vmem:[#allocation82_spill] sm:$0xff] %v32409_v60  ;;  %17786 = vst.msk [vmem:[%s32267_s12 + $0x68] sm:$0xff] %vm17772_vm4, %v24935_v47  ;;  %v17845_v21 = vand.u32 4294901760, %v24935_v47  ;;  %v32423_v32 = vmul.f32 %v24935_v47, %v24935_v47  ;;  %v32425_v2 = vpack.c.bf16 %v17961_v62, %v17954_v52  ;;  %v17974_v41 = vsub.f32 %v32383_v46, %v34550_v18 }
 0x87b   : > { %36302 = vst [vmem:[#allocation88_spill] sm:$0xff] %v32413_v12  ;;  %36304 = vst [vmem:[#allocation90_spill] sm:$0xff] %v32416_v20  ;;  %v17842_v16 = vand.u32 4294901760, %v24936_v45  ;;  %v32432_v0 = vmul.f32 %v24936_v45, %v24936_v45  ;;  %v24514_v24 = vpop.f32.mrb[14].mxu0  ;;  %v17968_v31 = vand.u32 4294901760, %v17967_v9  ;;  %v34555_v15 = vand.u32 4294901760, %v32413_v12 }
 0x87c   : > { %36305 = vst [vmem:[#allocation91_spill] sm:$0xff] %v32423_v32  ;;  %36306 = vst [vmem:[#allocation117_spill] sm:$0xff] %v32425_v2  ;;  %v32435_v30 = vsub.f32 %v24935_v47, %v17845_v21  ;;  %v24937_v52 = vadd.f32 %v24514_v24, %v36309_v34  ;;  %v17634_v62 = vpop.f32.mrb[15].mxu0  ;;  %v17975_v55 = vand.u32 4294901760, %v17974_v41  ;;  %v34557_v10 = vand.u32 4294901760, %v32409_v60  ;;  %v36330_v2 = vld [vmem:[#allocation40_spill] sm:$0xff] }
 0x87d   : > { %17785 = vst.msk [vmem:[%s32267_s12 + $0x60] sm:$0xff] %vm17772_vm4, %v24936_v45  ;;  %36307 = vst [vmem:[#allocation33_spill] sm:$0xff] %v32432_v0  ;;  %v32439_v18 = vsub.f32 %v24936_v45, %v17842_v16  ;;  %v24938_v63 = vadd.f32 %v17634_v62, %v36311_v25  ;;  %v32442_v4 = vpack.c.bf16 %v17845_v21, %v17842_v16 }
 0x87e   : > { %36308 = vst [vmem:[#allocation41_spill] sm:$0xff] %v32435_v30  ;;  %v17981_v9 = vsub.f32 %v32413_v12, %v34555_v15  ;;  %17788 = vst.msk [vmem:[%s32267_s12 + $0x78] sm:$0xff] %vm17772_vm4, %v24937_v52  ;;  %v17851_v47 = vand.u32 4294901760, %v24937_v52  ;;  %v32449_v33 = vmul.f32 %v24937_v52, %v24937_v52  ;;  %v32451_v34 = vpack.c.bf16 %v17975_v55, %v17968_v31  ;;  %v36317_v15 = vld [vmem:[#allocation44_spill] sm:$0xff] }
 0x87f   : > { %36310 = vst [vmem:[#allocation9_spill] sm:$0xff] %v32439_v18  ;;  %36312 = vst [vmem:[#allocation51_spill] sm:$0xff] %v32442_v4  ;;  %v17988_v45 = vsub.f32 %v32409_v60, %v34557_v10  ;;  %v17848_v25 = vand.u32 4294901760, %v24938_v63  ;;  %v32458_v21 = vmul.f32 %v24938_v63, %v24938_v63  ;;  %v24517_v41 = vpop.f32.mrb[16].mxu0  ;;  %v34563_v24 = vand.u32 4294901760, %v32439_v18 }
 0x880   : > { %36313 = vst [vmem:[#allocation63_spill] sm:$0xff] %v32449_v33  ;;  %36314 = vst [vmem:[#allocation76_spill] sm:$0xff] %v32451_v34  ;;  %v17982_v16 = vand.u32 4294901760, %v17981_v9  ;;  %v32461_v62 = vsub.f32 %v24937_v52, %v17851_v47  ;;  %v32464_v55 = vadd.f32 %v24517_v41, %v36317_v15  ;;  %v17646_v31 = vpop.f32.mrb[17].mxu0  ;;  %v34562_v10 = vand.u32 4294901760, %v32435_v30  ;;  %v36319_v33 = vld [vmem:[#allocation11_spill] sm:$0xff] }
 0x881   : > { %17787 = vst.msk [vmem:[%s32267_s12 + $0x70] sm:$0xff] %vm17772_vm4, %v24938_v63  ;;  %36315 = vst [vmem:[#allocation80_spill] sm:$0xff] %v32458_v21  ;;  %v17989_v19 = vand.u32 4294901760, %v17988_v45  ;;  %v32467_v42 = vsub.f32 %v24938_v63, %v17848_v25  ;;  %v32470_v32 = vadd.f32 %v17646_v31, %v36319_v33  ;;  %v32472_v21 = vpack.c.bf16 %v17851_v47, %v17848_v25  ;;  %v36325_v34 = vld [vmem:[#allocation30_spill] sm:$0xff] }
 0x882   : > { %36316 = vst [vmem:[#allocation83_spill] sm:$0xff] %v32461_v62  ;;  %v17995_v9 = vsub.f32 %v32439_v18, %v34563_v24  ;;  %17790 = vst.msk [vmem:[%s32267_s12 + $0x88] sm:$0xff] %vm17772_vm4, %v32464_v55  ;;  %v17857_v15 = vand.u32 4294901760, %v32464_v55  ;;  %v18002_v63 = vsub.f32 %v32435_v30, %v34562_v10 }
 0x883   : > { %36318 = vst [vmem:[#allocation86_spill] sm:$0xff] %v32467_v42  ;;  %36320 = vst [vmem:[#allocation96_spill] sm:$0xff] %v32472_v21  ;;  %v32481_v52 = vpack.c.bf16 %v17989_v19, %v17982_v16  ;;  %v24520_v47 = vpop.f32.mrb[18].mxu0  ;;  %v17854_v45 = vand.u32 4294901760, %v32470_v32  ;;  %v36322_v16 = vld [vmem:[#allocation14_spill] sm:$0xff] }
 0x884   : > { %17789 = vst.msk [vmem:[%s32267_s12 + $0x80] sm:$0xff] %vm17772_vm4, %v32470_v32  ;;  %v17996_v25 = vand.u32 4294901760, %v17995_v9  ;;  %v32495_v31 = vadd.f32 %v24520_v47, %v36322_v16  ;;  %v17658_v10 = vpop.f32.mrb[19].mxu0  ;;  %v32498_v24 = vsub.f32 %v32464_v55, %v17857_v15  ;;  %v18003_v33 = vand.u32 4294901760, %v18002_v63 }
 0x885   : > { %36321 = vst [vmem:[#allocation101_spill] sm:$0xff] %v32481_v52  ;;  %v36324_v52 = vand.u32 4294901760, %v32461_v62  ;;  %v32504_v9 = vadd.f32 %v17658_v10, %v36325_v34  ;;  %v32506_v41 = vpack.c.bf16 %v17857_v15, %v17854_v45  ;;  %v32509_v43 = vsub.f32 %v32470_v32, %v17854_v45  ;;  %v36331_v45 = vld [vmem:[#allocation47_spill] sm:$0xff] }
 0x886   : > { %36323 = vst [vmem:[#allocation122_spill] sm:$0xff] %v32498_v24  ;;  %v36328_v47 = vand.u32 4294901760, %v32467_v42  ;;  %17792 = vst.msk [vmem:[%s32267_s12 + $0x98] sm:$0xff] %vm17772_vm4, %v32495_v31  ;;  %v17863_v63 = vand.u32 4294901760, %v32495_v31  ;;  %v34571_v19 = vand.u32 4294901760, %v32498_v24 }
 0x887   : > { %v18016_v0 = vsub.f32 %v32461_v62, %v36324_v52  ;;  %36326 = vst [vmem:[#allocation125_spill] sm:$0xff] %v32506_v41  ;;  %36327 = vst [vmem:[#allocation113_spill] sm:$0xff] %v32509_v43  ;;  %v32519_v52 = vpack.c.bf16 %v18003_v33, %v17996_v25  ;;  %v24523_v34 = vpop.f32.mrb[20].mxu0  ;;  %24540 = vmatprep.subr.bf16.mxu1 %v32506_v41  ;;  %v17860_v15 = vand.u32 4294901760, %v32504_v9 }
 0x888   : > { %v18009_v16 = vsub.f32 %v32467_v42, %v36328_v47  ;;  %17791 = vst.msk [vmem:[%s32267_s12 + $0x90] sm:$0xff] %vm17772_vm4, %v32504_v9  ;;  %v32530_v33 = vadd.f32 %v24523_v34, %v36330_v2  ;;  %24542 = vmatpush3.bf16.msra.mxu1 %v32283_v40  ;;  %v32534_v25 = vsub.f32 %v32495_v31, %v17863_v63  ;;  %v36334_v34 = vand.u32 4294901760, %v32509_v43 }
 0x889   : > { %36329 = vst [vmem:[#allocation120_spill] sm:$0xff] %v32519_v52  ;;  %v18017_v10 = vand.u32 4294901760, %v18016_v0  ;;  %v17670_v0 = vpop.f32.mrb[21].mxu0  ;;  %v18030_v41 = vsub.f32 %v32498_v24, %v34571_v19  ;;  %v32544_v26 = vpack.c.bf16 %v17863_v63, %v17860_v15  ;;  %v32547_v2 = vsub.f32 %v32504_v9, %v17860_v15 }
 0x88a   : > { %v18010_v47 = vand.u32 4294901760, %v18009_v16  ;;  %v32542_v52 = vadd.f32 %v17670_v0, %v36331_v45  ;;  %v18023_v40 = vsub.f32 %v32509_v43, %v36334_v34  ;;  %17794 = vst.msk [vmem:[%s32267_s12 + $0xa8] sm:$0xff] %vm17772_vm4, %v32530_v33  ;;  %v17869_v19 = vand.u32 4294901760, %v32530_v33  ;;  %v36339_v0 = vld [vmem:[#allocation72_spill] sm:$0xff] }
 0x88b   : > { %36332 = vst [vmem:[#allocation25_spill] sm:$0xff] %v32544_v26  ;;  %36333 = vst [vmem:[#allocation18_spill] sm:$0xff] %v32547_v2  ;;  %v18031_v1 = vand.u32 4294901760, %v18030_v41  ;;  %v24526_v63 = vpop.f32.mrb[22].mxu0  ;;  %24544 = vmatprep.subr.bf16.mxu1 %v32544_v26  ;;  %v36336_v41 = vld [vmem:[#allocation71_spill] sm:$0xff]  ;;  %v36338_v26 = vand.u32 4294901760, %v32534_v25 }
 0x88c   : > { %v32557_v56 = vpack.c.bf16 %v18017_v10, %v18010_v47  ;;  %17793 = vst.msk [vmem:[%s32267_s12 + $0xa0] sm:$0xff] %vm17772_vm4, %v32542_v52  ;;  %v17866_v15 = vand.u32 4294901760, %v32542_v52  ;;  %v18024_v45 = vand.u32 4294901760, %v18023_v40  ;;  %v32568_v16 = vadd.f32 %v24526_v63, %v36336_v41  ;;  %v17682_v10 = vpop.f32.mrb[23].mxu0  ;;  %24546 = vmatpush3.bf16.msra.mxu1 %v32313_v59 }
 0x88d   : > { %v32572_v47 = vsub.f32 %v32530_v33, %v17869_v19  ;;  %v32580_v23 = vadd.f32 %v17682_v10, %v36339_v0 }
 0x88e   : > { %36335 = vst [vmem:[#allocation19_spill] sm:$0xff] %v32557_v56  ;;  %36337 = vst [vmem:[#allocation32_spill] sm:$0xff] %v32568_v16  ;;  %v18044_v56 = vsub.f32 %v32534_v25, %v36338_v26  ;;  %v32582_v34 = vpack.c.bf16 %v17869_v19, %v17866_v15  ;;  %v32585_v63 = vsub.f32 %v32542_v52, %v17866_v15  ;;  %v17875_v59 = vand.u32 4294901760, %v32568_v16 }
 0x88f   : > { %36340 = vst [vmem:[#allocation57_spill] sm:$0xff] %v32580_v23  ;;  %v32587_v41 = vpack.c.bf16 %v18031_v1, %v18024_v45  ;;  %17796 = vst.msk [vmem:[%s32267_s12 + $0xb8] sm:$0xff] %vm17772_vm4, %v32568_v16  ;;  %v36342_v26 = vand.u32 4294901760, %v32547_v2  ;;  %v24529_v19 = vpop.f32.mrb[24].mxu0  ;;  %v17872_v1 = vand.u32 4294901760, %v32580_v23  ;;  %v36344_v58 = vand.u32 4294901760, %v32572_v47 }
 0x890   : > { %36341 = vst [vmem:[#allocation59_spill] sm:$0xff] %v32582_v34  ;;  %v18045_v40 = vand.u32 4294901760, %v18044_v56  ;;  %17795 = vst.msk [vmem:[%s32267_s12 + $0xb0] sm:$0xff] %vm17772_vm4, %v32580_v23  ;;  %24548 = vmatprep.subr.bf16.mxu1 %v32582_v34  ;;  %v32608_v56 = vadd.f32 %v24529_v19, %v32117_v29  ;;  %v32612_v0 = vsub.f32 %v32568_v16, %v17875_v59  ;;  %v36348_v29 = vand.u32 4294901760, %v32585_v63 }
 0x891   : > { %v18037_v54 = vsub.f32 %v32547_v2, %v36342_v26  ;;  %v17694_v26 = vpop.f32.mrb[25].mxu0  ;;  %24550 = vmatpush3.bf16.msra.mxu1 %v32339_v11  ;;  %v18058_v15 = vsub.f32 %v32572_v47, %v36344_v58  ;;  %v32620_v51 = vpack.c.bf16 %v17875_v59, %v17872_v1  ;;  %v32623_v10 = vsub.f32 %v32580_v23, %v17872_v1 }
 0x892   : > { %36343 = vst [vmem:[#allocation73_spill] sm:$0xff] %v32608_v56  ;;  %v32618_v45 = vadd.f32 %v17694_v26, %v36345_v14  ;;  %v18051_v19 = vsub.f32 %v32585_v63, %v36348_v29  ;;  %17798 = vst.msk [vmem:[%s32267_s12 + $0xc8] sm:$0xff] %vm17772_vm4, %v32608_v56  ;;  %v34591_v14 = vand.u32 4294901760, %v32612_v0 }
 0x893   : > { %v18038_v34 = vand.u32 4294901760, %v18037_v54  ;;  %36347 = vst [vmem:[#allocation92_spill] sm:$0xff] %v32620_v51  ;;  %v17881_v54 = vand.u32 4294901760, %v32608_v56  ;;  %v18059_v58 = vand.u32 4294901760, %v18058_v15  ;;  %v24532_v59 = vpop.f32.mrb[26].mxu0  ;;  %24552 = vmatprep.subr.bf16.mxu1 %v32620_v51 }
 0x894   : > { %36346 = vst [vmem:[#allocation75_spill] sm:$0xff] %v32618_v45  ;;  %17797 = vst.msk [vmem:[%s32267_s12 + $0xc0] sm:$0xff] %vm17772_vm4, %v32618_v45  ;;  %v17878_v1 = vand.u32 4294901760, %v32618_v45  ;;  %v18052_v26 = vand.u32 4294901760, %v18051_v19  ;;  %v18072_v51 = vsub.f32 %v32612_v0, %v34591_v14  ;;  %v36352_v14 = vand.u32 4294901760, %v32623_v10 }
 0x895   : > { %v32632_v11 = vpack.c.bf16 %v18045_v40, %v18038_v34  ;;  %v32644_v34 = vadd.f32 %v24532_v59, %v32127_v39  ;;  %v17706_v40 = vpop.f32.mrb[27].mxu0  ;;  %24554 = vmatpush3.bf16.msra.mxu1 %v32364_v49  ;;  %v32648_v15 = vsub.f32 %v32608_v56, %v17881_v54 }
 0x896   : > { %v32656_v29 = vadd.f32 %v17706_v40, %v32129_v37  ;;  %v32658_v16 = vpack.c.bf16 %v17881_v54, %v17878_v1  ;;  %v32661_v39 = vsub.f32 %v32618_v45, %v17878_v1  ;;  %v32663_v59 = vpack.c.bf16 %v18059_v58, %v18052_v26 }
 0x897   : > { %36349 = vst [vmem:[#allocation98_spill] sm:$0xff] %v32644_v34  ;;  %17800 = vst.msk [vmem:[%s32267_s12 + $0xd8] sm:$0xff] %vm17772_vm4, %v32644_v34  ;;  %v17887_v49 = vand.u32 4294901760, %v32644_v34  ;;  %v18065_v56 = vsub.f32 %v32623_v10, %v36352_v14  ;;  %v18073_v19 = vand.u32 4294901760, %v18072_v51  ;;  %v24535_v54 = vpop.f32.mrb[28].mxu0  ;;  %v36353_v40 = vand.u32 4294901760, %v32509_v43 }
 0x898   : > { %36350 = vst [vmem:[#allocation99_spill] sm:$0xff] %v32656_v29  ;;  %36351 = vst [vmem:[#allocation102_spill] sm:$0xff] %v32658_v16  ;;  %24556 = vmatprep.subr.bf16.mxu1 %v32658_v16  ;;  %v17884_v58 = vand.u32 4294901760, %v32656_v29  ;;  %v36354_v51 = vand.u32 4294901760, %v32498_v24  ;;  %v32688_v37 = vadd.f32 %v24535_v54, %v32135_v50  ;;  %v17718_v45 = vpop.f32.mrb[29].mxu0  ;;  %v36357_v23 = vand.u32 4294901760, %v32648_v15 }
 0x899   : > { %17799 = vst.msk [vmem:[%s32267_s12 + $0xd0] sm:$0xff] %vm17772_vm4, %v32656_v29  ;;  %24558 = vmatpush3.bf16.msra.mxu1 %v32390_v17  ;;  %v32692_v16 = vsub.f32 %v32644_v34, %v17887_v49  ;;  %v18066_v1 = vand.u32 4294901760, %v18065_v56  ;;  %v32698_v43 = vadd.f32 %v17718_v45, %v32137_v53  ;;  %v36360_v50 = vand.u32 4294901760, %v32661_v39 }
 0x89a   : > { %v32685_v14 = vpack.c.bf16 %v36354_v51, %v36353_v40  ;;  %v18086_v26 = vsub.f32 %v32648_v15, %v36357_v23  ;;  %v32700_v40 = vpack.c.bf16 %v17887_v49, %v17884_v58  ;;  %v32703_v51 = vsub.f32 %v32656_v29, %v17884_v58  ;;  %17802 = vst.msk [vmem:[%s32267_s12 + $0xe8] sm:$0xff] %vm17772_vm4, %v32688_v37 }
 0x89b   : > { %36356 = vst [vmem:[#allocation12_spill] sm:$0xff] %v32692_v16  ;;  %v18079_v54 = vsub.f32 %v32661_v39, %v36360_v50  ;;  %v17893_v56 = vand.u32 4294901760, %v32688_v37  ;;  %v18099_v53 = vand.u32 4294901760, %v32692_v16  ;;  %17801 = vst.msk [vmem:[%s32267_s12 + $0xe0] sm:$0xff] %vm17772_vm4, %v32698_v43  ;;  %v24538_v49 = vpop.f32.mrb[30].mxu0  ;;  %v17890_v45 = vand.u32 4294901760, %v32698_v43 }
 0x89c   : > { %36355 = vst [vmem:[#allocation126_spill] sm:$0xff] %v32685_v14  ;;  %36358 = vst [vmem:[#allocation13_spill] sm:$0xff] %v32700_v40  ;;  %v32712_v14 = vpack.c.bf16 %v18073_v19, %v18066_v1  ;;  %v18087_v23 = vand.u32 4294901760, %v18086_v26  ;;  %24560 = vmatprep.subr.bf16.mxu1 %v32700_v40  ;;  %v18092_v50 = vand.u32 4294901760, %v32703_v51  ;;  %v32724_v19 = vadd.f32 %v24538_v49, %v32143_v7  ;;  %v17730_v1 = vpop.f32.mrb[31].mxu0 }
 0x89d   : > { %36359 = vst [vmem:[#allocation35_spill] sm:$0xff] %v32703_v51  ;;  %v18080_v58 = vand.u32 4294901760, %v18079_v54  ;;  %24562 = vmatpush3.bf16.msra.mxu1 %v32416_v20  ;;  %v32728_v26 = vsub.f32 %v32688_v37, %v17893_v56  ;;  %v18100_v40 = vsub.f32 %v32692_v16, %v18099_v53  ;;  %v36362_v24 = vand.u32 4294901760, %v32280_v57 }
 0x89e   : > { %v36363_v54 = vand.u32 4294901760, %v32277_v3  ;;  %v32738_v17 = vadd.f32 %v17730_v1, %v32145_v5  ;;  %v32740_v29 = vpack.c.bf16 %v17893_v56, %v17890_v45  ;;  %v32743_v7 = vsub.f32 %v32698_v43, %v17890_v45  ;;  %17804 = vst.msk [vmem:[%s32267_s12 + $0xf8] sm:$0xff] %vm17772_vm4, %v32724_v19 }
 0x89f   : > { %36361 = vst [vmem:[#allocation39_spill] sm:$0xff] %v32728_v26  ;;  %v32745_v49 = vpack.c.bf16 %v18087_v23, %v18080_v58  ;;  %v17899_v20 = vand.u32 4294901760, %v32724_v19  ;;  %v18093_v16 = vsub.f32 %v32703_v51, %v18092_v50  ;;  %v18101_v57 = vand.u32 4294901760, %v18100_v40 }
 0x8a0   : > { %v32735_v34 = vpack.c.bf16 %v36363_v54, %v36362_v24  ;;  %36365 = vst [vmem:[#allocation43_spill] sm:$0xff] %v32740_v29  ;;  %36366 = vst [vmem:[#allocation48_spill] sm:$0xff] %v32743_v7  ;;  %v18113_v24 = vand.u32 4294901760, %v32728_v26  ;;  %24564 = vmatprep.subr.bf16.mxu1 %v32740_v29  ;;  %v17896_v5 = vand.u32 4294901760, %v32738_v17  ;;  %v18106_v56 = vand.u32 4294901760, %v32743_v7 }
 0x8a1   : > { %17803 = vst.msk [vmem:[%s32267_s12 + $0xf0] sm:$0xff] %vm17772_vm4, %v32738_v17  ;;  %v36367_v45 = vand.u32 4294901760, %v32547_v2  ;;  %v36368_v58 = vand.u32 4294901760, %v32534_v25  ;;  %24566 = vmatpush3.bf16.msra.mxu1 %v32442_v4  ;;  %v32769_v40 = vsub.f32 %v32724_v19, %v17899_v20  ;;  %v18094_v54 = vand.u32 4294901760, %v18093_v16 }
 0x8a2   : > { %36364 = vst [vmem:[#allocation27_spill] sm:$0xff] %v32735_v34  ;;  %v18114_v34 = vsub.f32 %v32728_v26, %v18113_v24  ;;  %v36371_v29 = vand.u32 4294901760, %v32310_v38  ;;  %v36372_v51 = vand.u32 4294901760, %v32300_v6  ;;  %v32778_v23 = vpack.c.bf16 %v17899_v20, %v17896_v5 }
 0x8a3   : > { %v32765_v1 = vpack.c.bf16 %v36368_v58, %v36367_v45  ;;  %36370 = vst [vmem:[#allocation65_spill] sm:$0xff] %v32769_v40  ;;  %v32781_v2 = vsub.f32 %v32738_v17, %v17896_v5  ;;  %v18107_v45 = vsub.f32 %v32743_v7, %v18106_v56  ;;  %v36376_v58 = vand.u32 4294901760, %v32585_v63 }
 0x8a4   : > { %v32776_v3 = vpack.c.bf16 %v36372_v51, %v36371_v29  ;;  %36374 = vst [vmem:[#allocation116_spill] sm:$0xff] %v32778_v23  ;;  %v32790_v4 = vpack.c.bf16 %v18101_v57, %v18094_v54  ;;  %v18115_v26 = vand.u32 4294901760, %v18114_v34  ;;  %v18127_v38 = vand.u32 4294901760, %v32769_v40  ;;  %24568 = vmatprep.subr.bf16.mxu1 %v32778_v23 }
 0x8a5   : > { %36369 = vst [vmem:[#allocation64_spill] sm:$0xff] %v32765_v1  ;;  %36375 = vst [vmem:[#allocation129_spill] sm:$0xff] %v32781_v2  ;;  %v36377_v1 = vand.u32 4294901760, %v32572_v47  ;;  %v36379_v29 = vand.u32 4294901760, %v32336_v22  ;;  %v36380_v20 = vand.u32 4294901760, %v32328_v8  ;;  %v18108_v5 = vand.u32 4294901760, %v18107_v45  ;;  %24570 = vmatpush3.bf16.msra.mxu1 %v32472_v21 }
 0x8a6   : > { %36373 = vst [vmem:[#allocation119_spill] sm:$0xff] %v32776_v3  ;;  %v18120_v3 = vand.u32 4294901760, %v32781_v2  ;;  %v36382_v57 = vand.u32 4294901760, %v32623_v10  ;;  %v36383_v34 = vand.u32 4294901760, %v32612_v0  ;;  %v36391_v23 = vand.u32 4294901760, %v32387_v48  ;;  %24572 = vmatprep.subr.bf16.mxu1 %v32587_v41 }
 0x8a7   : > { %v32788_v16 = vpack.c.bf16 %v36377_v1, %v36376_v58  ;;  %v32797_v51 = vpack.c.bf16 %v36380_v20, %v36379_v29  ;;  %v18128_v58 = vsub.f32 %v32769_v40, %v18127_v38  ;;  %v36385_v29 = vand.u32 4294901760, %v32361_v13 }
 0x8a8   : > { %v32807_v54 = vpack.c.bf16 %v36383_v34, %v36382_v57  ;;  %v36386_v20 = vand.u32 4294901760, %v32356_v27  ;;  %v36389_v1 = vand.u32 4294901760, %v32648_v15  ;;  %v36392_v57 = vand.u32 4294901760, %v32383_v46 }
 0x8a9   : > { %36378 = vst [vmem:[#allocation106_spill] sm:$0xff] %v32788_v16  ;;  %36381 = vst [vmem:[#allocation115_spill] sm:$0xff] %v32797_v51  ;;  %v36388_v51 = vand.u32 4294901760, %v32661_v39  ;;  %v18121_v21 = vsub.f32 %v32781_v2, %v18120_v3 }
 0x8aa   : > { %36384 = vst [vmem:[#allocation128_spill] sm:$0xff] %v32807_v54  ;;  %v32815_v45 = vpack.c.bf16 %v36386_v20, %v36385_v29  ;;  %v32827_v34 = vpack.c.bf16 %v36392_v57, %v36391_v23  ;;  %v32830_v54 = vpack.c.bf16 %v18115_v26, %v18108_v5  ;;  %v32833_v29 = vpack.c.bf16 %v18099_v53, %v18092_v50 }
 0x8ab   : > { %v32821_v16 = vpack.c.bf16 %v36389_v1, %v36388_v51  ;;  %v36395_v20 = vand.u32 4294901760, %v32413_v12  ;;  %v18129_v1 = vand.u32 4294901760, %v18128_v58  ;;  %v36399_v23 = vand.u32 4294901760, %v32439_v18 }
 0x8ac   : > { %36387 = vst [vmem:[#allocation114_spill] sm:$0xff] %v32815_v45  ;;  %36393 = vst [vmem:[#allocation93_spill] sm:$0xff] %v32827_v34  ;;  %v36396_v45 = vand.u32 4294901760, %v32409_v60  ;;  %v36400_v57 = vand.u32 4294901760, %v32435_v30  ;;  %v32849_v26 = vpack.c.bf16 %v18127_v38, %v18120_v3  ;;  %v36403_v5 = vmov 0.0   ;;  %v36435_v34 = vld [vmem:[#allocation67_spill] sm:$0xff] }
 0x8ad   : > { %36390 = vst [vmem:[#allocation85_spill] sm:$0xff] %v32821_v16  ;;  %36394 = vst [vmem:[#allocation127_spill] sm:$0xff] %v32833_v29  ;;  %v32841_v16 = vpack.c.bf16 %v18113_v24, %v18106_v56  ;;  %17902 = vmatmul.mubr.f32.vlgmr.msra.gmra.mrb[32].mxu1 %v36403_v5  ;;  %v18122_v53 = vand.u32 4294901760, %v18121_v21  ;;  %v36404_v50 = vand.u32 4294901760, %v32467_v42  ;;  %v36405_v29 = vand.u32 4294901760, %v32461_v62 }
 0x8ae   : > { %v32839_v51 = vpack.c.bf16 %v36396_v45, %v36395_v20  ;;  %v32847_v41 = vpack.c.bf16 %v36400_v57, %v36399_v23  ;;  %36402 = vst [vmem:[#allocation16_spill] sm:$0xff] %v32849_v26  ;;  %v18657_v24 = vmul.f32 %v32470_v32, %v32470_v32  ;;  %v18658_v56 = vmul.f32 %v32464_v55, %v32464_v55  ;;  %v36423_v26 = vld [vmem:[#allocation69_spill] sm:$0xff] }
 0x8af   : > { %36398 = vst [vmem:[#allocation94_spill] sm:$0xff] %v32841_v16  ;;  %v32856_v45 = vpack.c.bf16 %v36405_v29, %v36404_v50  ;;  %24574 = vmatpush3.bf16.msra.mxu1 %v32341_v35  ;;  %v34622_v58 = vmov 1.0   ;;  %v36407_v3 = vand.u32 4294901760, %v32275_v36  ;;  %v18659_v21 = vmul.f32 %v32504_v9, %v32504_v9 }
 0x8b0   : > { %36397 = vst [vmem:[#allocation124_spill] sm:$0xff] %v32839_v51  ;;  %36401 = vst [vmem:[#allocation6_spill] sm:$0xff] %v32847_v41  ;;  %18131 = vmatprep.mubr.f32.mxu1 %v34622_v58  ;;  %v18660_v29 = vmul.f32 %v32495_v31, %v32495_v31  ;;  %v18680_v32 = vand.u32 4294901760, %v32295_v28  ;;  %24576 = vmatprep.subr.bf16.mxu1 %v32632_v11  ;;  %v32875_v55 = vpack.c.bf16 %v18129_v1, %v18122_v53 }
 0x8b1   : > { %36406 = vst [vmem:[#allocation10_spill] sm:$0xff] %v32856_v45  ;;  %v32867_v38 = vsub.f32 %v32275_v36, %v36407_v3  ;;  %v18722_v35 = vand.u32 4294901760, %v18657_v24  ;;  %v18725_v20 = vand.u32 4294901760, %v18658_v56  ;;  %v18683_v23 = vand.u32 4294901760, %v32288_v61 }
 0x8b2   : > { %v18728_v57 = vand.u32 4294901760, %v18659_v21  ;;  %v18731_v50 = vand.u32 4294901760, %v18660_v29  ;;  %v32879_v36 = vsub.f32 %v32295_v28, %v18680_v32  ;;  %v18661_v9 = vmul.f32 %v32542_v52, %v32542_v52 }
 0x8b3   : > { %36408 = vst [vmem:[#allocation34_spill] sm:$0xff] %v32867_v38  ;;  %v32883_v3 = vpack.c.bf16 %v18725_v20, %v18722_v35  ;;  %v32885_v31 = vsub.f32 %v18657_v24, %v18722_v35  ;;  %v32887_v58 = vsub.f32 %v18658_v56, %v18725_v20  ;;  %v32889_v11 = vpack.c.bf16 %v18683_v23, %v18680_v32  ;;  %v36416_v56 = vld [vmem:[#allocation121_spill] sm:$0xff]  ;;  %v36417_v35 = vld [vmem:[#allocation95_spill] sm:$0xff] }
 0x8b4   : > { %36409 = vst [vmem:[#allocation49_spill] sm:$0xff] %v32879_v36  ;;  %24578 = vmatpush3.bf16.msra.mxu1 %v32373_v44  ;;  %v32892_v1 = vpack.c.bf16 %v18731_v50, %v18728_v57  ;;  %v32894_v53 = vsub.f32 %v18659_v21, %v18728_v57  ;;  %v32896_v45 = vsub.f32 %v18660_v29, %v18731_v50  ;;  %v18734_v24 = vand.u32 4294901760, %v18661_v9  ;;  %v36418_v44 = vld [vmem:[#allocation57_spill] sm:$0xff]  ;;  %v36419_v21 = vld [vmem:[#allocation32_spill] sm:$0xff]  ;;  %v36420_v57 = vld [vmem:[#allocation42_spill] sm:$0xff] }
 0x8b5   : > { %36410 = vst [vmem:[#allocation56_spill] sm:$0xff] %v32883_v3  ;;  %36411 = vst [vmem:[#allocation22_spill] sm:$0xff] %v32887_v58  ;;  %v32899_v28 = vsub.f32 %v32288_v61, %v18683_v23  ;;  %24580 = vmatprep.subr.bf16.mxu1 %v32663_v59  ;;  %v18662_v52 = vmul.f32 %v32530_v33, %v32530_v33  ;;  %v18686_v32 = vand.u32 4294901760, %v36416_v56  ;;  %v18689_v20 = vand.u32 4294901760, %v36417_v35  ;;  %v36421_v61 = vld [vmem:[#allocation7_spill] sm:$0xff] }
 0x8b6   : > { %36412 = vst [vmem:[#allocation68_spill] sm:$0xff] %v32889_v11  ;;  %36413 = vst [vmem:[#allocation79_spill] sm:$0xff] %v32892_v1  ;;  %v18663_v11 = vmul.f32 %v36418_v44, %v36418_v44  ;;  %v18664_v29 = vmul.f32 %v36419_v21, %v36419_v21  ;;  %v18692_v50 = vand.u32 4294901760, %v36420_v57  ;;  %v18695_v23 = vand.u32 4294901760, %v36421_v61 }
 0x8b7   : > { %36414 = vst [vmem:[#allocation87_spill] sm:$0xff] %v32894_v53  ;;  %36415 = vst [vmem:[#allocation100_spill] sm:$0xff] %v32896_v45  ;;  %v18737_v1 = vand.u32 4294901760, %v18662_v52  ;;  %v32912_v59 = vsub.f32 %v18661_v9, %v18734_v24  ;;  %v32914_v3 = vpack.c.bf16 %v18689_v20, %v18686_v32  ;;  %v32917_v33 = vsub.f32 %v36416_v56, %v18686_v32 }
 0x8b8   : > { %24582 = vmatpush3.bf16.msra.mxu1 %v36423_v26  ;;  %v32921_v41 = vsub.f32 %v36417_v35, %v18689_v20  ;;  %v18740_v44 = vand.u32 4294901760, %v18663_v11  ;;  %v18743_v16 = vand.u32 4294901760, %v18664_v29  ;;  %v32923_v21 = vpack.c.bf16 %v18695_v23, %v18692_v50  ;;  %v36427_v20 = vld [vmem:[#allocation75_spill] sm:$0xff] }
 0x8b9   : > { %36422 = vst [vmem:[#allocation20_spill] sm:$0xff] %v32914_v3  ;;  %24584 = vmatprep.subr.bf16.mxu1 %v32712_v14  ;;  %v32926_v51 = vpack.c.bf16 %v18737_v1, %v18734_v24  ;;  %v32928_v9 = vsub.f32 %v18662_v52, %v18737_v1  ;;  %v32931_v3 = vsub.f32 %v36420_v57, %v18692_v50  ;;  %v36428_v14 = vld [vmem:[#allocation73_spill] sm:$0xff]  ;;  %v36429_v1 = vld [vmem:[#allocation54_spill] sm:$0xff]  ;;  %v36431_v50 = vld [vmem:[#allocation99_spill] sm:$0xff] }
 0x8ba   : > { %36424 = vst [vmem:[#allocation105_spill] sm:$0xff] %v32923_v21  ;;  %v32934_v56 = vsub.f32 %v36421_v61, %v18695_v23  ;;  %v32936_v26 = vpack.c.bf16 %v18743_v16, %v18740_v44  ;;  %v32938_v32 = vsub.f32 %v18663_v11, %v18740_v44  ;;  %v32940_v35 = vsub.f32 %v18664_v29, %v18743_v16  ;;  %v36432_v23 = vld [vmem:[#allocation117_spill] sm:$0xff]  ;;  %v36433_v11 = vld [vmem:[#allocation98_spill] sm:$0xff] }
 0x8bb   : > { %36425 = vst [vmem:[#allocation111_spill] sm:$0xff] %v32926_v51  ;;  %v18665_v21 = vmul.f32 %v36427_v20, %v36427_v20  ;;  %v18666_v24 = vmul.f32 %v36428_v14, %v36428_v14  ;;  %v18698_v52 = vand.u32 4294901760, %v36429_v1  ;;  %v36430_v51 = vld [vmem:[#allocation21_spill] sm:$0xff]  ;;  %v18667_v61 = vmul.f32 %v36431_v50, %v36431_v50  ;;  %v36434_v29 = vld [vmem:[#allocation70_spill] sm:$0xff] }
 0x8bc   : > { %36426 = vst [vmem:[#allocation24_spill] sm:$0xff] %v32936_v26  ;;  %v18701_v57 = vand.u32 4294901760, %v36430_v51  ;;  %24586 = vmatpush3.bf16.msra.mxu1 %v36432_v23  ;;  %v18668_v16 = vmul.f32 %v36433_v11, %v36433_v11  ;;  %v18704_v44 = vand.u32 4294901760, %v36434_v29  ;;  %v18707_v20 = vand.u32 4294901760, %v36435_v34 }
 0x8bd   : > { %v18746_v26 = vand.u32 4294901760, %v18665_v21  ;;  %24588 = vmatprep.subr.bf16.mxu1 %v32745_v49  ;;  %v18749_v14 = vand.u32 4294901760, %v18666_v24  ;;  %v32959_v62 = vsub.f32 %v36429_v1, %v18698_v52  ;;  %v18752_v2 = vand.u32 4294901760, %v18667_v61  ;;  %v36439_v1 = vld [vmem:[#allocation76_spill] sm:$0xff] }
 0x8be   : > { %v32956_v42 = vpack.c.bf16 %v18701_v57, %v18698_v52  ;;  %v32962_v50 = vsub.f32 %v36430_v51, %v18701_v57  ;;  %v18755_v40 = vand.u32 4294901760, %v18668_v16  ;;  %v32966_v11 = vpack.c.bf16 %v18707_v20, %v18704_v44  ;;  %v36441_v57 = vld [vmem:[#allocation33_spill] sm:$0xff] }
 0x8bf   : > { %v32964_v23 = vsub.f32 %v18665_v21, %v18746_v26  ;;  %v32968_v18 = vpack.c.bf16 %v18749_v14, %v18746_v26  ;;  %v32970_v30 = vsub.f32 %v18666_v24, %v18749_v14  ;;  %v32973_v49 = vsub.f32 %v36434_v29, %v18704_v44 }
 0x8c0   : > { %36436 = vst [vmem:[#allocation28_spill] sm:$0xff] %v32956_v42  ;;  %36437 = vst [vmem:[#allocation77_spill] sm:$0xff] %v32966_v11  ;;  %v32976_v42 = vsub.f32 %v36435_v34, %v18707_v20  ;;  %24590 = vmatpush3.bf16.msra.mxu1 %v36439_v1  ;;  %v32979_v51 = vpack.c.bf16 %v18755_v40, %v18752_v2  ;;  %v32981_v21 = vsub.f32 %v18667_v61, %v18752_v2  ;;  %v36442_v34 = vld [vmem:[#allocation91_spill] sm:$0xff] }
 0x8c1   : > { %36438 = vst [vmem:[#allocation89_spill] sm:$0xff] %v32968_v18  ;;  %v32983_v52 = vsub.f32 %v18668_v16, %v18755_v40  ;;  %v18669_v26 = vmul.f32 %v32698_v43, %v32698_v43  ;;  %24592 = vmatprep.subr.bf16.mxu1 %v32790_v4  ;;  %v18670_v24 = vmul.f32 %v32688_v37, %v32688_v37  ;;  %v18710_v29 = vand.u32 4294901760, %v36441_v57  ;;  %v36443_v40 = vld [vmem:[#allocation80_spill] sm:$0xff]  ;;  %v36444_v16 = vld [vmem:[#allocation63_spill] sm:$0xff] }
 0x8c2   : > { %36440 = vst [vmem:[#allocation17_spill] sm:$0xff] %v32979_v51  ;;  %v18713_v44 = vand.u32 4294901760, %v36442_v34  ;;  %v18671_v20 = vmul.f32 %v32738_v17, %v32738_v17  ;;  %v18672_v2 = vmul.f32 %v32724_v19, %v32724_v19  ;;  %v18716_v61 = vand.u32 4294901760, %v36443_v40  ;;  %v36448_v51 = vld [vmem:[#allocation101_spill] sm:$0xff] }
 0x8c3   : > { %v18758_v14 = vand.u32 4294901760, %v18669_v26  ;;  %v18719_v43 = vand.u32 4294901760, %v36444_v16  ;;  %v18761_v1 = vand.u32 4294901760, %v18670_v24  ;;  %v33001_v37 = vsub.f32 %v36441_v57, %v18710_v29 }
 0x8c4   : > { %v32998_v4 = vpack.c.bf16 %v18713_v44, %v18710_v29  ;;  %v33004_v11 = vsub.f32 %v36442_v34, %v18713_v44  ;;  %24594 = vmatpush3.bf16.msra.mxu1 %v36448_v51  ;;  %v18764_v18 = vand.u32 4294901760, %v18671_v20  ;;  %v18767_v7 = vand.u32 4294901760, %v18672_v2 }
 0x8c5   : > { %36446 = vst [vmem:[#allocation15_spill] sm:$0xff] %v33001_v37  ;;  %v33007_v17 = vsub.f32 %v18669_v26, %v18758_v14  ;;  %v33009_v19 = vpack.c.bf16 %v18719_v43, %v18716_v61  ;;  %24596 = vmatprep.subr.bf16.mxu1 %v32830_v54  ;;  %v33012_v12 = vpack.c.bf16 %v18761_v1, %v18758_v14  ;;  %v34644_v44 = vand.u32 4294901760, %v32885_v31 }
 0x8c6   : > { %36445 = vst [vmem:[#allocation29_spill] sm:$0xff] %v32998_v4  ;;  %36447 = vst [vmem:[#allocation26_spill] sm:$0xff] %v33004_v11  ;;  %v33014_v60 = vsub.f32 %v18670_v24, %v18761_v1  ;;  %v33017_v57 = vsub.f32 %v36443_v40, %v18716_v61  ;;  %v33020_v29 = vsub.f32 %v36444_v16, %v18719_v43  ;;  %v34645_v54 = vand.u32 4294901760, %v32887_v58  ;;  %v36456_v24 = vld [vmem:[#allocation112_spill] sm:$0xff] }
 0x8c7   : > { %36449 = vst [vmem:[#allocation38_spill] sm:$0xff] %v33009_v19  ;;  %36450 = vst [vmem:[#allocation84_spill] sm:$0xff] %v33012_v12  ;;  %v33022_v34 = vpack.c.bf16 %v18767_v7, %v18764_v18  ;;  %v33024_v51 = vsub.f32 %v18671_v20, %v18764_v18  ;;  %v33026_v26 = vsub.f32 %v18672_v2, %v18767_v7  ;;  %v34647_v14 = vand.u32 4294901760, %v32867_v38  ;;  %v36457_v61 = vld [vmem:[#allocation120_spill] sm:$0xff] }
 0x8c8   : > { %36451 = vst [vmem:[#allocation97_spill] sm:$0xff] %v33017_v57  ;;  %36452 = vst [vmem:[#allocation104_spill] sm:$0xff] %v33020_v29  ;;  %v34650_v1 = vand.u32 4294901760, %v36456_v24  ;;  %v34653_v40 = vand.u32 4294901760, %v32894_v53  ;;  %24598 = vmatpush3.bf16.msra.mxu1 %v36457_v61  ;;  %v18891_v16 = vsub.f32 %v32885_v31, %v34644_v44  ;;  %v34658_v18 = vand.u32 4294901760, %v32896_v45 }
 0x8c9   : > { %36453 = vst [vmem:[#allocation53_spill] sm:$0xff] %v33022_v34  ;;  %36454 = vst [vmem:[#allocation55_spill] sm:$0xff] %v33024_v51  ;;  %24600 = vmatprep.subr.bf16.mxu1 %v32875_v55  ;;  %v18898_v2 = vsub.f32 %v32887_v58, %v34645_v54  ;;  %v18779_v43 = vsub.f32 %v32867_v38, %v34647_v14  ;;  %v36458_v20 = vand.u32 4294901760, %v32879_v36  ;;  %v36459_v19 = vand.u32 4294901760, %v32899_v28 }
 0x8ca   : > { %36455 = vst [vmem:[#allocation61_spill] sm:$0xff] %v33026_v26  ;;  %v18786_v61 = vsub.f32 %v36456_v24, %v34650_v1  ;;  %v18905_v44 = vsub.f32 %v32894_v53, %v34653_v40  ;;  %v18892_v7 = vand.u32 4294901760, %v18891_v16  ;;  %v18912_v55 = vsub.f32 %v32896_v45, %v34658_v18  ;;  %v36460_v24 = vld [vmem:[#allocation19_spill] sm:$0xff]  ;;  %v36461_v18 = vld [vmem:[#allocation122_spill] sm:$0xff]  ;;  %v36462_v45 = vld [vmem:[#allocation113_spill] sm:$0xff] }
 0x8cb   : > { %v18793_v54 = vsub.f32 %v32879_v36, %v36458_v20  ;;  %v18800_v14 = vsub.f32 %v32899_v28, %v36459_v19  ;;  %v18899_v34 = vand.u32 4294901760, %v18898_v2  ;;  %v18780_v4 = vand.u32 4294901760, %v18779_v43 }
 0x8cc   : > { %v18787_v1 = vand.u32 4294901760, %v18786_v61  ;;  %v18906_v12 = vand.u32 4294901760, %v18905_v44  ;;  %24602 = vmatpush3.bf16.msra.mxu1 %v36460_v24  ;;  %v18913_v40 = vand.u32 4294901760, %v18912_v55  ;;  %v34670_v38 = vand.u32 4294901760, %v32912_v59  ;;  %v36468_v55 = vld [vmem:[#allocation18_spill] sm:$0xff] }
 0x8cd   : > { %v18794_v16 = vand.u32 4294901760, %v18793_v54  ;;  %v18801_v53 = vand.u32 4294901760, %v18800_v14  ;;  %v36463_v58 = vpack.c.bf16 %v36461_v18, %v36462_v45  ;;  %v33067_v20 = vpack.c.bf16 %v18899_v34, %v18892_v7  ;;  %v36465_v34 = vld [vmem:[#allocation81_spill] sm:$0xff] }
 0x8ce   : > { %v33069_v36 = vpack.c.bf16 %v18787_v1, %v18780_v4  ;;  %v34666_v19 = vand.u32 4294901760, %v32928_v9  ;;  %v34665_v2 = vand.u32 4294901760, %v32917_v33  ;;  %v33073_v44 = vpack.c.bf16 %v18913_v40, %v18906_v12  ;;  %v36466_v1 = vld [vmem:[#allocation109_spill] sm:$0xff] }
 0x8cf   : > { %24604 = vmatprep.subr.bf16.mxu1 %v36463_v58  ;;  %v33075_v24 = vpack.c.bf16 %v18801_v53, %v18794_v16  ;;  %v18919_v54 = vsub.f32 %v32912_v59, %v34670_v38  ;;  %v34668_v14 = vand.u32 4294901760, %v32921_v41  ;;  %v36464_v45 = vmov 1.0  }
 0x8d0   : > { %18132 = vmatmul.mubr.f32.vlgmr.msra.gmra.mrb[34].mxu1 %v36464_v45  ;;  %v18926_v58 = vsub.f32 %v32928_v9, %v34666_v19  ;;  %v18807_v4 = vsub.f32 %v32917_v33, %v34665_v2  ;;  %v34667_v12 = vand.u32 4294901760, %v32938_v32  ;;  %v34669_v53 = vand.u32 4294901760, %v32940_v35 }
 0x8d1   : > { %v36467_v40 = vpack.c.bf16 %v36465_v34, %v36466_v1  ;;  %18265 = vmatprep.mubr.f32.mxu1 %v36403_v5  ;;  %v18920_v18 = vand.u32 4294901760, %v18919_v54  ;;  %v18814_v7 = vsub.f32 %v32921_v41, %v34668_v14  ;;  %v34671_v43 = vand.u32 4294901760, %v32931_v3  ;;  %v36470_v14 = vld [vmem:[#allocation107_spill] sm:$0xff] }
 0x8d2   : > { %v34672_v61 = vand.u32 4294901760, %v32934_v56  ;;  %v36469_v16 = vpack.c.bf16 %v32534_v25, %v36468_v55  ;;  %v18927_v2 = vand.u32 4294901760, %v18926_v58  ;;  %v18808_v19 = vand.u32 4294901760, %v18807_v4 }
 0x8d3   : > { %24606 = vmatpush3.bf16.msra.mxu1 %v36467_v40  ;;  %v18933_v34 = vsub.f32 %v32938_v32, %v34667_v12  ;;  %v18940_v54 = vsub.f32 %v32940_v35, %v34669_v53  ;;  %v18815_v1 = vand.u32 4294901760, %v18814_v7  ;;  %v18821_v40 = vsub.f32 %v32931_v3, %v34671_v43 }
 0x8d4   : > { %24608 = vmatprep.subr.bf16.mxu1 %v36469_v16  ;;  %v18828_v25 = vsub.f32 %v32934_v56, %v34672_v61  ;;  %v34683_v58 = vand.u32 4294901760, %v32964_v23  ;;  %v33115_v4 = vpack.c.bf16 %v18927_v2, %v18920_v18  ;;  %v34682_v12 = vand.u32 4294901760, %v32970_v30 }
 0x8d5   : > { %v18934_v55 = vand.u32 4294901760, %v18933_v34  ;;  %v18941_v16 = vand.u32 4294901760, %v18940_v54  ;;  %v36471_v53 = vpack.c.bf16 %v32300_v6, %v36470_v14  ;;  %v33121_v7 = vpack.c.bf16 %v18815_v1, %v18808_v19 }
 0x8d6   : > { %v18822_v38 = vand.u32 4294901760, %v18821_v40  ;;  %v18829_v43 = vand.u32 4294901760, %v18828_v25  ;;  %v18947_v61 = vsub.f32 %v32964_v23, %v34683_v58  ;;  %v36473_v2 = vpack.c.bf16 %v32572_v47, %v32585_v63 }
 0x8d7   : > { %24610 = vmatpush3.bf16.msra.mxu1 %v36471_v53  ;;  %36472 = vst [vmem:[#allocation62_spill] sm:$0xff] %v33121_v7  ;;  %v33129_v18 = vpack.c.bf16 %v18941_v16, %v18934_v55  ;;  %v18954_v34 = vsub.f32 %v32970_v30, %v34682_v12  ;;  %v34676_v6 = vand.u32 4294901760, %v32959_v62  ;;  %v34674_v19 = vand.u32 4294901760, %v32962_v50  ;;  %v36487_v12 = vld [vmem:[#allocation35_spill] sm:$0xff] }
 0x8d8   : > { %24612 = vmatprep.subr.bf16.mxu1 %v36473_v2  ;;  %v33136_v14 = vpack.c.bf16 %v18829_v43, %v18822_v38  ;;  %v18948_v53 = vand.u32 4294901760, %v18947_v61  ;;  %v34673_v54 = vand.u32 4294901760, %v32981_v21  ;;  %v34675_v1 = vand.u32 4294901760, %v32983_v52 }
 0x8d9   : > { %36474 = vst [vmem:[#allocation31_spill] sm:$0xff] %v33129_v18  ;;  %v18955_v40 = vand.u32 4294901760, %v18954_v34  ;;  %v18835_v47 = vsub.f32 %v32959_v62, %v34676_v6  ;;  %v18842_v63 = vsub.f32 %v32962_v50, %v34674_v19  ;;  %v34681_v25 = vand.u32 4294901760, %v32973_v49 }
 0x8da   : > { %36475 = vst [vmem:[#allocation37_spill] sm:$0xff] %v33136_v14  ;;  %v36476_v38 = vpack.c.bf16 %v32328_v8, %v32336_v22  ;;  %v18961_v43 = vsub.f32 %v32981_v21, %v34673_v54  ;;  %v18968_v61 = vsub.f32 %v32983_v52, %v34675_v1  ;;  %v34680_v55 = vand.u32 4294901760, %v32976_v42  ;;  %v36492_v14 = vld [vmem:[#allocation100_spill] sm:$0xff] }
 0x8db   : > { %v34677_v16 = vand.u32 4294901760, %v33007_v17  ;;  %v36477_v2 = vpack.c.bf16 %v32612_v0, %v32623_v10  ;;  %v33161_v34 = vpack.c.bf16 %v18955_v40, %v18948_v53  ;;  %v18836_v8 = vand.u32 4294901760, %v18835_v47 }
 0x8dc   : > { %24614 = vmatpush3.bf16.msra.mxu1 %v36476_v38  ;;  %v18843_v22 = vand.u32 4294901760, %v18842_v63  ;;  %v18849_v38 = vsub.f32 %v32973_v49, %v34681_v25  ;;  %v18962_v54 = vand.u32 4294901760, %v18961_v43  ;;  %v18969_v19 = vand.u32 4294901760, %v18968_v61  ;;  %v36486_v25 = vld [vmem:[#allocation12_spill] sm:$0xff] }
 0x8dd   : > { %24616 = vmatprep.subr.bf16.mxu1 %v36477_v2  ;;  %36478 = vst [vmem:[#allocation50_spill] sm:$0xff] %v33161_v34  ;;  %v18856_v1 = vsub.f32 %v32976_v42, %v34680_v55  ;;  %v18975_v6 = vsub.f32 %v33007_v17, %v34677_v16  ;;  %v34679_v53 = vand.u32 4294901760, %v33014_v60  ;;  %v34678_v40 = vand.u32 4294901760, %v33001_v37  ;;  %v36491_v34 = vld [vmem:[#allocation87_spill] sm:$0xff]  ;;  %v36493_v55 = vld [vmem:[#allocation49_spill] sm:$0xff] }
 0x8de   : > { %v33172_v0 = vpack.c.bf16 %v18843_v22, %v18836_v8  ;;  %v18850_v10 = vand.u32 4294901760, %v18849_v38  ;;  %v36480_v47 = vpack.c.bf16 %v32356_v27, %v32361_v13  ;;  %v33179_v63 = vpack.c.bf16 %v18969_v19, %v18962_v54 }
 0x8df   : > { %v18857_v43 = vand.u32 4294901760, %v18856_v1  ;;  %v18976_v61 = vand.u32 4294901760, %v18975_v6  ;;  %v18869_v2 = vand.u32 4294901760, %v33004_v11  ;;  %v36482_v16 = vpack.c.bf16 %v32648_v15, %v32661_v39 }
 0x8e0   : > { %36479 = vst [vmem:[#allocation52_spill] sm:$0xff] %v33172_v0  ;;  %24618 = vmatpush3.bf16.msra.mxu1 %v36480_v47  ;;  %36481 = vst [vmem:[#allocation8_spill] sm:$0xff] %v33179_v63  ;;  %v18982_v8 = vsub.f32 %v33014_v60, %v34679_v53  ;;  %v18863_v22 = vsub.f32 %v33001_v37, %v34678_v40  ;;  %v18988_v27 = vand.u32 4294901760, %v33024_v51  ;;  %v18995_v13 = vand.u32 4294901760, %v33026_v26  ;;  %v36485_v53 = vld [vmem:[#allocation22_spill] sm:$0xff]  ;;  %v36490_v0 = vld [vmem:[#allocation112_spill] sm:$0xff] }
 0x8e1   : > { %24620 = vmatprep.subr.bf16.mxu1 %v36482_v16  ;;  %v33193_v19 = vpack.c.bf16 %v18857_v43, %v18850_v10  ;;  %v18870_v6 = vsub.f32 %v33004_v11, %v18869_v2  ;;  %v18876_v54 = vand.u32 4294901760, %v33017_v57  ;;  %v18883_v15 = vand.u32 4294901760, %v33020_v29  ;;  %v36489_v63 = vld [vmem:[#allocation34_spill] sm:$0xff] }
 0x8e2   : > { %v18983_v39 = vand.u32 4294901760, %v18982_v8  ;;  %v18864_v1 = vand.u32 4294901760, %v18863_v22  ;;  %v18989_v16 = vsub.f32 %v33024_v51, %v18988_v27  ;;  %v18996_v38 = vsub.f32 %v33026_v26, %v18995_v13  ;;  %v36575_v51 = vld [vmem:[#allocation114_spill] sm:$0xff]  ;;  %v36576_v26 = vld [vmem:[#allocation85_spill] sm:$0xff] }
 0x8e3   : > { %36483 = vst [vmem:[#allocation23_spill] sm:$0xff] %v33193_v19  ;;  %v36484_v47 = vpack.c.bf16 %v32383_v46, %v32387_v48  ;;  %v18871_v40 = vand.u32 4294901760, %v18870_v6  ;;  %v18877_v10 = vsub.f32 %v33017_v57, %v18876_v54  ;;  %v18884_v43 = vsub.f32 %v33020_v29, %v18883_v15  ;;  %v36573_v57 = vld [vmem:[#allocation115_spill] sm:$0xff]  ;;  %v36574_v29 = vld [vmem:[#allocation128_spill] sm:$0xff]  ;;  %v36580_v11 = vld [vmem:[#allocation94_spill] sm:$0xff] }
 0x8e4   : > { %v36488_v8 = vpack.c.bf16 %v36486_v25, %v36487_v12  ;;  %v33210_v22 = vpack.c.bf16 %v18983_v39, %v18976_v61  ;;  %v18990_v58 = vand.u32 4294901760, %v18989_v16  ;;  %v18997_v19 = vand.u32 4294901760, %v18996_v38  ;;  %v36494_v39 = vld [vmem:[#allocation82_spill] sm:$0xff]  ;;  %v36495_v16 = vld [vmem:[#allocation88_spill] sm:$0xff] }
 0x8e5   : > { %24622 = vmatpush3.bf16.msra.mxu1 %v36484_v47  ;;  %v33214_v48 = vpack.c.bf16 %v18871_v40, %v18864_v1  ;;  %v18878_v6 = vand.u32 4294901760, %v18877_v10  ;;  %v18885_v47 = vand.u32 4294901760, %v18884_v43  ;;  %v36496_v40 = vpack.c.bf16 %v36494_v39, %v36495_v16  ;;  %v36497_v10 = vld [vmem:[#allocation39_spill] sm:$0xff]  ;;  %v36498_v43 = vld [vmem:[#allocation48_spill] sm:$0xff] }
 0x8e6   : > { %24624 = vmatprep.subr.bf16.mxu1 %v36488_v8  ;;  %v33218_v7 = vpack.c.bf16 %v18997_v19, %v18990_v58  ;;  %v36499_v8 = vpack.c.bf16 %v36497_v10, %v36498_v43  ;;  %v36500_v43 = vand.u32 4294901760, %v32885_v31  ;;  %v36504_v61 = vand.u32 4294901760, %v36490_v0 }
 0x8e7   : > { %v33229_v1 = vpack.c.bf16 %v18885_v47, %v18878_v6  ;;  %v36503_v47 = vand.u32 4294901760, %v36489_v63  ;;  %v36506_v16 = vand.u32 4294901760, %v36491_v34  ;;  %v36507_v19 = vand.u32 4294901760, %v36492_v14 }
 0x8e8   : > { %v36509_v10 = vand.u32 4294901760, %v36493_v55  ;;  %v36510_v58 = vand.u32 4294901760, %v32899_v28  ;;  %v36518_v18 = vand.u32 4294901760, %v32917_v33  ;;  %v36521_v46 = vand.u32 4294901760, %v32938_v32 }
 0x8e9   : > { %24626 = vmatpush3.bf16.msra.mxu1 %v36496_v40  ;;  %v33264_v39 = vpack.c.bf16 %v36504_v61, %v36503_v47  ;;  %v33270_v40 = vpack.c.bf16 %v36507_v19, %v36506_v16  ;;  %v36515_v61 = vld [vmem:[#allocation41_spill] sm:$0xff]  ;;  %v36519_v19 = vand.u32 4294901760, %v32921_v41 }
 0x8ea   : > { %24628 = vmatprep.subr.bf16.mxu1 %v36499_v8  ;;  %v36501_v8 = vand.u32 4294901760, %v36485_v53  ;;  %v33276_v38 = vpack.c.bf16 %v36510_v58, %v36509_v10  ;;  %v36516_v47 = vld [vmem:[#allocation9_spill] sm:$0xff]  ;;  %v36522_v58 = vand.u32 4294901760, %v32940_v35 }
 0x8eb   : > { %36505 = vst [vmem:[#allocation60_spill] sm:$0xff] %v33264_v39  ;;  %36508 = vst [vmem:[#allocation66_spill] sm:$0xff] %v33270_v40  ;;  %v36517_v12 = vpack.c.bf16 %v36515_v61, %v36516_v47  ;;  %v33291_v16 = vpack.c.bf16 %v36519_v19, %v36518_v18  ;;  %v36528_v61 = vand.u32 4294901760, %v32970_v30  ;;  %v36530_v18 = vld [vmem:[#allocation65_spill] sm:$0xff]  ;;  %v36570_v40 = vld [vmem:[#allocation64_spill] sm:$0xff] }
 0x8ec   : > { %v33258_v6 = vpack.c.bf16 %v36501_v8, %v36500_v43  ;;  %36511 = vst [vmem:[#allocation78_spill] sm:$0xff] %v33276_v38  ;;  %v36512_v43 = vand.u32 4294901760, %v32912_v59  ;;  %v36513_v8 = vand.u32 4294901760, %v32928_v9  ;;  %v33297_v10 = vpack.c.bf16 %v36522_v58, %v36521_v46  ;;  %v36531_v19 = vld [vmem:[#allocation129_spill] sm:$0xff]  ;;  %v36571_v39 = vld [vmem:[#allocation119_spill] sm:$0xff] }
 0x8ed   : > { %24630 = vmatpush3.bf16.msra.mxu1 %v36517_v12  ;;  %36520 = vst [vmem:[#allocation123_spill] sm:$0xff] %v33291_v16  ;;  %v36524_v38 = vand.u32 4294901760, %v32931_v3  ;;  %v36527_v12 = vand.u32 4294901760, %v32964_v23  ;;  %v36532_v16 = vpack.c.bf16 %v36530_v18, %v36531_v19  ;;  %v36534_v46 = vand.u32 4294901760, %v32962_v50 }
 0x8ee   : > { %36502 = vst [vmem:[#allocation36_spill] sm:$0xff] %v33258_v6  ;;  %v33282_v25 = vpack.c.bf16 %v36513_v8, %v36512_v43  ;;  %36523 = vst [vmem:[#allocation44_spill] sm:$0xff] %v33297_v10  ;;  %v36525_v43 = vand.u32 4294901760, %v32934_v56  ;;  %v36536_v10 = vand.u32 4294901760, %v32981_v21  ;;  %v36543_v18 = vand.u32 4294901760, %v33014_v60  ;;  %v36572_v6 = vld [vmem:[#allocation106_spill] sm:$0xff] }
 0x8ef   : > { %v33309_v47 = vpack.c.bf16 %v36528_v61, %v36527_v12  ;;  %24632 = vmatprep.subr.bf16.mxu1 %v36532_v16  ;;  %v36540_v12 = vand.u32 4294901760, %v32976_v42  ;;  %v36542_v16 = vand.u32 4294901760, %v33007_v17 }
 0x8f0   : > { %36514 = vst [vmem:[#allocation103_spill] sm:$0xff] %v33282_v25  ;;  %v33303_v8 = vpack.c.bf16 %v36525_v43, %v36524_v38  ;;  %v36533_v25 = vand.u32 4294901760, %v32959_v62  ;;  %v36537_v38 = vand.u32 4294901760, %v32983_v52 }
 0x8f1   : > { %36529 = vst [vmem:[#allocation14_spill] sm:$0xff] %v33309_v47  ;;  %v33336_v19 = vpack.c.bf16 %v36543_v18, %v36542_v16  ;;  %v36554_v16 = vld [vmem:[#allocation25_spill] sm:$0xff] }
 0x8f2   : > { %36526 = vst [vmem:[#allocation11_spill] sm:$0xff] %v33303_v8  ;;  %v33318_v58 = vpack.c.bf16 %v36534_v46, %v36533_v25  ;;  %v33324_v43 = vpack.c.bf16 %v36537_v38, %v36536_v10  ;;  %v36539_v8 = vand.u32 4294901760, %v32973_v49  ;;  %v36545_v25 = vand.u32 4294901760, %v33001_v37  ;;  %v36549_v38 = vld [vmem:[#allocation83_spill] sm:$0xff]  ;;  %v36562_v18 = vld [vmem:[#allocation13_spill] sm:$0xff] }
 0x8f3   : > { %36544 = vst [vmem:[#allocation71_spill] sm:$0xff] %v33336_v19  ;;  %v33344_v10 = vpack.c.bf16 %v18883_v15, %v18876_v54  ;;  %v36558_v54 = vld [vmem:[#allocation92_spill] sm:$0xff]  ;;  %v36559_v15 = vld [vmem:[#allocation46_spill] sm:$0xff]  ;;  %v36578_v37 = vld [vmem:[#allocation127_spill] sm:$0xff] }
 0x8f4   : > { %36535 = vst [vmem:[#allocation30_spill] sm:$0xff] %v33318_v58  ;;  %36538 = vst [vmem:[#allocation40_spill] sm:$0xff] %v33324_v43  ;;  %v33330_v61 = vpack.c.bf16 %v36540_v12, %v36539_v8  ;;  %v33340_v46 = vpack.c.bf16 %v18869_v2, %v36545_v25  ;;  %v33342_v58 = vpack.c.bf16 %v18995_v13, %v18988_v27  ;;  %v36550_v43 = vld [vmem:[#allocation86_spill] sm:$0xff]  ;;  %v36552_v8 = vld [vmem:[#allocation125_spill] sm:$0xff] }
 0x8f5   : > { %36548 = vst [vmem:[#allocation121_spill] sm:$0xff] %v33344_v10  ;;  %v36551_v47 = vpack.c.bf16 %v36549_v38, %v36550_v43  ;;  %v36553_v12 = vld [vmem:[#allocation110_spill] sm:$0xff]  ;;  %v36555_v2 = vld [vmem:[#allocation108_spill] sm:$0xff]  ;;  %v36556_v27 = vld [vmem:[#allocation59_spill] sm:$0xff] }
 0x8f6   : > { %36541 = vst [vmem:[#allocation47_spill] sm:$0xff] %v33330_v61  ;;  %36546 = vst [vmem:[#allocation72_spill] sm:$0xff] %v33340_v46  ;;  %v36557_v13 = vld [vmem:[#allocation45_spill] sm:$0xff]  ;;  %v36561_v43 = vld [vmem:[#allocation58_spill] sm:$0xff] }
 0x8f7   : > { %36547 = vst [vmem:[#allocation74_spill] sm:$0xff] %v33342_v58  ;;  %24634 = vmatpush3.bf16.msra.mxu1 %v36551_v47  ;;  %v36560_v47 = vld [vmem:[#allocation102_spill] sm:$0xff]  ;;  %v36564_v38 = vld [vmem:[#allocation43_spill] sm:$0xff]  ;;  %v36566_v58 = vld [vmem:[#allocation116_spill] sm:$0xff] }
 0x8f8   : > { %24636 = vmatprep.subr.bf16.mxu1 %v36552_v8  ;;  %v36563_v25 = vld [vmem:[#allocation90_spill] sm:$0xff]  ;;  %v36565_v10 = vld [vmem:[#allocation51_spill] sm:$0xff]  ;;  %v36567_v46 = vld [vmem:[#allocation96_spill] sm:$0xff] }
 0x8f9   : > { %v36568_v19 = vld [vmem:[#allocation126_spill] sm:$0xff]  ;;  %v36569_v61 = vld [vmem:[#allocation27_spill] sm:$0xff] }
 0x8fa   : > { %18266 = vmatmul.mubr.f32.vlgmr.msra.gmra.mrb[36].mxu1 %v36403_v5 }
 0x8fb   : > { %24638 = vmatpush3.bf16.msra.mxu1 %v36553_v12  ;;  %18367 = vmatprep.mubr.f32.mxu1 %v36403_v5 }
 0x8fc   : > { %24640 = vmatprep.subr.bf16.mxu1 %v36554_v16 }
 0x8ff   : > { %24642 = vmatpush3.bf16.msra.mxu1 %v36555_v2 }
 0x900   : > { %24644 = vmatprep.subr.bf16.mxu1 %v36556_v27 }
 0x903   : > { %24646 = vmatpush3.bf16.msra.mxu1 %v36557_v13 }
 0x904   : > { %24648 = vmatprep.subr.bf16.mxu1 %v36558_v54 }
 0x907   : > { %24650 = vmatpush3.bf16.msra.mxu1 %v36559_v15 }
 0x908   : > { %24652 = vmatprep.subr.bf16.mxu1 %v36560_v47 }
 0x90b   : > { %24654 = vmatpush3.bf16.msra.mxu1 %v36561_v43 }
 0x90c   : > { %24656 = vmatprep.subr.bf16.mxu1 %v36562_v18 }
 0x90f   : > { %24658 = vmatpush3.bf16.msra.mxu1 %v36563_v25 }
 0x910   : > { %24660 = vmatprep.subr.bf16.mxu1 %v36564_v38 }
 0x913   : > { %24662 = vmatpush3.bf16.msra.mxu1 %v36565_v10 }
 0x914   : > { %24664 = vmatprep.subr.bf16.mxu1 %v36566_v58 }
 0x917   : > { %24666 = vmatpush3.bf16.msra.mxu1 %v36567_v46 }
 0x918   : > { %24668 = vmatprep.subr.bf16.mxu1 %v36568_v19  ;;  %v36577_v19 = vld [vmem:[#allocation93_spill] sm:$0xff] }
 0x91a   : > { %18368 = vmatmul.mubr.f32.vlgmr.msra.gmra.mrb[38].mxu1 %v36403_v5 }
 0x91b   : > { %24670 = vmatpush3.bf16.msra.mxu1 %v36569_v61  ;;  %18533 = vmatprep.mubr.f32.mxu1 %v36464_v45  ;;  %v36579_v61 = vld [vmem:[#allocation124_spill] sm:$0xff] }
 0x91c   : > { %24672 = vmatprep.subr.bf16.mxu1 %v36570_v40  ;;  %v36581_v40 = vld [vmem:[#allocation6_spill] sm:$0xff] }
 0x91f   : > { %24674 = vmatpush3.bf16.msra.mxu1 %v36571_v39  ;;  %v36582_v39 = vld [vmem:[#allocation16_spill] sm:$0xff] }
 0x920   : > { %24676 = vmatprep.subr.bf16.mxu1 %v36572_v6  ;;  %v36583_v6 = vld [vmem:[#allocation10_spill] sm:$0xff] }
 0x923   : > { %24678 = vmatpush3.bf16.msra.mxu1 %v36573_v57  ;;  %v36586_v57 = vld [vmem:[#allocation79_spill] sm:$0xff] }
 0x924   : > { %24680 = vmatprep.subr.bf16.mxu1 %v36574_v29  ;;  %v36587_v29 = vld [vmem:[#allocation68_spill] sm:$0xff] }
 0x927   : > { %24682 = vmatpush3.bf16.msra.mxu1 %v36575_v51  ;;  %v36588_v51 = vld [vmem:[#allocation111_spill] sm:$0xff] }
 0x928   : > { %24684 = vmatprep.subr.bf16.mxu1 %v36576_v26  ;;  %v36589_v26 = vld [vmem:[#allocation20_spill] sm:$0xff] }
 0x92b   : > { %24686 = vmatpush3.bf16.msra.mxu1 %v36577_v19  ;;  %v36606_v19 = vld [vmem:[#allocation23_spill] sm:$0xff] }
 0x92c   : > { %24688 = vmatprep.subr.bf16.mxu1 %v36578_v37  ;;  %v36585_v37 = vld [vmem:[#allocation118_spill] sm:$0xff] }
 0x92f   : > { %24690 = vmatpush3.bf16.msra.mxu1 %v36579_v61  ;;  %v36631_v61 = vld [vmem:[#allocation66_spill] sm:$0xff] }
 0x930   : > { %24692 = vmatprep.subr.bf16.mxu1 %v36580_v11  ;;  %v36584_v11 = vld [vmem:[#allocation56_spill] sm:$0xff] }
 0x933   : > { %24694 = vmatpush3.bf16.msra.mxu1 %v36581_v40  ;;  %v36632_v40 = vld [vmem:[#allocation78_spill] sm:$0xff] }
 0x934   : > { %24696 = vmatprep.subr.bf16.mxu1 %v36582_v39  ;;  %v36633_v39 = vld [vmem:[#allocation103_spill] sm:$0xff] }
 0x937   : > { %24698 = vmatpush3.bf16.msra.mxu1 %v36583_v6  ;;  %v36634_v6 = vld [vmem:[#allocation123_spill] sm:$0xff] }
 0x938   : > { %24700 = vmatprep.subr.bf16.mxu1 %v36552_v8  ;;  %v36593_v8 = vld [vmem:[#allocation28_spill] sm:$0xff] }
 0x93a   : > { %18534 = vmatmul.mubr.f32.vlgmr.msra.gmra.mrb[40].mxu1 %v36464_v45 }
 0x93b   : > { %24702 = vmatpush3.bf16.msra.mxu1 %v36553_v12  ;;  %18635 = vmatprep.mubr.f32.mxu1 %v36464_v45  ;;  %v36594_v12 = vld [vmem:[#allocation17_spill] sm:$0xff] }
 0x93c   : > { %24704 = vmatprep.subr.bf16.mxu1 %v36554_v16  ;;  %v36595_v16 = vld [vmem:[#allocation77_spill] sm:$0xff] }
 0x93f   : > { %24706 = vmatpush3.bf16.msra.mxu1 %v36555_v2  ;;  %v36596_v2 = vld [vmem:[#allocation84_spill] sm:$0xff] }
 0x940   : > { %24708 = vmatprep.subr.bf16.mxu1 %v36556_v27  ;;  %v36597_v27 = vld [vmem:[#allocation29_spill] sm:$0xff] }
 0x943   : > { %24710 = vmatpush3.bf16.msra.mxu1 %v36557_v13  ;;  %v36598_v13 = vld [vmem:[#allocation53_spill] sm:$0xff] }
 0x944   : > { %24712 = vmatprep.subr.bf16.mxu1 %v36558_v54  ;;  %v36599_v54 = vld [vmem:[#allocation38_spill] sm:$0xff] }
 0x947   : > { %24714 = vmatpush3.bf16.msra.mxu1 %v36559_v15  ;;  %v36600_v15 = vld [vmem:[#allocation62_spill] sm:$0xff] }
 0x948   : > { %24716 = vmatprep.subr.bf16.mxu1 %v36560_v47  ;;  %v36601_v47 = vld [vmem:[#allocation31_spill] sm:$0xff] }
 0x94b   : > { %24718 = vmatpush3.bf16.msra.mxu1 %v36561_v43  ;;  %v36602_v43 = vld [vmem:[#allocation37_spill] sm:$0xff] }
 0x94c   : > { %24720 = vmatprep.subr.bf16.mxu1 %v36562_v18  ;;  %v36603_v18 = vld [vmem:[#allocation50_spill] sm:$0xff] }
 0x94f   : > { %24722 = vmatpush3.bf16.msra.mxu1 %v36563_v25  ;;  %v36605_v25 = vld [vmem:[#allocation8_spill] sm:$0xff] }
 0x950   : > { %24724 = vmatprep.subr.bf16.mxu1 %v36564_v38 }
 0x953   : > { %24726 = vmatpush3.bf16.msra.mxu1 %v36565_v10  ;;  %v36590_v10 = vld [vmem:[#allocation24_spill] sm:$0xff] }
 0x954   : > { %24728 = vmatprep.subr.bf16.mxu1 %v36566_v58  ;;  %v36591_v58 = vld [vmem:[#allocation105_spill] sm:$0xff] }
 0x957   : > { %24730 = vmatpush3.bf16.msra.mxu1 %v36567_v46  ;;  %v36592_v46 = vld [vmem:[#allocation89_spill] sm:$0xff] }
 0x958   : > { %24732 = vmatprep.subr.bf16.mxu1 %v36584_v11 }
 0x95a   : > { %18636 = vmatmul.mubr.f32.vlgmr.msra.gmra.mrb[42].mxu1 %v36464_v45 }
 0x95b   : > { %24734 = vmatpush3.bf16.msra.mxu1 %v36585_v37  ;;  %18769 = vmatprep.mubr.f32.mxu1 %v36403_v5 }
 0x95c   : > { %24736 = vmatprep.subr.bf16.mxu1 %v36586_v57 }
 0x95f   : > { %24738 = vmatpush3.bf16.msra.mxu1 %v36587_v29 }
 0x960   : > { %24740 = vmatprep.subr.bf16.mxu1 %v36588_v51 }
 0x963   : > { %24742 = vmatpush3.bf16.msra.mxu1 %v36589_v26 }
 0x964   : > { %24744 = vmatprep.subr.bf16.mxu1 %v36590_v10 }
 0x967   : > { %24746 = vmatpush3.bf16.msra.mxu1 %v36591_v58 }
 0x968   : > { %24748 = vmatprep.subr.bf16.mxu1 %v36592_v46 }
 0x96b   : > { %24750 = vmatpush3.bf16.msra.mxu1 %v36593_v8 }
 0x96c   : > { %24752 = vmatprep.subr.bf16.mxu1 %v36594_v12 }
 0x96f   : > { %24754 = vmatpush3.bf16.msra.mxu1 %v36595_v16 }
 0x970   : > { %24756 = vmatprep.subr.bf16.mxu1 %v36596_v2 }
 0x973   : > { %24758 = vmatpush3.bf16.msra.mxu1 %v36597_v27 }
 0x974   : > { %24760 = vmatprep.subr.bf16.mxu1 %v36598_v13 }
 0x977   : > { %24762 = vmatpush3.bf16.msra.mxu1 %v36599_v54 }
 0x978   : > { %24764 = vmatprep.subr.bf16.mxu1 %v33067_v20  ;;  %v36604_v20 = vld [vmem:[#allocation52_spill] sm:$0xff] }
 0x97a   : > { %18770 = vmatmul.mubr.f32.vlgmr.msra.gmra.mrb[44].mxu1 %v36403_v5 }
 0x97b   : > { %24766 = vmatpush3.bf16.msra.mxu1 %v33069_v36  ;;  %18999 = vmatprep.mubr.f32.mxu1 %v36464_v45 }
 0x97c   : > { %24768 = vmatprep.subr.bf16.mxu1 %v33073_v44 }
 0x97f   : > { %24770 = vmatpush3.bf16.msra.mxu1 %v33075_v24  ;;  %v36607_v24 = vpack.c.bf16 %v36485_v53, %v32885_v31  ;;  %v36611_v31 = vpack.c.bf16 %v32928_v9, %v32912_v59  ;;  %v36612_v53 = vpack.c.bf16 %v32921_v41, %v32917_v33  ;;  %v36616_v59 = vpack.c.bf16 %v32962_v50, %v32959_v62  ;;  %v36623_v50 = vld [vmem:[#allocation61_spill] sm:$0xff] }
 0x980   : > { %24772 = vmatprep.subr.bf16.mxu1 %v33115_v4  ;;  %v21451_v36 = vpop.f32.mrb[32].mxu1  ;;  %v36608_v4 = vpack.c.bf16 %v36490_v0, %v36489_v63  ;;  %v36613_v0 = vpack.c.bf16 %v32940_v35, %v32938_v32  ;;  %v36617_v41 = vpack.c.bf16 %v32983_v52, %v32981_v21  ;;  %v36618_v35 = vpack.c.bf16 %v32976_v42, %v32973_v49  ;;  %v36626_v52 = vld [vmem:[#allocation104_spill] sm:$0xff] }
 0x981   : > { %v21452_v38 = vpop.f32.mrb[33].mxu1 }
 0x982   : > { %v21453_v44 = vadd.f32 %v21452_v38, %v21451_v36  ;;  %v36640_v38 = vld [vmem:[#allocation47_spill] sm:$0xff] }
 0x983   : > { %24774 = vmatpush3.bf16.msra.mxu1 %v36600_v15  ;;  %v36635_v15 = vld [vmem:[#allocation44_spill] sm:$0xff] }
 0x984   : > { %24776 = vmatprep.subr.bf16.mxu1 %v36601_v47  ;;  %v36636_v47 = vld [vmem:[#allocation11_spill] sm:$0xff] }
 0x987   : > { %24778 = vmatpush3.bf16.msra.mxu1 %v36602_v43  ;;  %v36637_v43 = vld [vmem:[#allocation14_spill] sm:$0xff] }
 0x988   : > { %24780 = vmatprep.subr.bf16.mxu1 %v36603_v18  ;;  %v36638_v18 = vld [vmem:[#allocation30_spill] sm:$0xff] }
 0x98b   : > { %24782 = vmatpush3.bf16.msra.mxu1 %v36604_v20 }
 0x98c   : > { %24784 = vmatprep.subr.bf16.mxu1 %v36605_v25 }
 0x98f   : > { %24786 = vmatpush3.bf16.msra.mxu1 %v36606_v19  ;;  %v36641_v19 = vld [vmem:[#allocation71_spill] sm:$0xff] }
 0x990   : > { %24788 = vmatprep.subr.bf16.mxu1 %v33210_v22  ;;  %v36609_v22 = vpack.c.bf16 %v36492_v14, %v36491_v34  ;;  %v36614_v14 = vpack.c.bf16 %v32934_v56, %v32931_v3  ;;  %v36619_v3 = vpack.c.bf16 %v33014_v60, %v33007_v17  ;;  %v36620_v56 = vld [vmem:[#allocation26_spill] sm:$0xff]  ;;  %v36627_v34 = vld [vmem:[#allocation97_spill] sm:$0xff] }
 0x991   : > { %v36628_v63 = vpack.c.bf16 %v36626_v52, %v36627_v34 }
 0x993   : > { %24790 = vmatpush3.bf16.msra.mxu1 %v33214_v48  ;;  %v36629_v48 = vld [vmem:[#allocation36_spill] sm:$0xff] }
 0x994   : > { %24792 = vmatprep.subr.bf16.mxu1 %v33218_v7  ;;  %v36610_v7 = vpack.c.bf16 %v32899_v28, %v36493_v55  ;;  %v36615_v28 = vpack.c.bf16 %v32970_v30, %v32964_v23  ;;  %v36621_v23 = vld [vmem:[#allocation15_spill] sm:$0xff] }
 0x995   : > { %v36622_v62 = vpack.c.bf16 %v36620_v56, %v36621_v23  ;;  %v36624_v55 = vld [vmem:[#allocation55_spill] sm:$0xff] }
 0x996   : > { %v36625_v21 = vpack.c.bf16 %v36623_v50, %v36624_v55 }
 0x997   : > { %24794 = vmatpush3.bf16.msra.mxu1 %v33229_v1  ;;  %v36630_v1 = vld [vmem:[#allocation60_spill] sm:$0xff] }
 0x998   : > { %24796 = vmatprep.subr.bf16.mxu1 %v36607_v24  ;;  %v36642_v24 = vld [vmem:[#allocation72_spill] sm:$0xff] }
 0x99a   : > { %19000 = vmatmul.mubr.f32.vlgmr.msra.gmra.mrb[46].mxu1 %v36464_v45 }
 0x99b   : > { %24798 = vmatpush3.bf16.msra.mxu1 %v36608_v4  ;;  %19133 = vmatprep.mubr.f32.mxu1 %v36403_v5  ;;  %v36643_v4 = vld [vmem:[#allocation74_spill] sm:$0xff] }
 0x99c   : > { %24800 = vmatprep.subr.bf16.mxu1 %v36609_v22  ;;  %v36644_v22 = vld [vmem:[#allocation121_spill] sm:$0xff] }
 0x99f   : > { %24802 = vmatpush3.bf16.msra.mxu1 %v36610_v7 }
 0x9a0   : > { %24804 = vmatprep.subr.bf16.mxu1 %v36611_v31 }
 0x9a3   : > { %24806 = vmatpush3.bf16.msra.mxu1 %v36612_v53  ;;  %v21486_v33 = vpop.f32.mrb[34].mxu1 }
 0x9a4   : > { %24808 = vmatprep.subr.bf16.mxu1 %v36613_v0  ;;  %v21487_v9 = vpop.f32.mrb[35].mxu1 }
 0x9a5   : > { %v21488_v32 = vadd.f32 %v21487_v9, %v21486_v33 }
 0x9a7   : > { %24810 = vmatpush3.bf16.msra.mxu1 %v36614_v14  ;;  %v18134_v30 = vadd.f32 %v21488_v32, %v21453_v44 }
 0x9a8   : > { %24812 = vmatprep.subr.bf16.mxu1 %v36615_v28 }
 0x9ab   : > { %24814 = vmatpush3.bf16.msra.mxu1 %v36616_v59 }
 0x9ac   : > { %24816 = vmatprep.subr.bf16.mxu1 %v36617_v41 }
 0x9af   : > { %24818 = vmatpush3.bf16.msra.mxu1 %v36618_v35 }
 0x9b0   : > { %24820 = vmatprep.subr.bf16.mxu1 %v36619_v3 }
 0x9b3   : > { %24822 = vmatpush3.bf16.msra.mxu1 %v36622_v62 }
 0x9b4   : > { %24824 = vmatprep.subr.bf16.mxu1 %v36625_v21 }
 0x9b7   : > { %24826 = vmatpush3.bf16.msra.mxu1 %v36628_v63 }
 0x9b8   : > { %24828 = vmatprep.subr.bf16.mxu1 %v36584_v11 }
 0x9ba   : > { %19134 = vmatmul.mubr.f32.vlgmr.msra.gmra.mrb[48].mxu1 %v36403_v5 }
 0x9bb   : > { %24830 = vmatpush3.bf16.msra.mxu1 %v36585_v37  ;;  %19235 = vmatprep.mubr.f32.mxu1 %v36403_v5 }
 0x9bc   : > { %24832 = vmatprep.subr.bf16.mxu1 %v36586_v57 }
 0x9bf   : > { %24834 = vmatpush3.bf16.msra.mxu1 %v36587_v29 }
 0x9c0   : > { %24836 = vmatprep.subr.bf16.mxu1 %v36588_v51 }
 0x9c3   : > { %24838 = vmatpush3.bf16.msra.mxu1 %v36589_v26 }
 0x9c4   : > { %24840 = vmatprep.subr.bf16.mxu1 %v36590_v10 }
 0x9c7   : > { %24842 = vmatpush3.bf16.msra.mxu1 %v36591_v58 }
 0x9c8   : > { %24844 = vmatprep.subr.bf16.mxu1 %v36592_v46 }
 0x9cb   : > { %24846 = vmatpush3.bf16.msra.mxu1 %v36593_v8 }
 0x9cc   : > { %24848 = vmatprep.subr.bf16.mxu1 %v36594_v12 }
 0x9cd   : > { %v21521_v42 = vpop.f32.mrb[36].mxu1 }
 0x9ce   : > { %v21522_v60 = vpop.f32.mrb[37].mxu1 }
 0x9cf   : > { %v21523_v49 = vadd.f32 %v21522_v60, %v21521_v42  ;;  %24850 = vmatpush3.bf16.msra.mxu1 %v36595_v16 }
 0x9d0   : > { %24852 = vmatprep.subr.bf16.mxu1 %v36596_v2 }
 0x9d1   : > { %v18268_v17 = vadd.f32 %v21523_v49, %v18134_v30 }
 0x9d3   : > { %24854 = vmatpush3.bf16.msra.mxu1 %v36597_v27 }
 0x9d4   : > { %24856 = vmatprep.subr.bf16.mxu1 %v36598_v13 }
 0x9d7   : > { %24858 = vmatpush3.bf16.msra.mxu1 %v36599_v54 }
 0x9d8   : > { %24860 = vmatprep.subr.bf16.mxu1 %v36629_v48 }
 0x9da   : > { %19236 = vmatmul.mubr.f32.vlgmr.msra.gmra.mrb[50].mxu1 %v36403_v5  ;;  %v36639_v5 = vld [vmem:[#allocation40_spill] sm:$0xff] }
 0x9db   : > { %24862 = vmatpush3.bf16.msra.mxu1 %v36630_v1  ;;  %19401 = vmatprep.mubr.f32.mxu1 %v36464_v45 }
 0x9dc   : > { %24864 = vmatprep.subr.bf16.mxu1 %v36631_v61 }
 0x9df   : > { %24866 = vmatpush3.bf16.msra.mxu1 %v36632_v40 }
 0x9e0   : > { %24868 = vmatprep.subr.bf16.mxu1 %v36633_v39 }
 0x9e3   : > { %24870 = vmatpush3.bf16.msra.mxu1 %v36634_v6 }
 0x9e4   : > { %24872 = vmatprep.subr.bf16.mxu1 %v36635_v15 }
 0x9e7   : > { %24874 = vmatpush3.bf16.msra.mxu1 %v36636_v47 }
 0x9e8   : > { %24876 = vmatprep.subr.bf16.mxu1 %v36637_v43 }
 0x9eb   : > { %24878 = vmatpush3.bf16.msra.mxu1 %v36638_v18 }
 0x9ec   : > { %24880 = vmatprep.subr.bf16.mxu1 %v36639_v5 }
 0x9ed   : > { %v21556_v20 = vpop.f32.mrb[38].mxu1 }
 0x9ee   : > { %v21557_v25 = vpop.f32.mrb[39].mxu1 }
 0x9ef   : > { %v21558_v36 = vadd.f32 %v21557_v25, %v21556_v20  ;;  %24882 = vmatpush3.bf16.msra.mxu1 %v36640_v38 }
 0x9f0   : > { %24884 = vmatprep.subr.bf16.mxu1 %v36641_v19 }
 0x9f1   : > { %v18370_v44 = vadd.f32 %v21558_v36, %v18268_v17 }
 0x9f3   : > { %24886 = vmatpush3.bf16.msra.mxu1 %v36642_v24 }
 0x9f4   : > { %24888 = vmatprep.subr.bf16.mxu1 %v36643_v4 }
 0x9f7   : > { %24890 = vmatpush3.bf16.msra.mxu1 %v36644_v22 }
 0x9f8   : > { %24892 = vmatprep.subr.bf16.mxu1 %v36584_v11 }
 0x9fa   : > { %19402 = vmatmul.mubr.f32.vlgmr.msra.gmra.mrb[52].mxu1 %v36464_v45 }
 0x9fb   : > { %24894 = vmatpush3.bf16.msra.mxu1 %v36585_v37  ;;  %19503 = vmatprep.mubr.f32.mxu1 %v36464_v45 }
 0x9fc   : > { %24896 = vmatprep.subr.bf16.mxu1 %v36586_v57 }
 0x9ff   : > { %24898 = vmatpush3.bf16.msra.mxu1 %v36587_v29 }
 0xa00   : > { %24900 = vmatprep.subr.bf16.mxu1 %v36588_v51 }
 0xa03   : > { %24902 = vmatpush3.bf16.msra.mxu1 %v36589_v26 }
 0xa04   : > { %24904 = vmatprep.subr.bf16.mxu1 %v36590_v10 }
 0xa07   : > { %24906 = vmatpush3.bf16.msra.mxu1 %v36591_v58 }
 0xa08   : > { %24908 = vmatprep.subr.bf16.mxu1 %v36592_v46 }
 0xa0b   : > { %24910 = vmatpush3.bf16.msra.mxu1 %v36593_v8 }
 0xa0c   : > { %24912 = vmatprep.subr.bf16.mxu1 %v36594_v12 }
 0xa0d   : > { %v21591_v11 = vpop.f32.mrb[40].mxu1 }
 0xa0e   : > { %v21592_v37 = vpop.f32.mrb[41].mxu1 }
 0xa0f   : > { %v21593_v7 = vadd.f32 %v21592_v37, %v21591_v11  ;;  %24914 = vmatpush3.bf16.msra.mxu1 %v36595_v16 }
 0xa10   : > { %24916 = vmatprep.subr.bf16.mxu1 %v36596_v2 }
 0xa11   : > { %v18536_v57 = vadd.f32 %v21593_v7, %v18370_v44 }
 0xa13   : > { %24918 = vmatpush3.bf16.msra.mxu1 %v36597_v27 }
 0xa14   : > { %24920 = vmatprep.subr.bf16.mxu1 %v36598_v13 }
 0xa17   : > { %24922 = vmatpush3.bf16.msra.mxu1 %v36599_v54 }
 0xa1a   : > { %19504 = vmatmul.mubr.f32.vlgmr.msra.gmra.mrb[54].mxu1 %v36464_v45 }
 0xa2d   : > { %v21626_v29 = vpop.f32.mrb[42].mxu1 }
 0xa2e   : > { %v21627_v51 = vpop.f32.mrb[43].mxu1 }
 0xa2f   : > { %v21628_v26 = vadd.f32 %v21627_v51, %v21626_v29 }
 0xa31   : > { %v18638_v10 = vadd.f32 %v21628_v26, %v18536_v57 }
 0xa4d   : > { %v21661_v58 = vpop.f32.mrb[44].mxu1 }
 0xa4e   : > { %v21662_v46 = vpop.f32.mrb[45].mxu1 }
 0xa4f   : > { %v21663_v8 = vadd.f32 %v21662_v46, %v21661_v58 }
 0xa6d   : > { %v21696_v12 = vpop.f32.mrb[46].mxu1 }
 0xa6e   : > { %v21697_v16 = vpop.f32.mrb[47].mxu1 }
 0xa6f   : > { %v21698_v2 = vadd.f32 %v21697_v16, %v21696_v12 }
 0xa71   : > { %v19002_v31 = vadd.f32 %v21698_v2, %v21663_v8 }
 0xa8d   : > { %v21731_v53 = vpop.f32.mrb[48].mxu1 }
 0xa8e   : > { %v21732_v27 = vpop.f32.mrb[49].mxu1 }
 0xa8f   : > { %v21733_v0 = vadd.f32 %v21732_v27, %v21731_v53 }
 0xa91   : > { %v19136_v13 = vadd.f32 %v21733_v0, %v19002_v31 }
 0xaad   : > { %v21766_v54 = vpop.f32.mrb[50].mxu1 }
 0xaae   : > { %v21767_v14 = vpop.f32.mrb[51].mxu1 }
 0xaaf   : > { %v21768_v45 = vadd.f32 %v21767_v14, %v21766_v54 }
 0xab1   : > { %v19238_v28 = vadd.f32 %v21768_v45, %v19136_v13 }
 0xacd   : > { %v21801_v59 = vpop.f32.mrb[52].mxu1 }
 0xace   : > { %v21802_v41 = vpop.f32.mrb[53].mxu1 }
 0xacf   : > { %v21803_v33 = vadd.f32 %v21802_v41, %v21801_v59 }
 0xad1   : > { %v19404_v9 = vadd.f32 %v21803_v33, %v19238_v28 }
 0xaed   : > { %v21836_v32 = vpop.f32.mrb[54].mxu1 }
 0xaee   : > { %v21837_v35 = vpop.f32.mrb[55].mxu1 }
 0xaef   : > { %v21838_v3 = vadd.f32 %v21837_v35, %v21836_v32 }
 0xaf1   : > { %v19506_v30 = vadd.f32 %v21838_v3, %v19404_v9 }
 0xaf3   : > { %v19510_v56 = vrot.slane %v19506_v30, 7 }
 0xaf5   : > { %v19513_v23 = vsel %vm19512_vm5, %v18638_v10, %v19510_v56 }
 0xaf6   : > { %19515 = vst.msk [vmem:[%s225_s14] sm:$0x3] %vm19514_vm6, %v19513_v23 }
 0xaf7   : > { %26673 = shalt.err (!%p26670_p3)
}
 0xaf8   : > { %s26674_s30 = scalar_lea.hbm %s33549_s3, 32  ;;  %s26678_s10 = scalar_lea.hbm %s33596_s5, 64 }
 0xaf9   : > { %p26675_p4 = scmp.ne.s32.totalorder %s33549_s3, %s26674_s30  ;;  %p26679_p9 = scmp.lt.u32.totalorder %s33549_s3, %s33596_s5 }
 0xafa   : > { %p26680_p10 = scmp.lt.u32.totalorder %s26678_s10, %s26674_s30  ;;  %p26682_p12 = scmp.lt.u32.totalorder %s26674_s30, %s33549_s3 }
 0xafb   : > { %p26676_p7 = pnand %p26675_p4, %p26795_p5 }
 0xafc   : > { %p26681_p11 = por %p26680_p10, %p26679_p9 }
 0xafd   : > { %p26677_p8 = pneg %p26676_p7 }
 0xafe   : > { %p26683_p13 = por %p26682_p12, %p26681_p11 }
 0xb00   : > { %p26684_p0 = pnand %p26683_p13, %p26677_p8 }
 0xb02   : > { %26687 = shalt.err (!%p26684_p0)
}
 0xb03   : > { %26619 = dma.vmem_to_hbm [thread:$0]  (%p26795_p5), %s33551_s15, 32, %s33549_s3, %s19522_s23  }
 0xb04 PF: > { %p26625_p1 = scmp.ge.s32.totalorder %s26722_s21, 2  ;;  %s19558_s7 = sand.u32 1, %s26710_s18  }
 0xb05   : > { %s19559_s8 = scalar_lea.sflag [#allocation4], %s19558_s7 }
 0xb06   : > { %p26622_p2 = pnand %p26625_p1, %p26799_p6 }
 0xb08   : > { %26705 = dma.done.wait (!%p26622_p2), %s19559_s8, 32  }
 0xb09   : > { %26707 = vsyncadd (!%p26622_p2), %s19559_s8, 4294967264  ;;  %p16_p3 = scmp.ge.s32.totalorder %s26782_s22, 4   ;;  %s36645_s18 = smov %s26714_s19 }
 0xb0a   : > { %s36646_s19 = smov %s26718_s20  ;;  %s36647_s20 = smov %s26793_s25 }
 0xb0b   : > { %s36648_s21 = smov %s26782_s22  ;;  %18 = sbr.rel (!%p16_p3) target bundleno = 3 (0x3), region = 86 }
 0xb12   :  { %19564 = vsyncpa [#allocation4], 1 }
 0xb13   :  { %19566 = vsyncpa [#allocation4 + $0x1], 1 }

</bundles_post_ra>
